<compile_context>
chip_gen: v7x
topology: tpu7x:2x2x1
jax: 0.10.0
libtpu: 0.0.40
codegen_flags: <defaults>
</compile_context>

<pallas_src>
import functools

import numpy as np
import jax
import jax.numpy as jnp
from jax import lax
from jax.experimental import pallas as pl
from jax.experimental.pallas import tpu as pltpu


B_TILE = 8   # images per grid step; multiple of 8 keeps every slice sublane-aligned


# ---------------------------------------------------------------------------
# Shape bookkeeping (with pooling-floor back-propagation of the "used" extents)
# ---------------------------------------------------------------------------
def _tnn_dims(input_shape, w1_shape, w2_shape, dout):
    cin, h, w = input_shape
    c1, _, kh1, kw1 = w1_shape
    c2, _, kh2, kw2 = w2_shape
    ho1, wo1 = h - kh1 + 1, w - kw1 + 1          # conv1 valid output
    hp1, wp1 = ho1 // 2, wo1 // 2                # pool1 (floor mode)
    ho2, wo2 = hp1 - kh2 + 1, wp1 - kw2 + 1      # conv2 valid output
    hp2, wp2 = ho2 // 2, wo2 // 2                # pool2 (floor mode)
    assert hp2 >= 1 and wp2 >= 1, "input too small for the TNN stack"
    # Only compute what the final output actually reads:
    ho2u, wo2u = 2 * hp2, 2 * wp2                # conv2 rows/cols pool2 reads
    hp1u, wp1u = ho2u + kh2 - 1, wo2u + kw2 - 1  # pool1 rows/cols conv2 reads
    ho1u, wo1u = 2 * hp1u, 2 * wp1u              # conv1 rows/cols pool1 reads
    h1u, w1u = ho1u + kh1 - 1, wo1u + kw1 - 1    # input rows/cols conv1 reads
    kpad = ((w1u * cin + 127) // 128) * 128      # lane-pad conv1 contraction dim
    return dict(cin=cin, h=h, w=w, h1u=h1u, w1u=w1u, kpad=kpad,
                c1=c1, kh1=kh1, kw1=kw1, ho1u=ho1u, wo1u=wo1u,
                hp1u=hp1u, wp1u=wp1u,
                c2=c2, kh2=kh2, kw2=kw2, ho2u=ho2u, wo2u=wo2u,
                hp2=hp2, wp2=wp2, dout=dout)


def _banded_stacked_weight(w_oihw, in_w, out_w, dtype, k_pad=None):
    """K-stacked banded conv weight with parity-ordered output columns.

    Rows: i*k_pad + (j*cin + c)  (kernel row i, input col j, input chan c).
    Cols: (wo%2)*(out_w//2)*cout + (wo//2)*cout + o   (output col wo, chan o).
    Entry = w[o, c, i, j - wo] when 0 <= j - wo < kw, else 0.  With the
    per-image input laid out as X[h, j*cin + c] and the kernel-row windows of
    X stacked along K, the valid convolution is a single matmul.
    """
    w = np.asarray(w_oihw, np.float32)
    cout, cin, kh, kw = w.shape
    kin = in_w * cin
    k_pad = kin if k_pad is None else k_pad
    assert k_pad >= kin and out_w % 2 == 0 and in_w == out_w + kw - 1
    half = (out_w // 2) * cout
    band = np.zeros((kh, k_pad, out_w * cout), np.float32)
    for i in range(kh):
        for wo in range(out_w):
            col0 = (wo % 2) * half + (wo // 2) * cout
            for dj in range(kw):
                j = wo + dj
                band[i, j * cin:(j + 1) * cin, col0:col0 + cout] = w[:, :, i, dj].T
    return jnp.asarray(band.reshape(kh * k_pad, out_w * cout), dtype=dtype)


def prepare_tnn_params(params, input_shape, compute_dtype=jnp.bfloat16):
    """One-time (host) weight pre-transformation; not part of the per-forward path."""
    d = _tnn_dims(input_shape, params["w1"].shape, params["w2"].shape,
                  params["bl"].shape[0])
    assert d["hp2"] * d["wp2"] * d["c2"] == params["wl"].shape[1]
    w1s = _banded_stacked_weight(params["w1"], d["w1u"], d["wo1u"],
                                 compute_dtype, k_pad=d["kpad"])
    w2s = _banded_stacked_weight(params["w2"], d["wp1u"], d["wo2u"], compute_dtype)
    b1t = jnp.asarray(np.tile(np.asarray(params["b1"], np.float32), d["wo1u"])[None, :])
    b2t = jnp.asarray(np.tile(np.asarray(params["b2"], np.float32), d["wo2u"])[None, :])
    # PyTorch flattens (C,H,W); the kernel flattens (H,W,C) -> permute once here.
    wl = np.asarray(params["wl"], np.float32).reshape(d["dout"], d["c2"],
                                                      d["hp2"], d["wp2"])
    wl = np.transpose(wl, (2, 3, 1, 0)).reshape(d["hp2"] * d["wp2"] * d["c2"], d["dout"])
    prep = dict(w1s=w1s, b1t=b1t, w2s=w2s, b2t=b2t,
                wl=jnp.asarray(wl, dtype=compute_dtype),
                bl=jnp.asarray(np.asarray(params["bl"], np.float32)[None, :]))
    return d, prep


# ---------------------------------------------------------------------------
# Fused Pallas kernel: conv1+ReLU+pool1+conv2+ReLU+pool2+linear per batch tile
# ---------------------------------------------------------------------------
def _tnn_fused_kernel(x_ref, w1_ref, b1_ref, w2_ref, b2_ref, wl_ref, bl_ref,
                      o_ref, lhs1_ref, acc1_ref, lhs2_ref, *, d, bt):
    cdt = w1_ref.dtype                               # MXU compute dtype (bf16)
    kpad, c1, c2 = d["kpad"], d["c1"], d["c2"]
    ho1u, ho2u, kh2 = d["ho1u"], d["ho2u"], d["kh2"]
    half1 = d["wp1u"] * c1       # pool1 parity split width == conv2 per-row K block
    half2 = d["wp2"] * c2        # pool2 parity split width

    # ---- conv1 LHS: stack the kh1 row-windows along K --------------------
    # x block rows are (row-major, image-minor):  row h of image b at h*bt + b
    # lhs1[r*bt + b, i*kpad + k] = x[image b, row i + r, k]
    for i in range(d["kh1"]):
        lhs1_ref[:, i * kpad:(i + 1) * kpad] = x_ref[0, i * bt:i * bt + ho1u * bt, :]

    # ---- conv1: ONE MXU matmul, f32 result into a VMEM scratch -----------
    acc1_ref[...] = jnp.dot(lhs1_ref[...], w1_ref[...],
                            preferred_element_type=jnp.float32)

    # ---- bias + ReLU + 2x2/2 max-pool (floor).  Output columns are
    #      parity-ordered (even w first, odd w second), so the width pool is
    #      a single lane-half maximum.  Pooled rows are written straight into
    #      the K-stacked conv2 LHS: lhs2[r*bt+b, i*half1 + :] = p1 row (i+r).
    b1 = b1_ref[...]
    for ph in range(d["hp1u"]):
        blk = acc1_ref[2 * ph * bt:(2 * ph + 2) * bt, :]          # rows 2ph, 2ph+1
        blk = jnp.maximum(blk + b1, 0.0)
        rmax = jnp.maximum(blk[:bt, :], blk[bt:, :])              # row pair max
        pblk = jnp.maximum(rmax[:, :half1], rmax[:, half1:])      # width pair max
        pblk = pblk.astype(cdt)
        for r in range(ho2u):
            i = ph - r
            if 0 <= i < kh2:
                lhs2_ref[r * bt:(r + 1) * bt, i * half1:(i + 1) * half1] = pblk

    # ---- conv2: ONE MXU matmul + bias + ReLU ------------------------------
    acc2 = jnp.dot(lhs2_ref[...], w2_ref[...], preferred_element_type=jnp.float32)
    acc2 = jnp.maximum(acc2 + b2_ref[...], 0.0)                   # (ho2u*bt, wo2u*c2)

    # ---- 2x2/2 max-pool -> flattened (h, w, c) features per image ---------
    feats = []
    for ph in range(d["hp2"]):
        blk = acc2[2 * ph * bt:(2 * ph + 2) * bt, :]
        rmax = jnp.maximum(blk[:bt, :], blk[bt:, :])
        feats.append(jnp.maximum(rmax[:, :half2], rmax[:, half2:]))
    p2 = feats[0] if len(feats) == 1 else jnp.concatenate(feats, axis=1)

    # ---- linear ------------------------------------------------------------
    out = jnp.dot(p2.astype(cdt), wl_ref[...], preferred_element_type=jnp.float32)
    o_ref[...] = out + bl_ref[...]                                # (bt, dout) store


def tnn_forward(x_nchw, prep, dims, b_tile=B_TILE):
    d = dims
    n = x_nchw.shape[0]
    nt = pl.cdiv(n, b_tile)
    n_pad = nt * b_tile
    h1u, w1u, cin, kpad = d["h1u"], d["w1u"], d["cin"], d["kpad"]

    # Per-forward host glue (tiny): crop to the used window, NCHW -> (H, N, W*Cin),
    # zero-pad lanes to kpad and batch to a multiple of b_tile, then group rows per
    # batch tile with (row-major, image-minor) ordering.
    xc = x_nchw[:, :, :h1u, :w1u].astype(jnp.bfloat16)
    xr = jnp.transpose(xc, (2, 0, 3, 1)).reshape(h1u, n, w1u * cin)
    xr = jnp.pad(xr, ((0, 0), (0, n_pad - n), (0, kpad - w1u * cin)))
    xt = xr.reshape(h1u, nt, b_tile, kpad).transpose(1, 0, 2, 3)
    xt = xt.reshape(nt, h1u * b_tile, kpad)

    kern = functools.partial(_tnn_fused_kernel, d=d, bt=b_tile)
    out = pl.pallas_call(
        kern,
        out_shape=jax.ShapeDtypeStruct((n_pad, d["dout"]), jnp.float32),
        grid=(nt,),
        in_specs=[
            pl.BlockSpec((1, h1u * b_tile, kpad), lambda t: (t, 0, 0)),
            pl.BlockSpec(prep["w1s"].shape, lambda t: (0, 0)),
            pl.BlockSpec(prep["b1t"].shape, lambda t: (0, 0)),
            pl.BlockSpec(prep["w2s"].shape, lambda t: (0, 0)),
            pl.BlockSpec(prep["b2t"].shape, lambda t: (0, 0)),
            pl.BlockSpec(prep["wl"].shape, lambda t: (0, 0)),
            pl.BlockSpec(prep["bl"].shape, lambda t: (0, 0)),
        ],
        out_specs=pl.BlockSpec((b_tile, d["dout"]), lambda t: (t, 0)),
        scratch_shapes=[
            pltpu.VMEM((d["ho1u"] * b_tile, d["kh1"] * kpad), jnp.bfloat16),        # lhs1
            pltpu.VMEM((d["ho1u"] * b_tile, d["wo1u"] * d["c1"]), jnp.float32),     # acc1
            pltpu.VMEM((d["ho2u"] * b_tile, d["kh2"] * d["wp1u"] * d["c1"]),
                       jnp.bfloat16),                                               # lhs2
        ],
        compiler_params=pltpu.CompilerParams(
            dimension_semantics=("parallel",),      # batch tiles across TCs (v7x)
            vmem_limit_bytes=40 * 1024 * 1024,      # weights stay VMEM-resident
        ),
    )(xt, prep["w1s"], prep["b1t"], prep["w2s"], prep["b2t"], prep["wl"], prep["bl"])
    return out[:n]


# ---------------------------------------------------------------------------
# Pure-JAX reference (correctness self-check)
# ---------------------------------------------------------------------------
def tnn_reference(x, params):
    dn = ("NCHW", "OIHW", "NCHW")
    y = lax.conv_general_dilated(x, params["w1"], (1, 1), "VALID", dimension_numbers=dn)
    y = jnp.maximum(y + params["b1"][None, :, None, None], 0.0)
    y = lax.reduce_window(y, -jnp.inf, lax.max, (1, 1, 2, 2), (1, 1, 2, 2), "VALID")
    y = lax.conv_general_dilated(y, params["w2"], (1, 1), "VALID", dimension_numbers=dn)
    y = jnp.maximum(y + params["b2"][None, :, None, None], 0.0)
    y = lax.reduce_window(y, -jnp.inf, lax.max, (1, 1, 2, 2), (1, 1, 2, 2), "VALID")
    flat = y.reshape(y.shape[0], -1)
    return flat @ params["wl"].T + params["bl"]


# ---------------------------------------------------------------------------
if __name__ == "__main__":
    key = jax.random.PRNGKey(0)
    kx, k1, k2, k3, k4, k5, k6 = jax.random.split(key, 7)

    # input_shape = (4, 20, 20): spatial >= 18 is required so both valid convs
    # and both 2x2 pools survive (20 -> 14 -> 7 -> 3 -> 1).
    # N=16 with B_TILE=8 -> grid length 2 (keeps both v7x TensorCores busy).
    N, C_in, H, W = 16, 4, 20, 20
    output_size = 128
    x = jax.random.normal(kx, (N, C_in, H, W), dtype=jnp.float32)

    # Deterministic synthetic parameters (shapes follow the PyTorch module).
    params = {
        "w1": 0.05 * jax.random.normal(k1, (128, C_in, 7, 7), dtype=jnp.float32),
        "b1": 0.05 * jax.random.normal(k2, (128,), dtype=jnp.float32),
        "w2": 0.02 * jax.random.normal(k3, (256, 128, 5, 5), dtype=jnp.float32),
        "b2": 0.02 * jax.random.normal(k4, (256,), dtype=jnp.float32),
        # CNN_outshape = 256 * 1 * 1 = 256 for this input_shape
        "wl": 0.05 * jax.random.normal(k5, (output_size, 256), dtype=jnp.float32),
        "bl": 0.05 * jax.random.normal(k6, (output_size,), dtype=jnp.float32),
    }

    # One-time weight pre-transformation (K-stacked banded bf16 weights, tiled biases).
    dims, prep = prepare_tnn_params(params, (C_in, H, W), compute_dtype=jnp.bfloat16)

    fwd = jax.jit(functools.partial(tnn_forward, dims=dims, b_tile=B_TILE))
    out = jax.block_until_ready(fwd(x, prep=prep))
    assert out.shape == (N, output_size), out.shape

    ref = jax.block_until_ready(tnn_reference(x, params))
    max_err = float(jnp.max(jnp.abs(out - ref)))
    # bf16 matmul operands with f32 accumulation -> slightly looser tolerance
    # than a pure-f32 comparison (observed error ~1e-3 at these scales).
    assert jnp.allclose(out, ref, atol=3e-2, rtol=3e-2), max_err

    print("KERNEL_OK")
</pallas_src>

<mosaic_0001>
module attributes {stable_mosaic.version = 11 : i64} {
  func.func @_tnn_fused_kernel(%arg0: i32, %arg1: memref<1x144x128xbf16, #tpu.memory_space<vmem>>, %arg2: memref<896x1536xbf16, #tpu.memory_space<vmem>>, %arg3: memref<1x1536xf32, #tpu.memory_space<vmem>>, %arg4: memref<3840x512xbf16, #tpu.memory_space<vmem>>, %arg5: memref<1x512xf32, #tpu.memory_space<vmem>>, %arg6: memref<256x128xbf16, #tpu.memory_space<vmem>>, %arg7: memref<1x128xf32, #tpu.memory_space<vmem>>, %arg8: memref<8x128xf32, #tpu.memory_space<vmem>>, %arg9: memref<96x896xbf16, #tpu.memory_space<vmem>>, %arg10: memref<96x1536xf32, #tpu.memory_space<vmem>>, %arg11: memref<16x3840xbf16, #tpu.memory_space<vmem>>) attributes {dimension_semantics = [#tpu.dimension_semantics<parallel>], iteration_bounds = array<i64: 2>, scalar_prefetch = 0 : i64, scratch_operands = 3 : i64, tpu.core_type = #tpu.core_type<tc>, window_params = [{transform_indices = @transform_0, window_bounds = array<i64: 1, 144, 128>}, {pipeline_mode = #tpu.pipeline_mode<synchronous>, transform_indices = @transform_1, window_bounds = array<i64: 896, 1536>}, {pipeline_mode = #tpu.pipeline_mode<synchronous>, transform_indices = @transform_2, window_bounds = array<i64: 1, 1536>}, {pipeline_mode = #tpu.pipeline_mode<synchronous>, transform_indices = @transform_3, window_bounds = array<i64: 3840, 512>}, {pipeline_mode = #tpu.pipeline_mode<synchronous>, transform_indices = @transform_4, window_bounds = array<i64: 1, 512>}, {pipeline_mode = #tpu.pipeline_mode<synchronous>, transform_indices = @transform_5, window_bounds = array<i64: 256, 128>}, {pipeline_mode = #tpu.pipeline_mode<synchronous>, transform_indices = @transform_6, window_bounds = array<i64: 1, 128>}, {transform_indices = @transform_7, window_bounds = array<i64: 8, 128>}]} {
    %c0 = arith.constant 0 : index
    %c0_0 = arith.constant 0 : index
    %c0_1 = arith.constant 0 : index
    %0 = vector.load %arg1[%c0, %c0_0, %c0_1] : memref<1x144x128xbf16, #tpu.memory_space<vmem>>, vector<1x96x128xbf16>
    %1 = vector.shape_cast %0 : vector<1x96x128xbf16> to vector<96x128xbf16>
    %c0_2 = arith.constant 0 : index
    %c0_3 = arith.constant 0 : index
    %2 = vector.load %arg9[%c0_2, %c0_3] : memref<96x896xbf16, #tpu.memory_space<vmem>>, vector<96x128xbf16>
    tpu.vector_store %arg9[%c0_2, %c0_3], %1 {strides = array<i32>} : memref<96x896xbf16, #tpu.memory_space<vmem>>, vector<96x128xbf16>,
    %c0_4 = arith.constant 0 : index
    %c8 = arith.constant 8 : index
    %c0_5 = arith.constant 0 : index
    %3 = vector.load %arg1[%c0_4, %c8, %c0_5] : memref<1x144x128xbf16, #tpu.memory_space<vmem>>, vector<1x96x128xbf16>
    %4 = vector.shape_cast %3 : vector<1x96x128xbf16> to vector<96x128xbf16>
    %c0_6 = arith.constant 0 : index
    %c128 = arith.constant 128 : index
    %5 = vector.load %arg9[%c0_6, %c128] : memref<96x896xbf16, #tpu.memory_space<vmem>>, vector<96x128xbf16>
    tpu.vector_store %arg9[%c0_6, %c128], %4 {strides = array<i32>} : memref<96x896xbf16, #tpu.memory_space<vmem>>, vector<96x128xbf16>,
    %c0_7 = arith.constant 0 : index
    %c16 = arith.constant 16 : index
    %c0_8 = arith.constant 0 : index
    %6 = vector.load %arg1[%c0_7, %c16, %c0_8] : memref<1x144x128xbf16, #tpu.memory_space<vmem>>, vector<1x96x128xbf16>
    %7 = vector.shape_cast %6 : vector<1x96x128xbf16> to vector<96x128xbf16>
    %c0_9 = arith.constant 0 : index
    %c256 = arith.constant 256 : index
    %8 = vector.load %arg9[%c0_9, %c256] : memref<96x896xbf16, #tpu.memory_space<vmem>>, vector<96x128xbf16>
    tpu.vector_store %arg9[%c0_9, %c256], %7 {strides = array<i32>} : memref<96x896xbf16, #tpu.memory_space<vmem>>, vector<96x128xbf16>,
    %c0_10 = arith.constant 0 : index
    %c24 = arith.constant 24 : index
    %c0_11 = arith.constant 0 : index
    %9 = vector.load %arg1[%c0_10, %c24, %c0_11] : memref<1x144x128xbf16, #tpu.memory_space<vmem>>, vector<1x96x128xbf16>
    %10 = vector.shape_cast %9 : vector<1x96x128xbf16> to vector<96x128xbf16>
    %c0_12 = arith.constant 0 : index
    %c384 = arith.constant 384 : index
    %11 = vector.load %arg9[%c0_12, %c384] : memref<96x896xbf16, #tpu.memory_space<vmem>>, vector<96x128xbf16>
    tpu.vector_store %arg9[%c0_12, %c384], %10 {strides = array<i32>} : memref<96x896xbf16, #tpu.memory_space<vmem>>, vector<96x128xbf16>,
    %c0_13 = arith.constant 0 : index
    %c32 = arith.constant 32 : index
    %c0_14 = arith.constant 0 : index
    %12 = vector.load %arg1[%c0_13, %c32, %c0_14] : memref<1x144x128xbf16, #tpu.memory_space<vmem>>, vector<1x96x128xbf16>
    %13 = vector.shape_cast %12 : vector<1x96x128xbf16> to vector<96x128xbf16>
    %c0_15 = arith.constant 0 : index
    %c512 = arith.constant 512 : index
    %14 = vector.load %arg9[%c0_15, %c512] : memref<96x896xbf16, #tpu.memory_space<vmem>>, vector<96x128xbf16>
    tpu.vector_store %arg9[%c0_15, %c512], %13 {strides = array<i32>} : memref<96x896xbf16, #tpu.memory_space<vmem>>, vector<96x128xbf16>,
    %c0_16 = arith.constant 0 : index
    %c40 = arith.constant 40 : index
    %c0_17 = arith.constant 0 : index
    %15 = vector.load %arg1[%c0_16, %c40, %c0_17] : memref<1x144x128xbf16, #tpu.memory_space<vmem>>, vector<1x96x128xbf16>
    %16 = vector.shape_cast %15 : vector<1x96x128xbf16> to vector<96x128xbf16>
    %c0_18 = arith.constant 0 : index
    %c640 = arith.constant 640 : index
    %17 = vector.load %arg9[%c0_18, %c640] : memref<96x896xbf16, #tpu.memory_space<vmem>>, vector<96x128xbf16>
    tpu.vector_store %arg9[%c0_18, %c640], %16 {strides = array<i32>} : memref<96x896xbf16, #tpu.memory_space<vmem>>, vector<96x128xbf16>,
    %c0_19 = arith.constant 0 : index
    %c48 = arith.constant 48 : index
    %c0_20 = arith.constant 0 : index
    %18 = vector.load %arg1[%c0_19, %c48, %c0_20] : memref<1x144x128xbf16, #tpu.memory_space<vmem>>, vector<1x96x128xbf16>
    %19 = vector.shape_cast %18 : vector<1x96x128xbf16> to vector<96x128xbf16>
    %c0_21 = arith.constant 0 : index
    %c768 = arith.constant 768 : index
    %20 = vector.load %arg9[%c0_21, %c768] : memref<96x896xbf16, #tpu.memory_space<vmem>>, vector<96x128xbf16>
    tpu.vector_store %arg9[%c0_21, %c768], %19 {strides = array<i32>} : memref<96x896xbf16, #tpu.memory_space<vmem>>, vector<96x128xbf16>,
    %c0_22 = arith.constant 0 : index
    %c0_23 = arith.constant 0 : index
    %21 = vector.load %arg9[%c0_22, %c0_23] : memref<96x896xbf16, #tpu.memory_space<vmem>>, vector<96x896xbf16>
    %c0_24 = arith.constant 0 : index
    %c0_25 = arith.constant 0 : index
    %22 = vector.load %arg2[%c0_24, %c0_25] : memref<896x1536xbf16, #tpu.memory_space<vmem>>, vector<896x1536xbf16>
    %cst = arith.constant dense<0.000000e+00> : vector<96x1536xf32>
    %23 = tpu.matmul %21, %22, %cst {dimension_numbers = #tpu.dot_dimension_numbers<[1], [0], [0], [1], [0, 0, 1, 1], [], []>} : vector<96x896xbf16>, vector<896x1536xbf16>, vector<96x1536xf32> -> vector<96x1536xf32>
    %c0_26 = arith.constant 0 : index
    %c0_27 = arith.constant 0 : index
    %24 = vector.load %arg10[%c0_26, %c0_27] : memref<96x1536xf32, #tpu.memory_space<vmem>>, vector<96x1536xf32>
    tpu.vector_store %arg10[%c0_26, %c0_27], %23 {strides = array<i32>} : memref<96x1536xf32, #tpu.memory_space<vmem>>, vector<96x1536xf32>,
    %c0_28 = arith.constant 0 : index
    %c0_29 = arith.constant 0 : index
    %25 = vector.load %arg3[%c0_28, %c0_29] : memref<1x1536xf32, #tpu.memory_space<vmem>>, vector<1x1536xf32>
    %c0_30 = arith.constant 0 : index
    %c0_31 = arith.constant 0 : index
    %26 = vector.load %arg10[%c0_30, %c0_31] : memref<96x1536xf32, #tpu.memory_space<vmem>>, vector<16x1536xf32>
    %27 = vector.broadcast %25 : vector<1x1536xf32> to vector<16x1536xf32>
    %28 = arith.addf %26, %27 : vector<16x1536xf32>
    %cst_32 = arith.constant 0.000000e+00 : f32
    %29 = vector.broadcast %cst_32 : f32 to vector<16x1536xf32>
    %30 = arith.maximumf %28, %29 : vector<16x1536xf32>
    %31 = vector.extract_strided_slice %30 {offsets = [0, 0], sizes = [8, 1536], strides = [1, 1]} : vector<16x1536xf32> to vector<8x1536xf32>
    %32 = vector.extract_strided_slice %30 {offsets = [8, 0], sizes = [8, 1536], strides = [1, 1]} : vector<16x1536xf32> to vector<8x1536xf32>
    %33 = arith.maximumf %31, %32 : vector<8x1536xf32>
    %34 = vector.extract_strided_slice %33 {offsets = [0, 0], sizes = [8, 768], strides = [1, 1]} : vector<8x1536xf32> to vector<8x768xf32>
    %35 = vector.extract_strided_slice %33 {offsets = [0, 768], sizes = [8, 768], strides = [1, 1]} : vector<8x1536xf32> to vector<8x768xf32>
    %36 = arith.maximumf %34, %35 : vector<8x768xf32>
    %37 = arith.truncf %36 : vector<8x768xf32> to vector<8x768xbf16>
    %c0_33 = arith.constant 0 : index
    %c0_34 = arith.constant 0 : index
    %38 = vector.load %arg11[%c0_33, %c0_34] : memref<16x3840xbf16, #tpu.memory_space<vmem>>, vector<8x768xbf16>
    tpu.vector_store %arg11[%c0_33, %c0_34], %37 {strides = array<i32>} : memref<16x3840xbf16, #tpu.memory_space<vmem>>, vector<8x768xbf16>,
    %c16_35 = arith.constant 16 : index
    %c0_36 = arith.constant 0 : index
    %39 = vector.load %arg10[%c16_35, %c0_36] : memref<96x1536xf32, #tpu.memory_space<vmem>>, vector<16x1536xf32>
    %40 = vector.broadcast %25 : vector<1x1536xf32> to vector<16x1536xf32>
    %41 = arith.addf %39, %40 : vector<16x1536xf32>
    %cst_37 = arith.constant 0.000000e+00 : f32
    %42 = vector.broadcast %cst_37 : f32 to vector<16x1536xf32>
    %43 = arith.maximumf %41, %42 : vector<16x1536xf32>
    %44 = vector.extract_strided_slice %43 {offsets = [0, 0], sizes = [8, 1536], strides = [1, 1]} : vector<16x1536xf32> to vector<8x1536xf32>
    %45 = vector.extract_strided_slice %43 {offsets = [8, 0], sizes = [8, 1536], strides = [1, 1]} : vector<16x1536xf32> to vector<8x1536xf32>
    %46 = arith.maximumf %44, %45 : vector<8x1536xf32>
    %47 = vector.extract_strided_slice %46 {offsets = [0, 0], sizes = [8, 768], strides = [1, 1]} : vector<8x1536xf32> to vector<8x768xf32>
    %48 = vector.extract_strided_slice %46 {offsets = [0, 768], sizes = [8, 768], strides = [1, 1]} : vector<8x1536xf32> to vector<8x768xf32>
    %49 = arith.maximumf %47, %48 : vector<8x768xf32>
    %50 = arith.truncf %49 : vector<8x768xf32> to vector<8x768xbf16>
    %c0_38 = arith.constant 0 : index
    %c768_39 = arith.constant 768 : index
    %51 = vector.load %arg11[%c0_38, %c768_39] : memref<16x3840xbf16, #tpu.memory_space<vmem>>, vector<8x768xbf16>
    tpu.vector_store %arg11[%c0_38, %c768_39], %50 {strides = array<i32>} : memref<16x3840xbf16, #tpu.memory_space<vmem>>, vector<8x768xbf16>,
    %c8_40 = arith.constant 8 : index
    %c0_41 = arith.constant 0 : index
    %52 = vector.load %arg11[%c8_40, %c0_41] : memref<16x3840xbf16, #tpu.memory_space<vmem>>, vector<8x768xbf16>
    tpu.vector_store %arg11[%c8_40, %c0_41], %50 {strides = array<i32>} : memref<16x3840xbf16, #tpu.memory_space<vmem>>, vector<8x768xbf16>,
    %c32_42 = arith.constant 32 : index
    %c0_43 = arith.constant 0 : index
    %53 = vector.load %arg10[%c32_42, %c0_43] : memref<96x1536xf32, #tpu.memory_space<vmem>>, vector<16x1536xf32>
    %54 = vector.broadcast %25 : vector<1x1536xf32> to vector<16x1536xf32>
    %55 = arith.addf %53, %54 : vector<16x1536xf32>
    %cst_44 = arith.constant 0.000000e+00 : f32
    %56 = vector.broadcast %cst_44 : f32 to vector<16x1536xf32>
    %57 = arith.maximumf %55, %56 : vector<16x1536xf32>
    %58 = vector.extract_strided_slice %57 {offsets = [0, 0], sizes = [8, 1536], strides = [1, 1]} : vector<16x1536xf32> to vector<8x1536xf32>
    %59 = vector.extract_strided_slice %57 {offsets = [8, 0], sizes = [8, 1536], strides = [1, 1]} : vector<16x1536xf32> to vector<8x1536xf32>
    %60 = arith.maximumf %58, %59 : vector<8x1536xf32>
    %61 = vector.extract_strided_slice %60 {offsets = [0, 0], sizes = [8, 768], strides = [1, 1]} : vector<8x1536xf32> to vector<8x768xf32>
    %62 = vector.extract_strided_slice %60 {offsets = [0, 768], sizes = [8, 768], strides = [1, 1]} : vector<8x1536xf32> to vector<8x768xf32>
    %63 = arith.maximumf %61, %62 : vector<8x768xf32>
    %64 = arith.truncf %63 : vector<8x768xf32> to vector<8x768xbf16>
    %c0_45 = arith.constant 0 : index
    %c1536 = arith.constant 1536 : index
    %65 = vector.load %arg11[%c0_45, %c1536] : memref<16x3840xbf16, #tpu.memory_space<vmem>>, vector<8x768xbf16>
    tpu.vector_store %arg11[%c0_45, %c1536], %64 {strides = array<i32>} : memref<16x3840xbf16, #tpu.memory_space<vmem>>, vector<8x768xbf16>,
    %c8_46 = arith.constant 8 : index
    %c768_47 = arith.constant 768 : index
    %66 = vector.load %arg11[%c8_46, %c768_47] : memref<16x3840xbf16, #tpu.memory_space<vmem>>, vector<8x768xbf16>
    tpu.vector_store %arg11[%c8_46, %c768_47], %64 {strides = array<i32>} : memref<16x3840xbf16, #tpu.memory_space<vmem>>, vector<8x768xbf16>,
    %c48_48 = arith.constant 48 : index
    %c0_49 = arith.constant 0 : index
    %67 = vector.load %arg10[%c48_48, %c0_49] : memref<96x1536xf32, #tpu.memory_space<vmem>>, vector<16x1536xf32>
    %68 = vector.broadcast %25 : vector<1x1536xf32> to vector<16x1536xf32>
    %69 = arith.addf %67, %68 : vector<16x1536xf32>
    %cst_50 = arith.constant 0.000000e+00 : f32
    %70 = vector.broadcast %cst_50 : f32 to vector<16x1536xf32>
    %71 = arith.maximumf %69, %70 : vector<16x1536xf32>
    %72 = vector.extract_strided_slice %71 {offsets = [0, 0], sizes = [8, 1536], strides = [1, 1]} : vector<16x1536xf32> to vector<8x1536xf32>
    %73 = vector.extract_strided_slice %71 {offsets = [8, 0], sizes = [8, 1536], strides = [1, 1]} : vector<16x1536xf32> to vector<8x1536xf32>
    %74 = arith.maximumf %72, %73 : vector<8x1536xf32>
    %75 = vector.extract_strided_slice %74 {offsets = [0, 0], sizes = [8, 768], strides = [1, 1]} : vector<8x1536xf32> to vector<8x768xf32>
    %76 = vector.extract_strided_slice %74 {offsets = [0, 768], sizes = [8, 768], strides = [1, 1]} : vector<8x1536xf32> to vector<8x768xf32>
    %77 = arith.maximumf %75, %76 : vector<8x768xf32>
    %78 = arith.truncf %77 : vector<8x768xf32> to vector<8x768xbf16>
    %c0_51 = arith.constant 0 : index
    %c2304 = arith.constant 2304 : index
    %79 = vector.load %arg11[%c0_51, %c2304] : memref<16x3840xbf16, #tpu.memory_space<vmem>>, vector<8x768xbf16>
    tpu.vector_store %arg11[%c0_51, %c2304], %78 {strides = array<i32>} : memref<16x3840xbf16, #tpu.memory_space<vmem>>, vector<8x768xbf16>,
    %c8_52 = arith.constant 8 : index
    %c1536_53 = arith.constant 1536 : index
    %80 = vector.load %arg11[%c8_52, %c1536_53] : memref<16x3840xbf16, #tpu.memory_space<vmem>>, vector<8x768xbf16>
    tpu.vector_store %arg11[%c8_52, %c1536_53], %78 {strides = array<i32>} : memref<16x3840xbf16, #tpu.memory_space<vmem>>, vector<8x768xbf16>,
    %c64 = arith.constant 64 : index
    %c0_54 = arith.constant 0 : index
    %81 = vector.load %arg10[%c64, %c0_54] : memref<96x1536xf32, #tpu.memory_space<vmem>>, vector<16x1536xf32>
    %82 = vector.broadcast %25 : vector<1x1536xf32> to vector<16x1536xf32>
    %83 = arith.addf %81, %82 : vector<16x1536xf32>
    %cst_55 = arith.constant 0.000000e+00 : f32
    %84 = vector.broadcast %cst_55 : f32 to vector<16x1536xf32>
    %85 = arith.maximumf %83, %84 : vector<16x1536xf32>
    %86 = vector.extract_strided_slice %85 {offsets = [0, 0], sizes = [8, 1536], strides = [1, 1]} : vector<16x1536xf32> to vector<8x1536xf32>
    %87 = vector.extract_strided_slice %85 {offsets = [8, 0], sizes = [8, 1536], strides = [1, 1]} : vector<16x1536xf32> to vector<8x1536xf32>
    %88 = arith.maximumf %86, %87 : vector<8x1536xf32>
    %89 = vector.extract_strided_slice %88 {offsets = [0, 0], sizes = [8, 768], strides = [1, 1]} : vector<8x1536xf32> to vector<8x768xf32>
    %90 = vector.extract_strided_slice %88 {offsets = [0, 768], sizes = [8, 768], strides = [1, 1]} : vector<8x1536xf32> to vector<8x768xf32>
    %91 = arith.maximumf %89, %90 : vector<8x768xf32>
    %92 = arith.truncf %91 : vector<8x768xf32> to vector<8x768xbf16>
    %c0_56 = arith.constant 0 : index
    %c3072 = arith.constant 3072 : index
    %93 = vector.load %arg11[%c0_56, %c3072] : memref<16x3840xbf16, #tpu.memory_space<vmem>>, vector<8x768xbf16>
    tpu.vector_store %arg11[%c0_56, %c3072], %92 {strides = array<i32>} : memref<16x3840xbf16, #tpu.memory_space<vmem>>, vector<8x768xbf16>,
    %c8_57 = arith.constant 8 : index
    %c2304_58 = arith.constant 2304 : index
    %94 = vector.load %arg11[%c8_57, %c2304_58] : memref<16x3840xbf16, #tpu.memory_space<vmem>>, vector<8x768xbf16>
    tpu.vector_store %arg11[%c8_57, %c2304_58], %92 {strides = array<i32>} : memref<16x3840xbf16, #tpu.memory_space<vmem>>, vector<8x768xbf16>,
    %c80 = arith.constant 80 : index
    %c0_59 = arith.constant 0 : index
    %95 = vector.load %arg10[%c80, %c0_59] : memref<96x1536xf32, #tpu.memory_space<vmem>>, vector<16x1536xf32>
    %96 = vector.broadcast %25 : vector<1x1536xf32> to vector<16x1536xf32>
    %97 = arith.addf %95, %96 : vector<16x1536xf32>
    %cst_60 = arith.constant 0.000000e+00 : f32
    %98 = vector.broadcast %cst_60 : f32 to vector<16x1536xf32>
    %99 = arith.maximumf %97, %98 : vector<16x1536xf32>
    %100 = vector.extract_strided_slice %99 {offsets = [0, 0], sizes = [8, 1536], strides = [1, 1]} : vector<16x1536xf32> to vector<8x1536xf32>
    %101 = vector.extract_strided_slice %99 {offsets = [8, 0], sizes = [8, 1536], strides = [1, 1]} : vector<16x1536xf32> to vector<8x1536xf32>
    %102 = arith.maximumf %100, %101 : vector<8x1536xf32>
    %103 = vector.extract_strided_slice %102 {offsets = [0, 0], sizes = [8, 768], strides = [1, 1]} : vector<8x1536xf32> to vector<8x768xf32>
    %104 = vector.extract_strided_slice %102 {offsets = [0, 768], sizes = [8, 768], strides = [1, 1]} : vector<8x1536xf32> to vector<8x768xf32>
    %105 = arith.maximumf %103, %104 : vector<8x768xf32>
    %106 = arith.truncf %105 : vector<8x768xf32> to vector<8x768xbf16>
    %c8_61 = arith.constant 8 : index
    %c3072_62 = arith.constant 3072 : index
    %107 = vector.load %arg11[%c8_61, %c3072_62] : memref<16x3840xbf16, #tpu.memory_space<vmem>>, vector<8x768xbf16>
    tpu.vector_store %arg11[%c8_61, %c3072_62], %106 {strides = array<i32>} : memref<16x3840xbf16, #tpu.memory_space<vmem>>, vector<8x768xbf16>,
    %c0_63 = arith.constant 0 : index
    %c0_64 = arith.constant 0 : index
    %108 = vector.load %arg11[%c0_63, %c0_64] : memref<16x3840xbf16, #tpu.memory_space<vmem>>, vector<16x3840xbf16>
    %c0_65 = arith.constant 0 : index
    %c0_66 = arith.constant 0 : index
    %109 = vector.load %arg4[%c0_65, %c0_66] : memref<3840x512xbf16, #tpu.memory_space<vmem>>, vector<3840x512xbf16>
    %cst_67 = arith.constant dense<0.000000e+00> : vector<16x512xf32>
    %110 = tpu.matmul %108, %109, %cst_67 {dimension_numbers = #tpu.dot_dimension_numbers<[1], [0], [0], [1], [0, 0, 1, 1], [], []>} : vector<16x3840xbf16>, vector<3840x512xbf16>, vector<16x512xf32> -> vector<16x512xf32>
    %c0_68 = arith.constant 0 : index
    %c0_69 = arith.constant 0 : index
    %111 = vector.load %arg5[%c0_68, %c0_69] : memref<1x512xf32, #tpu.memory_space<vmem>>, vector<1x512xf32>
    %112 = vector.broadcast %111 : vector<1x512xf32> to vector<16x512xf32>
    %113 = arith.addf %110, %112 : vector<16x512xf32>
    %cst_70 = arith.constant 0.000000e+00 : f32
    %114 = vector.broadcast %cst_70 : f32 to vector<16x512xf32>
    %115 = arith.maximumf %113, %114 : vector<16x512xf32>
    %116 = vector.extract_strided_slice %115 {offsets = [0, 0], sizes = [8, 512], strides = [1, 1]} : vector<16x512xf32> to vector<8x512xf32>
    %117 = vector.extract_strided_slice %115 {offsets = [8, 0], sizes = [8, 512], strides = [1, 1]} : vector<16x512xf32> to vector<8x512xf32>
    %118 = arith.maximumf %116, %117 : vector<8x512xf32>
    %119 = vector.extract_strided_slice %118 {offsets = [0, 0], sizes = [8, 256], strides = [1, 1]} : vector<8x512xf32> to vector<8x256xf32>
    %120 = vector.extract_strided_slice %118 {offsets = [0, 256], sizes = [8, 256], strides = [1, 1]} : vector<8x512xf32> to vector<8x256xf32>
    %121 = arith.maximumf %119, %120 : vector<8x256xf32>
    %122 = arith.truncf %121 : vector<8x256xf32> to vector<8x256xbf16>
    %c0_71 = arith.constant 0 : index
    %c0_72 = arith.constant 0 : index
    %123 = vector.load %arg6[%c0_71, %c0_72] : memref<256x128xbf16, #tpu.memory_space<vmem>>, vector<256x128xbf16>
    %cst_73 = arith.constant dense<0.000000e+00> : vector<8x128xf32>
    %124 = tpu.matmul %122, %123, %cst_73 {dimension_numbers = #tpu.dot_dimension_numbers<[1], [0], [0], [1], [0, 0, 1, 1], [], []>} : vector<8x256xbf16>, vector<256x128xbf16>, vector<8x128xf32> -> vector<8x128xf32>
    %c0_74 = arith.constant 0 : index
    %c0_75 = arith.constant 0 : index
    %125 = vector.load %arg7[%c0_74, %c0_75] : memref<1x128xf32, #tpu.memory_space<vmem>>, vector<1x128xf32>
    %126 = vector.broadcast %125 : vector<1x128xf32> to vector<8x128xf32>
    %127 = arith.addf %124, %126 : vector<8x128xf32>
    %c0_76 = arith.constant 0 : index
    %c0_77 = arith.constant 0 : index
    %128 = vector.load %arg8[%c0_76, %c0_77] : memref<8x128xf32, #tpu.memory_space<vmem>>, vector<8x128xf32>
    tpu.vector_store %arg8[%c0_76, %c0_77], %127 {strides = array<i32>} : memref<8x128xf32, #tpu.memory_space<vmem>>, vector<8x128xf32>,
    return
  }
  func.func @transform_0(%arg0: i32) -> (i32, i32, i32) {
    %c0_i32 = arith.constant 0 : i32
    %c0_i32_0 = arith.constant 0 : i32
    %c0_i32_1 = arith.constant 0 : i32
    return %arg0, %c0_i32, %c0_i32_0 : i32, i32, i32
  }
  func.func @transform_1(%arg0: i32) -> (i32, i32) {
    %c0_i32 = arith.constant 0 : i32
    %c0_i32_0 = arith.constant 0 : i32
    %c0_i32_1 = arith.constant 0 : i32
    return %c0_i32, %c0_i32_0 : i32, i32
  }
  func.func @transform_2(%arg0: i32) -> (i32, i32) {
    %c0_i32 = arith.constant 0 : i32
    %c0_i32_0 = arith.constant 0 : i32
    %c0_i32_1 = arith.constant 0 : i32
    return %c0_i32, %c0_i32_0 : i32, i32
  }
  func.func @transform_3(%arg0: i32) -> (i32, i32) {
    %c0_i32 = arith.constant 0 : i32
    %c0_i32_0 = arith.constant 0 : i32
    %c0_i32_1 = arith.constant 0 : i32
    return %c0_i32, %c0_i32_0 : i32, i32
  }
  func.func @transform_4(%arg0: i32) -> (i32, i32) {
    %c0_i32 = arith.constant 0 : i32
    %c0_i32_0 = arith.constant 0 : i32
    %c0_i32_1 = arith.constant 0 : i32
    return %c0_i32, %c0_i32_0 : i32, i32
  }
  func.func @transform_5(%arg0: i32) -> (i32, i32) {
    %c0_i32 = arith.constant 0 : i32
    %c0_i32_0 = arith.constant 0 : i32
    %c0_i32_1 = arith.constant 0 : i32
    return %c0_i32, %c0_i32_0 : i32, i32
  }
  func.func @transform_6(%arg0: i32) -> (i32, i32) {
    %c0_i32 = arith.constant 0 : i32
    %c0_i32_0 = arith.constant 0 : i32
    %c0_i32_1 = arith.constant 0 : i32
    return %c0_i32, %c0_i32_0 : i32, i32
  }
  func.func @transform_7(%arg0: i32) -> (i32, i32) {
    %c0_i32 = arith.constant 0 : i32
    %c0_i32_0 = arith.constant 0 : i32
    return %arg0, %c0_i32 : i32, i32
  }
}

</mosaic_0001>

<bundles_post_ra>
// kernel: tnn_forward.1
= control target key start
LH: loop header
LB: loop body
LE: loop exit
PB: predicated region body
PF: predicated region fallthrough
CT: control target
= control target key end

     0   :  { %s21434_s0 = inlined_call_operand.vmem [shape: bf16[2,144,128], index: 0, kind: input, shape index: {}]   ;;  %s21435_s1 = inlined_call_operand.hbm [shape: bf16[896,1536], index: 1, kind: input, shape index: {}]   ;;  %s21436_s2 = inlined_call_operand.hbm [shape: f32[1,1536], index: 2, kind: input, shape index: {}]   ;;  %s21437_s3 = inlined_call_operand.hbm [shape: bf16[3840,512], index: 3, kind: input, shape index: {}]   ;;  %s21438_s4 = inlined_call_operand.hbm [shape: f32[1,512], index: 4, kind: input, shape index: {}]   ;;  %s21439_s5 = inlined_call_operand.hbm [shape: bf16[256,128], index: 5, kind: input, shape index: {}]   ;;  %s21440_s6 = inlined_call_operand.hbm [shape: f32[1,128], index: 6, kind: input, shape index: {}]   ;;  %s21441_s7 = inlined_call_operand.hbm [shape: f32[16,128], index: 7, kind: output, shape index: {}]  }
   0x1   :  { %21445 = sst [smem:[#allocation23_spill]] %s21436_s2 }
   0x2   :  { %21446 = sst [smem:[#allocation24_spill]] %s21438_s4 }
   0x3   :  { %12 = vsyncpa [#allocation6], 0 }
   0x4   :  { %13 = vsyncpa [#allocation9], 0 }
   0x5   :  { %14 = vsyncpa [#allocation12], 0 }
   0x6   :  { %15 = vsyncpa [#allocation15], 0 }
   0x7   :  { %16 = vsyncpa [#allocation7], 0 }
   0x8   :  { %18 = vsyncpa [#allocation7 + $0x1], 0  ;;  %s20693_s24 = smov 0   ;;  %s20695_s25 = smov 0  }
   0x9   :  { %s20697_s26 = smov 0   ;;  %s20699_s27 = smov 0  }
   0xa LB: > { %s20714_s28 = sadd.s32 4294967295, %s20637_s27   ;;  %s15405_s29 = sadd.s32 4294967294, %s20637_s27   ;;  %s20637_s27 = sphi %s20699_s27, %s21470_s27   ;;  %s20633_s26 = sphi %s20697_s26, %s21469_s26   ;;  %s20629_s25 = sphi %s20695_s25, %s21468_s25   ;;  %s20625_s24 = sphi %s20693_s24, %s21467_s24  }
   0xb   : > { %s20718_s30 = sadd.s32 1, %s20637_s27   ;;  %s183_s8 = sadd.s32 1, %s20633_s26 }
   0xc   : > { %s180_s9 = ssub.s32 %s20637_s27, %s20718_s30  ;;  %p193_p0 = scmp.ne.s32.totalorder %s20633_s26, %s20629_s25 }
   0xd   : > { %p181_p1 = scmp.eq.s32.totalorder %s180_s9, 0  ;;  %p194_p2 = scmp.eq.s32.totalorder %s20714_s28, 1 }
   0xe   : > { %p199_p3 = scmp.ne.s32.totalorder %s20629_s25, %s20625_s24  ;;  %p200_p4 = scmp.eq.s32.totalorder %s15405_s29, 1 }
   0xf   : > { %s20729_s10 = scalar_select %p181_p1, %s20633_s26, %s183_s8  }
  0x10   : > { %p20731_p5 = por %p194_p2, %p193_p0  ;;  %p20735_p6 = por %p200_p4, %p199_p3 }
  0x11   : > { %21447 = sst [smem:[#allocation22_spill]] %s20729_s10  ;;  %p15406_p7 = scmp.ge.s32.totalorder %s20637_s27, 1 }
  0x12   : > { %s21448_s11 = scalar_select %p20731_p5, 1, 0 }
  0x13   : > { %s21449_s12 = scalar_select %p20735_p6, 1, 0 }
  0x14   : > { %p207_p8 = scmp.lt.s32.totalorder %s20637_s27, 3  ;;  %p21442_p9 = scmp.eq.s32.totalorder %s20714_s28, 0 }
  0x15   : > { %s20639_s14 = smov [#allocation8]   ;;  %s20640_s16 = smov [#allocation11]  }
  0x16   : > { %p20742_p10 = pnand %p15406_p7, %p207_p8  ;;  %s233_s15 = sshll.u32 %s20639_s14, 4  ;;  %s234_s15 = int_to_ptr.vmem [resolvable:$true] %s233_s15 }
  0x17   : > { %s257_s17 = sshll.u32 %s20640_s16, 4  ;;  %s20641_s19 = smov [#allocation5]   ;;  %s20754_s17 = int_to_ptr.vmem [resolvable:$true] %s257_s17 }
  0x18   : > { %s21450_s13 = scalar_select %p20742_p10, 1, 0 }
  0x19   : > { %p17719_p11 = pneg %p20742_p10  ;;  %s219_s20 = sshll.u32 %s20641_s19, 4  ;;  %s20756_s20 = int_to_ptr.vmem [resolvable:$true] %s219_s20 }
  0x1a   : > { %s21452_s2 = sld [smem:[#allocation23_spill]] }
  0x1b   : > { %p20750_p12 = pnand %p21442_p9, %p17719_p11 }
  0x1d   : > { %p20766_p0 = pneg %p20750_p12 }
  0x20   : > { %s20391_s23 = scalar_lea.hbm %s21452_s2, 192 }
  0x21   : > { %p20392_p13 = scmp.ne.s32.totalorder %s21452_s2, %s20391_s23  ;;  %p20398_p3 = scmp.lt.u32.totalorder %s20391_s23, %s21452_s2 }
  0x23   : > { %p20394_p1 = pnand %p20766_p0, %p20392_p13 }
  0x25   : > { %p20395_p2 = pneg %p20394_p1 }
  0x27   : > { %p20400_p4 = pnand %p20398_p3, %p20395_p2 }
  0x29   : > { %20403 = shalt.err (!%p20400_p4)
}
  0x2a   : > { %s20404_s19 = scalar_lea.vmem %s234_s15, 192  ;;  %p20412_p9 = scmp.lt.s32.totalorder %s234_s15, %s234_s15 }
  0x2b   : > { %p20405_p7 = scmp.ne.s32.totalorder %s234_s15, %s20404_s19  ;;  %p20413_p6 = scmp.lt.s32.totalorder %s20404_s19, %s20404_s19 }
  0x2d   : > { %p20407_p8 = pnand %p20405_p7, %p20766_p0  ;;  %p20414_p5 = por %p20413_p6, %p20412_p9 }
  0x2f   : > { %p20408_p11 = pneg %p20407_p8 }
  0x31   : > { %p20415_p10 = pnand %p20414_p5, %p20408_p11 }
  0x33   : > { %20418 = shalt.err (!%p20415_p10)
}
  0x34   : > { %17725 = dma.hbm_to_vmem [thread:$0]  (!%p20750_p12), %s21452_s2, 192, %s234_s15, [#allocation9]  }
  0x35   : > { %s21454_s4 = sld [smem:[#allocation24_spill]] }
  0x3b   : > { %s20419_s8 = scalar_lea.hbm %s21454_s4, 64 }
  0x3c   : > { %p20420_p13 = scmp.ne.s32.totalorder %s21454_s4, %s20419_s8  ;;  %p20426_p5 = scmp.lt.u32.totalorder %s20419_s8, %s21454_s4 }
  0x3e   : > { %p20422_p1 = pnand %p20420_p13, %p20766_p0 }
  0x40   : > { %p20423_p6 = pneg %p20422_p1 }
  0x42   : > { %p20428_p9 = pnand %p20426_p5, %p20423_p6 }
  0x44   : > { %20431 = shalt.err (!%p20428_p9)
}
  0x45   : > { %s20432_s15 = scalar_lea.vmem %s20754_s17, 64  ;;  %p20440_p4 = scmp.lt.s32.totalorder %s20754_s17, %s20754_s17 }
  0x46   : > { %p20433_p10 = scmp.ne.s32.totalorder %s20754_s17, %s20432_s15  ;;  %p20441_p7 = scmp.lt.s32.totalorder %s20432_s15, %s20432_s15 }
  0x48   : > { %p20435_p2 = pnand %p20433_p10, %p20766_p0  ;;  %p20442_p8 = por %p20441_p7, %p20440_p4 }
  0x4a   : > { %p20436_p3 = pneg %p20435_p2 }
  0x4c   : > { %p20443_p11 = pnand %p20442_p8, %p20436_p3 }
  0x4e   : > { %20446 = shalt.err (!%p20443_p11)
}
  0x4f   : > { %17731 = dma.hbm_to_vmem [thread:$0]  (!%p20750_p12), %s21454_s4, 64, %s20754_s17, [#allocation12]  }
  0x50   : > { %s20447_s29 = scalar_lea.hbm %s21435_s1, 86016 }
  0x51   : > { %p20448_p13 = scmp.ne.s32.totalorder %s21435_s1, %s20447_s29  ;;  %p20454_p5 = scmp.lt.u32.totalorder %s20447_s29, %s21435_s1 }
  0x53   : > { %p20450_p1 = pnand %p20448_p13, %p20766_p0 }
  0x55   : > { %p20451_p6 = pneg %p20450_p1 }
  0x57   : > { %p20456_p9 = pnand %p20454_p5, %p20451_p6 }
  0x59   : > { %20459 = shalt.err (!%p20456_p9)
}
  0x5a   : > { %s20460_s17 = scalar_lea.vmem %s20756_s20, 86016  ;;  %p20468_p4 = scmp.lt.s32.totalorder %s20756_s20, %s20756_s20 }
  0x5b   : > { %p20461_p10 = scmp.ne.s32.totalorder %s20756_s20, %s20460_s17  ;;  %p20469_p7 = scmp.lt.s32.totalorder %s20460_s17, %s20460_s17 }
  0x5d   : > { %p20463_p2 = pnand %p20461_p10, %p20766_p0  ;;  %p20470_p8 = por %p20469_p7, %p20468_p4 }
  0x5f   : > { %p20464_p3 = pneg %p20463_p2 }
  0x61   : > { %p20471_p11 = pnand %p20470_p8, %p20464_p3 }
  0x63   : > { %20474 = shalt.err (!%p20471_p11)
}
  0x64   : > { %s20642_s15 = smov 768   ;;  %s20643_s10 = smov 48  }
  0x65   : > { %17722 = dma.hbm_to_vmem [thread:$0]  (!%p20750_p12), %s21435_s1, 86016, %s20756_s20, [#allocation6], %s20642_s15, %s20642_s15, %s20643_s10  }
  0x66   : > { %s20644_s23 = smov [#allocation10]   ;;  %s20475_s16 = scalar_lea.hbm %s21437_s3, 122880 }
  0x67   : > { %s243_s29 = sshll.u32 %s20644_s23, 4  ;;  %p20476_p13 = scmp.ne.s32.totalorder %s21437_s3, %s20475_s16  ;;  %s244_s29 = int_to_ptr.vmem [resolvable:$true] %s243_s29 }
  0x68   : > { %p20482_p5 = scmp.lt.u32.totalorder %s20475_s16, %s21437_s3 }
  0x69   : > { %p20478_p1 = pnand %p20476_p13, %p20766_p0 }
  0x6b   : > { %p20479_p6 = pneg %p20478_p1 }
  0x6d   : > { %p20484_p9 = pnand %p20482_p5, %p20479_p6 }
  0x6f   : > { %20487 = shalt.err (!%p20484_p9)
}
  0x70   : > { %s20488_s20 = scalar_lea.vmem %s244_s29, 122880  ;;  %p20496_p4 = scmp.lt.s32.totalorder %s244_s29, %s244_s29 }
  0x71   : > { %p20489_p10 = scmp.ne.s32.totalorder %s244_s29, %s20488_s20  ;;  %p20497_p7 = scmp.lt.s32.totalorder %s20488_s20, %s20488_s20 }
  0x73   : > { %p20491_p2 = pnand %p20489_p10, %p20766_p0  ;;  %p20498_p8 = por %p20497_p7, %p20496_p4 }
  0x75   : > { %p20492_p3 = pneg %p20491_p2 }
  0x77   : > { %p20499_p11 = pnand %p20498_p8, %p20492_p3 }
  0x79   : > { %20502 = shalt.err (!%p20499_p11)
}
  0x7a   : > { %s20645_s15 = smov 256   ;;  %s20646_s10 = smov 16  }
  0x7b   : > { %17728 = dma.hbm_to_vmem [thread:$0]  (!%p20750_p12), %s21437_s3, 122880, %s244_s29, [#allocation9], %s20645_s15, %s20645_s15, %s20646_s10  }
  0x7c   : > { %s20647_s21 = smov [#allocation13]   ;;  %s20503_s14 = scalar_lea.hbm %s21439_s5, 2048 }
  0x7d   : > { %s267_s22 = sshll.u32 %s20647_s21, 4  ;;  %p20504_p13 = scmp.ne.s32.totalorder %s21439_s5, %s20503_s14  ;;  %s268_s22 = int_to_ptr.vmem [resolvable:$true] %s267_s22 }
  0x7e   : > { %p20510_p5 = scmp.lt.u32.totalorder %s20503_s14, %s21439_s5 }
  0x7f   : > { %p20506_p1 = pnand %p20504_p13, %p20766_p0 }
  0x81   : > { %p20507_p6 = pneg %p20506_p1 }
  0x83   : > { %p20512_p9 = pnand %p20510_p5, %p20507_p6 }
  0x85   : > { %20515 = shalt.err (!%p20512_p9)
}
  0x86   : > { %s20516_s29 = scalar_lea.vmem %s268_s22, 2048  ;;  %p20524_p4 = scmp.lt.s32.totalorder %s268_s22, %s268_s22 }
  0x87   : > { %p20517_p10 = scmp.ne.s32.totalorder %s268_s22, %s20516_s29  ;;  %p20525_p7 = scmp.lt.s32.totalorder %s20516_s29, %s20516_s29 }
  0x89   : > { %p20519_p2 = pnand %p20517_p10, %p20766_p0  ;;  %p20526_p8 = por %p20525_p7, %p20524_p4 }
  0x8b   : > { %p20520_p3 = pneg %p20519_p2 }
  0x8d   : > { %p20527_p11 = pnand %p20526_p8, %p20520_p3 }
  0x8f   : > { %20530 = shalt.err (!%p20527_p11)
}
  0x90   : > { %s20648_s15 = smov 64   ;;  %s20649_s10 = smov 4  }
  0x91   : > { %17734 = dma.hbm_to_vmem [thread:$0]  (!%p20750_p12), %s21439_s5, 2048, %s268_s22, [#allocation12], %s20648_s15, %s20648_s15, %s20649_s10  }
  0x92   : > { %s20650_s21 = smov [#allocation14]   ;;  %s20531_s16 = scalar_lea.hbm %s21440_s6, 16 }
  0x93   : > { %s281_s23 = sshll.u32 %s20650_s21, 4  ;;  %p20532_p13 = scmp.ne.s32.totalorder %s21440_s6, %s20531_s16  ;;  %s282_s23 = int_to_ptr.vmem [resolvable:$true] %s281_s23 }
  0x94   : > { %p20538_p5 = scmp.lt.u32.totalorder %s20531_s16, %s21440_s6 }
  0x95   : > { %p20534_p1 = pnand %p20532_p13, %p20766_p0 }
  0x97   : > { %p20535_p6 = pneg %p20534_p1 }
  0x99   : > { %p20540_p9 = pnand %p20538_p5, %p20535_p6 }
  0x9b   : > { %20543 = shalt.err (!%p20540_p9)
}
  0x9c   : > { %s20544_s22 = scalar_lea.vmem %s282_s23, 16  ;;  %s20551_s15 = scalar_lea.vmem %s282_s23, 32 }
  0x9d   : > { %p20545_p10 = scmp.ne.s32.totalorder %s282_s23, %s20544_s22  ;;  %p20552_p4 = scmp.lt.s32.totalorder %s282_s23, %s282_s23 }
  0x9e   : > { %p20553_p7 = scmp.lt.s32.totalorder %s20551_s15, %s20544_s22 }
  0x9f   : > { %p20547_p2 = pnand %p20545_p10, %p20766_p0 }
  0xa0   : > { %p20554_p8 = por %p20553_p7, %p20552_p4 }
  0xa1   : > { %p20548_p3 = pneg %p20547_p2 }
  0xa3   : > { %p20555_p11 = pnand %p20554_p8, %p20548_p3 }
  0xa5   : > { %20558 = shalt.err (!%p20555_p11)
}
  0xa6   : > { %17737 = dma.hbm_to_vmem [thread:$0]  (!%p20750_p12), %s21440_s6, 16, %s282_s23, [#allocation15]  }
  0xa7   : > { %p21455_p13 = scmp.ne.s32.totalorder %s21450_s13, 0 }
  0xa8   : > { %p21456_p1 = scmp.eq.s32.totalorder (!%p21455_p13), %s20714_s28, 0 }
  0xa9   : > { %302 = sbr.rel (%p21455_p13) target bundleno = 2446 (0x98e), region = 48 }
  0xb0   : > { %20604 = dma.done.wait (%p21456_p1), [#allocation6], 86016   ;;  %p21457_p0 = pmov %p21456_p1 }
  0xb2   : > { %20606 = vsyncadd (%p21457_p0), [#allocation6], 4294881280  ;;  %p21458_p6 = pmov %p21457_p0 }
  0xb3   : > { %p21459_p5 = pmov %p21457_p0 }
  0xb4   : > { %20608 = dma.done.wait (%p21458_p6), [#allocation9], 123072  }
  0xb5   : > { %20610 = vsyncadd (%p21459_p5), [#allocation9], 4294844224  ;;  %p21460_p9 = pmov %p21457_p0 }
  0xb6   : > { %p21461_p12 = pmov %p21457_p0 }
  0xb7   : > { %20612 = dma.done.wait (%p21460_p9), [#allocation12], 2112  }
  0xb8   : > { %20614 = vsyncadd (%p21461_p12), [#allocation12], 4294965184  ;;  %p21462_p10 = pmov %p21457_p0 }
  0xb9   : > { %p21463_p2 = pmov %p21457_p0 }
  0xba   : > { %20616 = dma.done.wait (%p21462_p10), [#allocation15], 16  }
  0xbb   : > { %20618 = vsyncadd (%p21463_p2), [#allocation15], 4294967280  ;;  %v17800_v0 = vld [vmem:[#allocation5 + $0x4] ss:$48 sps:$4 sm:$0xff]   ;;  %v17802_v1 = vld [vmem:[#allocation5 + $0xc] ss:$48 sps:$4 sm:$0xff]  }
  0xbc   : > { %4812 = vmatprep.subr.bf16.mxu0 %v17800_v0  ;;  %v17804_v2 = vld [vmem:[#allocation5] ss:$48 sps:$4 sm:$0xff]   ;;  %v17805_v3 = vld [vmem:[#allocation5 + $0x8] ss:$48 sps:$4 sm:$0xff]   ;;  %5184 = vmatprep.subr.bf16.mxu1 %v17802_v1  ;;  %v17806_v4 = vld [vmem:[#allocation5 + $0x64] ss:$48 sps:$4 sm:$0xff]  }
  0xbd   : > { %4813 = vmatpush1.bf16.msra.mxu0 %v17804_v2  ;;  %5185 = vmatpush1.bf16.msra.mxu1 %v17805_v3  ;;  %v17808_v5 = vld [vmem:[#allocation5 + $0x6c] ss:$48 sps:$4 sm:$0xff]   ;;  %v17810_v6 = vld [vmem:[#allocation5 + $0x60] ss:$48 sps:$4 sm:$0xff]   ;;  %v17811_v7 = vld [vmem:[#allocation5 + $0x68] ss:$48 sps:$4 sm:$0xff]  }
  0xbe   : > { %4814 = vmatprep.subr.bf16.mxu0 %v17806_v4  ;;  %5186 = vmatprep.subr.bf16.mxu1 %v17808_v5  ;;  %v17812_v8 = vld [vmem:[#allocation5 + $0xc4] ss:$48 sps:$4 sm:$0xff]   ;;  %v17814_v9 = vld [vmem:[#allocation5 + $0xcc] ss:$48 sps:$4 sm:$0xff]   ;;  %v17816_v10 = vld [vmem:[#allocation5 + $0xc0] ss:$48 sps:$4 sm:$0xff]  }
  0xbf   : > { %v17817_v11 = vld [vmem:[#allocation5 + $0xc8] ss:$48 sps:$4 sm:$0xff]   ;;  %v17818_v12 = vld [vmem:[#allocation5 + $0x124] ss:$48 sps:$4 sm:$0xff]   ;;  %v17820_v13 = vld [vmem:[#allocation5 + $0x12c] ss:$48 sps:$4 sm:$0xff]  }
  0xc0   : > { %v17822_v14 = vld [vmem:[#allocation5 + $0x120] ss:$48 sps:$4 sm:$0xff]   ;;  %v17823_v15 = vld [vmem:[#allocation5 + $0x128] ss:$48 sps:$4 sm:$0xff]   ;;  %v17824_v16 = vld [vmem:[#allocation5 + $0x184] ss:$48 sps:$4 sm:$0xff]  }
  0xc1   : > { %4815 = vmatpush1.bf16.msra.mxu0 %v17810_v6  ;;  %5187 = vmatpush1.bf16.msra.mxu1 %v17811_v7  ;;  %v17826_v17 = vld [vmem:[#allocation5 + $0x18c] ss:$48 sps:$4 sm:$0xff]   ;;  %v17828_v18 = vld [vmem:[#allocation5 + $0x180] ss:$48 sps:$4 sm:$0xff]   ;;  %v17829_v19 = vld [vmem:[#allocation5 + $0x188] ss:$48 sps:$4 sm:$0xff]  }
  0xc2   : > { %4816 = vmatprep.subr.bf16.mxu0 %v17812_v8  ;;  %5188 = vmatprep.subr.bf16.mxu1 %v17814_v9  ;;  %v17830_v20 = vld [vmem:[#allocation5 + $0x1e4] ss:$48 sps:$4 sm:$0xff]   ;;  %v17832_v21 = vld [vmem:[#allocation5 + $0x1ec] ss:$48 sps:$4 sm:$0xff]   ;;  %v17834_v22 = vld [vmem:[#allocation5 + $0x1e0] ss:$48 sps:$4 sm:$0xff]  }
  0xc3   : > { %v17835_v23 = vld [vmem:[#allocation5 + $0x1e8] ss:$48 sps:$4 sm:$0xff]   ;;  %v17836_v24 = vld [vmem:[#allocation5 + $0x244] ss:$48 sps:$4 sm:$0xff]   ;;  %v17838_v25 = vld [vmem:[#allocation5 + $0x24c] ss:$48 sps:$4 sm:$0xff]  }
  0xc4   : > { %v17840_v26 = vld [vmem:[#allocation5 + $0x240] ss:$48 sps:$4 sm:$0xff]   ;;  %v17841_v27 = vld [vmem:[#allocation5 + $0x248] ss:$48 sps:$4 sm:$0xff]   ;;  %v17842_v28 = vld [vmem:[#allocation5 + $0x2a4] ss:$48 sps:$4 sm:$0xff]  }
  0xc5   : > { %4817 = vmatpush1.bf16.msra.mxu0 %v17816_v10  ;;  %5189 = vmatpush1.bf16.msra.mxu1 %v17817_v11  ;;  %v17844_v29 = vld [vmem:[#allocation5 + $0x2ac] ss:$48 sps:$4 sm:$0xff]   ;;  %v17846_v30 = vld [vmem:[#allocation5 + $0x2a0] ss:$48 sps:$4 sm:$0xff]   ;;  %v17847_v31 = vld [vmem:[#allocation5 + $0x2a8] ss:$48 sps:$4 sm:$0xff]  }
  0xc6   : > { %4818 = vmatprep.subr.bf16.mxu0 %v17818_v12  ;;  %5190 = vmatprep.subr.bf16.mxu1 %v17820_v13  ;;  %v17848_v32 = vld [vmem:[#allocation5 + $0x304] ss:$48 sps:$4 sm:$0xff]   ;;  %p354_p3 = scmp.lt.s32.totalorder %s20714_s28, 1  ;;  %v17850_v33 = vld [vmem:[#allocation5 + $0x30c] ss:$48 sps:$4 sm:$0xff]   ;;  %s351_s23 = sand.u32 1, %s20629_s25  }
  0xc7   : > { %v17852_v34 = vld [vmem:[#allocation5 + $0x300] ss:$48 sps:$4 sm:$0xff]   ;;  %v17853_v35 = vld [vmem:[#allocation5 + $0x308] ss:$48 sps:$4 sm:$0xff]   ;;  %v17854_v36 = vld [vmem:[#allocation5 + $0x364] ss:$48 sps:$4 sm:$0xff]  }
  0xc8   : > { %s355_s13 = scalar_select %p354_p3, %s20714_s28, 1  ;;  %v17856_v37 = vld [vmem:[#allocation5 + $0x36c] ss:$48 sps:$4 sm:$0xff]   ;;  %v17858_v38 = vld [vmem:[#allocation5 + $0x360] ss:$48 sps:$4 sm:$0xff]  }
  0xc9   : > { %4819 = vmatpush1.bf16.msra.mxu0 %v17822_v14  ;;  %5191 = vmatpush1.bf16.msra.mxu1 %v17823_v15  ;;  %v17859_v39 = vld [vmem:[#allocation5 + $0x368] ss:$48 sps:$4 sm:$0xff]   ;;  %v17860_v40 = vld [vmem:[#allocation5 + $0x3c4] ss:$48 sps:$4 sm:$0xff]   ;;  %v17862_v41 = vld [vmem:[#allocation5 + $0x3cc] ss:$48 sps:$4 sm:$0xff]  }
  0xca   : > { %4820 = vmatprep.subr.bf16.mxu0 %v17824_v16  ;;  %5192 = vmatprep.subr.bf16.mxu1 %v17826_v17  ;;  %s17692_s18 = smul.u32 72, %s355_s13  ;;  %v17864_v42 = vld [vmem:[#allocation5 + $0x3c0] ss:$48 sps:$4 sm:$0xff]   ;;  %v17865_v43 = vld [vmem:[#allocation5 + $0x3c8] ss:$48 sps:$4 sm:$0xff]   ;;  %s15421_s8 = sshll.u32 %s351_s23, 3 }
  0xcb   : > { %v17866_v44 = vld [vmem:[#allocation5 + $0x424] ss:$48 sps:$4 sm:$0xff]   ;;  %v17868_v45 = vld [vmem:[#allocation5 + $0x42c] ss:$48 sps:$4 sm:$0xff]   ;;  %v17870_v46 = vld [vmem:[#allocation5 + $0x420] ss:$48 sps:$4 sm:$0xff]  }
  0xcc   : > { %s20905_s21 = scalar_lea.vmem %s21434_s0, %s17692_s18  ;;  %v17871_v48 = vld [vmem:[#allocation5 + $0x428] ss:$48 sps:$4 sm:$0xff]   ;;  %v17872_v49 = vld [vmem:[#allocation5 + $0x484] ss:$48 sps:$4 sm:$0xff]   ;;  %v17874_v50 = vld [vmem:[#allocation5 + $0x48c] ss:$48 sps:$4 sm:$0xff]  }
  0xcd   : > { %4821 = vmatpush1.bf16.msra.mxu0 %v17828_v18  ;;  %5193 = vmatpush1.bf16.msra.mxu1 %v17829_v19  ;;  %v17896_v47 = vld [vmem:[%s20905_s21 + $0x4] sm:$0xff]   ;;  %v17876_v51 = vld [vmem:[#allocation5 + $0x480] ss:$48 sps:$4 sm:$0xff]   ;;  %v17880_v54 = vld [vmem:[#allocation5 + $0x4ec] ss:$48 sps:$4 sm:$0xff]   ;;  %s17115_s14 = sshll.u32 %s20714_s28, 7 }
  0xce   : > { %4822 = vmatprep.subr.bf16.mxu0 %v17830_v20  ;;  %5194 = vmatprep.subr.bf16.mxu1 %v17832_v21  ;;  %v17877_v52 = vld [vmem:[#allocation5 + $0x488] ss:$48 sps:$4 sm:$0xff]   ;;  %v17878_v53 = vld [vmem:[#allocation5 + $0x4e4] ss:$48 sps:$4 sm:$0xff]   ;;  %v17882_v55 = vld [vmem:[#allocation5 + $0x4e0] ss:$48 sps:$4 sm:$0xff]   ;;  %s21392_s29 = scalar_lea.hbm %s21441_s7, %s17115_s14 }
  0xcf   : > { %4844 = vmatprep.mubr.bf16.mxu0 %v17896_v47  ;;  %5216 = vmatprep.mubr.bf16.mxu1 %v17896_v47  ;;  %v17883_v56 = vld [vmem:[#allocation5 + $0x4e8] ss:$48 sps:$4 sm:$0xff]   ;;  %v17884_v57 = vld [vmem:[#allocation5 + $0x544] ss:$48 sps:$4 sm:$0xff]   ;;  %v17886_v58 = vld [vmem:[#allocation5 + $0x54c] ss:$48 sps:$4 sm:$0xff]  }
  0xd0   : > { %v17888_v59 = vld [vmem:[#allocation5 + $0x540] ss:$48 sps:$4 sm:$0xff]   ;;  %v17889_v60 = vld [vmem:[#allocation5 + $0x548] ss:$48 sps:$4 sm:$0xff]   ;;  %v17890_v61 = vld [vmem:[#allocation5 + $0x5a4] ss:$48 sps:$4 sm:$0xff]  }
  0xd1   : > { %4823 = vmatpush1.bf16.msra.mxu0 %v17834_v22  ;;  %5195 = vmatpush1.bf16.msra.mxu1 %v17835_v23  ;;  %v17892_v62 = vld [vmem:[#allocation5 + $0x5ac] ss:$48 sps:$4 sm:$0xff]   ;;  %v17894_v63 = vld [vmem:[#allocation5 + $0x5a0] ss:$48 sps:$4 sm:$0xff]   ;;  %v17895_v0 = vld [vmem:[#allocation5 + $0x5a8] ss:$48 sps:$4 sm:$0xff]  }
  0xd2   : > { %4824 = vmatprep.subr.bf16.mxu0 %v17836_v24  ;;  %5196 = vmatprep.subr.bf16.mxu1 %v17838_v25  ;;  %v17899_v1 = vld [vmem:[#allocation5 + $0x604] ss:$48 sps:$4 sm:$0xff]   ;;  %v17902_v2 = vld [vmem:[#allocation5 + $0x60c] ss:$48 sps:$4 sm:$0xff]   ;;  %v17897_v3 = vld [vmem:[#allocation5 + $0x600] ss:$48 sps:$4 sm:$0xff]  }
  0xd3   : > { %v17900_v4 = vld [vmem:[#allocation5 + $0x608] ss:$48 sps:$4 sm:$0xff]   ;;  %v17903_v5 = vld [vmem:[%s20905_s21] sm:$0xff]   ;;  %v17909_v7 = vld [vmem:[#allocation5 + $0x66c] ss:$48 sps:$4 sm:$0xff]   ;;  %s353_s16 = scalar_lea.vmem [#allocation16], %s15421_s8 }
  0xd4   : > { %v17906_v6 = vld [vmem:[#allocation5 + $0x664] ss:$48 sps:$4 sm:$0xff]   ;;  %v17934_v8 = vld [vmem:[%s20905_s21 + $0xc] sm:$0xff]   ;;  %v17907_v10 = vld [vmem:[#allocation5 + $0x668] ss:$48 sps:$4 sm:$0xff]   ;;  %s15286_s19 = sshll.u32 %s353_s16, 4  ;;  %s21394_s19 = int_to_ptr.vmem [resolvable:$true] %s15286_s19 }
  0xd5   : > { %4825 = vmatpush1.bf16.msra.mxu0 %v17840_v26  ;;  %5197 = vmatpush1.bf16.msra.mxu1 %v17841_v27  ;;  %v17904_v9 = vld [vmem:[#allocation5 + $0x660] ss:$48 sps:$4 sm:$0xff]   ;;  %v17912_v11 = vld [vmem:[#allocation5 + $0x6c4] ss:$48 sps:$4 sm:$0xff]   ;;  %v17915_v12 = vld [vmem:[#allocation5 + $0x6cc] ss:$48 sps:$4 sm:$0xff]  }
  0xd6   : > { %4826 = vmatprep.subr.bf16.mxu0 %v17842_v28  ;;  %5198 = vmatprep.subr.bf16.mxu1 %v17844_v29  ;;  %v17910_v13 = vld [vmem:[#allocation5 + $0x6c0] ss:$48 sps:$4 sm:$0xff]   ;;  %v17941_v14 = vld [vmem:[%s20905_s21 + $0x8] sm:$0xff]   ;;  %v17918_v16 = vld [vmem:[#allocation5 + $0x724] ss:$48 sps:$4 sm:$0xff]   ;;  %s15273_s22 = scalar_lea.sflag [#allocation7], %s351_s23 }
  0xd7   : > { %v17913_v15 = vld [vmem:[#allocation5 + $0x6c8] ss:$48 sps:$4 sm:$0xff]   ;;  %v17921_v17 = vld [vmem:[#allocation5 + $0x72c] ss:$48 sps:$4 sm:$0xff]   ;;  %v17916_v19 = vld [vmem:[#allocation5 + $0x720] ss:$48 sps:$4 sm:$0xff]  }
  0xd8   : > { %v17948_v18 = vld [vmem:[%s20905_s21 + $0x14] sm:$0xff]   ;;  %v17927_v22 = vld [vmem:[#allocation5 + $0x78c] ss:$48 sps:$4 sm:$0xff]   ;;  %v17922_v23 = vld [vmem:[#allocation5 + $0x780] ss:$48 sps:$4 sm:$0xff]   ;;  %s20559_s15 = scalar_lea.vmem %s21394_s19, 128 }
  0xd9   : > { %4827 = vmatpush1.bf16.msra.mxu0 %v17846_v30  ;;  %5199 = vmatpush1.bf16.msra.mxu1 %v17847_v31  ;;  %v17919_v20 = vld [vmem:[#allocation5 + $0x728] ss:$48 sps:$4 sm:$0xff]   ;;  %v17924_v21 = vld [vmem:[#allocation5 + $0x784] ss:$48 sps:$4 sm:$0xff]   ;;  %v17933_v27 = vld [vmem:[#allocation5 + $0x7ec] ss:$48 sps:$4 sm:$0xff]   ;;  %p20560_p4 = scmp.ne.s32.totalorder %s21394_s19, %s20559_s15 }
  0xda   : > { %4828 = vmatprep.subr.bf16.mxu0 %v17848_v32  ;;  %5200 = vmatprep.subr.bf16.mxu1 %v17850_v33  ;;  %v17925_v24 = vld [vmem:[#allocation5 + $0x788] ss:$48 sps:$4 sm:$0xff]   ;;  %v17955_v25 = vld [vmem:[%s20905_s21 + $0x10] sm:$0xff]   ;;  %v17962_v28 = vld [vmem:[%s20905_s21 + $0x1c] sm:$0xff]   ;;  %p21464_p7 = scmp.ne.s32.totalorder %s21448_s11, 0  ;;  %s20652_s28 = smov [#allocation16]  }
  0xdb   : > { %v17930_v26 = vld [vmem:[#allocation5 + $0x7e4] ss:$48 sps:$4 sm:$0xff]   ;;  %v17928_v29 = vld [vmem:[#allocation5 + $0x7e0] ss:$48 sps:$4 sm:$0xff]   ;;  %v17931_v30 = vld [vmem:[#allocation5 + $0x7e8] ss:$48 sps:$4 sm:$0xff]  }
  0xdc   : > { %v17937_v31 = vld [vmem:[#allocation5 + $0x844] ss:$48 sps:$4 sm:$0xff]   ;;  %v17940_v32 = vld [vmem:[#allocation5 + $0x84c] ss:$48 sps:$4 sm:$0xff]   ;;  %p20561_p8 = pnand %p20560_p4, %p21464_p7  ;;  %s20563_s10 = sshll.u32 %s20652_s28, 4  ;;  %s20564_s10 = int_to_ptr.vmem [resolvable:$false] %s20563_s10 }
  0xdd   : > { %4829 = vmatpush1.bf16.msra.mxu0 %v17852_v34  ;;  %5201 = vmatpush1.bf16.msra.mxu1 %v17853_v35  ;;  %v17969_v33 = vld [vmem:[%s20905_s21 + $0x18] sm:$0xff]   ;;  %v17935_v34 = vld [vmem:[#allocation5 + $0x840] ss:$48 sps:$4 sm:$0xff]   ;;  %s20565_s2 = scalar_lea.vmem %s20564_s10, 256  ;;  %p20566_p13 = scmp.lt.s32.totalorder %s21394_s19, %s20564_s10 }
  0xde   : > { %4830 = vmatprep.subr.bf16.mxu0 %v17854_v36  ;;  %5202 = vmatprep.subr.bf16.mxu1 %v17856_v37  ;;  %v17938_v35 = vld [vmem:[#allocation5 + $0x848] ss:$48 sps:$4 sm:$0xff]   ;;  %v17944_v36 = vld [vmem:[#allocation5 + $0x8a4] ss:$48 sps:$4 sm:$0xff]   ;;  %v17947_v37 = vld [vmem:[#allocation5 + $0x8ac] ss:$48 sps:$4 sm:$0xff]   ;;  %p20562_p11 = pneg %p20561_p8  ;;  %p20567_p1 = scmp.lt.s32.totalorder %s20565_s2, %s20559_s15 }
  0xdf   : > { %v17961_v47 = vld [vmem:[#allocation5 + $0x96c] ss:$48 sps:$4 sm:$0xff]  }
  0xe0   : > { %p20568_p0 = por %p20567_p1, %p20566_p13 }
  0xe1   : > { %4831 = vmatpush1.bf16.msra.mxu0 %v17858_v38  ;;  %5203 = vmatpush1.bf16.msra.mxu1 %v17859_v39  ;;  %v17976_v38 = vld [vmem:[%s20905_s21 + $0x24] sm:$0xff]   ;;  %v17942_v39 = vld [vmem:[#allocation5 + $0x8a0] ss:$48 sps:$4 sm:$0xff]  }
  0xe2   : > { %4832 = vmatprep.subr.bf16.mxu0 %v17860_v40  ;;  %5204 = vmatprep.subr.bf16.mxu1 %v17862_v41  ;;  %v17945_v40 = vld [vmem:[#allocation5 + $0x8a8] ss:$48 sps:$4 sm:$0xff]   ;;  %v17951_v41 = vld [vmem:[#allocation5 + $0x904] ss:$48 sps:$4 sm:$0xff]   ;;  %p20569_p6 = pnand %p20568_p0, %p20562_p11 }
  0xe5   : > { %4833 = vmatpush1.bf16.msra.mxu0 %v17864_v42  ;;  %5205 = vmatpush1.bf16.msra.mxu1 %v17865_v43  ;;  %v17954_v42 = vld [vmem:[#allocation5 + $0x90c] ss:$48 sps:$4 sm:$0xff]   ;;  %v17949_v43 = vld [vmem:[#allocation5 + $0x900] ss:$48 sps:$4 sm:$0xff]  }
  0xe6   : > { %4834 = vmatprep.subr.bf16.mxu0 %v17866_v44  ;;  %5206 = vmatprep.subr.bf16.mxu1 %v17868_v45  ;;  %v17952_v44 = vld [vmem:[#allocation5 + $0x908] ss:$48 sps:$4 sm:$0xff]   ;;  %v17983_v45 = vld [vmem:[%s20905_s21 + $0x20] sm:$0xff]  }
  0xe9   : > { %4835 = vmatpush1.bf16.msra.mxu0 %v17870_v46  ;;  %5207 = vmatpush1.bf16.msra.mxu1 %v17871_v48  ;;  %v17958_v46 = vld [vmem:[#allocation5 + $0x964] ss:$48 sps:$4 sm:$0xff]   ;;  %v17990_v48 = vld [vmem:[%s20905_s21 + $0x2c] sm:$0xff]  }
  0xea   : > { %4836 = vmatprep.subr.bf16.mxu0 %v17872_v49  ;;  %5208 = vmatprep.subr.bf16.mxu1 %v17874_v50  ;;  %v17956_v49 = vld [vmem:[#allocation5 + $0x960] ss:$48 sps:$4 sm:$0xff]   ;;  %v17959_v50 = vld [vmem:[#allocation5 + $0x968] ss:$48 sps:$4 sm:$0xff]  }
  0xed   : > { %4837 = vmatpush1.bf16.msra.mxu0 %v17876_v51  ;;  %5209 = vmatpush1.bf16.msra.mxu1 %v17877_v52  ;;  %v17965_v51 = vld [vmem:[#allocation5 + $0x9c4] ss:$48 sps:$4 sm:$0xff]   ;;  %v17968_v52 = vld [vmem:[#allocation5 + $0x9cc] ss:$48 sps:$4 sm:$0xff]  }
  0xee   : > { %4838 = vmatprep.subr.bf16.mxu0 %v17878_v53  ;;  %5210 = vmatprep.subr.bf16.mxu1 %v17880_v54  ;;  %v17997_v53 = vld [vmem:[%s20905_s21 + $0x28] sm:$0xff]   ;;  %v17963_v54 = vld [vmem:[#allocation5 + $0x9c0] ss:$48 sps:$4 sm:$0xff]  }
  0xf1   : > { %4839 = vmatpush1.bf16.msra.mxu0 %v17882_v55  ;;  %5211 = vmatpush1.bf16.msra.mxu1 %v17883_v56  ;;  %v17966_v55 = vld [vmem:[#allocation5 + $0x9c8] ss:$48 sps:$4 sm:$0xff]   ;;  %v17972_v56 = vld [vmem:[#allocation5 + $0xa24] ss:$48 sps:$4 sm:$0xff]  }
  0xf2   : > { %4840 = vmatprep.subr.bf16.mxu0 %v17884_v57  ;;  %5212 = vmatprep.subr.bf16.mxu1 %v17886_v58  ;;  %v17975_v57 = vld [vmem:[#allocation5 + $0xa2c] ss:$48 sps:$4 sm:$0xff]  }
  0xf3   : > { %v18004_v58 = vld [vmem:[%s20905_s21 + $0xc] sm:$0xff]  }
  0xf5   : > { %4841 = vmatpush1.bf16.msra.mxu0 %v17888_v59  ;;  %5213 = vmatpush1.bf16.msra.mxu1 %v17889_v60  ;;  %v17970_v59 = vld [vmem:[#allocation5 + $0xa20] ss:$48 sps:$4 sm:$0xff]   ;;  %v17973_v60 = vld [vmem:[#allocation5 + $0xa28] ss:$48 sps:$4 sm:$0xff]  }
  0xf6   : > { %4842 = vmatprep.subr.bf16.mxu0 %v17890_v61  ;;  %5214 = vmatprep.subr.bf16.mxu1 %v17892_v62  ;;  %v17979_v61 = vld [vmem:[#allocation5 + $0xa84] ss:$48 sps:$4 sm:$0xff]   ;;  %v17982_v62 = vld [vmem:[#allocation5 + $0xa8c] ss:$48 sps:$4 sm:$0xff]  }
  0xf9   : > { %4843 = vmatpush1.bf16.msra.mxu0 %v17894_v63  ;;  %5215 = vmatpush1.bf16.msra.mxu1 %v17895_v0  ;;  %v17977_v63 = vld [vmem:[#allocation5 + $0xa80] ss:$48 sps:$4 sm:$0xff]   ;;  %v17980_v0 = vld [vmem:[#allocation5 + $0xa88] ss:$48 sps:$4 sm:$0xff]  }
  0xfa   : > { %4905 = vmatprep.subr.bf16.mxu0 %v17899_v1  ;;  %5277 = vmatprep.subr.bf16.mxu1 %v17902_v2  ;;  %v17986_v1 = vld [vmem:[#allocation5 + $0xae4] ss:$48 sps:$4 sm:$0xff]   ;;  %v17989_v2 = vld [vmem:[#allocation5 + $0xaec] ss:$48 sps:$4 sm:$0xff]  }
  0xfc   : > { %4845 = vmatmul.mubr.bf16.vlgmr.msra.gmra.mrb[0].mxu0 %v17903_v5  ;;  %5217 = vmatmul.mubr.bf16.vlgmr.msra.gmra.mrb[0].mxu1 %v17903_v5  ;;  %v17993_v5 = vld [vmem:[#allocation5 + $0xb44] ss:$48 sps:$4 sm:$0xff]  }
  0xfd   : > { %4906 = vmatpush1.bf16.msra.mxu0 %v17897_v3  ;;  %5278 = vmatpush1.bf16.msra.mxu1 %v17900_v4  ;;  %v17984_v3 = vld [vmem:[#allocation5 + $0xae0] ss:$48 sps:$4 sm:$0xff]   ;;  %v17987_v4 = vld [vmem:[#allocation5 + $0xae8] ss:$48 sps:$4 sm:$0xff]  }
  0xfe   : > { %4907 = vmatprep.subr.bf16.mxu0 %v17906_v6  ;;  %5279 = vmatprep.subr.bf16.mxu1 %v17909_v7  ;;  %v17996_v6 = vld [vmem:[#allocation5 + $0xb4c] ss:$48 sps:$4 sm:$0xff]   ;;  %v17991_v7 = vld [vmem:[#allocation5 + $0xb40] ss:$48 sps:$4 sm:$0xff]  }
  0xff   : > { %4854 = vmatprep.mubr.bf16.mxu0 %v17934_v8  ;;  %5226 = vmatprep.mubr.bf16.mxu1 %v17934_v8  ;;  %v17994_v8 = vld [vmem:[#allocation5 + $0xb48] ss:$48 sps:$4 sm:$0xff]  }
 0x101   : > { %4908 = vmatpush1.bf16.msra.mxu0 %v17904_v9  ;;  %5280 = vmatpush1.bf16.msra.mxu1 %v17907_v10  ;;  %v18000_v9 = vld [vmem:[#allocation5 + $0xba4] ss:$48 sps:$4 sm:$0xff]   ;;  %v18003_v10 = vld [vmem:[#allocation5 + $0xbac] ss:$48 sps:$4 sm:$0xff]  }
 0x102   : > { %4909 = vmatprep.subr.bf16.mxu0 %v17912_v11  ;;  %5281 = vmatprep.subr.bf16.mxu1 %v17915_v12  ;;  %v17998_v11 = vld [vmem:[#allocation5 + $0xba0] ss:$48 sps:$4 sm:$0xff]   ;;  %v18001_v12 = vld [vmem:[#allocation5 + $0xba8] ss:$48 sps:$4 sm:$0xff]  }
 0x104   : > { %4855 = vmatmul.mubr.bf16.gmra.mrb[4].mxu0 %v17941_v14  ;;  %5227 = vmatmul.mubr.bf16.gmra.mrb[4].mxu1 %v17941_v14  ;;  %v18010_v14 = vld [vmem:[#allocation5 + $0xc0c] ss:$48 sps:$4 sm:$0xff]  }
 0x105   : > { %4910 = vmatpush1.bf16.msra.mxu0 %v17910_v13  ;;  %5282 = vmatpush1.bf16.msra.mxu1 %v17913_v15  ;;  %v18007_v13 = vld [vmem:[#allocation5 + $0xc04] ss:$48 sps:$4 sm:$0xff]   ;;  %v18011_v15 = vld [vmem:[%s20905_s21 + $0x8] sm:$0xff]  }
 0x106   : > { %4911 = vmatprep.subr.bf16.mxu0 %v17918_v16  ;;  %5283 = vmatprep.subr.bf16.mxu1 %v17921_v17  ;;  %v18005_v16 = vld [vmem:[#allocation5 + $0xc00] ss:$48 sps:$4 sm:$0xff]   ;;  %v18008_v17 = vld [vmem:[#allocation5 + $0xc08] ss:$48 sps:$4 sm:$0xff]  }
 0x107   : > { %4864 = vmatprep.mubr.bf16.mxu0 %v17948_v18  ;;  %5236 = vmatprep.mubr.bf16.mxu1 %v17948_v18  ;;  %v18014_v18 = vld [vmem:[#allocation5 + $0xc64] ss:$48 sps:$4 sm:$0xff]  }
 0x109   : > { %4912 = vmatpush1.bf16.msra.mxu0 %v17916_v19  ;;  %5284 = vmatpush1.bf16.msra.mxu1 %v17919_v20  ;;  %v18017_v19 = vld [vmem:[#allocation5 + $0xc6c] ss:$48 sps:$4 sm:$0xff]   ;;  %v18012_v20 = vld [vmem:[#allocation5 + $0xc60] ss:$48 sps:$4 sm:$0xff]  }
 0x10a   : > { %4913 = vmatprep.subr.bf16.mxu0 %v17924_v21  ;;  %5285 = vmatprep.subr.bf16.mxu1 %v17927_v22  ;;  %v18042_v21 = vld [vmem:[%s20905_s21 + $0x14] sm:$0xff]  }
 0x10b   : > { %v18015_v22 = vld [vmem:[#allocation5 + $0xc68] ss:$48 sps:$4 sm:$0xff]  }
 0x10c   : > { %4865 = vmatmul.mubr.bf16.gmra.mrb[8].mxu0 %v17955_v25  ;;  %5237 = vmatmul.mubr.bf16.gmra.mrb[8].mxu1 %v17955_v25  ;;  %v18018_v25 = vld [vmem:[#allocation5 + $0xcc0] ss:$48 sps:$4 sm:$0xff]  }
 0x10d   : > { %4914 = vmatpush1.bf16.msra.mxu0 %v17922_v23  ;;  %5286 = vmatpush1.bf16.msra.mxu1 %v17925_v24  ;;  %v18020_v23 = vld [vmem:[#allocation5 + $0xcc4] ss:$48 sps:$4 sm:$0xff]   ;;  %v18023_v24 = vld [vmem:[#allocation5 + $0xccc] ss:$48 sps:$4 sm:$0xff]  }
 0x10e   : > { %4915 = vmatprep.subr.bf16.mxu0 %v17930_v26  ;;  %5287 = vmatprep.subr.bf16.mxu1 %v17933_v27  ;;  %v18021_v26 = vld [vmem:[#allocation5 + $0xcc8] ss:$48 sps:$4 sm:$0xff]   ;;  %v18043_v27 = vld [vmem:[%s20905_s21 + $0x10] sm:$0xff]  }
 0x10f   : > { %4874 = vmatprep.mubr.bf16.mxu0 %v17962_v28  ;;  %5246 = vmatprep.mubr.bf16.mxu1 %v17962_v28  ;;  %v18026_v28 = vld [vmem:[#allocation5 + $0xd24] ss:$48 sps:$4 sm:$0xff]  }
 0x111   : > { %4916 = vmatpush1.bf16.msra.mxu0 %v17928_v29  ;;  %5288 = vmatpush1.bf16.msra.mxu1 %v17931_v30  ;;  %v18029_v29 = vld [vmem:[#allocation5 + $0xd2c] ss:$48 sps:$4 sm:$0xff]  }
 0x112   : > { %4917 = vmatprep.subr.bf16.mxu0 %v17937_v31  ;;  %5289 = vmatprep.subr.bf16.mxu1 %v17940_v32  ;;  %v18056_v30 = vld [vmem:[%s20905_s21 + $0x1c] sm:$0xff]   ;;  %v18027_v32 = vld [vmem:[#allocation5 + $0xd28] ss:$48 sps:$4 sm:$0xff]  }
 0x113   : > { %v18024_v31 = vld [vmem:[#allocation5 + $0xd20] ss:$48 sps:$4 sm:$0xff]  }
 0x114   : > { %4875 = vmatmul.mubr.bf16.gmra.mrb[12].mxu0 %v17969_v33  ;;  %5247 = vmatmul.mubr.bf16.gmra.mrb[12].mxu1 %v17969_v33  ;;  %v18032_v33 = vld [vmem:[#allocation5 + $0xd84] ss:$48 sps:$4 sm:$0xff]  }
 0x115   : > { %4918 = vmatpush1.bf16.msra.mxu0 %v17935_v34  ;;  %5290 = vmatpush1.bf16.msra.mxu1 %v17938_v35  ;;  %v18035_v34 = vld [vmem:[#allocation5 + $0xd8c] ss:$48 sps:$4 sm:$0xff]   ;;  %v18030_v35 = vld [vmem:[#allocation5 + $0xd80] ss:$48 sps:$4 sm:$0xff]  }
 0x116   : > { %4919 = vmatprep.subr.bf16.mxu0 %v17944_v36  ;;  %5291 = vmatprep.subr.bf16.mxu1 %v17947_v37  ;;  %v18057_v36 = vld [vmem:[%s20905_s21 + $0x18] sm:$0xff]  }
 0x117   : > { %4884 = vmatprep.mubr.bf16.mxu0 %v17976_v38  ;;  %5256 = vmatprep.mubr.bf16.mxu1 %v17976_v38  ;;  %v18033_v37 = vld [vmem:[#allocation5 + $0xd88] ss:$48 sps:$4 sm:$0xff]   ;;  %v18038_v38 = vld [vmem:[#allocation5 + $0xde4] ss:$48 sps:$4 sm:$0xff]  }
 0x119   : > { %4920 = vmatpush1.bf16.msra.mxu0 %v17942_v39  ;;  %5292 = vmatpush1.bf16.msra.mxu1 %v17945_v40  ;;  %v18041_v39 = vld [vmem:[#allocation5 + $0xdec] ss:$48 sps:$4 sm:$0xff]   ;;  %v18070_v40 = vld [vmem:[%s20905_s21 + $0x24] sm:$0xff]  }
 0x11a   : > { %4921 = vmatprep.subr.bf16.mxu0 %v17951_v41  ;;  %5293 = vmatprep.subr.bf16.mxu1 %v17954_v42  ;;  %v18036_v41 = vld [vmem:[#allocation5 + $0xde0] ss:$48 sps:$4 sm:$0xff]   ;;  %v18039_v42 = vld [vmem:[#allocation5 + $0xde8] ss:$48 sps:$4 sm:$0xff]  }
 0x11c   : > { %4885 = vmatmul.mubr.bf16.gmra.mrb[16].mxu0 %v17983_v45  ;;  %5257 = vmatmul.mubr.bf16.gmra.mrb[16].mxu1 %v17983_v45  ;;  %v18044_v45 = vld [vmem:[#allocation5 + $0xe40] ss:$48 sps:$4 sm:$0xff]  }
 0x11d   : > { %4922 = vmatpush1.bf16.msra.mxu0 %v17949_v43  ;;  %5294 = vmatpush1.bf16.msra.mxu1 %v17952_v44  ;;  %v18046_v43 = vld [vmem:[#allocation5 + $0xe44] ss:$48 sps:$4 sm:$0xff]   ;;  %v18049_v44 = vld [vmem:[#allocation5 + $0xe4c] ss:$48 sps:$4 sm:$0xff]  }
 0x11e   : > { %4923 = vmatprep.subr.bf16.mxu0 %v17958_v46  ;;  %5295 = vmatprep.subr.bf16.mxu1 %v17961_v47  ;;  %v18047_v46 = vld [vmem:[#allocation5 + $0xe48] ss:$48 sps:$4 sm:$0xff]   ;;  %v18071_v47 = vld [vmem:[%s20905_s21 + $0x20] sm:$0xff]  }
 0x11f   : > { %4894 = vmatprep.mubr.bf16.mxu0 %v17990_v48  ;;  %5266 = vmatprep.mubr.bf16.mxu1 %v17990_v48  ;;  %v18052_v48 = vld [vmem:[#allocation5 + $0xea4] ss:$48 sps:$4 sm:$0xff]  }
 0x121   : > { %4924 = vmatpush1.bf16.msra.mxu0 %v17956_v49  ;;  %5296 = vmatpush1.bf16.msra.mxu1 %v17959_v50  ;;  %v18055_v49 = vld [vmem:[#allocation5 + $0xeac] ss:$48 sps:$4 sm:$0xff]  }
 0x122   : > { %4925 = vmatprep.subr.bf16.mxu0 %v17965_v51  ;;  %5297 = vmatprep.subr.bf16.mxu1 %v17968_v52  ;;  %v18084_v50 = vld [vmem:[%s20905_s21 + $0x2c] sm:$0xff]   ;;  %v18053_v52 = vld [vmem:[#allocation5 + $0xea8] ss:$48 sps:$4 sm:$0xff]  }
 0x123   : > { %v18050_v51 = vld [vmem:[#allocation5 + $0xea0] ss:$48 sps:$4 sm:$0xff]  }
 0x124   : > { %4895 = vmatmul.mubr.bf16.gmra.mrb[20].mxu0 %v17997_v53  ;;  %5267 = vmatmul.mubr.bf16.gmra.mrb[20].mxu1 %v17997_v53  ;;  %v18060_v53 = vld [vmem:[#allocation5 + $0xf04] ss:$48 sps:$4 sm:$0xff]  }
 0x125   : > { %4926 = vmatpush1.bf16.msra.mxu0 %v17963_v54  ;;  %5298 = vmatpush1.bf16.msra.mxu1 %v17966_v55  ;;  %v18063_v54 = vld [vmem:[#allocation5 + $0xf0c] ss:$48 sps:$4 sm:$0xff]   ;;  %v18058_v55 = vld [vmem:[#allocation5 + $0xf00] ss:$48 sps:$4 sm:$0xff]  }
 0x126   : > { %4927 = vmatprep.subr.bf16.mxu0 %v17972_v56  ;;  %5299 = vmatprep.subr.bf16.mxu1 %v17975_v57  ;;  %v18061_v56 = vld [vmem:[#allocation5 + $0xf08] ss:$48 sps:$4 sm:$0xff]  }
 0x127   : > { %4937 = vmatprep.mubr.bf16.mxu0 %v18004_v58  ;;  %5309 = vmatprep.mubr.bf16.mxu1 %v18004_v58  ;;  %v18085_v57 = vld [vmem:[%s20905_s21 + $0x28] sm:$0xff]   ;;  %v18066_v58 = vld [vmem:[#allocation5 + $0xf64] ss:$48 sps:$4 sm:$0xff]  }
 0x129   : > { %4928 = vmatpush1.bf16.msra.mxu0 %v17970_v59  ;;  %5300 = vmatpush1.bf16.msra.mxu1 %v17973_v60  ;;  %v18069_v59 = vld [vmem:[#allocation5 + $0xf6c] ss:$48 sps:$4 sm:$0xff]   ;;  %v18098_v60 = vld [vmem:[%s20905_s21 + $0x34] sm:$0xff]  }
 0x12a   : > { %4929 = vmatprep.subr.bf16.mxu0 %v17979_v61  ;;  %5301 = vmatprep.subr.bf16.mxu1 %v17982_v62  ;;  %v18064_v61 = vld [vmem:[#allocation5 + $0xf60] ss:$48 sps:$4 sm:$0xff]   ;;  %v18067_v62 = vld [vmem:[#allocation5 + $0xf68] ss:$48 sps:$4 sm:$0xff]  }
 0x12d   : > { %4930 = vmatpush1.bf16.msra.mxu0 %v17977_v63  ;;  %5302 = vmatpush1.bf16.msra.mxu1 %v17980_v0  ;;  %v18074_v63 = vld [vmem:[#allocation5 + $0xfc4] ss:$48 sps:$4 sm:$0xff]   ;;  %v18077_v0 = vld [vmem:[#allocation5 + $0xfcc] ss:$48 sps:$4 sm:$0xff]  }
 0x12e   : > { %4931 = vmatprep.subr.bf16.mxu0 %v17986_v1  ;;  %5303 = vmatprep.subr.bf16.mxu1 %v17989_v2  ;;  %v18072_v1 = vld [vmem:[#allocation5 + $0xfc0] ss:$48 sps:$4 sm:$0xff]   ;;  %v18075_v2 = vld [vmem:[#allocation5 + $0xfc8] ss:$48 sps:$4 sm:$0xff]  }
 0x131   : > { %4932 = vmatpush1.bf16.msra.mxu0 %v17984_v3  ;;  %5304 = vmatpush1.bf16.msra.mxu1 %v17987_v4  ;;  %v18099_v3 = vld [vmem:[%s20905_s21 + $0x30] sm:$0xff]  }
 0x132   : > { %4933 = vmatprep.subr.bf16.mxu0 %v17993_v5  ;;  %5305 = vmatprep.subr.bf16.mxu1 %v17996_v6  ;;  %v18080_v4 = vld [vmem:[#allocation5 + $0x1024] ss:$48 sps:$4 sm:$0xff]   ;;  %v18083_v5 = vld [vmem:[#allocation5 + $0x102c] ss:$48 sps:$4 sm:$0xff]  }
 0x133   : > { %v18112_v6 = vld [vmem:[%s20905_s21 + $0x14] sm:$0xff]  }
 0x135   : > { %4934 = vmatpush1.bf16.msra.mxu0 %v17991_v7  ;;  %5306 = vmatpush1.bf16.msra.mxu1 %v17994_v8  ;;  %v18078_v7 = vld [vmem:[#allocation5 + $0x1020] ss:$48 sps:$4 sm:$0xff]   ;;  %v18081_v8 = vld [vmem:[#allocation5 + $0x1028] ss:$48 sps:$4 sm:$0xff]  }
 0x136   : > { %4935 = vmatprep.subr.bf16.mxu0 %v18000_v9  ;;  %5307 = vmatprep.subr.bf16.mxu1 %v18003_v10  ;;  %v18088_v9 = vld [vmem:[#allocation5 + $0x1084] ss:$48 sps:$4 sm:$0xff]   ;;  %v18091_v10 = vld [vmem:[#allocation5 + $0x108c] ss:$48 sps:$4 sm:$0xff]  }
 0x139   : > { %4936 = vmatpush1.bf16.msra.mxu0 %v17998_v11  ;;  %5308 = vmatpush1.bf16.msra.mxu1 %v18001_v12  ;;  %v18086_v11 = vld [vmem:[#allocation5 + $0x1080] ss:$48 sps:$4 sm:$0xff]   ;;  %v18089_v12 = vld [vmem:[#allocation5 + $0x1088] ss:$48 sps:$4 sm:$0xff]  }
 0x13a   : > { %4998 = vmatprep.subr.bf16.mxu0 %v18007_v13  ;;  %5370 = vmatprep.subr.bf16.mxu1 %v18010_v14  ;;  %v18094_v13 = vld [vmem:[#allocation5 + $0x10e4] ss:$48 sps:$4 sm:$0xff]   ;;  %v18097_v14 = vld [vmem:[#allocation5 + $0x10ec] ss:$48 sps:$4 sm:$0xff]  }
 0x13c   : > { %4938 = vmatmul.mubr.bf16.vlgmr.msra.gmra.mrb[0].mxu0 %v18011_v15  ;;  %5310 = vmatmul.mubr.bf16.vlgmr.msra.gmra.mrb[0].mxu1 %v18011_v15  ;;  %v18092_v15 = vld [vmem:[#allocation5 + $0x10e0] ss:$48 sps:$4 sm:$0xff]  }
 0x13d   : > { %4999 = vmatpush1.bf16.msra.mxu0 %v18005_v16  ;;  %5371 = vmatpush1.bf16.msra.mxu1 %v18008_v17  ;;  %v18095_v16 = vld [vmem:[#allocation5 + $0x10e8] ss:$48 sps:$4 sm:$0xff]   ;;  %v18102_v17 = vld [vmem:[#allocation5 + $0x1144] ss:$48 sps:$4 sm:$0xff]  }
 0x13e   : > { %5000 = vmatprep.subr.bf16.mxu0 %v18014_v18  ;;  %5372 = vmatprep.subr.bf16.mxu1 %v18017_v19  ;;  %v18105_v18 = vld [vmem:[#allocation5 + $0x114c] ss:$48 sps:$4 sm:$0xff]   ;;  %v18100_v19 = vld [vmem:[#allocation5 + $0x1140] ss:$48 sps:$4 sm:$0xff]  }
 0x13f   : > { %4947 = vmatprep.mubr.bf16.mxu0 %v18042_v21  ;;  %5319 = vmatprep.mubr.bf16.mxu1 %v18042_v21  ;;  %v18108_v21 = vld [vmem:[#allocation5 + $0x11a4] ss:$48 sps:$4 sm:$0xff]  }
 0x141   : > { %5001 = vmatpush1.bf16.msra.mxu0 %v18012_v20  ;;  %5373 = vmatpush1.bf16.msra.mxu1 %v18015_v22  ;;  %v18103_v20 = vld [vmem:[#allocation5 + $0x1148] ss:$48 sps:$4 sm:$0xff]   ;;  %v18111_v22 = vld [vmem:[#allocation5 + $0x11ac] ss:$48 sps:$4 sm:$0xff]  }
 0x142   : > { %5002 = vmatprep.subr.bf16.mxu0 %v18020_v23  ;;  %5374 = vmatprep.subr.bf16.mxu1 %v18023_v24  ;;  %v18106_v23 = vld [vmem:[#allocation5 + $0x11a0] ss:$48 sps:$4 sm:$0xff]   ;;  %v18109_v24 = vld [vmem:[#allocation5 + $0x11a8] ss:$48 sps:$4 sm:$0xff]  }
 0x144   : > { %4948 = vmatmul.mubr.bf16.gmra.mrb[4].mxu0 %v18043_v27  ;;  %5320 = vmatmul.mubr.bf16.gmra.mrb[4].mxu1 %v18043_v27  ;;  %v18113_v27 = vld [vmem:[%s20905_s21 + $0x10] sm:$0xff]  }
 0x145   : > { %5003 = vmatpush1.bf16.msra.mxu0 %v18018_v25  ;;  %5375 = vmatpush1.bf16.msra.mxu1 %v18021_v26  ;;  %v18116_v25 = vld [vmem:[#allocation5 + $0x1204] ss:$48 sps:$4 sm:$0xff]   ;;  %v18128_v26 = vld [vmem:[#allocation5 + $0x120c] ss:$48 sps:$4 sm:$0xff]  }
 0x146   : > { %5004 = vmatprep.subr.bf16.mxu0 %v18026_v28  ;;  %5376 = vmatprep.subr.bf16.mxu1 %v18029_v29  ;;  %v18114_v28 = vld [vmem:[#allocation5 + $0x1200] ss:$48 sps:$4 sm:$0xff]  }
 0x147   : > { %4957 = vmatprep.mubr.bf16.mxu0 %v18056_v30  ;;  %5329 = vmatprep.mubr.bf16.mxu1 %v18056_v30  ;;  %v18120_v29 = vld [vmem:[%s20905_s21 + $0x1c] sm:$0xff]   ;;  %v18119_v30 = vld [vmem:[#allocation5 + $0x1264] ss:$48 sps:$4 sm:$0xff]  }
 0x149   : > { %5005 = vmatpush1.bf16.msra.mxu0 %v18024_v31  ;;  %5377 = vmatpush1.bf16.msra.mxu1 %v18027_v32  ;;  %v18126_v31 = vld [vmem:[#allocation5 + $0x1208] ss:$48 sps:$4 sm:$0xff]   ;;  %v18135_v32 = vld [vmem:[#allocation5 + $0x126c] ss:$48 sps:$4 sm:$0xff]  }
 0x14a   : > { %5006 = vmatprep.subr.bf16.mxu0 %v18032_v33  ;;  %5378 = vmatprep.subr.bf16.mxu1 %v18035_v34  ;;  %v18117_v33 = vld [vmem:[#allocation5 + $0x1260] ss:$48 sps:$4 sm:$0xff]   ;;  %v18124_v34 = vld [vmem:[#allocation5 + $0x12c4] ss:$48 sps:$4 sm:$0xff]  }
 0x14c   : > { %4958 = vmatmul.mubr.bf16.gmra.mrb[8].mxu0 %v18057_v36  ;;  %5330 = vmatmul.mubr.bf16.gmra.mrb[8].mxu1 %v18057_v36  ;;  %v18121_v36 = vld [vmem:[%s20905_s21 + $0x18] sm:$0xff]  }
 0x14d   : > { %5007 = vmatpush1.bf16.msra.mxu0 %v18030_v35  ;;  %5379 = vmatpush1.bf16.msra.mxu1 %v18033_v37  ;;  %v18133_v35 = vld [vmem:[#allocation5 + $0x1268] ss:$48 sps:$4 sm:$0xff]   ;;  %v18122_v37 = vld [vmem:[#allocation5 + $0x12c0] ss:$48 sps:$4 sm:$0xff]  }
 0x14e   : > { %5008 = vmatprep.subr.bf16.mxu0 %v18038_v38  ;;  %5380 = vmatprep.subr.bf16.mxu1 %v18041_v39  ;;  %v18125_v38 = vld [vmem:[%s20905_s21 + $0x24] sm:$0xff]  }
 0x14f   : > { %4967 = vmatprep.mubr.bf16.mxu0 %v18070_v40  ;;  %5339 = vmatprep.mubr.bf16.mxu1 %v18070_v40  ;;  %v18132_v39 = vld [vmem:[#allocation5 + $0x1324] ss:$48 sps:$4 sm:$0xff]   ;;  %v18130_v40 = vld [vmem:[#allocation5 + $0x1320] ss:$48 sps:$4 sm:$0xff]  }
 0x151   : > { %5009 = vmatpush1.bf16.msra.mxu0 %v18036_v41  ;;  %5381 = vmatpush1.bf16.msra.mxu1 %v18039_v42  ;;  %v18139_v41 = vld [vmem:[#allocation5 + $0x12cc] ss:$48 sps:$4 sm:$0xff]   ;;  %v18137_v42 = vld [vmem:[#allocation5 + $0x12c8] ss:$48 sps:$4 sm:$0xff]  }
 0x152   : > { %5010 = vmatprep.subr.bf16.mxu0 %v18046_v43  ;;  %5382 = vmatprep.subr.bf16.mxu1 %v18049_v44  ;;  %v18146_v43 = vld [vmem:[#allocation5 + $0x132c] ss:$48 sps:$4 sm:$0xff]   ;;  %v18143_v44 = vld [vmem:[#allocation5 + $0x1384] ss:$48 sps:$4 sm:$0xff]  }
 0x154   : > { %4968 = vmatmul.mubr.bf16.gmra.mrb[12].mxu0 %v18071_v47  ;;  %5340 = vmatmul.mubr.bf16.gmra.mrb[12].mxu1 %v18071_v47  ;;  %v18141_v47 = vld [vmem:[#allocation5 + $0x1380] ss:$48 sps:$4 sm:$0xff]  }
 0x155   : > { %5011 = vmatpush1.bf16.msra.mxu0 %v18044_v45  ;;  %5383 = vmatpush1.bf16.msra.mxu1 %v18047_v46  ;;  %v18129_v45 = vld [vmem:[%s20905_s21 + $0x20] sm:$0xff]   ;;  %v18136_v46 = vld [vmem:[%s20905_s21 + $0x2c] sm:$0xff]  }
 0x156   : > { %5012 = vmatprep.subr.bf16.mxu0 %v18052_v48  ;;  %5384 = vmatprep.subr.bf16.mxu1 %v18055_v49  ;;  %v18144_v48 = vld [vmem:[#allocation5 + $0x1328] ss:$48 sps:$4 sm:$0xff]   ;;  %v18149_v49 = vld [vmem:[#allocation5 + $0x13e4] ss:$48 sps:$4 sm:$0xff]  }
 0x157   : > { %4977 = vmatprep.mubr.bf16.mxu0 %v18084_v50  ;;  %5349 = vmatprep.mubr.bf16.mxu1 %v18084_v50  ;;  %v18153_v50 = vld [vmem:[#allocation5 + $0x138c] ss:$48 sps:$4 sm:$0xff]  }
 0x159   : > { %5013 = vmatpush1.bf16.msra.mxu0 %v18050_v51  ;;  %5385 = vmatpush1.bf16.msra.mxu1 %v18053_v52  ;;  %v18147_v51 = vld [vmem:[#allocation5 + $0x13e0] ss:$48 sps:$4 sm:$0xff]   ;;  %v18151_v52 = vld [vmem:[#allocation5 + $0x1388] ss:$48 sps:$4 sm:$0xff]  }
 0x15a   : > { %5014 = vmatprep.subr.bf16.mxu0 %v18060_v53  ;;  %5386 = vmatprep.subr.bf16.mxu1 %v18063_v54  ;;  %v18157_v53 = vld [vmem:[#allocation5 + $0x13ec] ss:$48 sps:$4 sm:$0xff]   ;;  %v18160_v54 = vld [vmem:[#allocation5 + $0x1444] ss:$48 sps:$4 sm:$0xff]  }
 0x15c   : > { %4978 = vmatmul.mubr.bf16.gmra.mrb[16].mxu0 %v18085_v57  ;;  %5350 = vmatmul.mubr.bf16.gmra.mrb[16].mxu1 %v18085_v57  ;;  %v18155_v57 = vld [vmem:[#allocation5 + $0x13e8] ss:$48 sps:$4 sm:$0xff]  }
 0x15d   : > { %5015 = vmatpush1.bf16.msra.mxu0 %v18058_v55  ;;  %5387 = vmatpush1.bf16.msra.mxu1 %v18061_v56  ;;  %v18140_v55 = vld [vmem:[%s20905_s21 + $0x28] sm:$0xff]   ;;  %v18150_v56 = vld [vmem:[%s20905_s21 + $0x34] sm:$0xff]  }
 0x15e   : > { %5016 = vmatprep.subr.bf16.mxu0 %v18066_v58  ;;  %5388 = vmatprep.subr.bf16.mxu1 %v18069_v59  ;;  %v18158_v58 = vld [vmem:[#allocation5 + $0x1440] ss:$48 sps:$4 sm:$0xff]   ;;  %v18164_v59 = vld [vmem:[#allocation5 + $0x144c] ss:$48 sps:$4 sm:$0xff]  }
 0x15f   : > { %4987 = vmatprep.mubr.bf16.mxu0 %v18098_v60  ;;  %5359 = vmatprep.mubr.bf16.mxu1 %v18098_v60  ;;  %v18168_v60 = vld [vmem:[#allocation5 + $0x14a4] ss:$48 sps:$4 sm:$0xff]  }
 0x161   : > { %5017 = vmatpush1.bf16.msra.mxu0 %v18064_v61  ;;  %5389 = vmatpush1.bf16.msra.mxu1 %v18067_v62  ;;  %v18162_v61 = vld [vmem:[#allocation5 + $0x1448] ss:$48 sps:$4 sm:$0xff]   ;;  %v18166_v62 = vld [vmem:[#allocation5 + $0x14a0] ss:$48 sps:$4 sm:$0xff]  }
 0x162   : > { %5018 = vmatprep.subr.bf16.mxu0 %v18074_v63  ;;  %5390 = vmatprep.subr.bf16.mxu1 %v18077_v0  ;;  %v18171_v63 = vld [vmem:[#allocation5 + $0x14ac] ss:$48 sps:$4 sm:$0xff]   ;;  %v18174_v0 = vld [vmem:[#allocation5 + $0x14] ss:$48 sps:$4 sm:$0xff]  }
 0x164   : > { %4988 = vmatmul.mubr.bf16.gmra.mrb[20].mxu0 %v18099_v3  ;;  %5360 = vmatmul.mubr.bf16.gmra.mrb[20].mxu1 %v18099_v3  ;;  %v18169_v3 = vld [vmem:[#allocation5 + $0x14a8] ss:$48 sps:$4 sm:$0xff]  }
 0x165   : > { %5019 = vmatpush1.bf16.msra.mxu0 %v18072_v1  ;;  %5391 = vmatpush1.bf16.msra.mxu1 %v18075_v2  ;;  %v18154_v1 = vld [vmem:[%s20905_s21 + $0x30] sm:$0xff]   ;;  %v18161_v2 = vld [vmem:[%s20905_s21 + $0x3c] sm:$0xff]  }
 0x166   : > { %5020 = vmatprep.subr.bf16.mxu0 %v18080_v4  ;;  %5392 = vmatprep.subr.bf16.mxu1 %v18083_v5  ;;  %v18177_v4 = vld [vmem:[#allocation5 + $0x1c] ss:$48 sps:$4 sm:$0xff]  }
 0x167   : > { %5030 = vmatprep.mubr.bf16.mxu0 %v18112_v6  ;;  %5402 = vmatprep.mubr.bf16.mxu1 %v18112_v6  ;;  %v18165_v5 = vld [vmem:[%s20905_s21 + $0x38] sm:$0xff]   ;;  %v20651_v6 = vmov 0  }
 0x169   : > { %5021 = vmatpush1.bf16.msra.mxu0 %v18078_v7  ;;  %5393 = vmatpush1.bf16.msra.mxu1 %v18081_v8  ;;  %v18178_v7 = vld [vmem:[%s20905_s21 + $0x18] sm:$0xff]   ;;  %v18172_v8 = vld [vmem:[#allocation5 + $0x10] ss:$48 sps:$4 sm:$0xff]  }
 0x16a   : > { %5022 = vmatprep.subr.bf16.mxu0 %v18088_v9  ;;  %5394 = vmatprep.subr.bf16.mxu1 %v18091_v10  ;;  %v18175_v9 = vld [vmem:[#allocation5 + $0x18] ss:$48 sps:$4 sm:$0xff]   ;;  %v18181_v10 = vld [vmem:[#allocation5 + $0x74] ss:$48 sps:$4 sm:$0xff]  }
 0x16d   : > { %5023 = vmatpush1.bf16.msra.mxu0 %v18086_v11  ;;  %5395 = vmatpush1.bf16.msra.mxu1 %v18089_v12  ;;  %v18184_v11 = vld [vmem:[#allocation5 + $0x7c] ss:$48 sps:$4 sm:$0xff]   ;;  %v18179_v12 = vld [vmem:[#allocation5 + $0x70] ss:$48 sps:$4 sm:$0xff]  }
 0x16e   : > { %5024 = vmatprep.subr.bf16.mxu0 %v18094_v13  ;;  %5396 = vmatprep.subr.bf16.mxu1 %v18097_v14  ;;  %v18182_v13 = vld [vmem:[#allocation5 + $0x78] ss:$48 sps:$4 sm:$0xff]   ;;  %v18187_v14 = vld [vmem:[#allocation5 + $0xd4] ss:$48 sps:$4 sm:$0xff]  }
 0x171   : > { %5025 = vmatpush1.bf16.msra.mxu0 %v18092_v15  ;;  %5397 = vmatpush1.bf16.msra.mxu1 %v18095_v16  ;;  %v18190_v15 = vld [vmem:[#allocation5 + $0xdc] ss:$48 sps:$4 sm:$0xff]   ;;  %v18191_v16 = vld [vmem:[%s20905_s21 + $0x20] sm:$0xff]  }
 0x172   : > { %5026 = vmatprep.subr.bf16.mxu0 %v18102_v17  ;;  %5398 = vmatprep.subr.bf16.mxu1 %v18105_v18  ;;  %v18185_v17 = vld [vmem:[#allocation5 + $0xd0] ss:$48 sps:$4 sm:$0xff]   ;;  %v18188_v18 = vld [vmem:[#allocation5 + $0xd8] ss:$48 sps:$4 sm:$0xff]  }
 0x175   : > { %5027 = vmatpush1.bf16.msra.mxu0 %v18100_v19  ;;  %5399 = vmatpush1.bf16.msra.mxu1 %v18103_v20  ;;  %v18194_v19 = vld [vmem:[#allocation5 + $0x134] ss:$48 sps:$4 sm:$0xff]   ;;  %v18197_v20 = vld [vmem:[#allocation5 + $0x13c] ss:$48 sps:$4 sm:$0xff]  }
 0x176   : > { %5028 = vmatprep.subr.bf16.mxu0 %v18108_v21  ;;  %5400 = vmatprep.subr.bf16.mxu1 %v18111_v22  ;;  %v18192_v21 = vld [vmem:[#allocation5 + $0x130] ss:$48 sps:$4 sm:$0xff]   ;;  %v18195_v22 = vld [vmem:[#allocation5 + $0x138] ss:$48 sps:$4 sm:$0xff]  }
 0x179   : > { %5029 = vmatpush1.bf16.msra.mxu0 %v18106_v23  ;;  %5401 = vmatpush1.bf16.msra.mxu1 %v18109_v24  ;;  %v18200_v23 = vld [vmem:[#allocation5 + $0x194] ss:$48 sps:$4 sm:$0xff]   ;;  %v18203_v24 = vld [vmem:[#allocation5 + $0x19c] ss:$48 sps:$4 sm:$0xff]  }
 0x17a   : > { %5091 = vmatprep.subr.bf16.mxu0 %v18116_v25  ;;  %5463 = vmatprep.subr.bf16.mxu1 %v18128_v26  ;;  %v18204_v25 = vld [vmem:[%s20905_s21 + $0x28] sm:$0xff]   ;;  %v18198_v26 = vld [vmem:[#allocation5 + $0x190] ss:$48 sps:$4 sm:$0xff]  }
 0x17c   : > { %5031 = vmatmul.mubr.bf16.vlgmr.msra.gmra.mrb[0].mxu0 %v18113_v27  ;;  %5403 = vmatmul.mubr.bf16.vlgmr.msra.gmra.mrb[0].mxu1 %v18113_v27  ;;  %v18201_v27 = vld [vmem:[#allocation5 + $0x198] ss:$48 sps:$4 sm:$0xff]  }
 0x17d   : > { %5092 = vmatpush1.bf16.msra.mxu0 %v18114_v28  ;;  %5040 = vmatprep.mubr.bf16.mxu0 %v18120_v29  ;;  %v18207_v28 = vld [vmem:[#allocation5 + $0x1f4] ss:$48 sps:$4 sm:$0xff]  }
 0x17e   : > { %5093 = vmatprep.subr.bf16.mxu0 %v18119_v30  ;;  %5412 = vmatprep.mubr.bf16.mxu1 %v18120_v29  ;;  %v18210_v29 = vld [vmem:[#allocation5 + $0x1fc] ss:$48 sps:$4 sm:$0xff]   ;;  %v18205_v30 = vld [vmem:[#allocation5 + $0x1f0] ss:$48 sps:$4 sm:$0xff]  }
 0x17f   : > { %5464 = vmatpush1.bf16.msra.mxu1 %v18126_v31  ;;  %v18208_v31 = vld [vmem:[#allocation5 + $0x1f8] ss:$48 sps:$4 sm:$0xff]  }
 0x180   : > { %5465 = vmatprep.subr.bf16.mxu1 %v18135_v32  ;;  %v18213_v32 = vld [vmem:[#allocation5 + $0x254] ss:$48 sps:$4 sm:$0xff]  }
 0x181   : > { %5094 = vmatpush1.bf16.msra.mxu0 %v18117_v33  ;;  %v18216_v33 = vld [vmem:[#allocation5 + $0x25c] ss:$48 sps:$4 sm:$0xff]  }
 0x182   : > { %5095 = vmatprep.subr.bf16.mxu0 %v18124_v34  ;;  %v18217_v34 = vld [vmem:[%s20905_s21 + $0x30] sm:$0xff]  }
 0x183   : > { %5466 = vmatpush1.bf16.msra.mxu1 %v18133_v35  ;;  %v18211_v35 = vld [vmem:[#allocation5 + $0x250] ss:$48 sps:$4 sm:$0xff]  }
 0x184   : > { %5041 = vmatmul.mubr.bf16.gmra.mrb[4].mxu0 %v18121_v36  ;;  %5413 = vmatmul.mubr.bf16.gmra.mrb[4].mxu1 %v18121_v36  ;;  %v18214_v36 = vld [vmem:[#allocation5 + $0x258] ss:$48 sps:$4 sm:$0xff]  }
 0x185   : > { %5096 = vmatpush1.bf16.msra.mxu0 %v18122_v37  ;;  %5050 = vmatprep.mubr.bf16.mxu0 %v18125_v38  ;;  %v18220_v37 = vld [vmem:[#allocation5 + $0x2b4] ss:$48 sps:$4 sm:$0xff]  }
 0x186   : > { %5422 = vmatprep.mubr.bf16.mxu1 %v18125_v38  ;;  %5097 = vmatprep.subr.bf16.mxu0 %v18132_v39  ;;  %v18223_v38 = vld [vmem:[#allocation5 + $0x2bc] ss:$48 sps:$4 sm:$0xff]   ;;  %v18218_v39 = vld [vmem:[#allocation5 + $0x2b0] ss:$48 sps:$4 sm:$0xff]  }
 0x187   : > { %5467 = vmatprep.subr.bf16.mxu1 %v18139_v41  ;;  %v18226_v41 = vld [vmem:[#allocation5 + $0x314] ss:$48 sps:$4 sm:$0xff]  }
 0x188   : > { %5468 = vmatpush1.bf16.msra.mxu1 %v18137_v42  ;;  %v18229_v42 = vld [vmem:[#allocation5 + $0x31c] ss:$48 sps:$4 sm:$0xff]  }
 0x189   : > { %5098 = vmatpush1.bf16.msra.mxu0 %v18130_v40  ;;  %5469 = vmatprep.subr.bf16.mxu1 %v18146_v43  ;;  %v18221_v40 = vld [vmem:[#allocation5 + $0x2b8] ss:$48 sps:$4 sm:$0xff]  }
 0x18a   : > { %5099 = vmatprep.subr.bf16.mxu0 %v18143_v44  ;;  %v18230_v43 = vld [vmem:[%s20905_s21 + $0x38] sm:$0xff]   ;;  %v18224_v44 = vld [vmem:[#allocation5 + $0x310] ss:$48 sps:$4 sm:$0xff]  }
 0x18c   : > { %5051 = vmatmul.mubr.bf16.gmra.mrb[8].mxu0 %v18129_v45  ;;  %5423 = vmatmul.mubr.bf16.gmra.mrb[8].mxu1 %v18129_v45  ;;  %v18227_v45 = vld [vmem:[#allocation5 + $0x318] ss:$48 sps:$4 sm:$0xff]  }
 0x18d   : > { %5060 = vmatprep.mubr.bf16.mxu0 %v18136_v46  ;;  %5432 = vmatprep.mubr.bf16.mxu1 %v18136_v46  ;;  %v18233_v46 = vld [vmem:[#allocation5 + $0x374] ss:$48 sps:$4 sm:$0xff]  }
 0x18e   : > { %5100 = vmatpush1.bf16.msra.mxu0 %v18141_v47  ;;  %5470 = vmatpush1.bf16.msra.mxu1 %v18144_v48  ;;  %v18236_v47 = vld [vmem:[#allocation5 + $0x37c] ss:$48 sps:$4 sm:$0xff]   ;;  %v18231_v48 = vld [vmem:[#allocation5 + $0x370] ss:$48 sps:$4 sm:$0xff]  }
 0x18f   : > { %5101 = vmatprep.subr.bf16.mxu0 %v18149_v49  ;;  %5471 = vmatprep.subr.bf16.mxu1 %v18153_v50  ;;  %v18234_v49 = vld [vmem:[#allocation5 + $0x378] ss:$48 sps:$4 sm:$0xff]   ;;  %v18239_v50 = vld [vmem:[#allocation5 + $0x3d4] ss:$48 sps:$4 sm:$0xff]  }
 0x192   : > { %5102 = vmatpush1.bf16.msra.mxu0 %v18147_v51  ;;  %5472 = vmatpush1.bf16.msra.mxu1 %v18151_v52  ;;  %v18242_v51 = vld [vmem:[#allocation5 + $0x3dc] ss:$48 sps:$4 sm:$0xff]   ;;  %v18243_v52 = vld [vmem:[%s20905_s21 + $0x40] sm:$0xff]  }
 0x193   : > { %5473 = vmatprep.subr.bf16.mxu1 %v18157_v53  ;;  %5103 = vmatprep.subr.bf16.mxu0 %v18160_v54  ;;  %v18237_v53 = vld [vmem:[#allocation5 + $0x3d0] ss:$48 sps:$4 sm:$0xff]   ;;  %v18240_v54 = vld [vmem:[#allocation5 + $0x3d8] ss:$48 sps:$4 sm:$0xff]  }
 0x194   : > { %5061 = vmatmul.mubr.bf16.gmra.mrb[12].mxu0 %v18140_v55  ;;  %5433 = vmatmul.mubr.bf16.gmra.mrb[12].mxu1 %v18140_v55  ;;  %v18246_v55 = vld [vmem:[#allocation5 + $0x434] ss:$48 sps:$4 sm:$0xff]  }
 0x195   : > { %5070 = vmatprep.mubr.bf16.mxu0 %v18150_v56  ;;  %5442 = vmatprep.mubr.bf16.mxu1 %v18150_v56  ;;  %v18249_v56 = vld [vmem:[#allocation5 + $0x43c] ss:$48 sps:$4 sm:$0xff]  }
 0x196   : > { %5474 = vmatpush1.bf16.msra.mxu1 %v18155_v57  ;;  %5104 = vmatpush1.bf16.msra.mxu0 %v18158_v58  ;;  %v18244_v57 = vld [vmem:[#allocation5 + $0x430] ss:$48 sps:$4 sm:$0xff]   ;;  %v18247_v58 = vld [vmem:[#allocation5 + $0x438] ss:$48 sps:$4 sm:$0xff]  }
 0x197   : > { %5475 = vmatprep.subr.bf16.mxu1 %v18164_v59  ;;  %5105 = vmatprep.subr.bf16.mxu0 %v18168_v60  ;;  %v18252_v59 = vld [vmem:[#allocation5 + $0x494] ss:$48 sps:$4 sm:$0xff]   ;;  %v18255_v60 = vld [vmem:[#allocation5 + $0x49c] ss:$48 sps:$4 sm:$0xff]  }
 0x19a   : > { %5476 = vmatpush1.bf16.msra.mxu1 %v18162_v61  ;;  %5106 = vmatpush1.bf16.msra.mxu0 %v18166_v62  ;;  %v20306_v61 = vld [vmem:[%s20905_s21 + $0x4] sm:$0xff]   ;;  %v18250_v62 = vld [vmem:[#allocation5 + $0x490] ss:$48 sps:$4 sm:$0xff]  }
 0x19b   : > { %5477 = vmatprep.subr.bf16.mxu1 %v18171_v63  ;;  %5556 = vmatprep.subr.bf16.mxu0 %v18174_v0  ;;  %v18253_v63 = vld [vmem:[#allocation5 + $0x498] ss:$48 sps:$4 sm:$0xff]   ;;  %v18258_v0 = vld [vmem:[#allocation5 + $0x4f4] ss:$48 sps:$4 sm:$0xff]  }
 0x19c   : > { %5071 = vmatmul.mubr.bf16.gmra.mrb[16].mxu0 %v18154_v1  ;;  %5443 = vmatmul.mubr.bf16.gmra.mrb[16].mxu1 %v18154_v1  ;;  %v18261_v1 = vld [vmem:[#allocation5 + $0x4fc] ss:$48 sps:$4 sm:$0xff]  }
 0x19d   : > { %5080 = vmatprep.mubr.bf16.mxu0 %v18161_v2  ;;  %5452 = vmatprep.mubr.bf16.mxu1 %v18161_v2  ;;  %v18256_v2 = vld [vmem:[#allocation5 + $0x4f0] ss:$48 sps:$4 sm:$0xff]  }
 0x19e   : > { %5478 = vmatpush1.bf16.msra.mxu1 %v18169_v3  ;;  %v18259_v3 = vld [vmem:[#allocation5 + $0x4f8] ss:$48 sps:$4 sm:$0xff]  }
 0x19f   : > { %5928 = vmatprep.subr.bf16.mxu1 %v18177_v4  ;;  %v18264_v4 = vld [vmem:[#allocation5 + $0x554] ss:$48 sps:$4 sm:$0xff]  }
 0x1a4   : > { %5081 = vmatmul.mubr.bf16.gmra.mrb[20].mxu0 %v18165_v5  ;;  %5453 = vmatmul.mubr.bf16.gmra.mrb[20].mxu1 %v18165_v5  ;;  %v18267_v5 = vld [vmem:[#allocation5 + $0x55c] ss:$48 sps:$4 sm:$0xff]  }
 0x1a5   : > { %5123 = vmatprep.mubr.bf16.mxu0 %v20651_v6  ;;  %5495 = vmatprep.mubr.bf16.mxu1 %v20651_v6 }
 0x1ac   : > { %5124 = vmatmul.mubr.bf16.vlgmr.msra.gmra.mrb[0].mxu0 %v18178_v7  ;;  %5496 = vmatmul.mubr.bf16.vlgmr.msra.gmra.mrb[0].mxu1 %v18178_v7  ;;  %v18262_v7 = vld [vmem:[#allocation5 + $0x550] ss:$48 sps:$4 sm:$0xff]  }
 0x1ad   : > { %5557 = vmatpush1.bf16.msra.mxu0 %v18172_v8  ;;  %5929 = vmatpush1.bf16.msra.mxu1 %v18175_v9  ;;  %v18265_v8 = vld [vmem:[#allocation5 + $0x558] ss:$48 sps:$4 sm:$0xff]   ;;  %v18270_v9 = vld [vmem:[#allocation5 + $0x5b4] ss:$48 sps:$4 sm:$0xff]  }
 0x1ae   : > { %5558 = vmatprep.subr.bf16.mxu0 %v18181_v10  ;;  %5930 = vmatprep.subr.bf16.mxu1 %v18184_v11  ;;  %v18273_v10 = vld [vmem:[#allocation5 + $0x5bc] ss:$48 sps:$4 sm:$0xff]   ;;  %v18268_v11 = vld [vmem:[#allocation5 + $0x5b0] ss:$48 sps:$4 sm:$0xff]  }
 0x1af   : > { %5133 = vmatprep.mubr.bf16.mxu0 %v20651_v6  ;;  %5505 = vmatprep.mubr.bf16.mxu1 %v20651_v6 }
 0x1b1   : > { %5559 = vmatpush1.bf16.msra.mxu0 %v18179_v12  ;;  %5931 = vmatpush1.bf16.msra.mxu1 %v18182_v13  ;;  %v18271_v12 = vld [vmem:[#allocation5 + $0x5b8] ss:$48 sps:$4 sm:$0xff]   ;;  %v18276_v13 = vld [vmem:[#allocation5 + $0x614] ss:$48 sps:$4 sm:$0xff]  }
 0x1b2   : > { %5560 = vmatprep.subr.bf16.mxu0 %v18187_v14  ;;  %5932 = vmatprep.subr.bf16.mxu1 %v18190_v15  ;;  %v18279_v14 = vld [vmem:[#allocation5 + $0x61c] ss:$48 sps:$4 sm:$0xff]   ;;  %v18274_v15 = vld [vmem:[#allocation5 + $0x610] ss:$48 sps:$4 sm:$0xff]  }
 0x1b4   : > { %5134 = vmatmul.mubr.bf16.gmra.mrb[4].mxu0 %v18191_v16  ;;  %5506 = vmatmul.mubr.bf16.gmra.mrb[4].mxu1 %v18191_v16  ;;  %v18277_v16 = vld [vmem:[#allocation5 + $0x618] ss:$48 sps:$4 sm:$0xff]  }
 0x1b5   : > { %5561 = vmatpush1.bf16.msra.mxu0 %v18185_v17  ;;  %5933 = vmatpush1.bf16.msra.mxu1 %v18188_v18  ;;  %v18282_v17 = vld [vmem:[#allocation5 + $0x674] ss:$48 sps:$4 sm:$0xff]   ;;  %v18285_v18 = vld [vmem:[#allocation5 + $0x67c] ss:$48 sps:$4 sm:$0xff]  }
 0x1b6   : > { %5562 = vmatprep.subr.bf16.mxu0 %v18194_v19  ;;  %5934 = vmatprep.subr.bf16.mxu1 %v18197_v20  ;;  %v20307_v19 = vld [vmem:[%s20905_s21] sm:$0xff]  }
 0x1b7   : > { %5143 = vmatprep.mubr.bf16.mxu0 %v20651_v6  ;;  %5515 = vmatprep.mubr.bf16.mxu1 %v20651_v6  ;;  %v18280_v20 = vld [vmem:[#allocation5 + $0x670] ss:$48 sps:$4 sm:$0xff]  }
 0x1b9   : > { %5563 = vmatpush1.bf16.msra.mxu0 %v18192_v21  ;;  %5935 = vmatpush1.bf16.msra.mxu1 %v18195_v22  ;;  %v18283_v21 = vld [vmem:[#allocation5 + $0x678] ss:$48 sps:$4 sm:$0xff]   ;;  %v18288_v22 = vld [vmem:[#allocation5 + $0x6d4] ss:$48 sps:$4 sm:$0xff]  }
 0x1ba   : > { %5564 = vmatprep.subr.bf16.mxu0 %v18200_v23  ;;  %5936 = vmatprep.subr.bf16.mxu1 %v18203_v24  ;;  %v18291_v23 = vld [vmem:[#allocation5 + $0x6dc] ss:$48 sps:$4 sm:$0xff]  }
 0x1bb   : > { %v20308_v24 = vld [vmem:[%s20905_s21 + $0xc] sm:$0xff]  }
 0x1bc   : > { %5144 = vmatmul.mubr.bf16.gmra.mrb[8].mxu0 %v18204_v25  ;;  %5516 = vmatmul.mubr.bf16.gmra.mrb[8].mxu1 %v18204_v25  ;;  %v18286_v25 = vld [vmem:[#allocation5 + $0x6d0] ss:$48 sps:$4 sm:$0xff]  }
 0x1bd   : > { %5565 = vmatpush1.bf16.msra.mxu0 %v18198_v26  ;;  %5937 = vmatpush1.bf16.msra.mxu1 %v18201_v27  ;;  %v18289_v26 = vld [vmem:[#allocation5 + $0x6d8] ss:$48 sps:$4 sm:$0xff]   ;;  %v18294_v27 = vld [vmem:[#allocation5 + $0x734] ss:$48 sps:$4 sm:$0xff]  }
 0x1be   : > { %5566 = vmatprep.subr.bf16.mxu0 %v18207_v28  ;;  %5938 = vmatprep.subr.bf16.mxu1 %v18210_v29  ;;  %v18297_v28 = vld [vmem:[#allocation5 + $0x73c] ss:$48 sps:$4 sm:$0xff]  }
 0x1bf   : > { %5153 = vmatprep.mubr.bf16.mxu0 %v20651_v6  ;;  %5525 = vmatprep.mubr.bf16.mxu1 %v20651_v6  ;;  %v20309_v29 = vld [vmem:[%s20905_s21 + $0x8] sm:$0xff]  }
 0x1c1   : > { %5567 = vmatpush1.bf16.msra.mxu0 %v18205_v30  ;;  %5939 = vmatpush1.bf16.msra.mxu1 %v18208_v31  ;;  %v18292_v30 = vld [vmem:[#allocation5 + $0x730] ss:$48 sps:$4 sm:$0xff]   ;;  %v18295_v31 = vld [vmem:[#allocation5 + $0x738] ss:$48 sps:$4 sm:$0xff]  }
 0x1c2   : > { %5568 = vmatprep.subr.bf16.mxu0 %v18213_v32  ;;  %5940 = vmatprep.subr.bf16.mxu1 %v18216_v33  ;;  %v18300_v32 = vld [vmem:[#allocation5 + $0x794] ss:$48 sps:$4 sm:$0xff]   ;;  %v18303_v33 = vld [vmem:[#allocation5 + $0x79c] ss:$48 sps:$4 sm:$0xff]  }
 0x1c4   : > { %5154 = vmatmul.mubr.bf16.gmra.mrb[12].mxu0 %v18217_v34  ;;  %5526 = vmatmul.mubr.bf16.gmra.mrb[12].mxu1 %v18217_v34  ;;  %v20310_v34 = vld [vmem:[%s20905_s21 + $0x14] sm:$0xff]  }
 0x1c5   : > { %5569 = vmatpush1.bf16.msra.mxu0 %v18211_v35  ;;  %5941 = vmatpush1.bf16.msra.mxu1 %v18214_v36  ;;  %v18298_v35 = vld [vmem:[#allocation5 + $0x790] ss:$48 sps:$4 sm:$0xff]   ;;  %v18301_v36 = vld [vmem:[#allocation5 + $0x798] ss:$48 sps:$4 sm:$0xff]  }
 0x1c6   : > { %5570 = vmatprep.subr.bf16.mxu0 %v18220_v37  ;;  %5942 = vmatprep.subr.bf16.mxu1 %v18223_v38  ;;  %v18306_v37 = vld [vmem:[#allocation5 + $0x7f4] ss:$48 sps:$4 sm:$0xff]   ;;  %v18309_v38 = vld [vmem:[#allocation5 + $0x7fc] ss:$48 sps:$4 sm:$0xff]  }
 0x1c7   : > { %5163 = vmatprep.mubr.bf16.mxu0 %v20651_v6  ;;  %5535 = vmatprep.mubr.bf16.mxu1 %v20651_v6 }
 0x1c9   : > { %5571 = vmatpush1.bf16.msra.mxu0 %v18218_v39  ;;  %5943 = vmatpush1.bf16.msra.mxu1 %v18221_v40  ;;  %v20311_v39 = vld [vmem:[%s20905_s21 + $0x10] sm:$0xff]  }
 0x1ca   : > { %5572 = vmatprep.subr.bf16.mxu0 %v18226_v41  ;;  %5944 = vmatprep.subr.bf16.mxu1 %v18229_v42  ;;  %v18304_v40 = vld [vmem:[#allocation5 + $0x7f0] ss:$48 sps:$4 sm:$0xff]   ;;  %v18307_v41 = vld [vmem:[#allocation5 + $0x7f8] ss:$48 sps:$4 sm:$0xff]   ;;  %v18312_v42 = vld [vmem:[#allocation5 + $0x854] ss:$48 sps:$4 sm:$0xff]  }
 0x1cc   : > { %5164 = vmatmul.mubr.bf16.gmra.mrb[16].mxu0 %v18230_v43  ;;  %5536 = vmatmul.mubr.bf16.gmra.mrb[16].mxu1 %v18230_v43  ;;  %v18315_v43 = vld [vmem:[#allocation5 + $0x85c] ss:$48 sps:$4 sm:$0xff]  }
 0x1cd   : > { %5573 = vmatpush1.bf16.msra.mxu0 %v18224_v44  ;;  %5945 = vmatpush1.bf16.msra.mxu1 %v18227_v45  ;;  %v20312_v44 = vld [vmem:[%s20905_s21 + $0x1c] sm:$0xff]  }
 0x1ce   : > { %5574 = vmatprep.subr.bf16.mxu0 %v18233_v46  ;;  %5946 = vmatprep.subr.bf16.mxu1 %v18236_v47  ;;  %v18310_v45 = vld [vmem:[#allocation5 + $0x850] ss:$48 sps:$4 sm:$0xff]   ;;  %v18313_v46 = vld [vmem:[#allocation5 + $0x858] ss:$48 sps:$4 sm:$0xff]   ;;  %v18318_v47 = vld [vmem:[#allocation5 + $0x8b4] ss:$48 sps:$4 sm:$0xff]  }
 0x1cf   : > { %5173 = vmatprep.mubr.bf16.mxu0 %v20651_v6  ;;  %5545 = vmatprep.mubr.bf16.mxu1 %v20651_v6 }
 0x1d1   : > { %5575 = vmatpush1.bf16.msra.mxu0 %v18231_v48  ;;  %5947 = vmatpush1.bf16.msra.mxu1 %v18234_v49  ;;  %v18321_v48 = vld [vmem:[#allocation5 + $0x8bc] ss:$48 sps:$4 sm:$0xff]   ;;  %v18316_v49 = vld [vmem:[#allocation5 + $0x8b0] ss:$48 sps:$4 sm:$0xff]  }
 0x1d2   : > { %5576 = vmatprep.subr.bf16.mxu0 %v18239_v50  ;;  %5948 = vmatprep.subr.bf16.mxu1 %v18242_v51  ;;  %v18319_v50 = vld [vmem:[#allocation5 + $0x8b8] ss:$48 sps:$4 sm:$0xff]  }
 0x1d3   : > { %v20313_v51 = vld [vmem:[%s20905_s21 + $0x18] sm:$0xff]  }
 0x1d4   : > { %5174 = vmatmul.mubr.bf16.gmra.mrb[20].mxu0 %v18243_v52  ;;  %5546 = vmatmul.mubr.bf16.gmra.mrb[20].mxu1 %v18243_v52  ;;  %v18324_v52 = vld [vmem:[#allocation5 + $0x914] ss:$48 sps:$4 sm:$0xff]  }
 0x1d5   : > { %5577 = vmatpush1.bf16.msra.mxu0 %v18237_v53  ;;  %5949 = vmatpush1.bf16.msra.mxu1 %v18240_v54  ;;  %v18327_v53 = vld [vmem:[#allocation5 + $0x91c] ss:$48 sps:$4 sm:$0xff]   ;;  %v18322_v54 = vld [vmem:[#allocation5 + $0x910] ss:$48 sps:$4 sm:$0xff]  }
 0x1d6   : > { %5578 = vmatprep.subr.bf16.mxu0 %v18246_v55  ;;  %5950 = vmatprep.subr.bf16.mxu1 %v18249_v56  ;;  %v18325_v55 = vld [vmem:[#allocation5 + $0x918] ss:$48 sps:$4 sm:$0xff]  }
 0x1d7   : > { %5588 = vmatprep.mubr.bf16.mxu0 %v20306_v61  ;;  %5960 = vmatprep.mubr.bf16.mxu1 %v20306_v61  ;;  %v20314_v56 = vld [vmem:[%s20905_s21 + $0x24] sm:$0xff]  }
 0x1d8   : > { %v18331_v61 = vld [vmem:[#allocation5 + $0x978] ss:$48 sps:$4 sm:$0xff]  }
 0x1d9   : > { %5579 = vmatpush1.bf16.msra.mxu0 %v18244_v57  ;;  %5951 = vmatpush1.bf16.msra.mxu1 %v18247_v58  ;;  %v18330_v57 = vld [vmem:[#allocation5 + $0x974] ss:$48 sps:$4 sm:$0xff]   ;;  %v18333_v58 = vld [vmem:[#allocation5 + $0x97c] ss:$48 sps:$4 sm:$0xff]  }
 0x1da   : > { %5580 = vmatprep.subr.bf16.mxu0 %v18252_v59  ;;  %5952 = vmatprep.subr.bf16.mxu1 %v18255_v60  ;;  %v20315_v59 = vld [vmem:[%s20905_s21 + $0x20] sm:$0xff]  }
 0x1db   : > { %v18328_v60 = vld [vmem:[#allocation5 + $0x970] ss:$48 sps:$4 sm:$0xff]  }
 0x1dd   : > { %5581 = vmatpush1.bf16.msra.mxu0 %v18250_v62  ;;  %5953 = vmatpush1.bf16.msra.mxu1 %v18253_v63  ;;  %v18336_v62 = vld [vmem:[#allocation5 + $0x9d4] ss:$48 sps:$4 sm:$0xff]   ;;  %v18339_v63 = vld [vmem:[#allocation5 + $0x9dc] ss:$48 sps:$4 sm:$0xff]  }
 0x1de   : > { %5582 = vmatprep.subr.bf16.mxu0 %v18258_v0  ;;  %5954 = vmatprep.subr.bf16.mxu1 %v18261_v1  ;;  %v20316_v0 = vld [vmem:[%s20905_s21 + $0x2c] sm:$0xff]  }
 0x1df   : > { %v18334_v1 = vld [vmem:[#allocation5 + $0x9d0] ss:$48 sps:$4 sm:$0xff]  }
 0x1e1   : > { %5583 = vmatpush1.bf16.msra.mxu0 %v18256_v2  ;;  %5955 = vmatpush1.bf16.msra.mxu1 %v18259_v3  ;;  %v18337_v2 = vld [vmem:[#allocation5 + $0x9d8] ss:$48 sps:$4 sm:$0xff]   ;;  %v18342_v3 = vld [vmem:[#allocation5 + $0xa34] ss:$48 sps:$4 sm:$0xff]  }
 0x1e2   : > { %5584 = vmatprep.subr.bf16.mxu0 %v18264_v4  ;;  %5956 = vmatprep.subr.bf16.mxu1 %v18267_v5  ;;  %v18345_v4 = vld [vmem:[#allocation5 + $0xa3c] ss:$48 sps:$4 sm:$0xff]  }
 0x1e3   : > { %v20317_v5 = vld [vmem:[%s20905_s21 + $0x28] sm:$0xff]  }
 0x1e5   : > { %5585 = vmatpush1.bf16.msra.mxu0 %v18262_v7  ;;  %5957 = vmatpush1.bf16.msra.mxu1 %v18265_v8  ;;  %v18340_v7 = vld [vmem:[#allocation5 + $0xa30] ss:$48 sps:$4 sm:$0xff]   ;;  %v18343_v8 = vld [vmem:[#allocation5 + $0xa38] ss:$48 sps:$4 sm:$0xff]  }
 0x1e6   : > { %5586 = vmatprep.subr.bf16.mxu0 %v18270_v9  ;;  %5958 = vmatprep.subr.bf16.mxu1 %v18273_v10  ;;  %v18348_v9 = vld [vmem:[#allocation5 + $0xa94] ss:$48 sps:$4 sm:$0xff]   ;;  %v18351_v10 = vld [vmem:[#allocation5 + $0xa9c] ss:$48 sps:$4 sm:$0xff]  }
 0x1e9   : > { %5587 = vmatpush1.bf16.msra.mxu0 %v18268_v11  ;;  %5959 = vmatpush1.bf16.msra.mxu1 %v18271_v12  ;;  %v20318_v11 = vld [vmem:[%s20905_s21 + $0xc] sm:$0xff]  }
 0x1ea   : > { %5649 = vmatprep.subr.bf16.mxu0 %v18276_v13  ;;  %6021 = vmatprep.subr.bf16.mxu1 %v18279_v14  ;;  %v18346_v12 = vld [vmem:[#allocation5 + $0xa90] ss:$48 sps:$4 sm:$0xff]   ;;  %v18349_v13 = vld [vmem:[#allocation5 + $0xa98] ss:$48 sps:$4 sm:$0xff]   ;;  %v18354_v14 = vld [vmem:[#allocation5 + $0xaf4] ss:$48 sps:$4 sm:$0xff]  }
 0x1ec   : > { %5589 = vmatmul.mubr.bf16.vlgmr.msra.gmra.mrb[24].mxu0 %v20307_v19  ;;  %5961 = vmatmul.mubr.bf16.vlgmr.msra.gmra.mrb[24].mxu1 %v20307_v19  ;;  %v18363_v19 = vld [vmem:[#allocation5 + $0xb5c] ss:$48 sps:$4 sm:$0xff]  }
 0x1ed   : > { %5650 = vmatpush1.bf16.msra.mxu0 %v18274_v15  ;;  %6022 = vmatpush1.bf16.msra.mxu1 %v18277_v16  ;;  %v18357_v15 = vld [vmem:[#allocation5 + $0xafc] ss:$48 sps:$4 sm:$0xff]   ;;  %v18352_v16 = vld [vmem:[#allocation5 + $0xaf0] ss:$48 sps:$4 sm:$0xff]  }
 0x1ee   : > { %5651 = vmatprep.subr.bf16.mxu0 %v18282_v17  ;;  %6023 = vmatprep.subr.bf16.mxu1 %v18285_v18  ;;  %v18355_v17 = vld [vmem:[#allocation5 + $0xaf8] ss:$48 sps:$4 sm:$0xff]   ;;  %v18360_v18 = vld [vmem:[#allocation5 + $0xb54] ss:$48 sps:$4 sm:$0xff]  }
 0x1ef   : > { %5598 = vmatprep.mubr.bf16.mxu0 %v20308_v24  ;;  %5970 = vmatprep.mubr.bf16.mxu1 %v20308_v24  ;;  %v18364_v24 = vld [vmem:[#allocation5 + $0xbb0] ss:$48 sps:$4 sm:$0xff]  }
 0x1f1   : > { %5652 = vmatpush1.bf16.msra.mxu0 %v18280_v20  ;;  %6024 = vmatpush1.bf16.msra.mxu1 %v18283_v21  ;;  %v18358_v20 = vld [vmem:[#allocation5 + $0xb50] ss:$48 sps:$4 sm:$0xff]   ;;  %v18361_v21 = vld [vmem:[#allocation5 + $0xb58] ss:$48 sps:$4 sm:$0xff]  }
 0x1f2   : > { %5653 = vmatprep.subr.bf16.mxu0 %v18288_v22  ;;  %6025 = vmatprep.subr.bf16.mxu1 %v18291_v23  ;;  %v18366_v22 = vld [vmem:[#allocation5 + $0xbb4] ss:$48 sps:$4 sm:$0xff]   ;;  %v18369_v23 = vld [vmem:[#allocation5 + $0xbbc] ss:$48 sps:$4 sm:$0xff]  }
 0x1f4   : > { %5599 = vmatmul.mubr.bf16.gmra.mrb[28].mxu0 %v20309_v29  ;;  %5971 = vmatmul.mubr.bf16.gmra.mrb[28].mxu1 %v20309_v29  ;;  %v18373_v29 = vld [vmem:[#allocation5 + $0xc18] ss:$48 sps:$4 sm:$0xff]  }
 0x1f5   : > { %5654 = vmatpush1.bf16.msra.mxu0 %v18286_v25  ;;  %6026 = vmatpush1.bf16.msra.mxu1 %v18289_v26  ;;  %v18367_v25 = vld [vmem:[#allocation5 + $0xbb8] ss:$48 sps:$4 sm:$0xff]   ;;  %v18372_v26 = vld [vmem:[#allocation5 + $0xc14] ss:$48 sps:$4 sm:$0xff]  }
 0x1f6   : > { %5655 = vmatprep.subr.bf16.mxu0 %v18294_v27  ;;  %6027 = vmatprep.subr.bf16.mxu1 %v18297_v28  ;;  %v18375_v27 = vld [vmem:[#allocation5 + $0xc1c] ss:$48 sps:$4 sm:$0xff]   ;;  %v18370_v28 = vld [vmem:[#allocation5 + $0xc10] ss:$48 sps:$4 sm:$0xff]  }
 0x1f7   : > { %5608 = vmatprep.mubr.bf16.mxu0 %v20310_v34  ;;  %5980 = vmatprep.mubr.bf16.mxu1 %v20310_v34  ;;  %v20319_v34 = vld [vmem:[%s20905_s21 + $0x8] sm:$0xff]  }
 0x1f9   : > { %5656 = vmatpush1.bf16.msra.mxu0 %v18292_v30  ;;  %6028 = vmatpush1.bf16.msra.mxu1 %v18295_v31  ;;  %v18378_v30 = vld [vmem:[#allocation5 + $0xc74] ss:$48 sps:$4 sm:$0xff]   ;;  %v18381_v31 = vld [vmem:[#allocation5 + $0xc7c] ss:$48 sps:$4 sm:$0xff]  }
 0x1fa   : > { %5657 = vmatprep.subr.bf16.mxu0 %v18300_v32  ;;  %6029 = vmatprep.subr.bf16.mxu1 %v18303_v33  ;;  %v18376_v32 = vld [vmem:[#allocation5 + $0xc70] ss:$48 sps:$4 sm:$0xff]   ;;  %v18379_v33 = vld [vmem:[#allocation5 + $0xc78] ss:$48 sps:$4 sm:$0xff]  }
 0x1fc   : > { %5609 = vmatmul.mubr.bf16.gmra.mrb[32].mxu0 %v20311_v39  ;;  %5981 = vmatmul.mubr.bf16.gmra.mrb[32].mxu1 %v20311_v39  ;;  %v18385_v39 = vld [vmem:[#allocation5 + $0xcd8] ss:$48 sps:$4 sm:$0xff]  }
 0x1fd   : > { %5658 = vmatpush1.bf16.msra.mxu0 %v18298_v35  ;;  %6030 = vmatpush1.bf16.msra.mxu1 %v18301_v36  ;;  %v18384_v35 = vld [vmem:[#allocation5 + $0xcd4] ss:$48 sps:$4 sm:$0xff]   ;;  %v18387_v36 = vld [vmem:[#allocation5 + $0xcdc] ss:$48 sps:$4 sm:$0xff]  }
 0x1fe   : > { %5659 = vmatprep.subr.bf16.mxu0 %v18306_v37  ;;  %6031 = vmatprep.subr.bf16.mxu1 %v18309_v38  ;;  %v20320_v37 = vld [vmem:[%s20905_s21 + $0x14] sm:$0xff]   ;;  %v18382_v38 = vld [vmem:[#allocation5 + $0xcd0] ss:$48 sps:$4 sm:$0xff]  }
 0x1ff   : > { %5618 = vmatprep.mubr.bf16.mxu0 %v20312_v44  ;;  %5990 = vmatprep.mubr.bf16.mxu1 %v20312_v44  ;;  %v18391_v44 = vld [vmem:[#allocation5 + $0xd38] ss:$48 sps:$4 sm:$0xff]  }
 0x201   : > { %5660 = vmatpush1.bf16.msra.mxu0 %v18304_v40  ;;  %6032 = vmatpush1.bf16.msra.mxu1 %v18307_v41  ;;  %v18390_v40 = vld [vmem:[#allocation5 + $0xd34] ss:$48 sps:$4 sm:$0xff]   ;;  %v18393_v41 = vld [vmem:[#allocation5 + $0xd3c] ss:$48 sps:$4 sm:$0xff]  }
 0x202   : > { %5661 = vmatprep.subr.bf16.mxu0 %v18312_v42  ;;  %6033 = vmatprep.subr.bf16.mxu1 %v18315_v43  ;;  %v20321_v42 = vld [vmem:[%s20905_s21 + $0x10] sm:$0xff]  }
 0x203   : > { %v18388_v43 = vld [vmem:[#allocation5 + $0xd30] ss:$48 sps:$4 sm:$0xff]  }
 0x204   : > { %5619 = vmatmul.mubr.bf16.gmra.mrb[36].mxu0 %v20313_v51  ;;  %5991 = vmatmul.mubr.bf16.gmra.mrb[36].mxu1 %v20313_v51  ;;  %v18405_v51 = vld [vmem:[#allocation5 + $0xdfc] ss:$48 sps:$4 sm:$0xff]  }
 0x205   : > { %5662 = vmatpush1.bf16.msra.mxu0 %v18310_v45  ;;  %6034 = vmatpush1.bf16.msra.mxu1 %v18313_v46  ;;  %v18396_v45 = vld [vmem:[#allocation5 + $0xd94] ss:$48 sps:$4 sm:$0xff]   ;;  %v18399_v46 = vld [vmem:[#allocation5 + $0xd9c] ss:$48 sps:$4 sm:$0xff]  }
 0x206   : > { %5663 = vmatprep.subr.bf16.mxu0 %v18318_v47  ;;  %6035 = vmatprep.subr.bf16.mxu1 %v18321_v48  ;;  %v20322_v47 = vld [vmem:[%s20905_s21 + $0x1c] sm:$0xff]  }
 0x207   : > { %5628 = vmatprep.mubr.bf16.mxu0 %v20314_v56  ;;  %6000 = vmatprep.mubr.bf16.mxu1 %v20314_v56  ;;  %v18394_v48 = vld [vmem:[#allocation5 + $0xd90] ss:$48 sps:$4 sm:$0xff]   ;;  %v18411_v56 = vld [vmem:[#allocation5 + $0xe5c] ss:$48 sps:$4 sm:$0xff]  }
 0x209   : > { %5664 = vmatpush1.bf16.msra.mxu0 %v18316_v49  ;;  %6036 = vmatpush1.bf16.msra.mxu1 %v18319_v50  ;;  %v18397_v49 = vld [vmem:[#allocation5 + $0xd98] ss:$48 sps:$4 sm:$0xff]   ;;  %v18402_v50 = vld [vmem:[#allocation5 + $0xdf4] ss:$48 sps:$4 sm:$0xff]  }
 0x20a   : > { %5665 = vmatprep.subr.bf16.mxu0 %v18324_v52  ;;  %6037 = vmatprep.subr.bf16.mxu1 %v18327_v53  ;;  %v20323_v52 = vld [vmem:[%s20905_s21 + $0x18] sm:$0xff]   ;;  %v18400_v53 = vld [vmem:[#allocation5 + $0xdf0] ss:$48 sps:$4 sm:$0xff]  }
 0x20c   : > { %5629 = vmatmul.mubr.bf16.gmra.mrb[40].mxu0 %v20315_v59  ;;  %6001 = vmatmul.mubr.bf16.gmra.mrb[40].mxu1 %v20315_v59  ;;  %v18409_v59 = vld [vmem:[#allocation5 + $0xe58] ss:$48 sps:$4 sm:$0xff]  }
 0x20d   : > { %5666 = vmatpush1.bf16.msra.mxu0 %v18322_v54  ;;  %6038 = vmatpush1.bf16.msra.mxu1 %v18325_v55  ;;  %v18403_v54 = vld [vmem:[#allocation5 + $0xdf8] ss:$48 sps:$4 sm:$0xff]   ;;  %v18408_v55 = vld [vmem:[#allocation5 + $0xe54] ss:$48 sps:$4 sm:$0xff]  }
 0x20e   : > { %5667 = vmatprep.subr.bf16.mxu0 %v18330_v57  ;;  %6039 = vmatprep.subr.bf16.mxu1 %v18333_v58  ;;  %v20324_v57 = vld [vmem:[%s20905_s21 + $0x24] sm:$0xff]   ;;  %v18406_v58 = vld [vmem:[#allocation5 + $0xe50] ss:$48 sps:$4 sm:$0xff]  }
 0x20f   : > { %5638 = vmatprep.mubr.bf16.mxu0 %v20316_v0  ;;  %6010 = vmatprep.mubr.bf16.mxu1 %v20316_v0  ;;  %v18415_v0 = vld [vmem:[#allocation5 + $0xeb8] ss:$48 sps:$4 sm:$0xff]  }
 0x211   : > { %5668 = vmatpush1.bf16.msra.mxu0 %v18328_v60  ;;  %6040 = vmatpush1.bf16.msra.mxu1 %v18331_v61  ;;  %v18414_v60 = vld [vmem:[#allocation5 + $0xeb4] ss:$48 sps:$4 sm:$0xff]   ;;  %v18417_v61 = vld [vmem:[#allocation5 + $0xebc] ss:$48 sps:$4 sm:$0xff]  }
 0x212   : > { %5669 = vmatprep.subr.bf16.mxu0 %v18336_v62  ;;  %6041 = vmatprep.subr.bf16.mxu1 %v18339_v63  ;;  %v20325_v62 = vld [vmem:[%s20905_s21 + $0x20] sm:$0xff]  }
 0x213   : > { %v18412_v63 = vld [vmem:[#allocation5 + $0xeb0] ss:$48 sps:$4 sm:$0xff]  }
 0x214   : > { %5639 = vmatmul.mubr.bf16.gmra.mrb[44].mxu0 %v20317_v5  ;;  %6011 = vmatmul.mubr.bf16.gmra.mrb[44].mxu1 %v20317_v5  ;;  %v18421_v5 = vld [vmem:[#allocation5 + $0xf18] ss:$48 sps:$4 sm:$0xff]  }
 0x215   : > { %5670 = vmatpush1.bf16.msra.mxu0 %v18334_v1  ;;  %6042 = vmatpush1.bf16.msra.mxu1 %v18337_v2  ;;  %v18420_v1 = vld [vmem:[#allocation5 + $0xf14] ss:$48 sps:$4 sm:$0xff]   ;;  %v18423_v2 = vld [vmem:[#allocation5 + $0xf1c] ss:$48 sps:$4 sm:$0xff]  }
 0x216   : > { %5671 = vmatprep.subr.bf16.mxu0 %v18342_v3  ;;  %6043 = vmatprep.subr.bf16.mxu1 %v18345_v4  ;;  %v20326_v3 = vld [vmem:[%s20905_s21 + $0x2c] sm:$0xff]  }
 0x217   : > { %5681 = vmatprep.mubr.bf16.mxu0 %v20318_v11  ;;  %6053 = vmatprep.mubr.bf16.mxu1 %v20318_v11  ;;  %v18418_v4 = vld [vmem:[#allocation5 + $0xf10] ss:$48 sps:$4 sm:$0xff]   ;;  %v18427_v11 = vld [vmem:[#allocation5 + $0xf78] ss:$48 sps:$4 sm:$0xff]  }
 0x219   : > { %5672 = vmatpush1.bf16.msra.mxu0 %v18340_v7  ;;  %6044 = vmatpush1.bf16.msra.mxu1 %v18343_v8  ;;  %v18426_v7 = vld [vmem:[#allocation5 + $0xf74] ss:$48 sps:$4 sm:$0xff]   ;;  %v18429_v8 = vld [vmem:[#allocation5 + $0xf7c] ss:$48 sps:$4 sm:$0xff]  }
 0x21a   : > { %5673 = vmatprep.subr.bf16.mxu0 %v18348_v9  ;;  %6045 = vmatprep.subr.bf16.mxu1 %v18351_v10  ;;  %v20327_v9 = vld [vmem:[%s20905_s21 + $0x28] sm:$0xff]   ;;  %v18424_v10 = vld [vmem:[#allocation5 + $0xf70] ss:$48 sps:$4 sm:$0xff]  }
 0x21d   : > { %5674 = vmatpush1.bf16.msra.mxu0 %v18346_v12  ;;  %6046 = vmatpush1.bf16.msra.mxu1 %v18349_v13  ;;  %v18432_v12 = vld [vmem:[#allocation5 + $0xfd4] ss:$48 sps:$4 sm:$0xff]   ;;  %v18435_v13 = vld [vmem:[#allocation5 + $0xfdc] ss:$48 sps:$4 sm:$0xff]  }
 0x21e   : > { %5675 = vmatprep.subr.bf16.mxu0 %v18354_v14  ;;  %6047 = vmatprep.subr.bf16.mxu1 %v18357_v15  ;;  %v20328_v14 = vld [vmem:[%s20905_s21 + $0x34] sm:$0xff]   ;;  %v18430_v15 = vld [vmem:[#allocation5 + $0xfd0] ss:$48 sps:$4 sm:$0xff]  }
 0x221   : > { %5676 = vmatpush1.bf16.msra.mxu0 %v18352_v16  ;;  %6048 = vmatpush1.bf16.msra.mxu1 %v18355_v17  ;;  %v18433_v16 = vld [vmem:[#allocation5 + $0xfd8] ss:$48 sps:$4 sm:$0xff]   ;;  %v18438_v17 = vld [vmem:[#allocation5 + $0x1034] ss:$48 sps:$4 sm:$0xff]  }
 0x222   : > { %5677 = vmatprep.subr.bf16.mxu0 %v18360_v18  ;;  %6049 = vmatprep.subr.bf16.mxu1 %v18363_v19  ;;  %v18441_v18 = vld [vmem:[#allocation5 + $0x103c] ss:$48 sps:$4 sm:$0xff]   ;;  %v20329_v19 = vld [vmem:[%s20905_s21 + $0x30] sm:$0xff]  }
 0x225   : > { %5678 = vmatpush1.bf16.msra.mxu0 %v18358_v20  ;;  %6050 = vmatpush1.bf16.msra.mxu1 %v18361_v21  ;;  %v18436_v20 = vld [vmem:[#allocation5 + $0x1030] ss:$48 sps:$4 sm:$0xff]   ;;  %v18439_v21 = vld [vmem:[#allocation5 + $0x1038] ss:$48 sps:$4 sm:$0xff]  }
 0x226   : > { %5679 = vmatprep.subr.bf16.mxu0 %v18366_v22  ;;  %6051 = vmatprep.subr.bf16.mxu1 %v18369_v23  ;;  %v18444_v22 = vld [vmem:[#allocation5 + $0x1094] ss:$48 sps:$4 sm:$0xff]   ;;  %v18447_v23 = vld [vmem:[#allocation5 + $0x109c] ss:$48 sps:$4 sm:$0xff]  }
 0x229   : > { %5680 = vmatpush1.bf16.msra.mxu0 %v18364_v24  ;;  %6052 = vmatpush1.bf16.msra.mxu1 %v18367_v25  ;;  %v20330_v24 = vld [vmem:[%s20905_s21 + $0x14] sm:$0xff]   ;;  %v18442_v25 = vld [vmem:[#allocation5 + $0x1090] ss:$48 sps:$4 sm:$0xff]  }
 0x22a   : > { %5742 = vmatprep.subr.bf16.mxu0 %v18372_v26  ;;  %6114 = vmatprep.subr.bf16.mxu1 %v18375_v27  ;;  %v18445_v26 = vld [vmem:[#allocation5 + $0x1098] ss:$48 sps:$4 sm:$0xff]   ;;  %v18450_v27 = vld [vmem:[#allocation5 + $0x10f4] ss:$48 sps:$4 sm:$0xff]  }
 0x22c   : > { %5682 = vmatmul.mubr.bf16.vlgmr.msra.gmra.mrb[24].mxu0 %v20319_v34  ;;  %6054 = vmatmul.mubr.bf16.vlgmr.msra.gmra.mrb[24].mxu1 %v20319_v34  ;;  %v18457_v34 = vld [vmem:[#allocation5 + $0x1158] ss:$48 sps:$4 sm:$0xff]  }
 0x22d   : > { %5743 = vmatpush1.bf16.msra.mxu0 %v18370_v28  ;;  %6115 = vmatpush1.bf16.msra.mxu1 %v18373_v29  ;;  %v18453_v28 = vld [vmem:[#allocation5 + $0x10fc] ss:$48 sps:$4 sm:$0xff]   ;;  %v18448_v29 = vld [vmem:[#allocation5 + $0x10f0] ss:$48 sps:$4 sm:$0xff]  }
 0x22e   : > { %5744 = vmatprep.subr.bf16.mxu0 %v18378_v30  ;;  %6116 = vmatprep.subr.bf16.mxu1 %v18381_v31  ;;  %v18451_v30 = vld [vmem:[#allocation5 + $0x10f8] ss:$48 sps:$4 sm:$0xff]   ;;  %v18456_v31 = vld [vmem:[#allocation5 + $0x1154] ss:$48 sps:$4 sm:$0xff]  }
 0x22f   : > { %5691 = vmatprep.mubr.bf16.mxu0 %v20320_v37  ;;  %6063 = vmatprep.mubr.bf16.mxu1 %v20320_v37  ;;  %v18460_v37 = vld [vmem:[#allocation5 + $0x11b0] ss:$48 sps:$4 sm:$0xff]  }
 0x231   : > { %5745 = vmatpush1.bf16.msra.mxu0 %v18376_v32  ;;  %6117 = vmatpush1.bf16.msra.mxu1 %v18379_v33  ;;  %v18459_v32 = vld [vmem:[#allocation5 + $0x115c] ss:$48 sps:$4 sm:$0xff]   ;;  %v18454_v33 = vld [vmem:[#allocation5 + $0x1150] ss:$48 sps:$4 sm:$0xff]  }
 0x232   : > { %5746 = vmatprep.subr.bf16.mxu0 %v18384_v35  ;;  %6118 = vmatprep.subr.bf16.mxu1 %v18387_v36  ;;  %v18462_v35 = vld [vmem:[#allocation5 + $0x11b4] ss:$48 sps:$4 sm:$0xff]   ;;  %v18465_v36 = vld [vmem:[#allocation5 + $0x11bc] ss:$48 sps:$4 sm:$0xff]  }
 0x234   : > { %5692 = vmatmul.mubr.bf16.gmra.mrb[28].mxu0 %v20321_v42  ;;  %6064 = vmatmul.mubr.bf16.gmra.mrb[28].mxu1 %v20321_v42  ;;  %v18471_v42 = vld [vmem:[#allocation5 + $0x1274] ss:$48 sps:$4 sm:$0xff]  }
 0x235   : > { %5747 = vmatpush1.bf16.msra.mxu0 %v18382_v38  ;;  %6119 = vmatpush1.bf16.msra.mxu1 %v18385_v39  ;;  %v18463_v38 = vld [vmem:[#allocation5 + $0x11b8] ss:$48 sps:$4 sm:$0xff]   ;;  %v18468_v39 = vld [vmem:[#allocation5 + $0x1214] ss:$48 sps:$4 sm:$0xff]  }
 0x236   : > { %5748 = vmatprep.subr.bf16.mxu0 %v18390_v40  ;;  %6120 = vmatprep.subr.bf16.mxu1 %v18393_v41  ;;  %v18477_v40 = vld [vmem:[#allocation5 + $0x121c] ss:$48 sps:$4 sm:$0xff]   ;;  %v18466_v41 = vld [vmem:[#allocation5 + $0x1210] ss:$48 sps:$4 sm:$0xff]  }
 0x237   : > { %5701 = vmatprep.mubr.bf16.mxu0 %v20322_v47  ;;  %6073 = vmatprep.mubr.bf16.mxu1 %v20322_v47  ;;  %v20332_v47 = vld [vmem:[%s20905_s21 + $0x1c] sm:$0xff]  }
 0x239   : > { %5749 = vmatpush1.bf16.msra.mxu0 %v18388_v43  ;;  %6121 = vmatpush1.bf16.msra.mxu1 %v18391_v44  ;;  %v18475_v43 = vld [vmem:[#allocation5 + $0x1218] ss:$48 sps:$4 sm:$0xff]   ;;  %v18483_v44 = vld [vmem:[#allocation5 + $0x127c] ss:$48 sps:$4 sm:$0xff]  }
 0x23a   : > { %5750 = vmatprep.subr.bf16.mxu0 %v18396_v45  ;;  %6122 = vmatprep.subr.bf16.mxu1 %v18399_v46  ;;  %v20331_v45 = vld [vmem:[%s20905_s21 + $0x10] sm:$0xff]  }
 0x23b   : > { %v18469_v46 = vld [vmem:[#allocation5 + $0x1270] ss:$48 sps:$4 sm:$0xff]  }
 0x23c   : > { %5702 = vmatmul.mubr.bf16.gmra.mrb[32].mxu0 %v20323_v52  ;;  %6074 = vmatmul.mubr.bf16.gmra.mrb[32].mxu1 %v20323_v52  ;;  %v18480_v52 = vld [vmem:[#allocation5 + $0x1334] ss:$48 sps:$4 sm:$0xff]  }
 0x23d   : > { %5751 = vmatpush1.bf16.msra.mxu0 %v18394_v48  ;;  %6123 = vmatpush1.bf16.msra.mxu1 %v18397_v49  ;;  %v18474_v48 = vld [vmem:[#allocation5 + $0x12d4] ss:$48 sps:$4 sm:$0xff]   ;;  %v18481_v49 = vld [vmem:[#allocation5 + $0x1278] ss:$48 sps:$4 sm:$0xff]  }
 0x23e   : > { %5752 = vmatprep.subr.bf16.mxu0 %v18402_v50  ;;  %6124 = vmatprep.subr.bf16.mxu1 %v18405_v51  ;;  %v7216_v50 = vlaneseq  ;;  %v18472_v51 = vld [vmem:[#allocation5 + $0x12d0] ss:$48 sps:$4 sm:$0xff]  }
 0x23f   : > { %5711 = vmatprep.mubr.bf16.mxu0 %v20324_v57  ;;  %6083 = vmatprep.mubr.bf16.mxu1 %v20324_v57  ;;  %v20334_v57 = vld [vmem:[%s20905_s21 + $0x24] sm:$0xff]  }
 0x241   : > { %5753 = vmatpush1.bf16.msra.mxu0 %v18400_v53  ;;  %6125 = vmatpush1.bf16.msra.mxu1 %v18403_v54  ;;  %v18484_v53 = vld [vmem:[#allocation5 + $0x12d8] ss:$48 sps:$4 sm:$0xff]   ;;  %v18486_v54 = vld [vmem:[#allocation5 + $0x12dc] ss:$48 sps:$4 sm:$0xff]  }
 0x242   : > { %5754 = vmatprep.subr.bf16.mxu0 %v18408_v55  ;;  %6126 = vmatprep.subr.bf16.mxu1 %v18411_v56  ;;  %v20333_v55 = vld [vmem:[%s20905_s21 + $0x18] sm:$0xff]   ;;  %v20989_v56 = vshrl.u32 %v7216_v50, 7 }
 0x244   : > { %5712 = vmatmul.mubr.bf16.gmra.mrb[36].mxu0 %v20325_v62  ;;  %6084 = vmatmul.mubr.bf16.gmra.mrb[36].mxu1 %v20325_v62  ;;  %v20993_v62 = vsub.s32 0, %v20989_v56 }
 0x245   : > { %5755 = vmatpush1.bf16.msra.mxu0 %v18406_v58  ;;  %6127 = vmatpush1.bf16.msra.mxu1 %v18409_v59  ;;  %v18478_v58 = vld [vmem:[#allocation5 + $0x1330] ss:$48 sps:$4 sm:$0xff]   ;;  %v18492_v59 = vld [vmem:[#allocation5 + $0x133c] ss:$48 sps:$4 sm:$0xff]  }
 0x246   : > { %5756 = vmatprep.subr.bf16.mxu0 %v18414_v60  ;;  %6128 = vmatprep.subr.bf16.mxu1 %v18417_v61  ;;  %v18489_v60 = vld [vmem:[#allocation5 + $0x1394] ss:$48 sps:$4 sm:$0xff]  }
 0x247   : > { %5721 = vmatprep.mubr.bf16.mxu0 %v20326_v3  ;;  %6093 = vmatprep.mubr.bf16.mxu1 %v20326_v3  ;;  %v7188_v61 = vld [vmem:[#allocation8] sm:$0xff]  ;;  %v18490_v3 = vld [vmem:[#allocation5 + $0x1338] ss:$48 sps:$4 sm:$0xff]  }
 0x249   : > { %5757 = vmatpush1.bf16.msra.mxu0 %v18412_v63  ;;  %6129 = vmatpush1.bf16.msra.mxu1 %v18415_v0  ;;  %v20996_v63 = vsub.s32 2, %v20989_v56  ;;  %v20999_v0 = vsub.s32 1, %v20989_v56 }
 0x24a   : > { %5758 = vmatprep.subr.bf16.mxu0 %v18420_v1  ;;  %6130 = vmatprep.subr.bf16.mxu1 %v18423_v2  ;;  %v21002_v1 = vsub.s32 3, %v20989_v56  ;;  %v18487_v2 = vld [vmem:[#allocation5 + $0x1390] ss:$48 sps:$4 sm:$0xff]  }
 0x24c   : > { %5722 = vmatmul.mubr.bf16.gmra.mrb[40].mxu0 %v20327_v9  ;;  %6094 = vmatmul.mubr.bf16.gmra.mrb[40].mxu1 %v20327_v9  ;;  %v21009_v9 = vrot.slane %v7188_v61, %v20996_v63 }
 0x24d   : > { %5759 = vmatpush1.bf16.msra.mxu0 %v18418_v4  ;;  %6131 = vmatpush1.bf16.msra.mxu1 %v18421_v5  ;;  %v18495_v4 = vld [vmem:[#allocation5 + $0x13f4] ss:$48 sps:$4 sm:$0xff]   ;;  %v18498_v5 = vld [vmem:[#allocation5 + $0x139c] ss:$48 sps:$4 sm:$0xff]  }
 0x24e   : > { %5760 = vmatprep.subr.bf16.mxu0 %v18426_v7  ;;  %6132 = vmatprep.subr.bf16.mxu1 %v18429_v8  ;;  %v20335_v7 = vld [vmem:[%s20905_s21 + $0x20] sm:$0xff]   ;;  %v21006_v8 = vrot.slane %v7188_v61, %v20993_v62 }
 0x24f   : > { %5731 = vmatprep.mubr.bf16.mxu0 %v20328_v14  ;;  %6103 = vmatprep.mubr.bf16.mxu1 %v20328_v14  ;;  %v18501_v14 = vld [vmem:[#allocation5 + $0x13fc] ss:$48 sps:$4 sm:$0xff]  }
 0x251   : > { %5761 = vmatpush1.bf16.msra.mxu0 %v18424_v10  ;;  %6133 = vmatpush1.bf16.msra.mxu1 %v18427_v11  ;;  %v21012_v10 = vrot.slane %v7188_v61, %v20999_v0  ;;  %v21015_v11 = vrot.slane %v7188_v61, %v21002_v1 }
 0x252   : > { %5762 = vmatprep.subr.bf16.mxu0 %v18432_v12  ;;  %6134 = vmatprep.subr.bf16.mxu1 %v18435_v13  ;;  %v20336_v12 = vld [vmem:[%s20905_s21 + $0x2c] sm:$0xff]   ;;  %v18496_v13 = vld [vmem:[#allocation5 + $0x1398] ss:$48 sps:$4 sm:$0xff]  }
 0x254   : > { %5732 = vmatmul.mubr.bf16.gmra.mrb[44].mxu0 %v20329_v19  ;;  %6104 = vmatmul.mubr.bf16.gmra.mrb[44].mxu1 %v20329_v19 }
 0x255   : > { %5763 = vmatpush1.bf16.msra.mxu0 %v18430_v15  ;;  %6135 = vmatpush1.bf16.msra.mxu1 %v18433_v16  ;;  %v18493_v15 = vld [vmem:[#allocation5 + $0x13f0] ss:$48 sps:$4 sm:$0xff]   ;;  %v18504_v16 = vld [vmem:[#allocation5 + $0x1454] ss:$48 sps:$4 sm:$0xff]  }
 0x256   : > { %5764 = vmatprep.subr.bf16.mxu0 %v18438_v17  ;;  %6136 = vmatprep.subr.bf16.mxu1 %v18441_v18 }
 0x257   : > { %5774 = vmatprep.mubr.bf16.mxu0 %v20330_v24  ;;  %6146 = vmatprep.mubr.bf16.mxu1 %v20330_v24 }
 0x259   : > { %5765 = vmatpush1.bf16.msra.mxu0 %v18436_v20  ;;  %6137 = vmatpush1.bf16.msra.mxu1 %v18439_v21 }
 0x25a   : > { %5766 = vmatprep.subr.bf16.mxu0 %v18444_v22  ;;  %6138 = vmatprep.subr.bf16.mxu1 %v18447_v23 }
 0x25d   : > { %5767 = vmatpush1.bf16.msra.mxu0 %v18442_v25  ;;  %6139 = vmatpush1.bf16.msra.mxu1 %v18445_v26 }
 0x25e   : > { %5768 = vmatprep.subr.bf16.mxu0 %v18450_v27  ;;  %6140 = vmatprep.subr.bf16.mxu1 %v18453_v28  ;;  %v18499_v27 = vld [vmem:[#allocation5 + $0x13f8] ss:$48 sps:$4 sm:$0xff]  }
 0x261   : > { %5769 = vmatpush1.bf16.msra.mxu0 %v18448_v29  ;;  %6141 = vmatpush1.bf16.msra.mxu1 %v18451_v30 }
 0x262   : > { %5770 = vmatprep.subr.bf16.mxu0 %v18456_v31  ;;  %6142 = vmatprep.subr.bf16.mxu1 %v18459_v32  ;;  %v18502_v32 = vld [vmem:[#allocation5 + $0x1450] ss:$48 sps:$4 sm:$0xff]  }
 0x265   : > { %5771 = vmatpush1.bf16.msra.mxu0 %v18454_v33  ;;  %6143 = vmatpush1.bf16.msra.mxu1 %v18457_v34  ;;  %v18507_v33 = vld [vmem:[#allocation5 + $0x145c] ss:$48 sps:$4 sm:$0xff]  }
 0x266   : > { %5772 = vmatprep.subr.bf16.mxu0 %v18462_v35  ;;  %6144 = vmatprep.subr.bf16.mxu1 %v18465_v36 }
 0x269   : > { %5773 = vmatpush1.bf16.msra.mxu0 %v18460_v37  ;;  %6145 = vmatpush1.bf16.msra.mxu1 %v18463_v38  ;;  %v18510_v37 = vld [vmem:[#allocation5 + $0x14b4] ss:$48 sps:$4 sm:$0xff]  }
 0x26a   : > { %5835 = vmatprep.subr.bf16.mxu0 %v18468_v39  ;;  %6207 = vmatprep.subr.bf16.mxu1 %v18477_v40 }
 0x26c   : > { %5775 = vmatmul.mubr.bf16.vlgmr.msra.gmra.mrb[24].mxu0 %v20331_v45  ;;  %6147 = vmatmul.mubr.bf16.vlgmr.msra.gmra.mrb[24].mxu1 %v20331_v45 }
 0x26d   : > { %5836 = vmatpush1.bf16.msra.mxu0 %v18466_v41  ;;  %5784 = vmatprep.mubr.bf16.mxu0 %v20332_v47  ;;  %v20337_v41 = vld [vmem:[%s20905_s21 + $0x28] sm:$0xff]  }
 0x26e   : > { %5837 = vmatprep.subr.bf16.mxu0 %v18471_v42  ;;  %6156 = vmatprep.mubr.bf16.mxu1 %v20332_v47  ;;  %v18505_v42 = vld [vmem:[#allocation5 + $0x1458] ss:$48 sps:$4 sm:$0xff]  }
 0x26f   : > { %6208 = vmatpush1.bf16.msra.mxu1 %v18475_v43  ;;  %v20338_v47 = vld [vmem:[%s20905_s21 + $0x34] sm:$0xff]  }
 0x270   : > { %6209 = vmatprep.subr.bf16.mxu1 %v18483_v44 }
 0x271   : > { %5838 = vmatpush1.bf16.msra.mxu0 %v18469_v46 }
 0x272   : > { %5839 = vmatprep.subr.bf16.mxu0 %v18474_v48  ;;  %v18513_v48 = vld [vmem:[#allocation5 + $0x14bc] ss:$48 sps:$4 sm:$0xff]  }
 0x273   : > { %6210 = vmatpush1.bf16.msra.mxu1 %v18481_v49 }
 0x274   : > { %5785 = vmatmul.mubr.bf16.gmra.mrb[28].mxu0 %v20333_v55  ;;  %6157 = vmatmul.mubr.bf16.gmra.mrb[28].mxu1 %v20333_v55 }
 0x275   : > { %5840 = vmatpush1.bf16.msra.mxu0 %v18472_v51  ;;  %5794 = vmatprep.mubr.bf16.mxu0 %v20334_v57  ;;  %v18508_v51 = vld [vmem:[#allocation5 + $0x14b0] ss:$48 sps:$4 sm:$0xff]  }
 0x276   : > { %6166 = vmatprep.mubr.bf16.mxu1 %v20334_v57  ;;  %5841 = vmatprep.subr.bf16.mxu0 %v18480_v52  ;;  %v18516_v52 = vld [vmem:[#allocation5 + $0x24] ss:$48 sps:$4 sm:$0xff]  }
 0x277   : > { %6211 = vmatprep.subr.bf16.mxu1 %v18486_v54 }
 0x278   : > { %6212 = vmatpush1.bf16.msra.mxu1 %v18484_v53 }
 0x279   : > { %5842 = vmatpush1.bf16.msra.mxu0 %v18478_v58  ;;  %6213 = vmatprep.subr.bf16.mxu1 %v18492_v59 }
 0x27a   : > { %5843 = vmatprep.subr.bf16.mxu0 %v18489_v60 }
 0x27c   : > { %5795 = vmatmul.mubr.bf16.gmra.mrb[32].mxu0 %v20335_v7  ;;  %6167 = vmatmul.mubr.bf16.gmra.mrb[32].mxu1 %v20335_v7 }
 0x27d   : > { %5804 = vmatprep.mubr.bf16.mxu0 %v20336_v12  ;;  %6176 = vmatprep.mubr.bf16.mxu1 %v20336_v12 }
 0x27e   : > { %5844 = vmatpush1.bf16.msra.mxu0 %v18487_v2  ;;  %6214 = vmatpush1.bf16.msra.mxu1 %v18490_v3 }
 0x27f   : > { %v5125_v17 = vpop.f32.mrb[0].mxu0  ;;  %v5497_v18 = vpop.f32.mrb[0].mxu1  ;;  %5845 = vmatprep.subr.bf16.mxu0 %v18495_v4  ;;  %6215 = vmatprep.subr.bf16.mxu1 %v18498_v5 }
 0x280   : > { %v7276_v19 = vadd.f32 %v21006_v8, %v5125_v17  ;;  %v7278_v20 = vadd.f32 %v21009_v9, %v5497_v18  ;;  %v5127_v21 = vpop.f32.mrb[1].mxu0  ;;  %v5499_v22 = vpop.f32.mrb[1].mxu1 }
 0x281   : > { %v7277_v23 = vadd.f32 %v21012_v10, %v5127_v21  ;;  %v7279_v24 = vadd.f32 %v21015_v11, %v5499_v22  ;;  %v5129_v25 = vpop.f32.mrb[2].mxu0  ;;  %v5501_v26 = vpop.f32.mrb[2].mxu1 }
 0x282   : > { %v7288_v28 = vadd.f32 %v21006_v8, %v5129_v25  ;;  %v7290_v29 = vadd.f32 %v21009_v9, %v5501_v26  ;;  %v5131_v30 = vpop.f32.mrb[3].mxu0  ;;  %v5503_v31 = vpop.f32.mrb[3].mxu1  ;;  %5846 = vmatpush1.bf16.msra.mxu0 %v18493_v15  ;;  %6216 = vmatpush1.bf16.msra.mxu1 %v18496_v13  ;;  %v7300_v34 = vmax.f32 %v7276_v19, 0.0  ;;  %v7302_v38 = vmax.f32 %v7278_v20, 0.0  ;;  %v18511_v15 = vld [vmem:[#allocation5 + $0x14b8] ss:$48 sps:$4 sm:$0xff]  }
 0x283   : > { %v7289_v35 = vadd.f32 %v21012_v10, %v5131_v30  ;;  %v7291_v36 = vadd.f32 %v21015_v11, %v5503_v31  ;;  %6217 = vmatprep.subr.bf16.mxu1 %v18501_v14  ;;  %5847 = vmatprep.subr.bf16.mxu0 %v18504_v16  ;;  %v7301_v43 = vmax.f32 %v7277_v23, 0.0  ;;  %v7303_v44 = vmax.f32 %v7279_v24, 0.0  ;;  %v18519_v19 = vld [vmem:[#allocation5 + $0x2c] ss:$48 sps:$4 sm:$0xff]   ;;  %v20339_v23 = vld [vmem:[%s20905_s21 + $0x30] sm:$0xff]  }
 0x284   : > { %v7312_v39 = vmax.f32 %v7288_v28, 0.0  ;;  %v7314_v40 = vmax.f32 %v7290_v29, 0.0  ;;  %5805 = vmatmul.mubr.bf16.gmra.mrb[36].mxu0 %v20337_v41  ;;  %6177 = vmatmul.mubr.bf16.gmra.mrb[36].mxu1 %v20337_v41  ;;  %v20340_v28 = vld [vmem:[%s20905_s21 + $0x3c] sm:$0xff]  }
 0x285   : > { %v7313_v45 = vmax.f32 %v7289_v35, 0.0  ;;  %v7315_v46 = vmax.f32 %v7291_v36, 0.0  ;;  %5814 = vmatprep.mubr.bf16.mxu0 %v20338_v47  ;;  %6186 = vmatprep.mubr.bf16.mxu1 %v20338_v47 }
 0x286   : > { %v21028_v49 = vmax.f32 %v7300_v34, %v7312_v39  ;;  %v21030_v50 = vmax.f32 %v7302_v38, %v7314_v40  ;;  %6218 = vmatpush1.bf16.msra.mxu1 %v18499_v27  ;;  %5848 = vmatpush1.bf16.msra.mxu0 %v18502_v32 }
 0x287   : > { %v21032_v53 = vmax.f32 %v7301_v43, %v7313_v45  ;;  %v21034_v54 = vmax.f32 %v7303_v44, %v7315_v46  ;;  %v5135_v55 = vpop.f32.mrb[4].mxu0  ;;  %v5507_v57 = vpop.f32.mrb[4].mxu1  ;;  %6219 = vmatprep.subr.bf16.mxu1 %v18507_v33  ;;  %5849 = vmatprep.subr.bf16.mxu0 %v18510_v37 }
 0x288   : > { %v7378_v58 = vadd.f32 %v21006_v8, %v5135_v55  ;;  %v7380_v59 = vadd.f32 %v21009_v9, %v5507_v57  ;;  %v5137_v60 = vpop.f32.mrb[5].mxu0  ;;  %v5509_v61 = vpop.f32.mrb[5].mxu1 }
 0x289   : > { %v7379_v2 = vadd.f32 %v21012_v10, %v5137_v60  ;;  %v7381_v3 = vadd.f32 %v21015_v11, %v5509_v61  ;;  %v5139_v4 = vpop.f32.mrb[6].mxu0  ;;  %v5511_v5 = vpop.f32.mrb[6].mxu1 }
 0x28a   : > { %v7390_v7 = vadd.f32 %v21006_v8, %v5139_v4  ;;  %v7392_v12 = vadd.f32 %v21009_v9, %v5511_v5  ;;  %v5141_v13 = vpop.f32.mrb[7].mxu0  ;;  %v5513_v14 = vpop.f32.mrb[7].mxu1  ;;  %6220 = vmatpush1.bf16.msra.mxu1 %v18505_v42  ;;  %5850 = vmatpush1.bf16.msra.mxu0 %v18508_v51  ;;  %v7402_v16 = vmax.f32 %v7378_v58, 0.0  ;;  %v7404_v20 = vmax.f32 %v7380_v59, 0.0  ;;  %v20341_v58 = vld [vmem:[%s20905_s21 + $0x38] sm:$0xff]  }
 0x28b   : > { %v7391_v17 = vadd.f32 %v21012_v10, %v5141_v13  ;;  %v7393_v18 = vadd.f32 %v21015_v11, %v5513_v14  ;;  %6221 = vmatprep.subr.bf16.mxu1 %v18513_v48  ;;  %6300 = vmatprep.subr.bf16.mxu0 %v18516_v52  ;;  %v7403_v24 = vmax.f32 %v7379_v2, 0.0  ;;  %v7405_v25 = vmax.f32 %v7381_v3, 0.0 }
 0x28c   : > { %v7414_v21 = vmax.f32 %v7390_v7, 0.0  ;;  %v7416_v22 = vmax.f32 %v7392_v12, 0.0  ;;  %5815 = vmatmul.mubr.bf16.gmra.mrb[40].mxu0 %v20339_v23  ;;  %6187 = vmatmul.mubr.bf16.gmra.mrb[40].mxu1 %v20339_v23  ;;  %v18517_v23 = vld [vmem:[#allocation5 + $0x28] ss:$48 sps:$4 sm:$0xff]  }
 0x28d   : > { %v7415_v26 = vmax.f32 %v7391_v17, 0.0  ;;  %v7417_v27 = vmax.f32 %v7393_v18, 0.0  ;;  %5824 = vmatprep.mubr.bf16.mxu0 %v20340_v28  ;;  %6196 = vmatprep.mubr.bf16.mxu1 %v20340_v28  ;;  %v18522_v28 = vld [vmem:[#allocation5 + $0x84] ss:$48 sps:$4 sm:$0xff]  }
 0x28e   : > { %v21046_v29 = vmax.f32 %v7402_v16, %v7414_v21  ;;  %v21048_v30 = vmax.f32 %v7404_v20, %v7416_v22  ;;  %6222 = vmatpush1.bf16.msra.mxu1 %v18511_v15  ;;  %v18514_v22 = vld [vmem:[#allocation5 + $0x20] ss:$48 sps:$4 sm:$0xff]  }
 0x28f   : > { %v21050_v31 = vmax.f32 %v7403_v24, %v7415_v26  ;;  %v21052_v32 = vmax.f32 %v7405_v25, %v7417_v27  ;;  %v5145_v33 = vpop.f32.mrb[8].mxu0  ;;  %v5517_v34 = vpop.f32.mrb[8].mxu1  ;;  %6672 = vmatprep.subr.bf16.mxu1 %v18519_v19 }
 0x290   : > { %v7504_v35 = vadd.f32 %v21006_v8, %v5145_v33  ;;  %v7506_v36 = vadd.f32 %v21009_v9, %v5517_v34  ;;  %v5147_v37 = vpop.f32.mrb[9].mxu0  ;;  %v5519_v38 = vpop.f32.mrb[9].mxu1  ;;  %v18525_v33 = vld [vmem:[#allocation5 + $0x8c] ss:$48 sps:$4 sm:$0xff]  }
 0x291   : > { %v7505_v39 = vadd.f32 %v21012_v10, %v5147_v37  ;;  %v7507_v40 = vadd.f32 %v21015_v11, %v5519_v38  ;;  %v5149_v41 = vpop.f32.mrb[10].mxu0  ;;  %v5521_v42 = vpop.f32.mrb[10].mxu1  ;;  %v18520_v37 = vld [vmem:[#allocation5 + $0x80] ss:$48 sps:$4 sm:$0xff]  }
 0x292   : > { %v7516_v43 = vadd.f32 %v21006_v8, %v5149_v41  ;;  %v7518_v44 = vadd.f32 %v21009_v9, %v5521_v42  ;;  %v5151_v45 = vpop.f32.mrb[11].mxu0  ;;  %v5523_v46 = vpop.f32.mrb[11].mxu1  ;;  %v7528_v47 = vmax.f32 %v7504_v35, 0.0  ;;  %v7530_v52 = vmax.f32 %v7506_v36, 0.0  ;;  %v20342_v41 = vld [vmem:[%s20905_s21 + $0x18] sm:$0xff]  }
 0x293   : > { %v7517_v48 = vadd.f32 %v21012_v10, %v5151_v45  ;;  %v7519_v51 = vadd.f32 %v21015_v11, %v5523_v46  ;;  %v7529_v59 = vmax.f32 %v7505_v39, 0.0  ;;  %v7531_v60 = vmax.f32 %v7507_v40, 0.0  ;;  %v18523_v46 = vld [vmem:[#allocation5 + $0x88] ss:$48 sps:$4 sm:$0xff]  }
 0x294   : > { %v7540_v55 = vmax.f32 %v7516_v43, 0.0  ;;  %v7542_v57 = vmax.f32 %v7518_v44, 0.0  ;;  %5825 = vmatmul.mubr.bf16.gmra.mrb[44].mxu0 %v20341_v58  ;;  %6197 = vmatmul.mubr.bf16.gmra.mrb[44].mxu1 %v20341_v58 }
 0x295   : > { %v7541_v61 = vmax.f32 %v7517_v48, 0.0  ;;  %v7543_v2 = vmax.f32 %v7519_v51, 0.0  ;;  %5867 = vmatprep.mubr.bf16.mxu0 %v20651_v6  ;;  %6239 = vmatprep.mubr.bf16.mxu1 %v20651_v6  ;;  %v18528_v51 = vld [vmem:[#allocation5 + $0xe4] ss:$48 sps:$4 sm:$0xff]  }
 0x296   : > { %v21065_v3 = vmax.f32 %v7528_v47, %v7540_v55  ;;  %v21067_v4 = vmax.f32 %v7530_v52, %v7542_v57  ;;  %v18531_v52 = vld [vmem:[#allocation5 + $0xec] ss:$48 sps:$4 sm:$0xff]  }
 0x297   : > { %v21069_v5 = vmax.f32 %v7529_v59, %v7541_v61  ;;  %v21071_v7 = vmax.f32 %v7531_v60, %v7543_v2  ;;  %v5155_v12 = vpop.f32.mrb[12].mxu0  ;;  %v5527_v13 = vpop.f32.mrb[12].mxu1 }
 0x298   : > { %v7630_v14 = vadd.f32 %v21006_v8, %v5155_v12  ;;  %v7632_v15 = vadd.f32 %v21009_v9, %v5527_v13  ;;  %v5157_v16 = vpop.f32.mrb[13].mxu0  ;;  %v5529_v17 = vpop.f32.mrb[13].mxu1 }
 0x299   : > { %v7631_v18 = vadd.f32 %v21012_v10, %v5157_v16  ;;  %v7633_v19 = vadd.f32 %v21015_v11, %v5529_v17  ;;  %v5159_v20 = vpop.f32.mrb[14].mxu0  ;;  %v5531_v21 = vpop.f32.mrb[14].mxu1  ;;  %v18526_v17 = vld [vmem:[#allocation5 + $0xe0] ss:$48 sps:$4 sm:$0xff]  }
 0x29a   : > { %v7642_v24 = vadd.f32 %v21006_v8, %v5159_v20  ;;  %v7644_v25 = vadd.f32 %v21009_v9, %v5531_v21  ;;  %v5161_v26 = vpop.f32.mrb[15].mxu0  ;;  %v5533_v27 = vpop.f32.mrb[15].mxu1  ;;  %v7654_v34 = vmax.f32 %v7630_v14, 0.0  ;;  %v7656_v38 = vmax.f32 %v7632_v15, 0.0 }
 0x29b   : > { %v7643_v35 = vadd.f32 %v21012_v10, %v5161_v26  ;;  %v7645_v36 = vadd.f32 %v21015_v11, %v5533_v27  ;;  %v7655_v42 = vmax.f32 %v7631_v18, 0.0  ;;  %v7657_v43 = vmax.f32 %v7633_v19, 0.0  ;;  %v18529_v18 = vld [vmem:[#allocation5 + $0xe8] ss:$48 sps:$4 sm:$0xff]  }
 0x29c   : > { %v7666_v39 = vmax.f32 %v7642_v24, 0.0  ;;  %v7668_v40 = vmax.f32 %v7644_v25, 0.0  ;;  %5868 = vmatmul.mubr.bf16.vlgmr.msra.gmra.mrb[24].mxu0 %v20342_v41  ;;  %6240 = vmatmul.mubr.bf16.vlgmr.msra.gmra.mrb[24].mxu1 %v20342_v41  ;;  %v18537_v24 = vld [vmem:[#allocation5 + $0x14c] ss:$48 sps:$4 sm:$0xff]   ;;  %v18535_v41 = vld [vmem:[#allocation5 + $0x148] ss:$48 sps:$4 sm:$0xff]  }
 0x29d   : > { %v7667_v44 = vmax.f32 %v7643_v35, 0.0  ;;  %v7669_v45 = vmax.f32 %v7645_v36, 0.0  ;;  %6301 = vmatpush1.bf16.msra.mxu0 %v18514_v22  ;;  %6673 = vmatpush1.bf16.msra.mxu1 %v18517_v23  ;;  %v18534_v23 = vld [vmem:[#allocation5 + $0x144] ss:$48 sps:$4 sm:$0xff]  }
 0x29e   : > { %v21082_v47 = vmax.f32 %v7654_v34, %v7666_v39  ;;  %v21084_v48 = vmax.f32 %v7656_v38, %v7668_v40  ;;  %6302 = vmatprep.subr.bf16.mxu0 %v18522_v28  ;;  %6674 = vmatprep.subr.bf16.mxu1 %v18525_v33  ;;  %v18532_v28 = vld [vmem:[#allocation5 + $0x140] ss:$48 sps:$4 sm:$0xff]  }
 0x29f   : > { %v21086_v55 = vmax.f32 %v7655_v42, %v7667_v44  ;;  %v21088_v57 = vmax.f32 %v7657_v43, %v7669_v45  ;;  %v5165_v58 = vpop.f32.mrb[16].mxu0  ;;  %v5537_v59 = vpop.f32.mrb[16].mxu1  ;;  %5877 = vmatprep.mubr.bf16.mxu0 %v20651_v6  ;;  %6249 = vmatprep.mubr.bf16.mxu1 %v20651_v6  ;;  %v20343_v36 = vld [vmem:[%s20905_s21 + $0x20] sm:$0xff]   ;;  %v18543_v45 = vld [vmem:[#allocation5 + $0x1ac] ss:$48 sps:$4 sm:$0xff]  }
 0x2a0   : > { %v7756_v60 = vadd.f32 %v21006_v8, %v5165_v58  ;;  %v7758_v61 = vadd.f32 %v21009_v9, %v5537_v59  ;;  %v5167_v2 = vpop.f32.mrb[17].mxu0  ;;  %v5539_v12 = vpop.f32.mrb[17].mxu1  ;;  %v18540_v44 = vld [vmem:[#allocation5 + $0x1a4] ss:$48 sps:$4 sm:$0xff]  }
 0x2a1   : > { %6303 = vmatpush1.bf16.msra.mxu0 %v18520_v37  ;;  %6675 = vmatpush1.bf16.msra.mxu1 %v18523_v46  ;;  %v7757_v13 = vadd.f32 %v21012_v10, %v5167_v2  ;;  %v7759_v14 = vadd.f32 %v21015_v11, %v5539_v12  ;;  %v5169_v15 = vpop.f32.mrb[18].mxu0  ;;  %v5541_v16 = vpop.f32.mrb[18].mxu1 }
 0x2a2   : > { %v7768_v19 = vadd.f32 %v21006_v8, %v5169_v15  ;;  %v7770_v20 = vadd.f32 %v21009_v9, %v5541_v16  ;;  %v5171_v21 = vpop.f32.mrb[19].mxu0  ;;  %v5543_v22 = vpop.f32.mrb[19].mxu1  ;;  %6304 = vmatprep.subr.bf16.mxu0 %v18528_v51  ;;  %6676 = vmatprep.subr.bf16.mxu1 %v18531_v52  ;;  %v7780_v25 = vmax.f32 %v7756_v60, 0.0  ;;  %v7782_v33 = vmax.f32 %v7758_v61, 0.0  ;;  %v18538_v16 = vld [vmem:[#allocation5 + $0x1a0] ss:$48 sps:$4 sm:$0xff]  }
 0x2a3   : > { %v7769_v26 = vadd.f32 %v21012_v10, %v5171_v21  ;;  %v7771_v27 = vadd.f32 %v21015_v11, %v5543_v22  ;;  %v7781_v37 = vmax.f32 %v7757_v13, 0.0  ;;  %v7783_v38 = vmax.f32 %v7759_v14, 0.0  ;;  %v18546_v22 = vld [vmem:[#allocation5 + $0x204] ss:$48 sps:$4 sm:$0xff]  }
 0x2a4   : > { %v7792_v34 = vmax.f32 %v7768_v19, 0.0  ;;  %v7794_v35 = vmax.f32 %v7770_v20, 0.0  ;;  %5878 = vmatmul.mubr.bf16.gmra.mrb[28].mxu0 %v20343_v36  ;;  %6250 = vmatmul.mubr.bf16.gmra.mrb[28].mxu1 %v20343_v36 }
 0x2a5   : > { %v7793_v39 = vmax.f32 %v7769_v26, 0.0  ;;  %v7795_v40 = vmax.f32 %v7771_v27, 0.0  ;;  %6305 = vmatpush1.bf16.msra.mxu0 %v18526_v17  ;;  %6677 = vmatpush1.bf16.msra.mxu1 %v18529_v18  ;;  %v18541_v17 = vld [vmem:[#allocation5 + $0x1a8] ss:$48 sps:$4 sm:$0xff]   ;;  %v18544_v27 = vld [vmem:[#allocation5 + $0x200] ss:$48 sps:$4 sm:$0xff]  }
 0x2a6   : > { %v21101_v42 = vmax.f32 %v7780_v25, %v7792_v34  ;;  %v21103_v43 = vmax.f32 %v7782_v33, %v7794_v35  ;;  %6306 = vmatprep.subr.bf16.mxu0 %v18534_v23  ;;  %6678 = vmatprep.subr.bf16.mxu1 %v18537_v24  ;;  %v18549_v23 = vld [vmem:[#allocation5 + $0x20c] ss:$48 sps:$4 sm:$0xff]  }
 0x2a7   : > { %v21105_v46 = vmax.f32 %v7781_v37, %v7793_v39  ;;  %v21107_v51 = vmax.f32 %v7783_v38, %v7795_v40  ;;  %v5175_v52 = vpop.f32.mrb[20].mxu0  ;;  %v5547_v58 = vpop.f32.mrb[20].mxu1  ;;  %5887 = vmatprep.mubr.bf16.mxu0 %v20651_v6  ;;  %6259 = vmatprep.mubr.bf16.mxu1 %v20651_v6  ;;  %v20344_v35 = vld [vmem:[%s20905_s21 + $0x28] sm:$0xff]  }
 0x2a8   : > { %v7882_v59 = vadd.f32 %v21006_v8, %v5175_v52  ;;  %v7884_v60 = vadd.f32 %v21009_v9, %v5547_v58  ;;  %v5177_v61 = vpop.f32.mrb[21].mxu0  ;;  %v5549_v2 = vpop.f32.mrb[21].mxu1  ;;  %v18547_v38 = vld [vmem:[#allocation5 + $0x208] ss:$48 sps:$4 sm:$0xff]   ;;  %v18558_v58 = vld [vmem:[#allocation5 + $0x2c4] ss:$48 sps:$4 sm:$0xff]  }
 0x2a9   : > { %6307 = vmatpush1.bf16.msra.mxu0 %v18532_v28  ;;  %6679 = vmatpush1.bf16.msra.mxu1 %v18535_v41  ;;  %v7883_v12 = vadd.f32 %v21012_v10, %v5177_v61  ;;  %v7885_v13 = vadd.f32 %v21015_v11, %v5549_v2  ;;  %v5179_v14 = vpop.f32.mrb[22].mxu0  ;;  %v5551_v15 = vpop.f32.mrb[22].mxu1  ;;  %v18553_v52 = vld [vmem:[#allocation5 + $0x268] ss:$48 sps:$4 sm:$0xff]   ;;  %v18556_v61 = vld [vmem:[#allocation5 + $0x2c0] ss:$48 sps:$4 sm:$0xff]  }
 0x2aa   : > { %v7894_v18 = vadd.f32 %v21006_v8, %v5179_v14  ;;  %v7896_v19 = vadd.f32 %v21009_v9, %v5551_v15  ;;  %v5181_v20 = vpop.f32.mrb[23].mxu0  ;;  %v5553_v21 = vpop.f32.mrb[23].mxu1  ;;  %6308 = vmatprep.subr.bf16.mxu0 %v18540_v44  ;;  %6680 = vmatprep.subr.bf16.mxu1 %v18543_v45  ;;  %v7906_v24 = vmax.f32 %v7882_v59, 0.0  ;;  %v7908_v28 = vmax.f32 %v7884_v60, 0.0  ;;  %v18550_v45 = vld [vmem:[#allocation5 + $0x260] ss:$48 sps:$4 sm:$0xff]  }
 0x2ab   : > { %v7895_v25 = vadd.f32 %v21012_v10, %v5181_v20  ;;  %v7897_v26 = vadd.f32 %v21015_v11, %v5553_v21  ;;  %v7907_v8 = vmax.f32 %v7883_v12, 0.0  ;;  %v7909_v9 = vmax.f32 %v7885_v13, 0.0  ;;  %v18552_v10 = vld [vmem:[#allocation5 + $0x264] ss:$48 sps:$4 sm:$0xff]   ;;  %v18555_v11 = vld [vmem:[#allocation5 + $0x26c] ss:$48 sps:$4 sm:$0xff]  }
 0x2ac   : > { %v7918_v33 = vmax.f32 %v7894_v18, 0.0  ;;  %v7920_v34 = vmax.f32 %v7896_v19, 0.0  ;;  %5888 = vmatmul.mubr.bf16.gmra.mrb[32].mxu0 %v20344_v35  ;;  %6260 = vmatmul.mubr.bf16.gmra.mrb[32].mxu1 %v20344_v35  ;;  %v18561_v59 = vld [vmem:[#allocation5 + $0x2cc] ss:$48 sps:$4 sm:$0xff]   ;;  %v20345_v60 = vld [vmem:[%s20905_s21 + $0x30] sm:$0xff]  }
 0x2ad   : > { %v7919_v36 = vmax.f32 %v7895_v25, 0.0  ;;  %v7921_v37 = vmax.f32 %v7897_v26, 0.0  ;;  %6309 = vmatpush1.bf16.msra.mxu0 %v18538_v16  ;;  %6681 = vmatpush1.bf16.msra.mxu1 %v18541_v17  ;;  %v18559_v2 = vld [vmem:[#allocation5 + $0x2c8] ss:$48 sps:$4 sm:$0xff]   ;;  %v18564_v12 = vld [vmem:[#allocation5 + $0x324] ss:$48 sps:$4 sm:$0xff]  }
 0x2ae   : > { %v21120_v39 = vmax.f32 %v7906_v24, %v7918_v33  ;;  %v21122_v40 = vmax.f32 %v7908_v28, %v7920_v34  ;;  %6310 = vmatprep.subr.bf16.mxu0 %v18546_v22  ;;  %6682 = vmatprep.subr.bf16.mxu1 %v18549_v23  ;;  %v18567_v13 = vld [vmem:[#allocation5 + $0x32c] ss:$48 sps:$4 sm:$0xff]   ;;  %v18562_v14 = vld [vmem:[#allocation5 + $0x320] ss:$48 sps:$4 sm:$0xff]   ;;  %v18565_v15 = vld [vmem:[#allocation5 + $0x328] ss:$48 sps:$4 sm:$0xff]  }
 0x2af   : > { %v21124_v41 = vmax.f32 %v7907_v8, %v7919_v36  ;;  %v21126_v44 = vmax.f32 %v7909_v9, %v7921_v37  ;;  %5897 = vmatprep.mubr.bf16.mxu0 %v20651_v6  ;;  %6269 = vmatprep.mubr.bf16.mxu1 %v20651_v6  ;;  %v18570_v16 = vld [vmem:[#allocation5 + $0x384] ss:$48 sps:$4 sm:$0xff]   ;;  %v18573_v17 = vld [vmem:[#allocation5 + $0x38c] ss:$48 sps:$4 sm:$0xff]   ;;  %v18568_v19 = vld [vmem:[#allocation5 + $0x380] ss:$48 sps:$4 sm:$0xff]  }
 0x2b0   : > { %v20346_v18 = vld [vmem:[%s20905_s21 + $0x38] sm:$0xff]   ;;  %v18576_v21 = vld [vmem:[#allocation5 + $0x3e4] ss:$48 sps:$4 sm:$0xff]   ;;  %v18574_v23 = vld [vmem:[#allocation5 + $0x3e0] ss:$48 sps:$4 sm:$0xff]  }
 0x2b1   : > { %6311 = vmatpush1.bf16.msra.mxu0 %v18544_v27  ;;  %6683 = vmatpush1.bf16.msra.mxu1 %v18547_v38  ;;  %v18571_v20 = vld [vmem:[#allocation5 + $0x388] ss:$48 sps:$4 sm:$0xff]   ;;  %v18579_v22 = vld [vmem:[#allocation5 + $0x3ec] ss:$48 sps:$4 sm:$0xff]   ;;  %v18582_v25 = vld [vmem:[#allocation5 + $0x444] ss:$48 sps:$4 sm:$0xff]  }
 0x2b2   : > { %6312 = vmatprep.subr.bf16.mxu0 %v18552_v10  ;;  %6684 = vmatprep.subr.bf16.mxu1 %v18555_v11  ;;  %v18577_v24 = vld [vmem:[#allocation5 + $0x3e8] ss:$48 sps:$4 sm:$0xff]   ;;  %v18585_v26 = vld [vmem:[#allocation5 + $0x44c] ss:$48 sps:$4 sm:$0xff]   ;;  %v20347_v27 = vld [vmem:[%s20905_s21 + $0x40] sm:$0xff]  }
 0x2b3   : > { %v18580_v28 = vld [vmem:[#allocation5 + $0x440] ss:$48 sps:$4 sm:$0xff]   ;;  %v18583_v33 = vld [vmem:[#allocation5 + $0x448] ss:$48 sps:$4 sm:$0xff]   ;;  %v18588_v34 = vld [vmem:[#allocation5 + $0x4a4] ss:$48 sps:$4 sm:$0xff]  }
 0x2b4   : > { %5898 = vmatmul.mubr.bf16.gmra.mrb[36].mxu0 %v20345_v60  ;;  %6270 = vmatmul.mubr.bf16.gmra.mrb[36].mxu1 %v20345_v60  ;;  %v18591_v35 = vld [vmem:[#allocation5 + $0x4ac] ss:$48 sps:$4 sm:$0xff]   ;;  %v20348_v8 = vld [vmem:[%s20905_s21 + $0x4] sm:$0xff]   ;;  %v18586_v9 = vld [vmem:[#allocation5 + $0x4a0] ss:$48 sps:$4 sm:$0xff]  }
 0x2b5   : > { %6313 = vmatpush1.bf16.msra.mxu0 %v18550_v45  ;;  %6685 = vmatpush1.bf16.msra.mxu1 %v18553_v52  ;;  %v18589_v36 = vld [vmem:[#allocation5 + $0x4a8] ss:$48 sps:$4 sm:$0xff]   ;;  %v18594_v37 = vld [vmem:[#allocation5 + $0x504] ss:$48 sps:$4 sm:$0xff]   ;;  %v18597_v38 = vld [vmem:[#allocation5 + $0x50c] ss:$48 sps:$4 sm:$0xff]  }
 0x2b6   : > { %6314 = vmatprep.subr.bf16.mxu0 %v18558_v58  ;;  %6686 = vmatprep.subr.bf16.mxu1 %v18561_v59  ;;  %v18592_v10 = vld [vmem:[#allocation5 + $0x500] ss:$48 sps:$4 sm:$0xff]   ;;  %v18595_v11 = vld [vmem:[#allocation5 + $0x508] ss:$48 sps:$4 sm:$0xff]   ;;  %v18600_v45 = vld [vmem:[#allocation5 + $0x564] ss:$48 sps:$4 sm:$0xff]  }
 0x2b7   : > { %5907 = vmatprep.mubr.bf16.mxu0 %v20651_v6  ;;  %6279 = vmatprep.mubr.bf16.mxu1 %v20651_v6  ;;  %v18603_v52 = vld [vmem:[#allocation5 + $0x56c] ss:$48 sps:$4 sm:$0xff]   ;;  %v18598_v58 = vld [vmem:[#allocation5 + $0x560] ss:$48 sps:$4 sm:$0xff]   ;;  %v18601_v59 = vld [vmem:[#allocation5 + $0x568] ss:$48 sps:$4 sm:$0xff]  }
 0x2b8   : > { %v18606_v60 = vld [vmem:[#allocation5 + $0x5c4] ss:$48 sps:$4 sm:$0xff]  }
 0x2b9   : > { %6315 = vmatpush1.bf16.msra.mxu0 %v18556_v61  ;;  %6687 = vmatpush1.bf16.msra.mxu1 %v18559_v2  ;;  %v18609_v61 = vld [vmem:[#allocation5 + $0x5cc] ss:$48 sps:$4 sm:$0xff]   ;;  %v18604_v2 = vld [vmem:[#allocation5 + $0x5c0] ss:$48 sps:$4 sm:$0xff]  }
 0x2ba   : > { %6316 = vmatprep.subr.bf16.mxu0 %v18564_v12  ;;  %6688 = vmatprep.subr.bf16.mxu1 %v18567_v13  ;;  %v18607_v12 = vld [vmem:[#allocation5 + $0x5c8] ss:$48 sps:$4 sm:$0xff]   ;;  %v18612_v13 = vld [vmem:[#allocation5 + $0x624] ss:$48 sps:$4 sm:$0xff]  }
 0x2bc   : > { %5908 = vmatmul.mubr.bf16.gmra.mrb[40].mxu0 %v20346_v18  ;;  %6280 = vmatmul.mubr.bf16.gmra.mrb[40].mxu1 %v20346_v18  ;;  %v18621_v18 = vld [vmem:[#allocation5 + $0x68c] ss:$48 sps:$4 sm:$0xff]  }
 0x2bd   : > { %6317 = vmatpush1.bf16.msra.mxu0 %v18562_v14  ;;  %6689 = vmatpush1.bf16.msra.mxu1 %v18565_v15  ;;  %v18615_v14 = vld [vmem:[#allocation5 + $0x62c] ss:$48 sps:$4 sm:$0xff]   ;;  %v18610_v15 = vld [vmem:[#allocation5 + $0x620] ss:$48 sps:$4 sm:$0xff]  }
 0x2be   : > { %6318 = vmatprep.subr.bf16.mxu0 %v18570_v16  ;;  %6690 = vmatprep.subr.bf16.mxu1 %v18573_v17  ;;  %v18613_v16 = vld [vmem:[#allocation5 + $0x628] ss:$48 sps:$4 sm:$0xff]   ;;  %v18618_v17 = vld [vmem:[#allocation5 + $0x684] ss:$48 sps:$4 sm:$0xff]  }
 0x2bf   : > { %5917 = vmatprep.mubr.bf16.mxu0 %v20651_v6  ;;  %6289 = vmatprep.mubr.bf16.mxu1 %v20651_v6 }
 0x2c1   : > { %6319 = vmatpush1.bf16.msra.mxu0 %v18568_v19  ;;  %6691 = vmatpush1.bf16.msra.mxu1 %v18571_v20  ;;  %v20349_v19 = vld [vmem:[%s20905_s21] sm:$0xff]  }
 0x2c2   : > { %6320 = vmatprep.subr.bf16.mxu0 %v18576_v21  ;;  %6692 = vmatprep.subr.bf16.mxu1 %v18579_v22  ;;  %v18616_v20 = vld [vmem:[#allocation5 + $0x680] ss:$48 sps:$4 sm:$0xff]   ;;  %v18619_v21 = vld [vmem:[#allocation5 + $0x688] ss:$48 sps:$4 sm:$0xff]   ;;  %v18624_v22 = vld [vmem:[#allocation5 + $0x6e4] ss:$48 sps:$4 sm:$0xff]  }
 0x2c4   : > { %5918 = vmatmul.mubr.bf16.gmra.mrb[44].mxu0 %v20347_v27  ;;  %6290 = vmatmul.mubr.bf16.gmra.mrb[44].mxu1 %v20347_v27  ;;  %v18630_v27 = vld [vmem:[#allocation5 + $0x744] ss:$48 sps:$4 sm:$0xff]  }
 0x2c5   : > { %6321 = vmatpush1.bf16.msra.mxu0 %v18574_v23  ;;  %6693 = vmatpush1.bf16.msra.mxu1 %v18577_v24  ;;  %v18627_v23 = vld [vmem:[#allocation5 + $0x6ec] ss:$48 sps:$4 sm:$0xff]   ;;  %v18622_v24 = vld [vmem:[#allocation5 + $0x6e0] ss:$48 sps:$4 sm:$0xff]  }
 0x2c6   : > { %6322 = vmatprep.subr.bf16.mxu0 %v18582_v25  ;;  %6694 = vmatprep.subr.bf16.mxu1 %v18585_v26  ;;  %v18625_v25 = vld [vmem:[#allocation5 + $0x6e8] ss:$48 sps:$4 sm:$0xff]   ;;  %v20350_v26 = vld [vmem:[%s20905_s21 + $0xc] sm:$0xff]  }
 0x2c7   : > { %6332 = vmatprep.mubr.bf16.mxu0 %v20348_v8  ;;  %6704 = vmatprep.mubr.bf16.mxu1 %v20348_v8  ;;  %v18636_v8 = vld [vmem:[#allocation5 + $0x7a4] ss:$48 sps:$4 sm:$0xff]  }
 0x2c9   : > { %6323 = vmatpush1.bf16.msra.mxu0 %v18580_v28  ;;  %6695 = vmatpush1.bf16.msra.mxu1 %v18583_v33  ;;  %v18633_v28 = vld [vmem:[#allocation5 + $0x74c] ss:$48 sps:$4 sm:$0xff]   ;;  %v18628_v33 = vld [vmem:[#allocation5 + $0x740] ss:$48 sps:$4 sm:$0xff]  }
 0x2ca   : > { %6324 = vmatprep.subr.bf16.mxu0 %v18588_v34  ;;  %6696 = vmatprep.subr.bf16.mxu1 %v18591_v35  ;;  %v18631_v34 = vld [vmem:[#allocation5 + $0x748] ss:$48 sps:$4 sm:$0xff]  }
 0x2cb   : > { %v20351_v35 = vld [vmem:[%s20905_s21 + $0x8] sm:$0xff]  }
 0x2cd   : > { %6325 = vmatpush1.bf16.msra.mxu0 %v18586_v9  ;;  %6697 = vmatpush1.bf16.msra.mxu1 %v18589_v36  ;;  %v18639_v9 = vld [vmem:[#allocation5 + $0x7ac] ss:$48 sps:$4 sm:$0xff]   ;;  %v18634_v36 = vld [vmem:[#allocation5 + $0x7a0] ss:$48 sps:$4 sm:$0xff]  }
 0x2ce   : > { %6326 = vmatprep.subr.bf16.mxu0 %v18594_v37  ;;  %6698 = vmatprep.subr.bf16.mxu1 %v18597_v38  ;;  %v18637_v37 = vld [vmem:[#allocation5 + $0x7a8] ss:$48 sps:$4 sm:$0xff]  }
 0x2cf   : > { %v20352_v38 = vld [vmem:[%s20905_s21 + $0x14] sm:$0xff]  }
 0x2d1   : > { %6327 = vmatpush1.bf16.msra.mxu0 %v18592_v10  ;;  %6699 = vmatpush1.bf16.msra.mxu1 %v18595_v11  ;;  %v18642_v10 = vld [vmem:[#allocation5 + $0x804] ss:$48 sps:$4 sm:$0xff]   ;;  %v18645_v11 = vld [vmem:[#allocation5 + $0x80c] ss:$48 sps:$4 sm:$0xff]  }
 0x2d2   : > { %6328 = vmatprep.subr.bf16.mxu0 %v18600_v45  ;;  %6700 = vmatprep.subr.bf16.mxu1 %v18603_v52  ;;  %v18640_v45 = vld [vmem:[#allocation5 + $0x800] ss:$48 sps:$4 sm:$0xff]   ;;  %v18643_v52 = vld [vmem:[#allocation5 + $0x808] ss:$48 sps:$4 sm:$0xff]  }
 0x2d5   : > { %6329 = vmatpush1.bf16.msra.mxu0 %v18598_v58  ;;  %6701 = vmatpush1.bf16.msra.mxu1 %v18601_v59  ;;  %v18648_v58 = vld [vmem:[#allocation5 + $0x864] ss:$48 sps:$4 sm:$0xff]  }
 0x2d6   : > { %6330 = vmatprep.subr.bf16.mxu0 %v18606_v60  ;;  %6702 = vmatprep.subr.bf16.mxu1 %v18609_v61  ;;  %v20353_v59 = vld [vmem:[%s20905_s21 + $0x10] sm:$0xff]   ;;  %v18651_v60 = vld [vmem:[#allocation5 + $0x86c] ss:$48 sps:$4 sm:$0xff]  }
 0x2d7   : > { %v18646_v61 = vld [vmem:[#allocation5 + $0x860] ss:$48 sps:$4 sm:$0xff]  }
 0x2d9   : > { %6331 = vmatpush1.bf16.msra.mxu0 %v18604_v2  ;;  %6703 = vmatpush1.bf16.msra.mxu1 %v18607_v12  ;;  %v18649_v2 = vld [vmem:[#allocation5 + $0x868] ss:$48 sps:$4 sm:$0xff]   ;;  %v20354_v12 = vld [vmem:[%s20905_s21 + $0x1c] sm:$0xff]  }
 0x2da   : > { %6393 = vmatprep.subr.bf16.mxu0 %v18612_v13  ;;  %6765 = vmatprep.subr.bf16.mxu1 %v18615_v14  ;;  %v18654_v13 = vld [vmem:[#allocation5 + $0x8c4] ss:$48 sps:$4 sm:$0xff]   ;;  %v18657_v14 = vld [vmem:[#allocation5 + $0x8cc] ss:$48 sps:$4 sm:$0xff]  }
 0x2dc   : > { %6333 = vmatmul.mubr.bf16.vlgmr.msra.gmra.mrb[48].mxu0 %v20349_v19  ;;  %6705 = vmatmul.mubr.bf16.vlgmr.msra.gmra.mrb[48].mxu1 %v20349_v19  ;;  %v18663_v19 = vld [vmem:[#allocation5 + $0x92c] ss:$48 sps:$4 sm:$0xff]  }
 0x2dd   : > { %6394 = vmatpush1.bf16.msra.mxu0 %v18610_v15  ;;  %6766 = vmatpush1.bf16.msra.mxu1 %v18613_v16  ;;  %v18652_v15 = vld [vmem:[#allocation5 + $0x8c0] ss:$48 sps:$4 sm:$0xff]   ;;  %v18655_v16 = vld [vmem:[#allocation5 + $0x8c8] ss:$48 sps:$4 sm:$0xff]  }
 0x2de   : > { %6395 = vmatprep.subr.bf16.mxu0 %v18618_v17  ;;  %6767 = vmatprep.subr.bf16.mxu1 %v18621_v18  ;;  %v20355_v17 = vld [vmem:[%s20905_s21 + $0x18] sm:$0xff]   ;;  %v18660_v18 = vld [vmem:[#allocation5 + $0x924] ss:$48 sps:$4 sm:$0xff]  }
 0x2df   : > { %6342 = vmatprep.mubr.bf16.mxu0 %v20350_v26  ;;  %6714 = vmatprep.mubr.bf16.mxu1 %v20350_v26  ;;  %v18664_v26 = vld [vmem:[#allocation5 + $0x980] ss:$48 sps:$4 sm:$0xff]  }
 0x2e1   : > { %6396 = vmatpush1.bf16.msra.mxu0 %v18616_v20  ;;  %6768 = vmatpush1.bf16.msra.mxu1 %v18619_v21  ;;  %v20356_v20 = vld [vmem:[%s20905_s21 + $0x24] sm:$0xff]   ;;  %v18658_v21 = vld [vmem:[#allocation5 + $0x920] ss:$48 sps:$4 sm:$0xff]  }
 0x2e2   : > { %6397 = vmatprep.subr.bf16.mxu0 %v18624_v22  ;;  %6769 = vmatprep.subr.bf16.mxu1 %v18627_v23  ;;  %v18661_v22 = vld [vmem:[#allocation5 + $0x928] ss:$48 sps:$4 sm:$0xff]   ;;  %v18666_v23 = vld [vmem:[#allocation5 + $0x984] ss:$48 sps:$4 sm:$0xff]  }
 0x2e4   : > { %6343 = vmatmul.mubr.bf16.gmra.mrb[52].mxu0 %v20351_v35  ;;  %6715 = vmatmul.mubr.bf16.gmra.mrb[52].mxu1 %v20351_v35  ;;  %v18670_v35 = vld [vmem:[#allocation5 + $0x9e0] ss:$48 sps:$4 sm:$0xff]  }
 0x2e5   : > { %6398 = vmatpush1.bf16.msra.mxu0 %v18622_v24  ;;  %6770 = vmatpush1.bf16.msra.mxu1 %v18625_v25  ;;  %v18669_v24 = vld [vmem:[#allocation5 + $0x98c] ss:$48 sps:$4 sm:$0xff]   ;;  %v20357_v25 = vld [vmem:[%s20905_s21 + $0x20] sm:$0xff]  }
 0x2e6   : > { %6399 = vmatprep.subr.bf16.mxu0 %v18630_v27  ;;  %6771 = vmatprep.subr.bf16.mxu1 %v18633_v28  ;;  %v18667_v27 = vld [vmem:[#allocation5 + $0x988] ss:$48 sps:$4 sm:$0xff]   ;;  %v18672_v28 = vld [vmem:[#allocation5 + $0x9e4] ss:$48 sps:$4 sm:$0xff]  }
 0x2e7   : > { %6352 = vmatprep.mubr.bf16.mxu0 %v20352_v38  ;;  %6724 = vmatprep.mubr.bf16.mxu1 %v20352_v38  ;;  %v18676_v38 = vld [vmem:[#allocation5 + $0xa40] ss:$48 sps:$4 sm:$0xff]  }
 0x2e9   : > { %6400 = vmatpush1.bf16.msra.mxu0 %v18628_v33  ;;  %6772 = vmatpush1.bf16.msra.mxu1 %v18631_v34  ;;  %v18675_v33 = vld [vmem:[#allocation5 + $0x9ec] ss:$48 sps:$4 sm:$0xff]  }
 0x2ea   : > { %6401 = vmatprep.subr.bf16.mxu0 %v18636_v8  ;;  %6773 = vmatprep.subr.bf16.mxu1 %v18639_v9  ;;  %v20358_v34 = vld [vmem:[%s20905_s21 + $0x2c] sm:$0xff]   ;;  %v18673_v8 = vld [vmem:[#allocation5 + $0x9e8] ss:$48 sps:$4 sm:$0xff]   ;;  %v18678_v9 = vld [vmem:[#allocation5 + $0xa44] ss:$48 sps:$4 sm:$0xff]  }
 0x2ec   : > { %6353 = vmatmul.mubr.bf16.gmra.mrb[56].mxu0 %v20353_v59  ;;  %6725 = vmatmul.mubr.bf16.gmra.mrb[56].mxu1 %v20353_v59  ;;  %v18685_v59 = vld [vmem:[#allocation5 + $0xaa8] ss:$48 sps:$4 sm:$0xff]  }
 0x2ed   : > { %6402 = vmatpush1.bf16.msra.mxu0 %v18634_v36  ;;  %6774 = vmatpush1.bf16.msra.mxu1 %v18637_v37  ;;  %v18681_v36 = vld [vmem:[#allocation5 + $0xa4c] ss:$48 sps:$4 sm:$0xff]  }
 0x2ee   : > { %6403 = vmatprep.subr.bf16.mxu0 %v18642_v10  ;;  %6775 = vmatprep.subr.bf16.mxu1 %v18645_v11  ;;  %v20359_v37 = vld [vmem:[%s20905_s21 + $0x28] sm:$0xff]   ;;  %v18684_v11 = vld [vmem:[#allocation5 + $0xaa4] ss:$48 sps:$4 sm:$0xff]  }
 0x2ef   : > { %6362 = vmatprep.mubr.bf16.mxu0 %v20354_v12  ;;  %6734 = vmatprep.mubr.bf16.mxu1 %v20354_v12  ;;  %v18679_v10 = vld [vmem:[#allocation5 + $0xa48] ss:$48 sps:$4 sm:$0xff]  }
 0x2f0   : > { %v18691_v12 = vld [vmem:[#allocation5 + $0xb08] ss:$48 sps:$4 sm:$0xff]  }
 0x2f1   : > { %6404 = vmatpush1.bf16.msra.mxu0 %v18640_v45  ;;  %6776 = vmatpush1.bf16.msra.mxu1 %v18643_v52  ;;  %v18687_v45 = vld [vmem:[#allocation5 + $0xaac] ss:$48 sps:$4 sm:$0xff]  }
 0x2f2   : > { %6405 = vmatprep.subr.bf16.mxu0 %v18648_v58  ;;  %6777 = vmatprep.subr.bf16.mxu1 %v18651_v60  ;;  %v20360_v52 = vld [vmem:[%s20905_s21 + $0xc] sm:$0xff]   ;;  %v18690_v60 = vld [vmem:[#allocation5 + $0xb04] ss:$48 sps:$4 sm:$0xff]  }
 0x2f3   : > { %v18682_v58 = vld [vmem:[#allocation5 + $0xaa0] ss:$48 sps:$4 sm:$0xff]  }
 0x2f4   : > { %6363 = vmatmul.mubr.bf16.gmra.mrb[60].mxu0 %v20355_v17  ;;  %6735 = vmatmul.mubr.bf16.gmra.mrb[60].mxu1 %v20355_v17  ;;  %v18702_v17 = vld [vmem:[#allocation5 + $0xbc4] ss:$48 sps:$4 sm:$0xff]  }
 0x2f5   : > { %6406 = vmatpush1.bf16.msra.mxu0 %v18646_v61  ;;  %6778 = vmatpush1.bf16.msra.mxu1 %v18649_v2  ;;  %v18693_v61 = vld [vmem:[#allocation5 + $0xb0c] ss:$48 sps:$4 sm:$0xff]   ;;  %v18688_v2 = vld [vmem:[#allocation5 + $0xb00] ss:$48 sps:$4 sm:$0xff]  }
 0x2f6   : > { %6407 = vmatprep.subr.bf16.mxu0 %v18654_v13  ;;  %6779 = vmatprep.subr.bf16.mxu1 %v18657_v14  ;;  %v18696_v13 = vld [vmem:[#allocation5 + $0xb64] ss:$48 sps:$4 sm:$0xff]   ;;  %v18699_v14 = vld [vmem:[#allocation5 + $0xb6c] ss:$48 sps:$4 sm:$0xff]  }
 0x2f7   : > { %6372 = vmatprep.mubr.bf16.mxu0 %v20356_v20  ;;  %6744 = vmatprep.mubr.bf16.mxu1 %v20356_v20  ;;  %v18703_v20 = vld [vmem:[#allocation5 + $0xbc8] ss:$48 sps:$4 sm:$0xff]  }
 0x2f9   : > { %6408 = vmatpush1.bf16.msra.mxu0 %v18652_v15  ;;  %6780 = vmatpush1.bf16.msra.mxu1 %v18655_v16  ;;  %v18694_v15 = vld [vmem:[#allocation5 + $0xb60] ss:$48 sps:$4 sm:$0xff]   ;;  %v18697_v16 = vld [vmem:[#allocation5 + $0xb68] ss:$48 sps:$4 sm:$0xff]  }
 0x2fa   : > { %6409 = vmatprep.subr.bf16.mxu0 %v18660_v18  ;;  %6781 = vmatprep.subr.bf16.mxu1 %v18663_v19  ;;  %v18705_v18 = vld [vmem:[#allocation5 + $0xbcc] ss:$48 sps:$4 sm:$0xff]   ;;  %v18700_v19 = vld [vmem:[#allocation5 + $0xbc0] ss:$48 sps:$4 sm:$0xff]  }
 0x2fc   : > { %6373 = vmatmul.mubr.bf16.gmra.mrb[64].mxu0 %v20357_v25  ;;  %6745 = vmatmul.mubr.bf16.gmra.mrb[64].mxu1 %v20357_v25  ;;  %v18714_v25 = vld [vmem:[#allocation5 + $0xc84] ss:$48 sps:$4 sm:$0xff]  }
 0x2fd   : > { %6410 = vmatpush1.bf16.msra.mxu0 %v18658_v21  ;;  %6782 = vmatpush1.bf16.msra.mxu1 %v18661_v22  ;;  %v18708_v21 = vld [vmem:[#allocation5 + $0xc24] ss:$48 sps:$4 sm:$0xff]   ;;  %v18711_v22 = vld [vmem:[#allocation5 + $0xc2c] ss:$48 sps:$4 sm:$0xff]  }
 0x2fe   : > { %6411 = vmatprep.subr.bf16.mxu0 %v18666_v23  ;;  %6783 = vmatprep.subr.bf16.mxu1 %v18669_v24  ;;  %v18706_v23 = vld [vmem:[#allocation5 + $0xc20] ss:$48 sps:$4 sm:$0xff]   ;;  %v18709_v24 = vld [vmem:[#allocation5 + $0xc28] ss:$48 sps:$4 sm:$0xff]  }
 0x2ff   : > { %6382 = vmatprep.mubr.bf16.mxu0 %v20358_v34  ;;  %6754 = vmatprep.mubr.bf16.mxu1 %v20358_v34  ;;  %v18720_v34 = vld [vmem:[#allocation5 + $0xce4] ss:$48 sps:$4 sm:$0xff]  }
 0x301   : > { %6412 = vmatpush1.bf16.msra.mxu0 %v18664_v26  ;;  %6784 = vmatpush1.bf16.msra.mxu1 %v18667_v27  ;;  %v18717_v26 = vld [vmem:[#allocation5 + $0xc8c] ss:$48 sps:$4 sm:$0xff]   ;;  %v18712_v27 = vld [vmem:[#allocation5 + $0xc80] ss:$48 sps:$4 sm:$0xff]  }
 0x302   : > { %6413 = vmatprep.subr.bf16.mxu0 %v18672_v28  ;;  %6785 = vmatprep.subr.bf16.mxu1 %v18675_v33  ;;  %v18715_v28 = vld [vmem:[#allocation5 + $0xc88] ss:$48 sps:$4 sm:$0xff]  }
 0x303   : > { %v20361_v33 = vld [vmem:[%s20905_s21 + $0x8] sm:$0xff]  }
 0x304   : > { %6383 = vmatmul.mubr.bf16.gmra.mrb[68].mxu0 %v20359_v37  ;;  %6755 = vmatmul.mubr.bf16.gmra.mrb[68].mxu1 %v20359_v37  ;;  %v18726_v37 = vld [vmem:[#allocation5 + $0xd44] ss:$48 sps:$4 sm:$0xff]  }
 0x305   : > { %6414 = vmatpush1.bf16.msra.mxu0 %v18670_v35  ;;  %6786 = vmatpush1.bf16.msra.mxu1 %v18673_v8  ;;  %v18723_v35 = vld [vmem:[#allocation5 + $0xcec] ss:$48 sps:$4 sm:$0xff]   ;;  %v18718_v8 = vld [vmem:[#allocation5 + $0xce0] ss:$48 sps:$4 sm:$0xff]  }
 0x306   : > { %6415 = vmatprep.subr.bf16.mxu0 %v18678_v9  ;;  %6787 = vmatprep.subr.bf16.mxu1 %v18681_v36  ;;  %v18721_v9 = vld [vmem:[#allocation5 + $0xce8] ss:$48 sps:$4 sm:$0xff]  }
 0x307   : > { %6425 = vmatprep.mubr.bf16.mxu0 %v20360_v52  ;;  %6797 = vmatprep.mubr.bf16.mxu1 %v20360_v52  ;;  %v20362_v36 = vld [vmem:[%s20905_s21 + $0x14] sm:$0xff]  }
 0x308   : > { %v18732_v52 = vld [vmem:[#allocation5 + $0xda4] ss:$48 sps:$4 sm:$0xff]  }
 0x309   : > { %6416 = vmatpush1.bf16.msra.mxu0 %v18676_v38  ;;  %6788 = vmatpush1.bf16.msra.mxu1 %v18679_v10  ;;  %v18729_v38 = vld [vmem:[#allocation5 + $0xd4c] ss:$48 sps:$4 sm:$0xff]   ;;  %v18724_v10 = vld [vmem:[#allocation5 + $0xd40] ss:$48 sps:$4 sm:$0xff]  }
 0x30a   : > { %6417 = vmatprep.subr.bf16.mxu0 %v18684_v11  ;;  %6789 = vmatprep.subr.bf16.mxu1 %v18687_v45  ;;  %v18727_v11 = vld [vmem:[#allocation5 + $0xd48] ss:$48 sps:$4 sm:$0xff]   ;;  %v20363_v45 = vld [vmem:[%s20905_s21 + $0x10] sm:$0xff]  }
 0x30d   : > { %6418 = vmatpush1.bf16.msra.mxu0 %v18682_v58  ;;  %6790 = vmatpush1.bf16.msra.mxu1 %v18685_v59  ;;  %v18735_v58 = vld [vmem:[#allocation5 + $0xdac] ss:$48 sps:$4 sm:$0xff]  }
 0x30e   : > { %6419 = vmatprep.subr.bf16.mxu0 %v18690_v60  ;;  %6791 = vmatprep.subr.bf16.mxu1 %v18693_v61  ;;  %v20364_v59 = vld [vmem:[%s20905_s21 + $0x1c] sm:$0xff]   ;;  %v18733_v61 = vld [vmem:[#allocation5 + $0xda8] ss:$48 sps:$4 sm:$0xff]  }
 0x30f   : > { %v18730_v60 = vld [vmem:[#allocation5 + $0xda0] ss:$48 sps:$4 sm:$0xff]  }
 0x311   : > { %6420 = vmatpush1.bf16.msra.mxu0 %v18688_v2  ;;  %6792 = vmatpush1.bf16.msra.mxu1 %v18691_v12  ;;  %v18738_v2 = vld [vmem:[#allocation5 + $0xe04] ss:$48 sps:$4 sm:$0xff]   ;;  %v18741_v12 = vld [vmem:[#allocation5 + $0xe0c] ss:$48 sps:$4 sm:$0xff]  }
 0x312   : > { %6421 = vmatprep.subr.bf16.mxu0 %v18696_v13  ;;  %6793 = vmatprep.subr.bf16.mxu1 %v18699_v14  ;;  %v20365_v13 = vld [vmem:[%s20905_s21 + $0x18] sm:$0xff]   ;;  %v18736_v14 = vld [vmem:[#allocation5 + $0xe00] ss:$48 sps:$4 sm:$0xff]  }
 0x315   : > { %6422 = vmatpush1.bf16.msra.mxu0 %v18694_v15  ;;  %6794 = vmatpush1.bf16.msra.mxu1 %v18697_v16  ;;  %v18739_v15 = vld [vmem:[#allocation5 + $0xe08] ss:$48 sps:$4 sm:$0xff]   ;;  %v18744_v16 = vld [vmem:[#allocation5 + $0xe64] ss:$48 sps:$4 sm:$0xff]  }
 0x316   : > { %6423 = vmatprep.subr.bf16.mxu0 %v18702_v17  ;;  %6795 = vmatprep.subr.bf16.mxu1 %v18705_v18  ;;  %v18747_v17 = vld [vmem:[#allocation5 + $0xe6c] ss:$48 sps:$4 sm:$0xff]   ;;  %v20366_v18 = vld [vmem:[%s20905_s21 + $0x24] sm:$0xff]  }
 0x319   : > { %6424 = vmatpush1.bf16.msra.mxu0 %v18700_v19  ;;  %6796 = vmatpush1.bf16.msra.mxu1 %v18703_v20  ;;  %v18742_v19 = vld [vmem:[#allocation5 + $0xe60] ss:$48 sps:$4 sm:$0xff]   ;;  %v18745_v20 = vld [vmem:[#allocation5 + $0xe68] ss:$48 sps:$4 sm:$0xff]  }
 0x31a   : > { %6486 = vmatprep.subr.bf16.mxu0 %v18708_v21  ;;  %6858 = vmatprep.subr.bf16.mxu1 %v18711_v22  ;;  %v18750_v21 = vld [vmem:[#allocation5 + $0xec4] ss:$48 sps:$4 sm:$0xff]   ;;  %v18753_v22 = vld [vmem:[#allocation5 + $0xecc] ss:$48 sps:$4 sm:$0xff]  }
 0x31c   : > { %6426 = vmatmul.mubr.bf16.vlgmr.msra.gmra.mrb[48].mxu0 %v20361_v33  ;;  %6798 = vmatmul.mubr.bf16.vlgmr.msra.gmra.mrb[48].mxu1 %v20361_v33  ;;  %v18754_v33 = vld [vmem:[#allocation5 + $0xf20] ss:$48 sps:$4 sm:$0xff]  }
 0x31d   : > { %6487 = vmatpush1.bf16.msra.mxu0 %v18706_v23  ;;  %6859 = vmatpush1.bf16.msra.mxu1 %v18709_v24  ;;  %v18748_v23 = vld [vmem:[#allocation5 + $0xec0] ss:$48 sps:$4 sm:$0xff]   ;;  %v18751_v24 = vld [vmem:[#allocation5 + $0xec8] ss:$48 sps:$4 sm:$0xff]  }
 0x31e   : > { %6488 = vmatprep.subr.bf16.mxu0 %v18714_v25  ;;  %6860 = vmatprep.subr.bf16.mxu1 %v18717_v26  ;;  %v20367_v25 = vld [vmem:[%s20905_s21 + $0x20] sm:$0xff]  }
 0x31f   : > { %6435 = vmatprep.mubr.bf16.mxu0 %v20362_v36  ;;  %6807 = vmatprep.mubr.bf16.mxu1 %v20362_v36  ;;  %v18756_v26 = vld [vmem:[#allocation5 + $0xf24] ss:$48 sps:$4 sm:$0xff]   ;;  %v18760_v36 = vld [vmem:[#allocation5 + $0xf80] ss:$48 sps:$4 sm:$0xff]  }
 0x321   : > { %6489 = vmatpush1.bf16.msra.mxu0 %v18712_v27  ;;  %6861 = vmatpush1.bf16.msra.mxu1 %v18715_v28  ;;  %v18759_v27 = vld [vmem:[#allocation5 + $0xf2c] ss:$48 sps:$4 sm:$0xff]  }
 0x322   : > { %6490 = vmatprep.subr.bf16.mxu0 %v18720_v34  ;;  %6862 = vmatprep.subr.bf16.mxu1 %v18723_v35  ;;  %v20368_v28 = vld [vmem:[%s20905_s21 + $0x2c] sm:$0xff]   ;;  %v18757_v34 = vld [vmem:[#allocation5 + $0xf28] ss:$48 sps:$4 sm:$0xff]   ;;  %v18762_v35 = vld [vmem:[#allocation5 + $0xf84] ss:$48 sps:$4 sm:$0xff]  }
 0x324   : > { %6436 = vmatmul.mubr.bf16.gmra.mrb[52].mxu0 %v20363_v45  ;;  %6808 = vmatmul.mubr.bf16.gmra.mrb[52].mxu1 %v20363_v45  ;;  %v18766_v45 = vld [vmem:[#allocation5 + $0xfe0] ss:$48 sps:$4 sm:$0xff]  }
 0x325   : > { %6491 = vmatpush1.bf16.msra.mxu0 %v18718_v8  ;;  %6863 = vmatpush1.bf16.msra.mxu1 %v18721_v9  ;;  %v18765_v8 = vld [vmem:[#allocation5 + $0xf8c] ss:$48 sps:$4 sm:$0xff]  }
 0x326   : > { %6492 = vmatprep.subr.bf16.mxu0 %v18726_v37  ;;  %6864 = vmatprep.subr.bf16.mxu1 %v18729_v38  ;;  %v20369_v9 = vld [vmem:[%s20905_s21 + $0x28] sm:$0xff]   ;;  %v18768_v38 = vld [vmem:[#allocation5 + $0xfe4] ss:$48 sps:$4 sm:$0xff]  }
 0x327   : > { %6445 = vmatprep.mubr.bf16.mxu0 %v20364_v59  ;;  %6817 = vmatprep.mubr.bf16.mxu1 %v20364_v59  ;;  %v18763_v37 = vld [vmem:[#allocation5 + $0xf88] ss:$48 sps:$4 sm:$0xff]   ;;  %v18777_v59 = vld [vmem:[#allocation5 + $0x104c] ss:$48 sps:$4 sm:$0xff]  }
 0x329   : > { %6493 = vmatpush1.bf16.msra.mxu0 %v18724_v10  ;;  %6865 = vmatpush1.bf16.msra.mxu1 %v18727_v11  ;;  %v18771_v10 = vld [vmem:[#allocation5 + $0xfec] ss:$48 sps:$4 sm:$0xff]   ;;  %v20370_v11 = vld [vmem:[%s20905_s21 + $0x34] sm:$0xff]  }
 0x32a   : > { %6494 = vmatprep.subr.bf16.mxu0 %v18732_v52  ;;  %6866 = vmatprep.subr.bf16.mxu1 %v18735_v58  ;;  %v18769_v52 = vld [vmem:[#allocation5 + $0xfe8] ss:$48 sps:$4 sm:$0xff]   ;;  %v18774_v58 = vld [vmem:[#allocation5 + $0x1044] ss:$48 sps:$4 sm:$0xff]  }
 0x32c   : > { %6446 = vmatmul.mubr.bf16.gmra.mrb[56].mxu0 %v20365_v13  ;;  %6818 = vmatmul.mubr.bf16.gmra.mrb[56].mxu1 %v20365_v13  ;;  %v18783_v13 = vld [vmem:[#allocation5 + $0x10ac] ss:$48 sps:$4 sm:$0xff]  }
 0x32d   : > { %6495 = vmatpush1.bf16.msra.mxu0 %v18730_v60  ;;  %6867 = vmatpush1.bf16.msra.mxu1 %v18733_v61  ;;  %v20371_v60 = vld [vmem:[%s20905_s21 + $0x30] sm:$0xff]  }
 0x32e   : > { %6496 = vmatprep.subr.bf16.mxu0 %v18738_v2  ;;  %6868 = vmatprep.subr.bf16.mxu1 %v18741_v12  ;;  %v18772_v61 = vld [vmem:[#allocation5 + $0x1040] ss:$48 sps:$4 sm:$0xff]   ;;  %v18775_v2 = vld [vmem:[#allocation5 + $0x1048] ss:$48 sps:$4 sm:$0xff]   ;;  %v18780_v12 = vld [vmem:[#allocation5 + $0x10a4] ss:$48 sps:$4 sm:$0xff]  }
 0x32f   : > { %6455 = vmatprep.mubr.bf16.mxu0 %v20366_v18  ;;  %6827 = vmatprep.mubr.bf16.mxu1 %v20366_v18  ;;  %v18789_v18 = vld [vmem:[#allocation5 + $0x110c] ss:$48 sps:$4 sm:$0xff]  }
 0x331   : > { %6497 = vmatpush1.bf16.msra.mxu0 %v18736_v14  ;;  %6869 = vmatpush1.bf16.msra.mxu1 %v18739_v15  ;;  %v18778_v14 = vld [vmem:[#allocation5 + $0x10a0] ss:$48 sps:$4 sm:$0xff]   ;;  %v18781_v15 = vld [vmem:[#allocation5 + $0x10a8] ss:$48 sps:$4 sm:$0xff]  }
 0x332   : > { %6498 = vmatprep.subr.bf16.mxu0 %v18744_v16  ;;  %6870 = vmatprep.subr.bf16.mxu1 %v18747_v17  ;;  %v20372_v16 = vld [vmem:[%s20905_s21 + $0x14] sm:$0xff]  }
 0x333   : > { %v18786_v17 = vld [vmem:[#allocation5 + $0x1104] ss:$48 sps:$4 sm:$0xff]  }
 0x334   : > { %6456 = vmatmul.mubr.bf16.gmra.mrb[60].mxu0 %v20367_v25  ;;  %6828 = vmatmul.mubr.bf16.gmra.mrb[60].mxu1 %v20367_v25  ;;  %v18798_v25 = vld [vmem:[#allocation5 + $0x11c4] ss:$48 sps:$4 sm:$0xff]  }
 0x335   : > { %6499 = vmatpush1.bf16.msra.mxu0 %v18742_v19  ;;  %6871 = vmatpush1.bf16.msra.mxu1 %v18745_v20  ;;  %v18784_v19 = vld [vmem:[#allocation5 + $0x1100] ss:$48 sps:$4 sm:$0xff]   ;;  %v18787_v20 = vld [vmem:[#allocation5 + $0x1108] ss:$48 sps:$4 sm:$0xff]  }
 0x336   : > { %6500 = vmatprep.subr.bf16.mxu0 %v18750_v21  ;;  %6872 = vmatprep.subr.bf16.mxu1 %v18753_v22  ;;  %v18792_v21 = vld [vmem:[#allocation5 + $0x1164] ss:$48 sps:$4 sm:$0xff]   ;;  %v18795_v22 = vld [vmem:[#allocation5 + $0x116c] ss:$48 sps:$4 sm:$0xff]  }
 0x337   : > { %6465 = vmatprep.mubr.bf16.mxu0 %v20368_v28  ;;  %6837 = vmatprep.mubr.bf16.mxu1 %v20368_v28  ;;  %v18799_v28 = vld [vmem:[#allocation5 + $0x11c8] ss:$48 sps:$4 sm:$0xff]  }
 0x339   : > { %6501 = vmatpush1.bf16.msra.mxu0 %v18748_v23  ;;  %6873 = vmatpush1.bf16.msra.mxu1 %v18751_v24  ;;  %v18790_v23 = vld [vmem:[#allocation5 + $0x1160] ss:$48 sps:$4 sm:$0xff]   ;;  %v18793_v24 = vld [vmem:[#allocation5 + $0x1168] ss:$48 sps:$4 sm:$0xff]  }
 0x33a   : > { %6502 = vmatprep.subr.bf16.mxu0 %v18756_v26  ;;  %6874 = vmatprep.subr.bf16.mxu1 %v18759_v27  ;;  %v18801_v26 = vld [vmem:[#allocation5 + $0x11cc] ss:$48 sps:$4 sm:$0xff]   ;;  %v18796_v27 = vld [vmem:[#allocation5 + $0x11c0] ss:$48 sps:$4 sm:$0xff]  }
 0x33c   : > { %6466 = vmatmul.mubr.bf16.gmra.mrb[64].mxu0 %v20369_v9  ;;  %6838 = vmatmul.mubr.bf16.gmra.mrb[64].mxu1 %v20369_v9  ;;  %v18811_v9 = vld [vmem:[#allocation5 + $0x1228] ss:$48 sps:$4 sm:$0xff]  }
 0x33d   : > { %6503 = vmatpush1.bf16.msra.mxu0 %v18754_v33  ;;  %6875 = vmatpush1.bf16.msra.mxu1 %v18757_v34  ;;  %v18804_v33 = vld [vmem:[#allocation5 + $0x1224] ss:$48 sps:$4 sm:$0xff]   ;;  %v18813_v34 = vld [vmem:[#allocation5 + $0x122c] ss:$48 sps:$4 sm:$0xff]  }
 0x33e   : > { %6504 = vmatprep.subr.bf16.mxu0 %v18762_v35  ;;  %6876 = vmatprep.subr.bf16.mxu1 %v18765_v8  ;;  %v18802_v35 = vld [vmem:[#allocation5 + $0x1220] ss:$48 sps:$4 sm:$0xff]   ;;  %v18807_v8 = vld [vmem:[#allocation5 + $0x1284] ss:$48 sps:$4 sm:$0xff]  }
 0x33f   : > { %6475 = vmatprep.mubr.bf16.mxu0 %v20370_v11  ;;  %6847 = vmatprep.mubr.bf16.mxu1 %v20370_v11  ;;  %v18810_v11 = vld [vmem:[#allocation5 + $0x12e4] ss:$48 sps:$4 sm:$0xff]  }
 0x341   : > { %6505 = vmatpush1.bf16.msra.mxu0 %v18760_v36  ;;  %6877 = vmatpush1.bf16.msra.mxu1 %v18763_v37  ;;  %v18819_v36 = vld [vmem:[#allocation5 + $0x128c] ss:$48 sps:$4 sm:$0xff]   ;;  %v20373_v37 = vld [vmem:[%s20905_s21 + $0x10] sm:$0xff]  }
 0x342   : > { %6506 = vmatprep.subr.bf16.mxu0 %v18768_v38  ;;  %6878 = vmatprep.subr.bf16.mxu1 %v18771_v10  ;;  %v18805_v38 = vld [vmem:[#allocation5 + $0x1280] ss:$48 sps:$4 sm:$0xff]  }
 0x343   : > { %v20374_v10 = vld [vmem:[%s20905_s21 + $0x1c] sm:$0xff]  }
 0x344   : > { %6476 = vmatmul.mubr.bf16.gmra.mrb[68].mxu0 %v20371_v60  ;;  %6848 = vmatmul.mubr.bf16.gmra.mrb[68].mxu1 %v20371_v60  ;;  %v18822_v60 = vld [vmem:[#allocation5 + $0x12ec] ss:$48 sps:$4 sm:$0xff]  }
 0x345   : > { %6507 = vmatpush1.bf16.msra.mxu0 %v18766_v45  ;;  %6879 = vmatpush1.bf16.msra.mxu1 %v18769_v52  ;;  %v18817_v45 = vld [vmem:[#allocation5 + $0x1288] ss:$48 sps:$4 sm:$0xff]   ;;  %v18808_v52 = vld [vmem:[#allocation5 + $0x12e0] ss:$48 sps:$4 sm:$0xff]  }
 0x346   : > { %6508 = vmatprep.subr.bf16.mxu0 %v18774_v58  ;;  %6880 = vmatprep.subr.bf16.mxu1 %v18777_v59  ;;  %v18816_v58 = vld [vmem:[#allocation5 + $0x1344] ss:$48 sps:$4 sm:$0xff]   ;;  %v18820_v59 = vld [vmem:[#allocation5 + $0x12e8] ss:$48 sps:$4 sm:$0xff]  }
 0x347   : > { %6518 = vmatprep.mubr.bf16.mxu0 %v20372_v16  ;;  %6890 = vmatprep.mubr.bf16.mxu1 %v20372_v16  ;;  %v7242_v16 = vsub.s32 6, %v20989_v56 }
 0x349   : > { %6509 = vmatpush1.bf16.msra.mxu0 %v18772_v61  ;;  %6881 = vmatpush1.bf16.msra.mxu1 %v18775_v2  ;;  %v20375_v61 = vld [vmem:[%s20905_s21 + $0x18] sm:$0xff]   ;;  %v20376_v2 = vld [vmem:[%s20905_s21 + $0x24] sm:$0xff]  }
 0x34a   : > { %6510 = vmatprep.subr.bf16.mxu0 %v18780_v12  ;;  %6882 = vmatprep.subr.bf16.mxu1 %v18783_v13  ;;  %v18814_v12 = vld [vmem:[#allocation5 + $0x1340] ss:$48 sps:$4 sm:$0xff]   ;;  %v18828_v13 = vld [vmem:[#allocation5 + $0x134c] ss:$48 sps:$4 sm:$0xff]  }
 0x34d   : > { %6511 = vmatpush1.bf16.msra.mxu0 %v18778_v14  ;;  %6883 = vmatpush1.bf16.msra.mxu1 %v18781_v15  ;;  %v18825_v14 = vld [vmem:[#allocation5 + $0x13a4] ss:$48 sps:$4 sm:$0xff]   ;;  %v7234_v15 = vsub.s32 4, %v20989_v56 }
 0x34e   : > { %6512 = vmatprep.subr.bf16.mxu0 %v18786_v17  ;;  %6884 = vmatprep.subr.bf16.mxu1 %v18789_v18  ;;  %v18823_v17 = vld [vmem:[#allocation5 + $0x13a0] ss:$48 sps:$4 sm:$0xff]   ;;  %v18826_v18 = vld [vmem:[#allocation5 + $0x1348] ss:$48 sps:$4 sm:$0xff]  }
 0x351   : > { %6513 = vmatpush1.bf16.msra.mxu0 %v18784_v19  ;;  %6885 = vmatpush1.bf16.msra.mxu1 %v18787_v20  ;;  %v7238_v19 = vsub.s32 5, %v20989_v56  ;;  %v7246_v20 = vsub.s32 7, %v20989_v56  ;;  %v18837_v56 = vld [vmem:[#allocation5 + $0x140c] ss:$48 sps:$4 sm:$0xff]  }
 0x352   : > { %6514 = vmatprep.subr.bf16.mxu0 %v18792_v21  ;;  %6886 = vmatprep.subr.bf16.mxu1 %v18795_v22  ;;  %v18831_v21 = vld [vmem:[#allocation5 + $0x1404] ss:$48 sps:$4 sm:$0xff]   ;;  %v18834_v22 = vld [vmem:[#allocation5 + $0x13ac] ss:$48 sps:$4 sm:$0xff]  }
 0x355   : > { %6515 = vmatpush1.bf16.msra.mxu0 %v18790_v23  ;;  %6887 = vmatpush1.bf16.msra.mxu1 %v18793_v24  ;;  %v20377_v23 = vld [vmem:[%s20905_s21 + $0x20] sm:$0xff]   ;;  %v20378_v24 = vld [vmem:[#allocation8] sm:$0xff] }
 0x356   : > { %6516 = vmatprep.subr.bf16.mxu0 %v18798_v25  ;;  %6888 = vmatprep.subr.bf16.mxu1 %v18801_v26  ;;  %v21171_v25 = vrot.slane %v20378_v24, %v7234_v15  ;;  %v21173_v26 = vrot.slane %v20378_v24, %v7242_v16  ;;  %v18846_v16 = vld [vmem:[#allocation5 + $0x14c4] ss:$48 sps:$4 sm:$0xff]  }
 0x359   : > { %6517 = vmatpush1.bf16.msra.mxu0 %v18796_v27  ;;  %6889 = vmatpush1.bf16.msra.mxu1 %v18799_v28  ;;  %v18829_v27 = vld [vmem:[#allocation5 + $0x1400] ss:$48 sps:$4 sm:$0xff]   ;;  %v18832_v28 = vld [vmem:[#allocation5 + $0x13a8] ss:$48 sps:$4 sm:$0xff]  }
 0x35a   : > { %6579 = vmatprep.subr.bf16.mxu0 %v18804_v33  ;;  %6951 = vmatprep.subr.bf16.mxu1 %v18813_v34  ;;  %v21175_v33 = vrot.slane %v20378_v24, %v7238_v19  ;;  %v21177_v34 = vrot.slane %v20378_v24, %v7246_v20  ;;  %v20380_v24 = vld [vmem:[%s20905_s21 + $0x28] sm:$0xff]  }
 0x35c   : > { %6519 = vmatmul.mubr.bf16.vlgmr.msra.gmra.mrb[48].mxu0 %v20373_v37  ;;  %6891 = vmatmul.mubr.bf16.vlgmr.msra.gmra.mrb[48].mxu1 %v20373_v37 }
 0x35d   : > { %6580 = vmatpush1.bf16.msra.mxu0 %v18802_v35  ;;  %6528 = vmatprep.mubr.bf16.mxu0 %v20374_v10  ;;  %v20379_v35 = vld [vmem:[%s20905_s21 + $0x2c] sm:$0xff]  }
 0x35e   : > { %6581 = vmatprep.subr.bf16.mxu0 %v18807_v8  ;;  %6900 = vmatprep.mubr.bf16.mxu1 %v20374_v10  ;;  %v18840_v8 = vld [vmem:[#allocation5 + $0x1464] ss:$48 sps:$4 sm:$0xff]  }
 0x35f   : > { %6952 = vmatpush1.bf16.msra.mxu1 %v18811_v9 }
 0x360   : > { %6953 = vmatprep.subr.bf16.mxu1 %v18819_v36 }
 0x361   : > { %6582 = vmatpush1.bf16.msra.mxu0 %v18805_v38 }
 0x362   : > { %6583 = vmatprep.subr.bf16.mxu0 %v18810_v11 }
 0x363   : > { %6954 = vmatpush1.bf16.msra.mxu1 %v18817_v45  ;;  %v18835_v45 = vld [vmem:[#allocation5 + $0x1408] ss:$48 sps:$4 sm:$0xff]  }
 0x364   : > { %6529 = vmatmul.mubr.bf16.gmra.mrb[52].mxu0 %v20375_v61  ;;  %6901 = vmatmul.mubr.bf16.gmra.mrb[52].mxu1 %v20375_v61 }
 0x365   : > { %6584 = vmatpush1.bf16.msra.mxu0 %v18808_v52  ;;  %6538 = vmatprep.mubr.bf16.mxu0 %v20376_v2  ;;  %v18838_v52 = vld [vmem:[#allocation5 + $0x1460] ss:$48 sps:$4 sm:$0xff]  }
 0x366   : > { %6910 = vmatprep.mubr.bf16.mxu1 %v20376_v2  ;;  %6585 = vmatprep.subr.bf16.mxu0 %v18816_v58  ;;  %v18843_v2 = vld [vmem:[#allocation5 + $0x146c] ss:$48 sps:$4 sm:$0xff]  }
 0x367   : > { %6955 = vmatprep.subr.bf16.mxu1 %v18822_v60 }
 0x368   : > { %6956 = vmatpush1.bf16.msra.mxu1 %v18820_v59 }
 0x369   : > { %6586 = vmatpush1.bf16.msra.mxu0 %v18814_v12  ;;  %6957 = vmatprep.subr.bf16.mxu1 %v18828_v13 }
 0x36a   : > { %6587 = vmatprep.subr.bf16.mxu0 %v18825_v14 }
 0x36c   : > { %6539 = vmatmul.mubr.bf16.gmra.mrb[56].mxu0 %v20377_v23  ;;  %6911 = vmatmul.mubr.bf16.gmra.mrb[56].mxu1 %v20377_v23 }
 0x36d   : > { %6548 = vmatprep.mubr.bf16.mxu0 %v20379_v35  ;;  %6920 = vmatprep.mubr.bf16.mxu1 %v20379_v35  ;;  %v18841_v35 = vld [vmem:[#allocation5 + $0x1468] ss:$48 sps:$4 sm:$0xff]  }
 0x36e   : > { %6588 = vmatpush1.bf16.msra.mxu0 %v18823_v17  ;;  %6958 = vmatpush1.bf16.msra.mxu1 %v18826_v18 }
 0x36f   : > { %v5869_v9 = vpop.f32.mrb[24].mxu0  ;;  %v6241_v36 = vpop.f32.mrb[24].mxu1  ;;  %6589 = vmatprep.subr.bf16.mxu0 %v18831_v21  ;;  %6959 = vmatprep.subr.bf16.mxu1 %v18834_v22 }
 0x370   : > { %v7280_v37 = vadd.f32 %v21171_v25, %v5869_v9  ;;  %v7282_v38 = vadd.f32 %v21173_v26, %v6241_v36  ;;  %v5871_v10 = vpop.f32.mrb[25].mxu0  ;;  %v6243_v11 = vpop.f32.mrb[25].mxu1  ;;  %v18844_v9 = vld [vmem:[#allocation5 + $0x14c0] ss:$48 sps:$4 sm:$0xff]  }
 0x371   : > { %v7281_v58 = vadd.f32 %v21175_v33, %v5871_v10  ;;  %v7283_v59 = vadd.f32 %v21177_v34, %v6243_v11  ;;  %v5873_v60 = vpop.f32.mrb[26].mxu0  ;;  %v6245_v61 = vpop.f32.mrb[26].mxu1  ;;  %v18852_v10 = vld [vmem:[#allocation10 + $0x4] ss:$16 sps:$4 sm:$0xff]  }
 0x372   : > { %v7292_v12 = vadd.f32 %v21171_v25, %v5873_v60  ;;  %v7294_v13 = vadd.f32 %v21173_v26, %v6245_v61  ;;  %v5875_v14 = vpop.f32.mrb[27].mxu0  ;;  %v6247_v15 = vpop.f32.mrb[27].mxu1  ;;  %6590 = vmatpush1.bf16.msra.mxu0 %v18829_v27  ;;  %6960 = vmatpush1.bf16.msra.mxu1 %v18832_v28  ;;  %v7304_v17 = vmax.f32 %v7280_v37, 0.0  ;;  %v7306_v18 = vmax.f32 %v7282_v38, 0.0  ;;  %v20381_v37 = vld [vmem:[%s20905_s21 + $0x34] sm:$0xff]  }
 0x373   : > { %v7293_v19 = vadd.f32 %v21175_v33, %v5875_v14  ;;  %v7295_v20 = vadd.f32 %v21177_v34, %v6247_v15  ;;  %6961 = vmatprep.subr.bf16.mxu1 %v18837_v56  ;;  %6591 = vmatprep.subr.bf16.mxu0 %v18840_v8  ;;  %v7305_v21 = vmax.f32 %v7281_v58, 0.0  ;;  %v7307_v27 = vmax.f32 %v7283_v59, 0.0  ;;  %v18849_v38 = vld [vmem:[#allocation5 + $0x14cc] ss:$48 sps:$4 sm:$0xff]   ;;  %v18847_v15 = vld [vmem:[#allocation5 + $0x14c8] ss:$48 sps:$4 sm:$0xff]  }
 0x374   : > { %v7316_v22 = vmax.f32 %v7292_v12, 0.0  ;;  %v7318_v23 = vmax.f32 %v7294_v13, 0.0  ;;  %6549 = vmatmul.mubr.bf16.gmra.mrb[60].mxu0 %v20380_v24  ;;  %6921 = vmatmul.mubr.bf16.gmra.mrb[60].mxu1 %v20380_v24 }
 0x375   : > { %v7317_v28 = vmax.f32 %v7293_v19, 0.0  ;;  %v7319_v36 = vmax.f32 %v7295_v20, 0.0  ;;  %6558 = vmatprep.mubr.bf16.mxu0 %v20381_v37  ;;  %6930 = vmatprep.mubr.bf16.mxu1 %v20381_v37  ;;  %v20382_v37 = vld [vmem:[%s20905_s21 + $0x30] sm:$0xff]  }
 0x376   : > { %v21190_v11 = vmax.f32 %v7304_v17, %v7316_v22  ;;  %v7330_v56 = vmax.f32 %v7306_v18, %v7318_v23  ;;  %6962 = vmatpush1.bf16.msra.mxu1 %v18835_v45  ;;  %6592 = vmatpush1.bf16.msra.mxu0 %v18838_v52  ;;  %v18855_v22 = vld [vmem:[#allocation10 + $0xc] ss:$16 sps:$4 sm:$0xff]  }
 0x377   : > { %v21192_v8 = vmax.f32 %v7305_v21, %v7317_v28  ;;  %v7331_v58 = vmax.f32 %v7307_v27, %v7319_v36  ;;  %v5879_v60 = vpop.f32.mrb[28].mxu0  ;;  %v6251_v61 = vpop.f32.mrb[28].mxu1  ;;  %6963 = vmatprep.subr.bf16.mxu1 %v18843_v2  ;;  %6593 = vmatprep.subr.bf16.mxu0 %v18846_v16 }
 0x378   : > { %v7336_v59 = vmax.f32 %v21028_v49, %v7330_v56  ;;  %v7382_v12 = vadd.f32 %v21171_v25, %v5879_v60  ;;  %v5881_v13 = vpop.f32.mrb[29].mxu0  ;;  %v6253_v14 = vpop.f32.mrb[29].mxu1  ;;  %v7384_v18 = vadd.f32 %v21173_v26, %v6251_v61 }
 0x379   : > { %v7337_v17 = vmax.f32 %v21032_v53, %v7331_v58  ;;  %v7383_v45 = vadd.f32 %v21175_v33, %v5881_v13  ;;  %v5883_v52 = vpop.f32.mrb[30].mxu0  ;;  %v6255_v19 = vpop.f32.mrb[30].mxu1  ;;  %v7385_v21 = vadd.f32 %v21177_v34, %v6253_v14  ;;  %v20383_v58 = vld [vmem:[%s20905_s21 + $0x3c] sm:$0xff]  }
 0x37a   : > { %v7342_v20 = vpack.c.bf16 %v7336_v59, %v7336_v59  ;;  %v7394_v2 = vadd.f32 %v21171_v25, %v5883_v52  ;;  %v5885_v49 = vpop.f32.mrb[31].mxu0  ;;  %v6257_v16 = vpop.f32.mrb[31].mxu1  ;;  %6964 = vmatpush1.bf16.msra.mxu1 %v18841_v35  ;;  %6594 = vmatpush1.bf16.msra.mxu0 %v18844_v9  ;;  %v7396_v53 = vadd.f32 %v21173_v26, %v6255_v19  ;;  %v7406_v24 = vmax.f32 %v7382_v12, 0.0 }
 0x37b   : > { %v7343_v23 = vpack.c.bf16 %v7337_v17, %v7337_v17  ;;  %6965 = vmatprep.subr.bf16.mxu1 %v18849_v38  ;;  %13790 = vmatprep.subr.bf16.mxu0 %v18852_v10  ;;  %v7395_v28 = vadd.f32 %v21175_v33, %v5885_v49  ;;  %v7397_v36 = vadd.f32 %v21177_v34, %v6257_v16  ;;  %v7408_v35 = vmax.f32 %v7384_v18, 0.0 }
 0x37c   : > { %7348 = vst [vmem:[#allocation4] sm:$0xf] %v7342_v20  ;;  %v7418_v27 = vmax.f32 %v7394_v2, 0.0  ;;  %6559 = vmatmul.mubr.bf16.gmra.mrb[64].mxu0 %v20382_v37  ;;  %6931 = vmatmul.mubr.bf16.gmra.mrb[64].mxu1 %v20382_v37  ;;  %v7407_v9 = vmax.f32 %v7383_v45, 0.0  ;;  %v7420_v56 = vmax.f32 %v7396_v53, 0.0  ;;  %v7409_v60 = vmax.f32 %v7385_v21, 0.0 }
 0x37d   : > { %7349 = vst [vmem:[#allocation4 + $0x8] sm:$0xf] %v7343_v23  ;;  %6568 = vmatprep.mubr.bf16.mxu0 %v20383_v58  ;;  %6940 = vmatprep.mubr.bf16.mxu1 %v20383_v58  ;;  %v7419_v10 = vmax.f32 %v7395_v28, 0.0  ;;  %v7421_v61 = vmax.f32 %v7397_v36, 0.0  ;;  %v20384_v58 = vld [vmem:[%s20905_s21 + $0x38] sm:$0xff]  }
 0x37e   : > { %v21206_v38 = vmax.f32 %v7406_v24, %v7418_v27  ;;  %6966 = vmatpush1.bf16.msra.mxu1 %v18847_v15  ;;  %v7432_v59 = vmax.f32 %v7408_v35, %v7420_v56 }
 0x37f   : > { %v5889_v12 = vpop.f32.mrb[32].mxu0  ;;  %v6261_v13 = vpop.f32.mrb[32].mxu1  ;;  %14435 = vmatprep.subr.bf16.mxu1 %v18855_v22  ;;  %v21208_v14 = vmax.f32 %v7407_v9, %v7419_v10  ;;  %v7433_v17 = vmax.f32 %v7409_v60, %v7421_v61 }
 0x380   : > { %v7508_v18 = vadd.f32 %v21171_v25, %v5889_v12  ;;  %v7510_v45 = vadd.f32 %v21173_v26, %v6261_v13  ;;  %v5891_v52 = vpop.f32.mrb[33].mxu0  ;;  %v6263_v19 = vpop.f32.mrb[33].mxu1  ;;  %v7438_v20 = vmax.f32 %v21046_v29, %v7432_v59 }
 0x381   : > { %v7509_v21 = vadd.f32 %v21175_v33, %v5891_v52  ;;  %v7511_v2 = vadd.f32 %v21177_v34, %v6263_v19  ;;  %v5893_v15 = vpop.f32.mrb[34].mxu0  ;;  %v6265_v49 = vpop.f32.mrb[34].mxu1  ;;  %v7439_v16 = vmax.f32 %v21050_v31, %v7433_v17  ;;  %v18850_v52 = vld [vmem:[#allocation10] ss:$16 sps:$4 sm:$0xff]   ;;  %v18853_v19 = vld [vmem:[#allocation10 + $0x8] ss:$16 sps:$4 sm:$0xff]  }
 0x382   : > { %v7532_v22 = vmax.f32 %v7508_v18, 0.0  ;;  %v7520_v23 = vadd.f32 %v21171_v25, %v5893_v15  ;;  %v5895_v53 = vpop.f32.mrb[35].mxu0  ;;  %v6267_v24 = vpop.f32.mrb[35].mxu1  ;;  %v7444_v27 = vpack.c.bf16 %v7438_v20, %v7438_v20  ;;  %v7534_v28 = vmax.f32 %v7510_v45, 0.0 }
 0x383   : > { %v7533_v36 = vmax.f32 %v7509_v21, 0.0  ;;  %v7522_v37 = vadd.f32 %v21173_v26, %v6265_v49  ;;  %v7445_v29 = vpack.c.bf16 %v7439_v16, %v7439_v16  ;;  %v7521_v9 = vadd.f32 %v21175_v33, %v5895_v53 }
 0x384   : > { %v7544_v35 = vmax.f32 %v7520_v23, 0.0  ;;  %v7523_v56 = vadd.f32 %v21177_v34, %v6267_v24  ;;  %6569 = vmatmul.mubr.bf16.gmra.mrb[68].mxu0 %v20384_v58  ;;  %6941 = vmatmul.mubr.bf16.gmra.mrb[68].mxu1 %v20384_v58  ;;  %7450 = vst [vmem:[#allocation4 + $0x30] sm:$0xf] %v7444_v27  ;;  %v7462_v31 = vrot.slane %v7444_v27, 4  ;;  %v7535_v60 = vmax.f32 %v7511_v2, 0.0 }
 0x385   : > { %v7546_v10 = vmax.f32 %v7522_v37, 0.0  ;;  %6611 = vmatprep.mubr.bf16.mxu0 %v20651_v6  ;;  %6983 = vmatprep.mubr.bf16.mxu1 %v20651_v6  ;;  %7451 = vst [vmem:[#allocation4 + $0x38] sm:$0xf] %v7445_v29  ;;  %v7463_v61 = vrot.slane %v7445_v29, 4  ;;  %v7545_v12 = vmax.f32 %v7521_v9, 0.0 }
 0x386   : > { %v21223_v59 = vmax.f32 %v7532_v22, %v7544_v35  ;;  %v7547_v13 = vmax.f32 %v7523_v56, 0.0  ;;  %7474 = vst [vmem:[#allocation4] sm:$0xf0] %v7462_v31  ;;  %v18858_v22 = vld [vmem:[#allocation10 + $0x24] ss:$16 sps:$4 sm:$0xff]  }
 0x387   : > { %v7558_v17 = vmax.f32 %v7534_v28, %v7546_v10  ;;  %v5899_v18 = vpop.f32.mrb[36].mxu0  ;;  %v6271_v45 = vpop.f32.mrb[36].mxu1  ;;  %7475 = vst [vmem:[#allocation4 + $0x8] sm:$0xf0] %v7463_v61  ;;  %v21225_v20 = vmax.f32 %v7533_v36, %v7545_v12  ;;  %v18861_v23 = vld [vmem:[#allocation10 + $0x2c] ss:$16 sps:$4 sm:$0xff]  }
 0x388   : > { %v7559_v21 = vmax.f32 %v7535_v60, %v7547_v13  ;;  %v7634_v2 = vadd.f32 %v21171_v25, %v5899_v18  ;;  %v7636_v15 = vadd.f32 %v21173_v26, %v6271_v45  ;;  %v5901_v49 = vpop.f32.mrb[37].mxu0  ;;  %v6273_v16 = vpop.f32.mrb[37].mxu1  ;;  %v18859_v61 = vld [vmem:[#allocation10 + $0x28] ss:$16 sps:$4 sm:$0xff]   ;;  %v20385_v45 = vld [vmem:[%s20905_s21 + $0x18] sm:$0xff]  }
 0x389   : > { %v7564_v53 = vmax.f32 %v21065_v3, %v7558_v17  ;;  %v7635_v24 = vadd.f32 %v21175_v33, %v5901_v49  ;;  %v7637_v27 = vadd.f32 %v21177_v34, %v6273_v16  ;;  %v5903_v28 = vpop.f32.mrb[38].mxu0  ;;  %v6275_v37 = vpop.f32.mrb[38].mxu1  ;;  %v18856_v3 = vld [vmem:[#allocation10 + $0x20] ss:$16 sps:$4 sm:$0xff]  }
 0x38a   : > { %v7565_v36 = vmax.f32 %v21069_v5, %v7559_v21  ;;  %v7658_v29 = vmax.f32 %v7634_v2, 0.0  ;;  %v7646_v35 = vadd.f32 %v21171_v25, %v5903_v28  ;;  %v5905_v9 = vpop.f32.mrb[39].mxu0  ;;  %v6277_v56 = vpop.f32.mrb[39].mxu1  ;;  %v7660_v31 = vmax.f32 %v7636_v15, 0.0  ;;  %v18864_v5 = vld [vmem:[#allocation10 + $0x44] ss:$16 sps:$4 sm:$0xff]  }
 0x38b   : > { %v7570_v58 = vpack.c.bf16 %v7564_v53, %v7564_v53  ;;  %v7659_v60 = vmax.f32 %v7635_v24, 0.0  ;;  %v7648_v10 = vadd.f32 %v21173_v26, %v6275_v37  ;;  %v7647_v17 = vadd.f32 %v21175_v33, %v5905_v9  ;;  %v18867_v21 = vld [vmem:[#allocation10 + $0x4c] ss:$16 sps:$4 sm:$0xff]   ;;  %v18865_v9 = vld [vmem:[#allocation10 + $0x48] ss:$16 sps:$4 sm:$0xff]  }
 0x38c   : > { %v7571_v12 = vpack.c.bf16 %v7565_v36, %v7565_v36  ;;  %v7670_v13 = vmax.f32 %v7646_v35, 0.0  ;;  %v7649_v18 = vadd.f32 %v21177_v34, %v6277_v56  ;;  %6612 = vmatmul.mubr.bf16.vlgmr.msra.gmra.mrb[48].mxu0 %v20385_v45  ;;  %6984 = vmatmul.mubr.bf16.vlgmr.msra.gmra.mrb[48].mxu1 %v20385_v45  ;;  %v7661_v49 = vmax.f32 %v7637_v27, 0.0  ;;  %v18862_v27 = vld [vmem:[#allocation10 + $0x40] ss:$16 sps:$4 sm:$0xff]  }
 0x38d   : > { %7576 = vst [vmem:[#allocation4 + $0x60] sm:$0xf] %v7570_v58  ;;  %v7588_v2 = vrot.slane %v7570_v58, 4  ;;  %v7672_v15 = vmax.f32 %v7648_v10, 0.0  ;;  %13791 = vmatpush1.bf16.msra.mxu0 %v18850_v52  ;;  %14436 = vmatpush1.bf16.msra.mxu1 %v18853_v19  ;;  %v7671_v24 = vmax.f32 %v7647_v17, 0.0 }
 0x38e   : > { %7577 = vst [vmem:[#allocation4 + $0x68] sm:$0xf] %v7571_v12  ;;  %v7589_v16 = vrot.slane %v7571_v12, 4  ;;  %v21238_v53 = vmax.f32 %v7658_v29, %v7670_v13  ;;  %v7673_v28 = vmax.f32 %v7649_v18, 0.0  ;;  %13792 = vmatprep.subr.bf16.mxu0 %v18858_v22  ;;  %14437 = vmatprep.subr.bf16.mxu1 %v18861_v23  ;;  %v18870_v58 = vld [vmem:[#allocation10 + $0x64] ss:$16 sps:$4 sm:$0xff]  }
 0x38f   : > { %7600 = vst [vmem:[#allocation4 + $0x30] sm:$0xf0] %v7588_v2  ;;  %v7684_v37 = vmax.f32 %v7660_v31, %v7672_v15  ;;  %v5909_v36 = vpop.f32.mrb[40].mxu0  ;;  %v6281_v35 = vpop.f32.mrb[40].mxu1  ;;  %6621 = vmatprep.mubr.bf16.mxu0 %v20651_v6  ;;  %6993 = vmatprep.mubr.bf16.mxu1 %v20651_v6  ;;  %v21242_v52 = vmax.f32 %v7659_v60, %v7671_v24  ;;  %v18873_v31 = vld [vmem:[#allocation10 + $0x6c] ss:$16 sps:$4 sm:$0xff]  }
 0x390   : > { %7601 = vst [vmem:[#allocation4 + $0x38] sm:$0xf0] %v7589_v16  ;;  %v7685_v19 = vmax.f32 %v7661_v49, %v7673_v28  ;;  %v7760_v29 = vadd.f32 %v21171_v25, %v5909_v36  ;;  %v7762_v56 = vadd.f32 %v21173_v26, %v6281_v35  ;;  %v5911_v22 = vpop.f32.mrb[41].mxu0  ;;  %v6283_v23 = vpop.f32.mrb[41].mxu1  ;;  %v18868_v24 = vld [vmem:[#allocation10 + $0x60] ss:$16 sps:$4 sm:$0xff]  }
 0x391   : > { %v7690_v10 = vmax.f32 %v21082_v47, %v7684_v37  ;;  %13793 = vmatpush1.bf16.msra.mxu0 %v18856_v3  ;;  %14438 = vmatpush1.bf16.msra.mxu1 %v18859_v61  ;;  %v7761_v12 = vadd.f32 %v21175_v33, %v5911_v22  ;;  %v7763_v13 = vadd.f32 %v21177_v34, %v6283_v23  ;;  %v5913_v17 = vpop.f32.mrb[42].mxu0  ;;  %v6285_v60 = vpop.f32.mrb[42].mxu1  ;;  %v18871_v28 = vld [vmem:[#allocation10 + $0x68] ss:$16 sps:$4 sm:$0xff]   ;;  %v18879_v22 = vld [vmem:[#allocation10 + $0x8c] ss:$16 sps:$4 sm:$0xff]  }
 0x392   : > { %v7691_v18 = vmax.f32 %v21086_v55, %v7685_v19  ;;  %v7784_v45 = vmax.f32 %v7760_v29, 0.0  ;;  %v7772_v2 = vadd.f32 %v21171_v25, %v5913_v17  ;;  %v5915_v49 = vpop.f32.mrb[43].mxu0  ;;  %v6287_v15 = vpop.f32.mrb[43].mxu1  ;;  %13794 = vmatprep.subr.bf16.mxu0 %v18864_v5  ;;  %14439 = vmatprep.subr.bf16.mxu1 %v18867_v21  ;;  %v7786_v47 = vmax.f32 %v7762_v56, 0.0  ;;  %v20386_v19 = vld [vmem:[%s20905_s21 + $0x20] sm:$0xff]  }
 0x393   : > { %v7696_v16 = vpack.c.bf16 %v7690_v10, %v7690_v10  ;;  %v7785_v3 = vmax.f32 %v7761_v12, 0.0  ;;  %v7774_v61 = vadd.f32 %v21173_v26, %v6285_v60  ;;  %v7773_v35 = vadd.f32 %v21175_v33, %v5915_v49  ;;  %v18876_v29 = vld [vmem:[#allocation10 + $0x84] ss:$16 sps:$4 sm:$0xff]   ;;  %v18877_v49 = vld [vmem:[#allocation10 + $0x88] ss:$16 sps:$4 sm:$0xff]  }
 0x394   : > { %v7697_v37 = vpack.c.bf16 %v7691_v18, %v7691_v18  ;;  %v7796_v36 = vmax.f32 %v7772_v2, 0.0  ;;  %v7775_v55 = vadd.f32 %v21177_v34, %v6287_v15  ;;  %6622 = vmatmul.mubr.bf16.gmra.mrb[52].mxu0 %v20386_v19  ;;  %6994 = vmatmul.mubr.bf16.gmra.mrb[52].mxu1 %v20386_v19  ;;  %v7787_v21 = vmax.f32 %v7763_v13, 0.0  ;;  %v18874_v13 = vld [vmem:[#allocation10 + $0x80] ss:$16 sps:$4 sm:$0xff]  }
 0x395   : > { %7702 = vst [vmem:[#allocation4 + $0x90] sm:$0xf] %v7696_v16  ;;  %v7714_v5 = vrot.slane %v7696_v16, 4  ;;  %v7798_v56 = vmax.f32 %v7774_v61, 0.0  ;;  %13795 = vmatpush1.bf16.msra.mxu0 %v18862_v27  ;;  %14440 = vmatpush1.bf16.msra.mxu1 %v18865_v9  ;;  %v7797_v12 = vmax.f32 %v7773_v35, 0.0 }
 0x396   : > { %7703 = vst [vmem:[#allocation4 + $0x98] sm:$0xf] %v7697_v37  ;;  %v7715_v23 = vrot.slane %v7697_v37, 4  ;;  %v21255_v10 = vmax.f32 %v7784_v45, %v7796_v36  ;;  %v7799_v17 = vmax.f32 %v7775_v55, 0.0  ;;  %13796 = vmatprep.subr.bf16.mxu0 %v18870_v58  ;;  %14441 = vmatprep.subr.bf16.mxu1 %v18873_v31  ;;  %v18882_v16 = vld [vmem:[#allocation10 + $0xa4] ss:$16 sps:$4 sm:$0xff]  }
 0x397   : > { %7726 = vst [vmem:[#allocation4 + $0x60] sm:$0xf0] %v7714_v5  ;;  %v7810_v60 = vmax.f32 %v7786_v47, %v7798_v56  ;;  %v5919_v18 = vpop.f32.mrb[44].mxu0  ;;  %v6291_v2 = vpop.f32.mrb[44].mxu1  ;;  %6631 = vmatprep.mubr.bf16.mxu0 %v20651_v6  ;;  %7003 = vmatprep.mubr.bf16.mxu1 %v20651_v6  ;;  %v21259_v27 = vmax.f32 %v7785_v3, %v7797_v12  ;;  %v18885_v47 = vld [vmem:[#allocation10 + $0xac] ss:$16 sps:$4 sm:$0xff]  }
 0x398   : > { %7727 = vst [vmem:[#allocation4 + $0x68] sm:$0xf0] %v7715_v23  ;;  %v7811_v9 = vmax.f32 %v7787_v21, %v7799_v17  ;;  %v7886_v45 = vadd.f32 %v21171_v25, %v5919_v18  ;;  %v7888_v15 = vadd.f32 %v21173_v26, %v6291_v2  ;;  %v5921_v58 = vpop.f32.mrb[45].mxu0  ;;  %v6293_v31 = vpop.f32.mrb[45].mxu1  ;;  %v18880_v12 = vld [vmem:[#allocation10 + $0xa0] ss:$16 sps:$4 sm:$0xff]  }
 0x399   : > { %v7816_v61 = vmax.f32 %v21101_v42, %v7810_v60  ;;  %13797 = vmatpush1.bf16.msra.mxu0 %v18868_v24  ;;  %14442 = vmatpush1.bf16.msra.mxu1 %v18871_v28  ;;  %v7887_v37 = vadd.f32 %v21175_v33, %v5921_v58  ;;  %v7889_v36 = vadd.f32 %v21177_v34, %v6293_v31  ;;  %v5923_v35 = vpop.f32.mrb[46].mxu0  ;;  %v6295_v3 = vpop.f32.mrb[46].mxu1  ;;  %v18883_v17 = vld [vmem:[#allocation10 + $0xa8] ss:$16 sps:$4 sm:$0xff]  }
 0x39a   : > { %v7817_v55 = vmax.f32 %v21105_v46, %v7811_v9  ;;  %v7910_v19 = vmax.f32 %v7886_v45, 0.0  ;;  %v7898_v5 = vadd.f32 %v21171_v25, %v5923_v35  ;;  %v5925_v21 = vpop.f32.mrb[47].mxu0  ;;  %v6297_v56 = vpop.f32.mrb[47].mxu1  ;;  %13798 = vmatprep.subr.bf16.mxu0 %v18876_v29  ;;  %14443 = vmatprep.subr.bf16.mxu1 %v18879_v22  ;;  %v7912_v42 = vmax.f32 %v7888_v15, 0.0  ;;  %v20387_v9 = vld [vmem:[%s20905_s21 + $0x28] sm:$0xff]  }
 0x39b   : > { %v7822_v23 = vpack.c.bf16 %v7816_v61, %v7816_v61  ;;  %v7911_v24 = vmax.f32 %v7887_v37, 0.0  ;;  %v7900_v28 = vadd.f32 %v21173_v26, %v6295_v3  ;;  %v7899_v2 = vadd.f32 %v21175_v33, %v5925_v21  ;;  %v18888_v25 = vld [vmem:[#allocation10 + $0xc4] ss:$16 sps:$4 sm:$0xff]   ;;  %v18891_v45 = vld [vmem:[#allocation10 + $0xcc] ss:$16 sps:$4 sm:$0xff]  }
 0x39c   : > { %v7823_v60 = vpack.c.bf16 %v7817_v55, %v7817_v55  ;;  %v7922_v18 = vmax.f32 %v7898_v5, 0.0  ;;  %v7901_v46 = vadd.f32 %v21177_v34, %v6297_v56  ;;  %6632 = vmatmul.mubr.bf16.gmra.mrb[56].mxu0 %v20387_v9  ;;  %7004 = vmatmul.mubr.bf16.gmra.mrb[56].mxu1 %v20387_v9  ;;  %v7913_v22 = vmax.f32 %v7889_v36, 0.0  ;;  %v18886_v34 = vld [vmem:[#allocation10 + $0xc0] ss:$16 sps:$4 sm:$0xff]   ;;  %v18889_v37 = vld [vmem:[#allocation10 + $0xc8] ss:$16 sps:$4 sm:$0xff]  }
 0x39d   : > { %7828 = vst [vmem:[#allocation4 + $0xc0] sm:$0xf] %v7822_v23  ;;  %v7840_v29 = vrot.slane %v7822_v23, 4  ;;  %v7924_v15 = vmax.f32 %v7900_v28, 0.0  ;;  %13799 = vmatpush1.bf16.msra.mxu0 %v18874_v13  ;;  %14444 = vmatpush1.bf16.msra.mxu1 %v18877_v49  ;;  %v7923_v31 = vmax.f32 %v7899_v2, 0.0  ;;  %v20388_v21 = vld [vmem:[%s20905_s21 + $0x30] sm:$0xff]  }
 0x39e   : > { %7829 = vst [vmem:[#allocation4 + $0xc8] sm:$0xf] %v7823_v60  ;;  %v7841_v26 = vrot.slane %v7823_v60, 4  ;;  %v21272_v58 = vmax.f32 %v7910_v19, %v7922_v18  ;;  %v7925_v61 = vmax.f32 %v7901_v46, 0.0  ;;  %13800 = vmatprep.subr.bf16.mxu0 %v18882_v16  ;;  %14445 = vmatprep.subr.bf16.mxu1 %v18885_v47  ;;  %v18894_v36 = vld [vmem:[#allocation10 + $0xe4] ss:$16 sps:$4 sm:$0xff]  }
 0x39f   : > { %7852 = vst [vmem:[#allocation4 + $0x90] sm:$0xf0] %v7840_v29  ;;  %v7936_v33 = vmax.f32 %v7912_v42, %v7924_v15  ;;  %6641 = vmatprep.mubr.bf16.mxu0 %v20651_v6  ;;  %7013 = vmatprep.mubr.bf16.mxu1 %v20651_v6  ;;  %v21276_v13 = vmax.f32 %v7911_v24, %v7923_v31  ;;  %v18897_v35 = vld [vmem:[#allocation10 + $0xec] ss:$16 sps:$4 sm:$0xff]   ;;  %v18892_v55 = vld [vmem:[#allocation10 + $0xe0] ss:$16 sps:$4 sm:$0xff]  }
 0x3a0   : > { %7853 = vst [vmem:[#allocation4 + $0x98] sm:$0xf0] %v7841_v26  ;;  %v7937_v49 = vmax.f32 %v7913_v22, %v7925_v61  ;;  %v18895_v19 = vld [vmem:[#allocation10 + $0xe8] ss:$16 sps:$4 sm:$0xff]   ;;  %v18900_v56 = vld [vmem:[#allocation10 + $0x104] ss:$16 sps:$4 sm:$0xff]  }
 0x3a1   : > { %v7942_v3 = vmax.f32 %v21120_v39, %v7936_v33  ;;  %13801 = vmatpush1.bf16.msra.mxu0 %v18880_v12  ;;  %14446 = vmatpush1.bf16.msra.mxu1 %v18883_v17  ;;  %v18903_v39 = vld [vmem:[#allocation10 + $0x10c] ss:$16 sps:$4 sm:$0xff]   ;;  %v18901_v24 = vld [vmem:[#allocation10 + $0x108] ss:$16 sps:$4 sm:$0xff]   ;;  %v18906_v28 = vld [vmem:[#allocation10 + $0x124] ss:$16 sps:$4 sm:$0xff]  }
 0x3a2   : > { %v7943_v16 = vmax.f32 %v21124_v41, %v7937_v49  ;;  %13802 = vmatprep.subr.bf16.mxu0 %v18888_v25  ;;  %14447 = vmatprep.subr.bf16.mxu1 %v18891_v45  ;;  %v18898_v41 = vld [vmem:[#allocation10 + $0x100] ss:$16 sps:$4 sm:$0xff]   ;;  %v18909_v12 = vld [vmem:[#allocation10 + $0x12c] ss:$16 sps:$4 sm:$0xff]   ;;  %v18907_v60 = vld [vmem:[#allocation10 + $0x128] ss:$16 sps:$4 sm:$0xff]  }
 0x3a3   : > { %v7948_v47 = vpack.c.bf16 %v7942_v3, %v7942_v3  ;;  %v18904_v17 = vld [vmem:[#allocation10 + $0x120] ss:$16 sps:$4 sm:$0xff]   ;;  %v18912_v2 = vld [vmem:[#allocation10 + $0x144] ss:$16 sps:$4 sm:$0xff]   ;;  %v18915_v46 = vld [vmem:[#allocation10 + $0x14c] ss:$16 sps:$4 sm:$0xff]  }
 0x3a4   : > { %v7949_v5 = vpack.c.bf16 %v7943_v16, %v7943_v16  ;;  %6642 = vmatmul.mubr.bf16.gmra.mrb[60].mxu0 %v20388_v21  ;;  %7014 = vmatmul.mubr.bf16.gmra.mrb[60].mxu1 %v20388_v21  ;;  %v20389_v18 = vld [vmem:[%s20905_s21 + $0x38] sm:$0xff]   ;;  %v18913_v25 = vld [vmem:[#allocation10 + $0x148] ss:$16 sps:$4 sm:$0xff]   ;;  %v18918_v45 = vld [vmem:[#allocation10 + $0x164] ss:$16 sps:$4 sm:$0xff]  }
 0x3a5   : > { %v7960_v23 = vrot.slane %v7948_v47, 4  ;;  %13803 = vmatpush1.bf16.msra.mxu0 %v18886_v34  ;;  %14448 = vmatpush1.bf16.msra.mxu1 %v18889_v37  ;;  %v18910_v9 = vld [vmem:[#allocation10 + $0x140] ss:$16 sps:$4 sm:$0xff]   ;;  %v18921_v29 = vld [vmem:[#allocation10 + $0x16c] ss:$16 sps:$4 sm:$0xff]   ;;  %v20390_v31 = vld [vmem:[%s20905_s21 + $0x40] sm:$0xff]  }
 0x3a6   : > { %v7961_v42 = vrot.slane %v7949_v5, 4  ;;  %13804 = vmatprep.subr.bf16.mxu0 %v18894_v36  ;;  %14449 = vmatprep.subr.bf16.mxu1 %v18897_v35  ;;  %v7979_v22 = vld [vmem:[#allocation4 + $0x8] sm:$0xff]  ;;  %v18919_v26 = vld [vmem:[#allocation10 + $0x168] ss:$16 sps:$4 sm:$0xff]   ;;  %v18924_v61 = vld [vmem:[#allocation10 + $0x184] ss:$16 sps:$4 sm:$0xff]  }
 0x3a7   : > { %7972 = vst [vmem:[#allocation4 + $0xc0] sm:$0xf0] %v7960_v23  ;;  %6651 = vmatprep.mubr.bf16.mxu0 %v20651_v6  ;;  %7023 = vmatprep.mubr.bf16.mxu1 %v20651_v6  ;;  %v18916_v15 = vld [vmem:[#allocation10 + $0x160] ss:$16 sps:$4 sm:$0xff]   ;;  %v18927_v33 = vld [vmem:[#allocation10 + $0x18c] ss:$16 sps:$4 sm:$0xff]  }
 0x3a8   : > { %7973 = vst [vmem:[#allocation4 + $0xc8] sm:$0xf0] %v7961_v42  ;;  %v18925_v34 = vld [vmem:[#allocation10 + $0x188] ss:$16 sps:$4 sm:$0xff]   ;;  %v18930_v37 = vld [vmem:[#allocation10 + $0x1a4] ss:$16 sps:$4 sm:$0xff]  }
 0x3a9   : > { %13805 = vmatpush1.bf16.msra.mxu0 %v18892_v55  ;;  %14450 = vmatpush1.bf16.msra.mxu1 %v18895_v19  ;;  %v18933_v49 = vld [vmem:[#allocation10 + $0x1ac] ss:$16 sps:$4 sm:$0xff]   ;;  %v18928_v36 = vld [vmem:[#allocation10 + $0x1a0] ss:$16 sps:$4 sm:$0xff]   ;;  %v18931_v35 = vld [vmem:[#allocation10 + $0x1a8] ss:$16 sps:$4 sm:$0xff]  }
 0x3aa   : > { %13806 = vmatprep.subr.bf16.mxu0 %v18900_v56  ;;  %14451 = vmatprep.subr.bf16.mxu1 %v18903_v39  ;;  %v18936_v3 = vld [vmem:[#allocation10 + $0x1c4] ss:$16 sps:$4 sm:$0xff]   ;;  %v18939_v16 = vld [vmem:[#allocation10 + $0x1cc] ss:$16 sps:$4 sm:$0xff]   ;;  %v18934_v47 = vld [vmem:[#allocation10 + $0x1c0] ss:$16 sps:$4 sm:$0xff]  }
 0x3ab   : > { %v18937_v55 = vld [vmem:[#allocation10 + $0x1c8] ss:$16 sps:$4 sm:$0xff]   ;;  %v18942_v19 = vld [vmem:[#allocation10 + $0x1e4] ss:$16 sps:$4 sm:$0xff]   ;;  %v18945_v5 = vld [vmem:[#allocation10 + $0x1ec] ss:$16 sps:$4 sm:$0xff]  }
 0x3ac   : > { %6652 = vmatmul.mubr.bf16.gmra.mrb[64].mxu0 %v20389_v18  ;;  %7024 = vmatmul.mubr.bf16.gmra.mrb[64].mxu1 %v20389_v18  ;;  %v18940_v21 = vld [vmem:[#allocation10 + $0x1e0] ss:$16 sps:$4 sm:$0xff]   ;;  %v18943_v56 = vld [vmem:[#allocation10 + $0x1e8] ss:$16 sps:$4 sm:$0xff]   ;;  %v18948_v23 = vld [vmem:[#allocation10 + $0x204] ss:$16 sps:$4 sm:$0xff]  }
 0x3ad   : > { %13807 = vmatpush1.bf16.msra.mxu0 %v18898_v41  ;;  %14452 = vmatpush1.bf16.msra.mxu1 %v18901_v24  ;;  %v18951_v42 = vld [vmem:[#allocation10 + $0x20c] ss:$16 sps:$4 sm:$0xff]   ;;  %v18946_v39 = vld [vmem:[#allocation10 + $0x200] ss:$16 sps:$4 sm:$0xff]   ;;  %v18949_v41 = vld [vmem:[#allocation10 + $0x208] ss:$16 sps:$4 sm:$0xff]  }
 0x3ae   : > { %13808 = vmatprep.subr.bf16.mxu0 %v18906_v28  ;;  %14453 = vmatprep.subr.bf16.mxu1 %v18909_v12  ;;  %v18954_v24 = vld [vmem:[#allocation10 + $0x224] ss:$16 sps:$4 sm:$0xff]   ;;  %v18957_v28 = vld [vmem:[#allocation10 + $0x22c] ss:$16 sps:$4 sm:$0xff]  }
 0x3af   : > { %6661 = vmatprep.mubr.bf16.mxu0 %v20651_v6  ;;  %7033 = vmatprep.mubr.bf16.mxu1 %v20651_v6  ;;  %v18922_v6 = vld [vmem:[#allocation10 + $0x180] ss:$16 sps:$4 sm:$0xff]   ;;  %v7978_v12 = vld [vmem:[#allocation4] sm:$0xff] }
 0x3b0   : > { %v18960_v18 = vld [vmem:[#allocation10 + $0x244] ss:$16 sps:$4 sm:$0xff]  }
 0x3b1   : > { %13809 = vmatpush1.bf16.msra.mxu0 %v18904_v17  ;;  %14454 = vmatpush1.bf16.msra.mxu1 %v18907_v60  ;;  %v18952_v17 = vld [vmem:[#allocation10 + $0x220] ss:$16 sps:$4 sm:$0xff]   ;;  %v18955_v60 = vld [vmem:[#allocation10 + $0x228] ss:$16 sps:$4 sm:$0xff]  }
 0x3b2   : > { %13810 = vmatprep.subr.bf16.mxu0 %v18912_v2  ;;  %14455 = vmatprep.subr.bf16.mxu1 %v18915_v46  ;;  %v18963_v2 = vld [vmem:[#allocation10 + $0x24c] ss:$16 sps:$4 sm:$0xff]   ;;  %v18958_v46 = vld [vmem:[#allocation10 + $0x240] ss:$16 sps:$4 sm:$0xff]  }
 0x3b4   : > { %6662 = vmatmul.mubr.bf16.gmra.mrb[68].mxu0 %v20390_v31  ;;  %7034 = vmatmul.mubr.bf16.gmra.mrb[68].mxu1 %v20390_v31  ;;  %v18970_v31 = vld [vmem:[#allocation10 + $0x280] ss:$16 sps:$4 sm:$0xff]  }
 0x3b5   : > { %13811 = vmatpush1.bf16.msra.mxu0 %v18910_v9  ;;  %14456 = vmatpush1.bf16.msra.mxu1 %v18913_v25  ;;  %v18961_v9 = vld [vmem:[#allocation10 + $0x248] ss:$16 sps:$4 sm:$0xff]   ;;  %v18966_v25 = vld [vmem:[#allocation10 + $0x264] ss:$16 sps:$4 sm:$0xff]  }
 0x3b6   : > { %13822 = vmatprep.mubr.bf16.mxu0 %v7979_v22  ;;  %14467 = vmatprep.mubr.bf16.mxu1 %v7979_v22  ;;  %v18967_v22 = vld [vmem:[#allocation10 + $0x268] ss:$16 sps:$4 sm:$0xff]  }
 0x3b7   : > { %13812 = vmatprep.subr.bf16.mxu0 %v18918_v45  ;;  %14457 = vmatprep.subr.bf16.mxu1 %v18921_v29  ;;  %v18969_v45 = vld [vmem:[#allocation10 + $0x26c] ss:$16 sps:$4 sm:$0xff]   ;;  %v18964_v29 = vld [vmem:[#allocation10 + $0x260] ss:$16 sps:$4 sm:$0xff]  }
 0x3b9   : > { %13813 = vmatpush1.bf16.msra.mxu0 %v18916_v15  ;;  %14458 = vmatpush1.bf16.msra.mxu1 %v18919_v26  ;;  %v18972_v15 = vld [vmem:[#allocation10 + $0x284] ss:$16 sps:$4 sm:$0xff]   ;;  %v18975_v26 = vld [vmem:[#allocation10 + $0x28c] ss:$16 sps:$4 sm:$0xff]  }
 0x3ba   : > { %13814 = vmatprep.subr.bf16.mxu0 %v18924_v61  ;;  %14459 = vmatprep.subr.bf16.mxu1 %v18927_v33  ;;  %v18973_v61 = vld [vmem:[#allocation10 + $0x288] ss:$16 sps:$4 sm:$0xff]   ;;  %v18978_v33 = vld [vmem:[#allocation10 + $0x2a4] ss:$16 sps:$4 sm:$0xff]  }
 0x3bd   : > { %13815 = vmatpush1.bf16.msra.mxu0 %v18922_v6  ;;  %14460 = vmatpush1.bf16.msra.mxu1 %v18925_v34  ;;  %v18981_v6 = vld [vmem:[#allocation10 + $0x2ac] ss:$16 sps:$4 sm:$0xff]   ;;  %v18976_v34 = vld [vmem:[#allocation10 + $0x2a0] ss:$16 sps:$4 sm:$0xff]  }
 0x3be   : > { %13816 = vmatprep.subr.bf16.mxu0 %v18930_v37  ;;  %14461 = vmatprep.subr.bf16.mxu1 %v18933_v49  ;;  %v18979_v37 = vld [vmem:[#allocation10 + $0x2a8] ss:$16 sps:$4 sm:$0xff]   ;;  %v18984_v49 = vld [vmem:[#allocation10 + $0x2c4] ss:$16 sps:$4 sm:$0xff]  }
 0x3c1   : > { %13817 = vmatpush1.bf16.msra.mxu0 %v18928_v36  ;;  %14462 = vmatpush1.bf16.msra.mxu1 %v18931_v35  ;;  %v18987_v36 = vld [vmem:[#allocation10 + $0x2cc] ss:$16 sps:$4 sm:$0xff]   ;;  %v18982_v35 = vld [vmem:[#allocation10 + $0x2c0] ss:$16 sps:$4 sm:$0xff]  }
 0x3c2   : > { %13818 = vmatprep.subr.bf16.mxu0 %v18936_v3  ;;  %14463 = vmatprep.subr.bf16.mxu1 %v18939_v16  ;;  %v18985_v3 = vld [vmem:[#allocation10 + $0x2c8] ss:$16 sps:$4 sm:$0xff]   ;;  %v18990_v16 = vld [vmem:[#allocation10 + $0x2e4] ss:$16 sps:$4 sm:$0xff]  }
 0x3c5   : > { %13819 = vmatpush1.bf16.msra.mxu0 %v18934_v47  ;;  %14464 = vmatpush1.bf16.msra.mxu1 %v18937_v55  ;;  %v18993_v47 = vld [vmem:[#allocation10 + $0x2ec] ss:$16 sps:$4 sm:$0xff]   ;;  %v18988_v55 = vld [vmem:[#allocation10 + $0x2e0] ss:$16 sps:$4 sm:$0xff]  }
 0x3c6   : > { %13820 = vmatprep.subr.bf16.mxu0 %v18942_v19  ;;  %14465 = vmatprep.subr.bf16.mxu1 %v18945_v5  ;;  %v18991_v19 = vld [vmem:[#allocation10 + $0x2e8] ss:$16 sps:$4 sm:$0xff]   ;;  %v18996_v5 = vld [vmem:[#allocation10 + $0x304] ss:$16 sps:$4 sm:$0xff]  }
 0x3c9   : > { %13821 = vmatpush1.bf16.msra.mxu0 %v18940_v21  ;;  %14466 = vmatpush1.bf16.msra.mxu1 %v18943_v56  ;;  %v18999_v21 = vld [vmem:[#allocation10 + $0x30c] ss:$16 sps:$4 sm:$0xff]   ;;  %v18994_v56 = vld [vmem:[#allocation10 + $0x300] ss:$16 sps:$4 sm:$0xff]  }
 0x3ca   : > { %13833 = vmatprep.subr.bf16.mxu0 %v18948_v23  ;;  %14478 = vmatprep.subr.bf16.mxu1 %v18951_v42  ;;  %v18997_v23 = vld [vmem:[#allocation10 + $0x308] ss:$16 sps:$4 sm:$0xff]   ;;  %v19002_v42 = vld [vmem:[#allocation10 + $0x324] ss:$16 sps:$4 sm:$0xff]  }
 0x3cc   : > { %13823 = vmatmul.mubr.bf16.vlgmr.msra.gmra.mrb[72].mxu0 %v7978_v12  ;;  %14468 = vmatmul.mubr.bf16.vlgmr.msra.gmra.mrb[72].mxu1 %v7978_v12  ;;  %v19011_v12 = vld [vmem:[#allocation10 + $0x34c] ss:$16 sps:$4 sm:$0xff]  }
 0x3cd   : > { %13834 = vmatpush1.bf16.msra.mxu0 %v18946_v39  ;;  %14479 = vmatpush1.bf16.msra.mxu1 %v18949_v41  ;;  %v19005_v39 = vld [vmem:[#allocation10 + $0x32c] ss:$16 sps:$4 sm:$0xff]   ;;  %v19000_v41 = vld [vmem:[#allocation10 + $0x320] ss:$16 sps:$4 sm:$0xff]  }
 0x3ce   : > { %13835 = vmatprep.subr.bf16.mxu0 %v18954_v24  ;;  %14480 = vmatprep.subr.bf16.mxu1 %v18957_v28  ;;  %v19003_v24 = vld [vmem:[#allocation10 + $0x328] ss:$16 sps:$4 sm:$0xff]   ;;  %v19008_v28 = vld [vmem:[#allocation10 + $0x344] ss:$16 sps:$4 sm:$0xff]  }
 0x3d1   : > { %13836 = vmatpush1.bf16.msra.mxu0 %v18952_v17  ;;  %14481 = vmatpush1.bf16.msra.mxu1 %v18955_v60  ;;  %v19006_v17 = vld [vmem:[#allocation10 + $0x340] ss:$16 sps:$4 sm:$0xff]   ;;  %v19009_v60 = vld [vmem:[#allocation10 + $0x348] ss:$16 sps:$4 sm:$0xff]  }
 0x3d2   : > { %13837 = vmatprep.subr.bf16.mxu0 %v18960_v18  ;;  %14482 = vmatprep.subr.bf16.mxu1 %v18963_v2  ;;  %v19014_v18 = vld [vmem:[#allocation10 + $0x364] ss:$16 sps:$4 sm:$0xff]   ;;  %v19017_v2 = vld [vmem:[#allocation10 + $0x36c] ss:$16 sps:$4 sm:$0xff]  }
 0x3d5   : > { %13838 = vmatpush1.bf16.msra.mxu0 %v18958_v46  ;;  %14483 = vmatpush1.bf16.msra.mxu1 %v18961_v9  ;;  %v19012_v46 = vld [vmem:[#allocation10 + $0x360] ss:$16 sps:$4 sm:$0xff]   ;;  %v19015_v9 = vld [vmem:[#allocation10 + $0x368] ss:$16 sps:$4 sm:$0xff]  }
 0x3d6   : > { %13839 = vmatprep.subr.bf16.mxu0 %v18966_v25  ;;  %14484 = vmatprep.subr.bf16.mxu1 %v18969_v45  ;;  %v19020_v25 = vld [vmem:[#allocation10 + $0x384] ss:$16 sps:$4 sm:$0xff]   ;;  %v19023_v45 = vld [vmem:[#allocation10 + $0x38c] ss:$16 sps:$4 sm:$0xff]  }
 0x3d9   : > { %13840 = vmatpush1.bf16.msra.mxu0 %v18964_v29  ;;  %14485 = vmatpush1.bf16.msra.mxu1 %v18967_v22  ;;  %v19018_v29 = vld [vmem:[#allocation10 + $0x380] ss:$16 sps:$4 sm:$0xff]   ;;  %v19021_v22 = vld [vmem:[#allocation10 + $0x388] ss:$16 sps:$4 sm:$0xff]  }
 0x3da   : > { %13841 = vmatprep.subr.bf16.mxu0 %v18972_v15  ;;  %14486 = vmatprep.subr.bf16.mxu1 %v18975_v26  ;;  %v19026_v15 = vld [vmem:[#allocation10 + $0x3a4] ss:$16 sps:$4 sm:$0xff]   ;;  %v19029_v26 = vld [vmem:[#allocation10 + $0x3ac] ss:$16 sps:$4 sm:$0xff]  }
 0x3dd   : > { %13842 = vmatpush1.bf16.msra.mxu0 %v18970_v31  ;;  %14487 = vmatpush1.bf16.msra.mxu1 %v18973_v61  ;;  %v19024_v31 = vld [vmem:[#allocation10 + $0x3a0] ss:$16 sps:$4 sm:$0xff]   ;;  %v19027_v61 = vld [vmem:[#allocation10 + $0x3a8] ss:$16 sps:$4 sm:$0xff]  }
 0x3de   : > { %13843 = vmatprep.subr.bf16.mxu0 %v18978_v33  ;;  %14488 = vmatprep.subr.bf16.mxu1 %v18981_v6  ;;  %v19032_v33 = vld [vmem:[#allocation10 + $0x3c4] ss:$16 sps:$4 sm:$0xff]   ;;  %v19035_v6 = vld [vmem:[#allocation10 + $0x3cc] ss:$16 sps:$4 sm:$0xff]  }
 0x3e1   : > { %13844 = vmatpush1.bf16.msra.mxu0 %v18976_v34  ;;  %14489 = vmatpush1.bf16.msra.mxu1 %v18979_v37  ;;  %v19030_v34 = vld [vmem:[#allocation10 + $0x3c0] ss:$16 sps:$4 sm:$0xff]   ;;  %v19033_v37 = vld [vmem:[#allocation10 + $0x3c8] ss:$16 sps:$4 sm:$0xff]  }
 0x3e2   : > { %13845 = vmatprep.subr.bf16.mxu0 %v18984_v49  ;;  %14490 = vmatprep.subr.bf16.mxu1 %v18987_v36  ;;  %v19038_v49 = vld [vmem:[#allocation10 + $0x3e4] ss:$16 sps:$4 sm:$0xff]   ;;  %v19041_v36 = vld [vmem:[#allocation10 + $0x3ec] ss:$16 sps:$4 sm:$0xff]  }
 0x3e5   : > { %13846 = vmatpush1.bf16.msra.mxu0 %v18982_v35  ;;  %14491 = vmatpush1.bf16.msra.mxu1 %v18985_v3  ;;  %v19036_v35 = vld [vmem:[#allocation10 + $0x3e0] ss:$16 sps:$4 sm:$0xff]   ;;  %v19039_v3 = vld [vmem:[#allocation10 + $0x3e8] ss:$16 sps:$4 sm:$0xff]  }
 0x3e6   : > { %13847 = vmatprep.subr.bf16.mxu0 %v18990_v16  ;;  %14492 = vmatprep.subr.bf16.mxu1 %v18993_v47  ;;  %v19044_v16 = vld [vmem:[#allocation10 + $0x404] ss:$16 sps:$4 sm:$0xff]   ;;  %v19047_v47 = vld [vmem:[#allocation10 + $0x40c] ss:$16 sps:$4 sm:$0xff]  }
 0x3e9   : > { %13848 = vmatpush1.bf16.msra.mxu0 %v18988_v55  ;;  %14493 = vmatpush1.bf16.msra.mxu1 %v18991_v19  ;;  %v7189_v55 = vld [vmem:[#allocation8 + $0x8] sm:$0xf] }
 0x3ea   : > { %13849 = vmatprep.subr.bf16.mxu0 %v18996_v5  ;;  %14494 = vmatprep.subr.bf16.mxu1 %v18999_v21  ;;  %v21288_v19 = vrot.slane %v7189_v55, %v20993_v62  ;;  %v21291_v5 = vrot.slane %v7189_v55, %v20996_v63  ;;  %v21294_v21 = vrot.slane %v7189_v55, %v20999_v0 }
 0x3ed   : > { %13850 = vmatpush1.bf16.msra.mxu0 %v18994_v56  ;;  %14495 = vmatpush1.bf16.msra.mxu1 %v18997_v23  ;;  %v21297_v56 = vrot.slane %v7189_v55, %v21002_v1 }
 0x3ee   : > { %13851 = vmatprep.subr.bf16.mxu0 %v19002_v42  ;;  %14496 = vmatprep.subr.bf16.mxu1 %v19005_v39 }
 0x3f1   : > { %13852 = vmatpush1.bf16.msra.mxu0 %v19000_v41  ;;  %14497 = vmatpush1.bf16.msra.mxu1 %v19003_v24 }
 0x3f2   : > { %13853 = vmatprep.subr.bf16.mxu0 %v19008_v28  ;;  %14498 = vmatprep.subr.bf16.mxu1 %v19011_v12 }
 0x3f5   : > { %13854 = vmatpush1.bf16.msra.mxu0 %v19006_v17  ;;  %14499 = vmatpush1.bf16.msra.mxu1 %v19009_v60 }
 0x3f6   : > { %13855 = vmatprep.subr.bf16.mxu0 %v19014_v18  ;;  %14500 = vmatprep.subr.bf16.mxu1 %v19017_v2 }
 0x3f9   : > { %13856 = vmatpush1.bf16.msra.mxu0 %v19012_v46  ;;  %14501 = vmatpush1.bf16.msra.mxu1 %v19015_v9 }
 0x3fa   : > { %13857 = vmatprep.subr.bf16.mxu0 %v19020_v25  ;;  %14502 = vmatprep.subr.bf16.mxu1 %v19023_v45 }
 0x3fd   : > { %13858 = vmatpush1.bf16.msra.mxu0 %v19018_v29  ;;  %14503 = vmatpush1.bf16.msra.mxu1 %v19021_v22 }
 0x3fe   : > { %13859 = vmatprep.subr.bf16.mxu0 %v19026_v15  ;;  %14504 = vmatprep.subr.bf16.mxu1 %v19029_v26 }
 0x401   : > { %13860 = vmatpush1.bf16.msra.mxu0 %v19024_v31  ;;  %14505 = vmatpush1.bf16.msra.mxu1 %v19027_v61 }
 0x402   : > { %13861 = vmatprep.subr.bf16.mxu0 %v19032_v33  ;;  %14506 = vmatprep.subr.bf16.mxu1 %v19035_v6 }
 0x405   : > { %13862 = vmatpush1.bf16.msra.mxu0 %v19030_v34  ;;  %14507 = vmatpush1.bf16.msra.mxu1 %v19033_v37 }
 0x406   : > { %13863 = vmatprep.subr.bf16.mxu0 %v19038_v49  ;;  %14508 = vmatprep.subr.bf16.mxu1 %v19041_v36 }
 0x409   : > { %13864 = vmatpush1.bf16.msra.mxu0 %v19036_v35  ;;  %14509 = vmatpush1.bf16.msra.mxu1 %v19039_v3 }
 0x40a   : > { %13876 = vmatprep.subr.bf16.mxu0 %v19044_v16  ;;  %14521 = vmatprep.subr.bf16.mxu1 %v19047_v47 }
 0x45f   : > { %v6613_v23 = vpop.f32.mrb[48].mxu0  ;;  %v6985_v42 = vpop.f32.mrb[48].mxu1 }
 0x460   : > { %v7284_v39 = vadd.f32 %v21288_v19, %v6613_v23  ;;  %v7286_v41 = vadd.f32 %v21291_v5, %v6985_v42  ;;  %v6615_v24 = vpop.f32.mrb[49].mxu0  ;;  %v6987_v28 = vpop.f32.mrb[49].mxu1 }
 0x461   : > { %v7285_v12 = vadd.f32 %v21294_v21, %v6615_v24  ;;  %v7287_v17 = vadd.f32 %v21297_v56, %v6987_v28  ;;  %v6617_v60 = vpop.f32.mrb[50].mxu0  ;;  %v6989_v18 = vpop.f32.mrb[50].mxu1 }
 0x462   : > { %v7296_v2 = vadd.f32 %v21288_v19, %v6617_v60  ;;  %v7298_v46 = vadd.f32 %v21291_v5, %v6989_v18  ;;  %v6619_v9 = vpop.f32.mrb[51].mxu0  ;;  %v6991_v25 = vpop.f32.mrb[51].mxu1  ;;  %v7308_v22 = vmax.f32 %v7284_v39, 0.0  ;;  %v7310_v15 = vmax.f32 %v7286_v41, 0.0 }
 0x463   : > { %v7297_v45 = vadd.f32 %v21294_v21, %v6619_v9  ;;  %v7299_v29 = vadd.f32 %v21297_v56, %v6991_v25  ;;  %v7309_v61 = vmax.f32 %v7285_v12, 0.0  ;;  %v7311_v33 = vmax.f32 %v7287_v17, 0.0 }
 0x464   : > { %v7320_v26 = vmax.f32 %v7296_v2, 0.0  ;;  %v7322_v31 = vmax.f32 %v7298_v46, 0.0 }
 0x465   : > { %v7321_v6 = vmax.f32 %v7297_v45, 0.0  ;;  %v7323_v34 = vmax.f32 %v7299_v29, 0.0 }
 0x466   : > { %v7332_v37 = vmax.f32 %v7308_v22, %v7320_v26  ;;  %v7334_v49 = vmax.f32 %v7310_v15, %v7322_v31 }
 0x467   : > { %v7333_v36 = vmax.f32 %v7309_v61, %v7321_v6  ;;  %v7335_v35 = vmax.f32 %v7311_v33, %v7323_v34  ;;  %v6623_v3 = vpop.f32.mrb[52].mxu0  ;;  %v6995_v16 = vpop.f32.mrb[52].mxu1 }
 0x468   : > { %v7338_v47 = vmax.f32 %v21030_v50, %v7332_v37  ;;  %v7340_v55 = vmax.f32 %v21190_v11, %v7334_v49  ;;  %v7386_v23 = vadd.f32 %v21288_v19, %v6623_v3  ;;  %v7388_v42 = vadd.f32 %v21291_v5, %v6995_v16  ;;  %v6625_v39 = vpop.f32.mrb[53].mxu0  ;;  %v6997_v41 = vpop.f32.mrb[53].mxu1 }
 0x469   : > { %v7339_v24 = vmax.f32 %v21034_v54, %v7333_v36  ;;  %v7341_v28 = vmax.f32 %v21192_v8, %v7335_v35  ;;  %v7387_v12 = vadd.f32 %v21294_v21, %v6625_v39  ;;  %v7389_v17 = vadd.f32 %v21297_v56, %v6997_v41  ;;  %v6627_v60 = vpop.f32.mrb[54].mxu0  ;;  %v6999_v18 = vpop.f32.mrb[54].mxu1 }
 0x46a   : > { %v7344_v2 = vpack.c.bf16 %v7338_v47, %v7338_v47  ;;  %v7346_v50 = vpack.c.bf16 %v7340_v55, %v7340_v55  ;;  %v6629_v46 = vpop.f32.mrb[55].mxu0  ;;  %v7001_v11 = vpop.f32.mrb[55].mxu1  ;;  %v7398_v45 = vadd.f32 %v21288_v19, %v6627_v60  ;;  %v7400_v54 = vadd.f32 %v21291_v5, %v6999_v18 }
 0x46b   : > { %v7345_v9 = vpack.c.bf16 %v7339_v24, %v7339_v24  ;;  %v7347_v25 = vpack.c.bf16 %v7341_v28, %v7341_v28  ;;  %v7399_v8 = vadd.f32 %v21294_v21, %v6629_v46  ;;  %v7401_v29 = vadd.f32 %v21297_v56, %v7001_v11 }
 0x46c   : > { %7350 = vst [vmem:[#allocation4 + $0x10] sm:$0xf] %v7344_v2  ;;  %7352 = vst [vmem:[#allocation4 + $0x20] sm:$0xf] %v7346_v50  ;;  %v7410_v22 = vmax.f32 %v7386_v23, 0.0  ;;  %v7412_v15 = vmax.f32 %v7388_v42, 0.0 }
 0x46d   : > { %7351 = vst [vmem:[#allocation4 + $0x18] sm:$0xf] %v7345_v9  ;;  %7353 = vst [vmem:[#allocation4 + $0x28] sm:$0xf] %v7347_v25  ;;  %v7411_v26 = vmax.f32 %v7387_v12, 0.0  ;;  %v7413_v31 = vmax.f32 %v7389_v17, 0.0 }
 0x46e   : > { %v7422_v61 = vmax.f32 %v7398_v45, 0.0  ;;  %v7424_v33 = vmax.f32 %v7400_v54, 0.0  ;;  %v7423_v6 = vmax.f32 %v7399_v8, 0.0  ;;  %v7425_v34 = vmax.f32 %v7401_v29, 0.0 }
 0x46f   : > { %v6633_v37 = vpop.f32.mrb[56].mxu0  ;;  %v7005_v49 = vpop.f32.mrb[56].mxu1 }
 0x470   : > { %v7434_v36 = vmax.f32 %v7410_v22, %v7422_v61  ;;  %v7436_v35 = vmax.f32 %v7412_v15, %v7424_v33  ;;  %v7435_v3 = vmax.f32 %v7411_v26, %v7423_v6  ;;  %v7437_v16 = vmax.f32 %v7413_v31, %v7425_v34  ;;  %v6635_v47 = vpop.f32.mrb[57].mxu0  ;;  %v7007_v55 = vpop.f32.mrb[57].mxu1 }
 0x471   : > { %v7512_v39 = vadd.f32 %v21288_v19, %v6633_v37  ;;  %v7514_v41 = vadd.f32 %v21291_v5, %v7005_v49  ;;  %v7513_v23 = vadd.f32 %v21294_v21, %v6635_v47  ;;  %v7515_v42 = vadd.f32 %v21297_v56, %v7007_v55  ;;  %v6637_v24 = vpop.f32.mrb[58].mxu0  ;;  %v7009_v28 = vpop.f32.mrb[58].mxu1 }
 0x472   : > { %v7440_v12 = vmax.f32 %v21048_v30, %v7434_v36  ;;  %v7442_v17 = vmax.f32 %v21206_v38, %v7436_v35  ;;  %v7441_v60 = vmax.f32 %v21052_v32, %v7435_v3  ;;  %v7443_v18 = vmax.f32 %v21208_v14, %v7437_v16  ;;  %v6639_v2 = vpop.f32.mrb[59].mxu0  ;;  %v7011_v50 = vpop.f32.mrb[59].mxu1 }
 0x473   : > { %v7536_v46 = vmax.f32 %v7512_v39, 0.0  ;;  %v7538_v11 = vmax.f32 %v7514_v41, 0.0  ;;  %v7537_v9 = vmax.f32 %v7513_v23, 0.0  ;;  %v7539_v25 = vmax.f32 %v7515_v42, 0.0 }
 0x474   : > { %v7446_v45 = vpack.c.bf16 %v7440_v12, %v7440_v12  ;;  %v7448_v54 = vpack.c.bf16 %v7442_v17, %v7442_v17  ;;  %v7447_v8 = vpack.c.bf16 %v7441_v60, %v7441_v60  ;;  %v7449_v29 = vpack.c.bf16 %v7443_v18, %v7443_v18 }
 0x475   : > { %v7524_v22 = vadd.f32 %v21288_v19, %v6637_v24  ;;  %v7526_v30 = vadd.f32 %v21291_v5, %v7009_v28  ;;  %v7525_v38 = vadd.f32 %v21294_v21, %v6639_v2  ;;  %v7527_v32 = vadd.f32 %v21297_v56, %v7011_v50 }
 0x476   : > { %7452 = vst [vmem:[#allocation4 + $0x40] sm:$0xf] %v7446_v45  ;;  %v7464_v14 = vrot.slane %v7446_v45, 4  ;;  %7454 = vst [vmem:[#allocation4 + $0x50] sm:$0xf] %v7448_v54  ;;  %v7466_v15 = vrot.slane %v7448_v54, 4 }
 0x477   : > { %7453 = vst [vmem:[#allocation4 + $0x48] sm:$0xf] %v7447_v8  ;;  %v7465_v26 = vrot.slane %v7447_v8, 4  ;;  %7455 = vst [vmem:[#allocation4 + $0x58] sm:$0xf] %v7449_v29  ;;  %v7467_v31 = vrot.slane %v7449_v29, 4 }
 0x478   : > { %v7548_v61 = vmax.f32 %v7524_v22, 0.0  ;;  %v7550_v33 = vmax.f32 %v7526_v30, 0.0  ;;  %v7549_v6 = vmax.f32 %v7525_v38, 0.0  ;;  %v7551_v34 = vmax.f32 %v7527_v32, 0.0  ;;  %v6643_v37 = vpop.f32.mrb[60].mxu0  ;;  %v7015_v49 = vpop.f32.mrb[60].mxu1 }
 0x479   : > { %7476 = vst [vmem:[#allocation4 + $0x10] sm:$0xf0] %v7464_v14  ;;  %7478 = vst [vmem:[#allocation4 + $0x20] sm:$0xf0] %v7466_v15  ;;  %v7638_v36 = vadd.f32 %v21288_v19, %v6643_v37  ;;  %v7640_v35 = vadd.f32 %v21291_v5, %v7015_v49  ;;  %v6645_v3 = vpop.f32.mrb[61].mxu0  ;;  %v7017_v16 = vpop.f32.mrb[61].mxu1 }
 0x47a   : > { %7477 = vst [vmem:[#allocation4 + $0x18] sm:$0xf0] %v7465_v26  ;;  %7479 = vst [vmem:[#allocation4 + $0x28] sm:$0xf0] %v7467_v31  ;;  %v7560_v47 = vmax.f32 %v7536_v46, %v7548_v61  ;;  %v7562_v55 = vmax.f32 %v7538_v11, %v7550_v33  ;;  %v7561_v39 = vmax.f32 %v7537_v9, %v7549_v6  ;;  %v6647_v23 = vpop.f32.mrb[62].mxu0  ;;  %v7019_v42 = vpop.f32.mrb[62].mxu1 }
 0x47b   : > { %v7563_v41 = vmax.f32 %v7539_v25, %v7551_v34  ;;  %v7662_v24 = vmax.f32 %v7638_v36, 0.0  ;;  %v7664_v28 = vmax.f32 %v7640_v35, 0.0  ;;  %v7639_v12 = vadd.f32 %v21294_v21, %v6645_v3  ;;  %v6649_v60 = vpop.f32.mrb[63].mxu0  ;;  %v7021_v18 = vpop.f32.mrb[63].mxu1  ;;  %v19042_v14 = vld [vmem:[#allocation10 + $0x400] ss:$16 sps:$4 sm:$0xff]  }
 0x47c   : > { %v7641_v17 = vadd.f32 %v21297_v56, %v7017_v16  ;;  %v7566_v2 = vmax.f32 %v21067_v4, %v7560_v47  ;;  %v7568_v50 = vmax.f32 %v21223_v59, %v7562_v55  ;;  %v7567_v45 = vmax.f32 %v21071_v7, %v7561_v39  ;;  %v19045_v7 = vld [vmem:[#allocation10 + $0x408] ss:$16 sps:$4 sm:$0xff]  }
 0x47d   : > { %v7569_v46 = vmax.f32 %v21225_v20, %v7563_v41  ;;  %v7663_v11 = vmax.f32 %v7639_v12, 0.0  ;;  %v7650_v25 = vadd.f32 %v21288_v19, %v6647_v23  ;;  %v7652_v54 = vadd.f32 %v21291_v5, %v7019_v42 }
 0x47e   : > { %v7665_v9 = vmax.f32 %v7641_v17, 0.0  ;;  %v7572_v8 = vpack.c.bf16 %v7566_v2, %v7566_v2  ;;  %v7574_v29 = vpack.c.bf16 %v7568_v50, %v7568_v50  ;;  %v7573_v22 = vpack.c.bf16 %v7567_v45, %v7567_v45  ;;  %v19053_v2 = vld [vmem:[#allocation10 + $0x42c] ss:$16 sps:$4 sm:$0xff]  }
 0x47f   : > { %v7575_v30 = vpack.c.bf16 %v7569_v46, %v7569_v46  ;;  %v7674_v38 = vmax.f32 %v7650_v25, 0.0  ;;  %v7676_v32 = vmax.f32 %v7652_v54, 0.0  ;;  %v7651_v4 = vadd.f32 %v21294_v21, %v6649_v60  ;;  %v6653_v61 = vpop.f32.mrb[64].mxu0  ;;  %v7025_v33 = vpop.f32.mrb[64].mxu1 }
 0x480   : > { %v7653_v59 = vadd.f32 %v21297_v56, %v7021_v18  ;;  %7578 = vst [vmem:[#allocation4 + $0x70] sm:$0xf] %v7572_v8  ;;  %v7590_v20 = vrot.slane %v7572_v8, 4  ;;  %7580 = vst [vmem:[#allocation4 + $0x80] sm:$0xf] %v7574_v29  ;;  %v7592_v15 = vrot.slane %v7574_v29, 4  ;;  %v21344_v16 = vadd.f32 %v21288_v19, %v6653_v61 }
 0x481   : > { %7579 = vst [vmem:[#allocation4 + $0x78] sm:$0xf] %v7573_v22  ;;  %v7591_v26 = vrot.slane %v7573_v22, 4  ;;  %7581 = vst [vmem:[#allocation4 + $0x88] sm:$0xf] %v7575_v30  ;;  %v7593_v31 = vrot.slane %v7575_v30, 4  ;;  %v7686_v6 = vmax.f32 %v7662_v24, %v7674_v38  ;;  %v7688_v34 = vmax.f32 %v7664_v28, %v7676_v32 }
 0x482   : > { %v7675_v37 = vmax.f32 %v7651_v4, 0.0  ;;  %v7677_v49 = vmax.f32 %v7653_v59, 0.0  ;;  %v7981_v36 = vld [vmem:[#allocation4 + $0x18] sm:$0xff]  ;;  %v6655_v35 = vpop.f32.mrb[65].mxu0  ;;  %v7027_v3 = vpop.f32.mrb[65].mxu1  ;;  %v21347_v47 = vadd.f32 %v21291_v5, %v7025_v33  ;;  %v7980_v39 = vld [vmem:[#allocation4 + $0x10] sm:$0xff] }
 0x483   : > { %7602 = vst [vmem:[#allocation4 + $0x40] sm:$0xf0] %v7590_v20  ;;  %7604 = vst [vmem:[#allocation4 + $0x50] sm:$0xf0] %v7592_v15  ;;  %13865 = vmatprep.mubr.bf16.mxu0 %v7981_v36  ;;  %14510 = vmatprep.mubr.bf16.mxu1 %v7981_v36  ;;  %v21350_v55 = vadd.f32 %v21294_v21, %v6655_v35  ;;  %v6657_v41 = vpop.f32.mrb[66].mxu0  ;;  %v7029_v23 = vpop.f32.mrb[66].mxu1  ;;  %v7692_v42 = vmax.f32 %v21084_v48, %v7686_v6 }
 0x484   : > { %7603 = vst [vmem:[#allocation4 + $0x48] sm:$0xf0] %v7591_v26  ;;  %7605 = vst [vmem:[#allocation4 + $0x58] sm:$0xf0] %v7593_v31  ;;  %v7694_v24 = vmax.f32 %v21238_v53, %v7688_v34  ;;  %v7687_v28 = vmax.f32 %v7663_v11, %v7675_v37  ;;  %v7689_v12 = vmax.f32 %v7665_v9, %v7677_v49  ;;  %13866 = vmatmul.mubr.bf16.vlgmr.msra.gmra.mrb[72].mxu0 %v7980_v39  ;;  %v6659_v17 = vpop.f32.mrb[67].mxu0  ;;  %v7031_v60 = vpop.f32.mrb[67].mxu1 }
 0x485   : > { %v19050_v18 = vld [vmem:[#allocation10 + $0x424] ss:$16 sps:$4 sm:$0xff]   ;;  %v7788_v50 = vmax.f32 %v21344_v16, 0.0  ;;  %v7790_v45 = vmax.f32 %v21347_v47, 0.0  ;;  %v7789_v46 = vmax.f32 %v21350_v55, 0.0  ;;  %v21358_v25 = vadd.f32 %v21297_v56, %v7027_v3  ;;  %13877 = vmatpush1.bf16.msra.mxu0 %v19042_v14  ;;  %14511 = vmatmul.mubr.bf16.vlgmr.msra.gmra.mrb[72].mxu1 %v7980_v39  ;;  %v7983_v8 = vld [vmem:[#allocation4 + $0x28] sm:$0xff] }
 0x486   : > { %v19048_v48 = vld [vmem:[#allocation10 + $0x420] ss:$16 sps:$4 sm:$0xff]   ;;  %v7698_v53 = vpack.c.bf16 %v7692_v42, %v7692_v42  ;;  %v7700_v11 = vpack.c.bf16 %v7694_v24, %v7694_v24  ;;  %v7693_v9 = vmax.f32 %v21088_v57, %v7687_v28  ;;  %v7695_v54 = vmax.f32 %v21242_v52, %v7689_v12  ;;  %14522 = vmatpush1.bf16.msra.mxu1 %v19045_v7  ;;  %v19051_v29 = vld [vmem:[#allocation10 + $0x428] ss:$16 sps:$4 sm:$0xff]   ;;  %v19056_v22 = vld [vmem:[#allocation10 + $0x444] ss:$16 sps:$4 sm:$0xff]  }
 0x487   : > { %v7791_v30 = vmax.f32 %v21358_v25, 0.0  ;;  %v7776_v38 = vadd.f32 %v21288_v19, %v6657_v41  ;;  %v7778_v32 = vadd.f32 %v21291_v5, %v7029_v23  ;;  %13908 = vmatprep.mubr.bf16.mxu0 %v7983_v8  ;;  %14553 = vmatprep.mubr.bf16.mxu1 %v7983_v8  ;;  %v7777_v4 = vadd.f32 %v21294_v21, %v6659_v17  ;;  %v19059_v59 = vld [vmem:[#allocation10 + $0x44c] ss:$16 sps:$4 sm:$0xff]   ;;  %v19054_v20 = vld [vmem:[#allocation10 + $0x440] ss:$16 sps:$4 sm:$0xff]   ;;  %v6663_v6 = vpop.f32.mrb[68].mxu0 }
 0x488   : > { %7704 = vst [vmem:[#allocation4 + $0xa0] sm:$0xf] %v7698_v53  ;;  %v7716_v14 = vrot.slane %v7698_v53, 4  ;;  %7706 = vst [vmem:[#allocation4 + $0xb0] sm:$0xf] %v7700_v11  ;;  %v7718_v57 = vrot.slane %v7700_v11, 4  ;;  %v7699_v52 = vpack.c.bf16 %v7693_v9, %v7693_v9  ;;  %v7701_v7 = vpack.c.bf16 %v7695_v54, %v7695_v54  ;;  %13878 = vmatprep.subr.bf16.mxu0 %v19050_v18 }
 0x489   : > { %14523 = vmatprep.subr.bf16.mxu1 %v19053_v2  ;;  %v19057_v15 = vld [vmem:[#allocation10 + $0x448] ss:$16 sps:$4 sm:$0xff]   ;;  %v7800_v26 = vmax.f32 %v7776_v38, 0.0  ;;  %v7802_v31 = vmax.f32 %v7778_v32, 0.0  ;;  %v7801_v61 = vmax.f32 %v7777_v4, 0.0  ;;  %v7779_v33 = vadd.f32 %v21297_v56, %v7031_v60  ;;  %13879 = vmatpush1.bf16.msra.mxu0 %v19048_v48  ;;  %v7035_v34 = vpop.f32.mrb[68].mxu1 }
 0x48a   : > { %7728 = vst [vmem:[#allocation4 + $0x70] sm:$0xf0] %v7716_v14  ;;  %7730 = vst [vmem:[#allocation4 + $0x80] sm:$0xf0] %v7718_v57  ;;  %v7717_v37 = vrot.slane %v7699_v52, 4  ;;  %v7719_v49 = vrot.slane %v7701_v7, 4  ;;  %14524 = vmatpush1.bf16.msra.mxu1 %v19051_v29  ;;  %v7890_v36 = vadd.f32 %v21288_v19, %v6663_v6  ;;  %v7892_v35 = vadd.f32 %v21291_v5, %v7035_v34 }
 0x48b   : > { %7705 = vst [vmem:[#allocation4 + $0xa8] sm:$0xf] %v7699_v52  ;;  %7707 = vst [vmem:[#allocation4 + $0xb8] sm:$0xf] %v7701_v7  ;;  %13880 = vmatprep.subr.bf16.mxu0 %v19056_v22  ;;  %v6665_v3 = vpop.f32.mrb[69].mxu0  ;;  %v7037_v16 = vpop.f32.mrb[69].mxu1  ;;  %v7812_v55 = vmax.f32 %v7788_v50, %v7800_v26  ;;  %v7814_v39 = vmax.f32 %v7790_v45, %v7802_v31  ;;  %v7813_v41 = vmax.f32 %v7789_v46, %v7801_v61 }
 0x48c   : > { %v19062_v47 = vld [vmem:[#allocation10 + $0x464] ss:$16 sps:$4 sm:$0xff]   ;;  %v7803_v23 = vmax.f32 %v7779_v33, 0.0  ;;  %14525 = vmatprep.subr.bf16.mxu1 %v19059_v59  ;;  %v6667_v42 = vpop.f32.mrb[70].mxu0  ;;  %v7039_v24 = vpop.f32.mrb[70].mxu1  ;;  %v7914_v12 = vmax.f32 %v7890_v36, 0.0  ;;  %v7891_v60 = vadd.f32 %v21294_v21, %v6665_v3  ;;  %v7893_v18 = vadd.f32 %v21297_v56, %v7037_v16 }
 0x48d   : > { %v19065_v28 = vld [vmem:[#allocation10 + $0x46c] ss:$16 sps:$4 sm:$0xff]   ;;  %7729 = vst [vmem:[#allocation4 + $0x78] sm:$0xf0] %v7717_v37  ;;  %7731 = vst [vmem:[#allocation4 + $0x88] sm:$0xf0] %v7719_v49  ;;  %v7818_v48 = vmax.f32 %v21103_v43, %v7812_v55  ;;  %v7820_v50 = vmax.f32 %v21255_v10, %v7814_v39  ;;  %v7819_v45 = vmax.f32 %v21107_v51, %v7813_v41  ;;  %13881 = vmatpush1.bf16.msra.mxu0 %v19054_v20 }
 0x48e   : > { %v7916_v17 = vmax.f32 %v7892_v35, 0.0  ;;  %v6669_v2 = vpop.f32.mrb[71].mxu0  ;;  %v7041_v25 = vpop.f32.mrb[71].mxu1  ;;  %v7815_v46 = vmax.f32 %v7791_v30, %v7803_v23  ;;  %v19060_v53 = vld [vmem:[#allocation10 + $0x460] ss:$16 sps:$4 sm:$0xff]   ;;  %v7915_v11 = vmax.f32 %v7891_v60, 0.0  ;;  %14526 = vmatpush1.bf16.msra.mxu1 %v19057_v15  ;;  %v7902_v54 = vadd.f32 %v21288_v19, %v6667_v42  ;;  %13882 = vmatprep.subr.bf16.mxu0 %v19062_v47 }
 0x48f   : > { %v7917_v9 = vmax.f32 %v7893_v18, 0.0  ;;  %v7904_v8 = vadd.f32 %v21291_v5, %v7039_v24  ;;  %v19063_v29 = vld [vmem:[#allocation10 + $0x468] ss:$16 sps:$4 sm:$0xff]   ;;  %v19068_v22 = vld [vmem:[#allocation10 + $0x484] ss:$16 sps:$4 sm:$0xff]   ;;  %v7824_v38 = vpack.c.bf16 %v7818_v48, %v7818_v48  ;;  %v7826_v32 = vpack.c.bf16 %v7820_v50, %v7820_v50  ;;  %14527 = vmatprep.subr.bf16.mxu1 %v19065_v28 }
 0x490   : > { %v7825_v43 = vpack.c.bf16 %v7819_v45, %v7819_v45  ;;  %v7821_v10 = vmax.f32 %v21259_v27, %v7815_v46  ;;  %v19071_v51 = vld [vmem:[#allocation10 + $0x48c] ss:$16 sps:$4 sm:$0xff]   ;;  %v7926_v30 = vmax.f32 %v7902_v54, 0.0  ;;  %v7903_v59 = vadd.f32 %v21294_v21, %v6669_v2  ;;  %v19066_v7 = vld [vmem:[#allocation10 + $0x480] ss:$16 sps:$4 sm:$0xff]  }
 0x491   : > { %v7928_v4 = vmax.f32 %v7904_v8, 0.0  ;;  %v7905_v14 = vadd.f32 %v21297_v56, %v7041_v25  ;;  %7830 = vst [vmem:[#allocation4 + $0xd0] sm:$0xf] %v7824_v38  ;;  %v7842_v19 = vrot.slane %v7824_v38, 4  ;;  %7832 = vst [vmem:[#allocation4 + $0xe0] sm:$0xf] %v7826_v32  ;;  %13883 = vmatpush1.bf16.msra.mxu0 %v19060_v53 }
 0x492   : > { %v7844_v5 = vrot.slane %v7826_v32, 4  ;;  %7831 = vst [vmem:[#allocation4 + $0xd8] sm:$0xf] %v7825_v43  ;;  %v7843_v57 = vrot.slane %v7825_v43, 4  ;;  %v7827_v52 = vpack.c.bf16 %v7821_v10, %v7821_v10  ;;  %v7938_v20 = vmax.f32 %v7914_v12, %v7926_v30  ;;  %14528 = vmatpush1.bf16.msra.mxu1 %v19063_v29  ;;  %13884 = vmatprep.subr.bf16.mxu0 %v19068_v22  ;;  %v19069_v31 = vld [vmem:[#allocation10 + $0x488] ss:$16 sps:$4 sm:$0xff]  }
 0x493   : > { %v7940_v15 = vmax.f32 %v7916_v17, %v7928_v4  ;;  %v7927_v27 = vmax.f32 %v7903_v59, 0.0  ;;  %v7929_v26 = vmax.f32 %v7905_v14, 0.0  ;;  %7854 = vst [vmem:[#allocation4 + $0xa0] sm:$0xf0] %v7842_v19  ;;  %14529 = vmatprep.subr.bf16.mxu1 %v19071_v51  ;;  %v19074_v56 = vld [vmem:[#allocation10 + $0x4a4] ss:$16 sps:$4 sm:$0xff]  }
 0x494   : > { %7856 = vst [vmem:[#allocation4 + $0xb0] sm:$0xf0] %v7844_v5  ;;  %7855 = vst [vmem:[#allocation4 + $0xa8] sm:$0xf0] %v7843_v57  ;;  %v7845_v21 = vrot.slane %v7827_v52, 4  ;;  %v7944_v33 = vmax.f32 %v21122_v40, %v7938_v20 }
 0x495   : > { %7833 = vst [vmem:[#allocation4 + $0xe8] sm:$0xf] %v7827_v52  ;;  %v19077_v61 = vld [vmem:[#allocation10 + $0x4ac] ss:$16 sps:$4 sm:$0xff]   ;;  %v7946_v6 = vmax.f32 %v21272_v58, %v7940_v15  ;;  %v7939_v34 = vmax.f32 %v7915_v11, %v7927_v27  ;;  %v7941_v37 = vmax.f32 %v7917_v9, %v7929_v26  ;;  %13885 = vmatpush1.bf16.msra.mxu0 %v19066_v7  ;;  %v19072_v49 = vld [vmem:[#allocation10 + $0x4a0] ss:$16 sps:$4 sm:$0xff]  }
 0x496   : > { %7857 = vst [vmem:[#allocation4 + $0xb8] sm:$0xf0] %v7845_v21  ;;  %v7950_v36 = vpack.c.bf16 %v7944_v33, %v7944_v33  ;;  %14530 = vmatpush1.bf16.msra.mxu1 %v19069_v31  ;;  %v19075_v47 = vld [vmem:[#allocation10 + $0x4a8] ss:$16 sps:$4 sm:$0xff]   ;;  %v19080_v55 = vld [vmem:[#allocation10 + $0x4c4] ss:$16 sps:$4 sm:$0xff]   ;;  %13886 = vmatprep.subr.bf16.mxu0 %v19074_v56 }
 0x497   : > { %v7952_v35 = vpack.c.bf16 %v7946_v6, %v7946_v6  ;;  %v7945_v3 = vmax.f32 %v21126_v44, %v7939_v34  ;;  %v7947_v16 = vmax.f32 %v21276_v13, %v7941_v37  ;;  %14531 = vmatprep.subr.bf16.mxu1 %v19077_v61  ;;  %v19083_v39 = vld [vmem:[#allocation10 + $0x4cc] ss:$16 sps:$4 sm:$0xff]   ;;  %v19078_v42 = vld [vmem:[#allocation10 + $0x4c0] ss:$16 sps:$4 sm:$0xff]   ;;  %v19081_v44 = vld [vmem:[#allocation10 + $0x4c8] ss:$16 sps:$4 sm:$0xff]  }
 0x498   : > { %v7962_v40 = vrot.slane %v7950_v36, 4  ;;  %v19086_v13 = vld [vmem:[#allocation10 + $0x4e4] ss:$16 sps:$4 sm:$0xff]   ;;  %v19089_v12 = vld [vmem:[#allocation10 + $0x4ec] ss:$16 sps:$4 sm:$0xff]  }
 0x499   : > { %v7964_v41 = vrot.slane %v7952_v35, 4  ;;  %v7951_v58 = vpack.c.bf16 %v7945_v3, %v7945_v3  ;;  %v7953_v23 = vpack.c.bf16 %v7947_v16, %v7947_v16  ;;  %13887 = vmatpush1.bf16.msra.mxu0 %v19072_v49  ;;  %v19084_v17 = vld [vmem:[#allocation10 + $0x4e0] ss:$16 sps:$4 sm:$0xff]   ;;  %v19087_v60 = vld [vmem:[#allocation10 + $0x4e8] ss:$16 sps:$4 sm:$0xff]  }
 0x49a   : > { %7974 = vst [vmem:[#allocation4 + $0xd0] sm:$0xf0] %v7962_v40  ;;  %14532 = vmatpush1.bf16.msra.mxu1 %v19075_v47  ;;  %13888 = vmatprep.subr.bf16.mxu0 %v19080_v55  ;;  %v19092_v18 = vld [vmem:[#allocation10 + $0x504] ss:$16 sps:$4 sm:$0xff]   ;;  %v19095_v2 = vld [vmem:[#allocation10 + $0x50c] ss:$16 sps:$4 sm:$0xff]  }
 0x49b   : > { %7976 = vst [vmem:[#allocation4 + $0xe0] sm:$0xf0] %v7964_v41  ;;  %v7963_v24 = vrot.slane %v7951_v58, 4  ;;  %v7965_v28 = vrot.slane %v7953_v23, 4  ;;  %14533 = vmatprep.subr.bf16.mxu1 %v19083_v39  ;;  %v19090_v25 = vld [vmem:[#allocation10 + $0x500] ss:$16 sps:$4 sm:$0xff]  }
 0x49c   : > { %v19093_v48 = vld [vmem:[#allocation10 + $0x508] ss:$16 sps:$4 sm:$0xff]   ;;  %v19098_v50 = vld [vmem:[#allocation10 + $0x524] ss:$16 sps:$4 sm:$0xff]   ;;  %v19101_v45 = vld [vmem:[#allocation10 + $0x52c] ss:$16 sps:$4 sm:$0xff]  }
 0x49d   : > { %7975 = vst [vmem:[#allocation4 + $0xd8] sm:$0xf0] %v7963_v24  ;;  %7977 = vst [vmem:[#allocation4 + $0xe8] sm:$0xf0] %v7965_v28  ;;  %13889 = vmatpush1.bf16.msra.mxu0 %v19078_v42  ;;  %v19096_v46 = vld [vmem:[#allocation10 + $0x520] ss:$16 sps:$4 sm:$0xff]  }
 0x49e   : > { %14534 = vmatpush1.bf16.msra.mxu1 %v19081_v44  ;;  %13890 = vmatprep.subr.bf16.mxu0 %v19086_v13  ;;  %v19099_v53 = vld [vmem:[#allocation10 + $0x528] ss:$16 sps:$4 sm:$0xff]   ;;  %v19104_v11 = vld [vmem:[#allocation10 + $0x544] ss:$16 sps:$4 sm:$0xff]   ;;  %v19107_v9 = vld [vmem:[#allocation10 + $0x54c] ss:$16 sps:$4 sm:$0xff]  }
 0x49f   : > { %14535 = vmatprep.subr.bf16.mxu1 %v19089_v12  ;;  %v19102_v54 = vld [vmem:[#allocation10 + $0x540] ss:$16 sps:$4 sm:$0xff]   ;;  %v19105_v8 = vld [vmem:[#allocation10 + $0x548] ss:$16 sps:$4 sm:$0xff]   ;;  %v19110_v29 = vld [vmem:[#allocation10 + $0x564] ss:$16 sps:$4 sm:$0xff]  }
 0x4a0   : > { %v19113_v22 = vld [vmem:[#allocation10 + $0x56c] ss:$16 sps:$4 sm:$0xff]   ;;  %v19108_v38 = vld [vmem:[#allocation10 + $0x560] ss:$16 sps:$4 sm:$0xff]   ;;  %v19111_v32 = vld [vmem:[#allocation10 + $0x568] ss:$16 sps:$4 sm:$0xff]  }
 0x4a1   : > { %13891 = vmatpush1.bf16.msra.mxu0 %v19084_v17  ;;  %v19116_v43 = vld [vmem:[#allocation10 + $0x584] ss:$16 sps:$4 sm:$0xff]   ;;  %v19119_v10 = vld [vmem:[#allocation10 + $0x58c] ss:$16 sps:$4 sm:$0xff]   ;;  %v19114_v51 = vld [vmem:[#allocation10 + $0x580] ss:$16 sps:$4 sm:$0xff]  }
 0x4a2   : > { %14536 = vmatpush1.bf16.msra.mxu1 %v19087_v60  ;;  %13892 = vmatprep.subr.bf16.mxu0 %v19092_v18  ;;  %v19117_v30 = vld [vmem:[#allocation10 + $0x588] ss:$16 sps:$4 sm:$0xff]   ;;  %v19122_v4 = vld [vmem:[#allocation10 + $0x5a4] ss:$16 sps:$4 sm:$0xff]   ;;  %v19125_v59 = vld [vmem:[#allocation10 + $0x5ac] ss:$16 sps:$4 sm:$0xff]  }
 0x4a3   : > { %14537 = vmatprep.subr.bf16.mxu1 %v19095_v2  ;;  %v19120_v14 = vld [vmem:[#allocation10 + $0x5a0] ss:$16 sps:$4 sm:$0xff]   ;;  %v19123_v19 = vld [vmem:[#allocation10 + $0x5a8] ss:$16 sps:$4 sm:$0xff]   ;;  %v19128_v5 = vld [vmem:[#allocation10 + $0x5c4] ss:$16 sps:$4 sm:$0xff]  }
 0x4a4   : > { %v19131_v57 = vld [vmem:[#allocation10 + $0x5cc] ss:$16 sps:$4 sm:$0xff]   ;;  %v19126_v52 = vld [vmem:[#allocation10 + $0x5c0] ss:$16 sps:$4 sm:$0xff]   ;;  %v19129_v7 = vld [vmem:[#allocation10 + $0x5c8] ss:$16 sps:$4 sm:$0xff]  }
 0x4a5   : > { %13893 = vmatpush1.bf16.msra.mxu0 %v19090_v25  ;;  %v19134_v20 = vld [vmem:[#allocation10 + $0x5e4] ss:$16 sps:$4 sm:$0xff]   ;;  %v19137_v15 = vld [vmem:[#allocation10 + $0x5ec] ss:$16 sps:$4 sm:$0xff]   ;;  %v19132_v27 = vld [vmem:[#allocation10 + $0x5e0] ss:$16 sps:$4 sm:$0xff]  }
 0x4a6   : > { %14538 = vmatpush1.bf16.msra.mxu1 %v19093_v48  ;;  %13894 = vmatprep.subr.bf16.mxu0 %v19098_v50  ;;  %v19135_v26 = vld [vmem:[#allocation10 + $0x5e8] ss:$16 sps:$4 sm:$0xff]   ;;  %v19140_v31 = vld [vmem:[#allocation10 + $0x604] ss:$16 sps:$4 sm:$0xff]   ;;  %v19143_v21 = vld [vmem:[#allocation10 + $0x60c] ss:$16 sps:$4 sm:$0xff]  }
 0x4a7   : > { %14539 = vmatprep.subr.bf16.mxu1 %v19101_v45  ;;  %v19138_v56 = vld [vmem:[#allocation10 + $0x600] ss:$16 sps:$4 sm:$0xff]   ;;  %v19141_v61 = vld [vmem:[#allocation10 + $0x608] ss:$16 sps:$4 sm:$0xff]   ;;  %v19146_v6 = vld [vmem:[#allocation10 + $0x624] ss:$16 sps:$4 sm:$0xff]  }
 0x4a8   : > { %v7982_v33 = vld [vmem:[#allocation4 + $0x20] sm:$0xff]  ;;  %v19149_v34 = vld [vmem:[#allocation10 + $0x62c] ss:$16 sps:$4 sm:$0xff]   ;;  %v19144_v49 = vld [vmem:[#allocation10 + $0x620] ss:$16 sps:$4 sm:$0xff]  }
 0x4a9   : > { %13895 = vmatpush1.bf16.msra.mxu0 %v19096_v46  ;;  %v7985_v37 = vld [vmem:[#allocation4 + $0x38] sm:$0xff]  ;;  %v19147_v36 = vld [vmem:[#allocation10 + $0x628] ss:$16 sps:$4 sm:$0xff]   ;;  %v19152_v35 = vld [vmem:[#allocation10 + $0x644] ss:$16 sps:$4 sm:$0xff]  }
 0x4aa   : > { %14540 = vmatpush1.bf16.msra.mxu1 %v19099_v53  ;;  %13896 = vmatprep.subr.bf16.mxu0 %v19104_v11  ;;  %v19155_v3 = vld [vmem:[#allocation10 + $0x64c] ss:$16 sps:$4 sm:$0xff]   ;;  %v19150_v16 = vld [vmem:[#allocation10 + $0x640] ss:$16 sps:$4 sm:$0xff]   ;;  %v19153_v47 = vld [vmem:[#allocation10 + $0x648] ss:$16 sps:$4 sm:$0xff]  }
 0x4ab   : > { %14541 = vmatprep.subr.bf16.mxu1 %v19107_v9  ;;  %v19158_v55 = vld [vmem:[#allocation10 + $0x664] ss:$16 sps:$4 sm:$0xff]   ;;  %v19161_v39 = vld [vmem:[#allocation10 + $0x66c] ss:$16 sps:$4 sm:$0xff]   ;;  %v19156_v40 = vld [vmem:[#allocation10 + $0x660] ss:$16 sps:$4 sm:$0xff]  }
 0x4ac   : > { %v19159_v41 = vld [vmem:[#allocation10 + $0x668] ss:$16 sps:$4 sm:$0xff]   ;;  %v19164_v58 = vld [vmem:[#allocation10 + $0x684] ss:$16 sps:$4 sm:$0xff]   ;;  %v19167_v23 = vld [vmem:[#allocation10 + $0x68c] ss:$16 sps:$4 sm:$0xff]  }
 0x4ad   : > { %13897 = vmatpush1.bf16.msra.mxu0 %v19102_v54  ;;  %v19162_v42 = vld [vmem:[#allocation10 + $0x680] ss:$16 sps:$4 sm:$0xff]   ;;  %v19165_v24 = vld [vmem:[#allocation10 + $0x688] ss:$16 sps:$4 sm:$0xff]   ;;  %v19170_v28 = vld [vmem:[#allocation10 + $0x6a4] ss:$16 sps:$4 sm:$0xff]  }
 0x4ae   : > { %14542 = vmatpush1.bf16.msra.mxu1 %v19105_v8  ;;  %13898 = vmatprep.subr.bf16.mxu0 %v19110_v29  ;;  %v19173_v44 = vld [vmem:[#allocation10 + $0x6ac] ss:$16 sps:$4 sm:$0xff]   ;;  %v19168_v13 = vld [vmem:[#allocation10 + $0x6a0] ss:$16 sps:$4 sm:$0xff]   ;;  %v19171_v12 = vld [vmem:[#allocation10 + $0x6a8] ss:$16 sps:$4 sm:$0xff]  }
 0x4af   : > { %14543 = vmatprep.subr.bf16.mxu1 %v19113_v22  ;;  %v19176_v17 = vld [vmem:[#allocation10 + $0x6c4] ss:$16 sps:$4 sm:$0xff]   ;;  %v19179_v60 = vld [vmem:[#allocation10 + $0x6cc] ss:$16 sps:$4 sm:$0xff]   ;;  %v19174_v18 = vld [vmem:[#allocation10 + $0x6c0] ss:$16 sps:$4 sm:$0xff]  }
 0x4b0   : > { %v19177_v2 = vld [vmem:[#allocation10 + $0x6c8] ss:$16 sps:$4 sm:$0xff]   ;;  %v19182_v25 = vld [vmem:[#allocation10 + $0x6e4] ss:$16 sps:$4 sm:$0xff]   ;;  %v19185_v48 = vld [vmem:[#allocation10 + $0x6ec] ss:$16 sps:$4 sm:$0xff]  }
 0x4b1   : > { %13899 = vmatpush1.bf16.msra.mxu0 %v19108_v38  ;;  %v19180_v50 = vld [vmem:[#allocation10 + $0x6e0] ss:$16 sps:$4 sm:$0xff]   ;;  %v19183_v45 = vld [vmem:[#allocation10 + $0x6e8] ss:$16 sps:$4 sm:$0xff]   ;;  %v19188_v46 = vld [vmem:[#allocation10 + $0x704] ss:$16 sps:$4 sm:$0xff]  }
 0x4b2   : > { %14544 = vmatpush1.bf16.msra.mxu1 %v19111_v32  ;;  %13900 = vmatprep.subr.bf16.mxu0 %v19116_v43  ;;  %v19191_v53 = vld [vmem:[#allocation10 + $0x70c] ss:$16 sps:$4 sm:$0xff]   ;;  %v19186_v11 = vld [vmem:[#allocation10 + $0x700] ss:$16 sps:$4 sm:$0xff]   ;;  %v19189_v9 = vld [vmem:[#allocation10 + $0x708] ss:$16 sps:$4 sm:$0xff]  }
 0x4b3   : > { %14545 = vmatprep.subr.bf16.mxu1 %v19119_v10  ;;  %v19194_v54 = vld [vmem:[#allocation10 + $0x724] ss:$16 sps:$4 sm:$0xff]   ;;  %v19197_v8 = vld [vmem:[#allocation10 + $0x72c] ss:$16 sps:$4 sm:$0xff]   ;;  %v19192_v29 = vld [vmem:[#allocation10 + $0x720] ss:$16 sps:$4 sm:$0xff]  }
 0x4b4   : > { %v19195_v22 = vld [vmem:[#allocation10 + $0x728] ss:$16 sps:$4 sm:$0xff]   ;;  %v19200_v38 = vld [vmem:[#allocation10 + $0x744] ss:$16 sps:$4 sm:$0xff]   ;;  %v19203_v32 = vld [vmem:[#allocation10 + $0x74c] ss:$16 sps:$4 sm:$0xff]  }
 0x4b5   : > { %13901 = vmatpush1.bf16.msra.mxu0 %v19114_v51  ;;  %v19198_v43 = vld [vmem:[#allocation10 + $0x740] ss:$16 sps:$4 sm:$0xff]   ;;  %v19201_v10 = vld [vmem:[#allocation10 + $0x748] ss:$16 sps:$4 sm:$0xff]   ;;  %v19206_v51 = vld [vmem:[#allocation10 + $0x764] ss:$16 sps:$4 sm:$0xff]  }
 0x4b6   : > { %14546 = vmatpush1.bf16.msra.mxu1 %v19117_v30  ;;  %13902 = vmatprep.subr.bf16.mxu0 %v19122_v4  ;;  %v19209_v30 = vld [vmem:[#allocation10 + $0x76c] ss:$16 sps:$4 sm:$0xff]   ;;  %v19204_v4 = vld [vmem:[#allocation10 + $0x760] ss:$16 sps:$4 sm:$0xff]  }
 0x4b7   : > { %14547 = vmatprep.subr.bf16.mxu1 %v19125_v59  ;;  %v19207_v59 = vld [vmem:[#allocation10 + $0x768] ss:$16 sps:$4 sm:$0xff]  }
 0x4b9   : > { %13903 = vmatpush1.bf16.msra.mxu0 %v19120_v14  ;;  %v19212_v14 = vld [vmem:[#allocation10 + $0x784] ss:$16 sps:$4 sm:$0xff]  }
 0x4ba   : > { %14548 = vmatpush1.bf16.msra.mxu1 %v19123_v19  ;;  %13904 = vmatprep.subr.bf16.mxu0 %v19128_v5  ;;  %v19215_v19 = vld [vmem:[#allocation10 + $0x78c] ss:$16 sps:$4 sm:$0xff]   ;;  %v19210_v5 = vld [vmem:[#allocation10 + $0x780] ss:$16 sps:$4 sm:$0xff]  }
 0x4bb   : > { %14549 = vmatprep.subr.bf16.mxu1 %v19131_v57  ;;  %v19213_v57 = vld [vmem:[#allocation10 + $0x788] ss:$16 sps:$4 sm:$0xff]  }
 0x4bd   : > { %13905 = vmatpush1.bf16.msra.mxu0 %v19126_v52  ;;  %v19218_v52 = vld [vmem:[#allocation10 + $0x7a4] ss:$16 sps:$4 sm:$0xff]  }
 0x4be   : > { %14550 = vmatpush1.bf16.msra.mxu1 %v19129_v7  ;;  %13906 = vmatprep.subr.bf16.mxu0 %v19134_v20  ;;  %v19221_v7 = vld [vmem:[#allocation10 + $0x7ac] ss:$16 sps:$4 sm:$0xff]   ;;  %v19216_v20 = vld [vmem:[#allocation10 + $0x7a0] ss:$16 sps:$4 sm:$0xff]  }
 0x4bf   : > { %14551 = vmatprep.subr.bf16.mxu1 %v19137_v15  ;;  %v19219_v15 = vld [vmem:[#allocation10 + $0x7a8] ss:$16 sps:$4 sm:$0xff]  }
 0x4c1   : > { %13907 = vmatpush1.bf16.msra.mxu0 %v19132_v27  ;;  %v19224_v27 = vld [vmem:[#allocation10 + $0x7c4] ss:$16 sps:$4 sm:$0xff]  }
 0x4c2   : > { %14552 = vmatpush1.bf16.msra.mxu1 %v19135_v26  ;;  %13919 = vmatprep.subr.bf16.mxu0 %v19140_v31  ;;  %v19227_v26 = vld [vmem:[#allocation10 + $0x7cc] ss:$16 sps:$4 sm:$0xff]   ;;  %v19222_v31 = vld [vmem:[#allocation10 + $0x7c0] ss:$16 sps:$4 sm:$0xff]  }
 0x4c3   : > { %14564 = vmatprep.subr.bf16.mxu1 %v19143_v21  ;;  %v19225_v21 = vld [vmem:[#allocation10 + $0x7c8] ss:$16 sps:$4 sm:$0xff]  }
 0x4c4   : > { %13909 = vmatmul.mubr.bf16.vlgmr.msra.gmra.mrb[72].mxu0 %v7982_v33 }
 0x4c5   : > { %14554 = vmatmul.mubr.bf16.vlgmr.msra.gmra.mrb[72].mxu1 %v7982_v33  ;;  %13920 = vmatpush1.bf16.msra.mxu0 %v19138_v56  ;;  %v19230_v56 = vld [vmem:[#allocation10 + $0x7e4] ss:$16 sps:$4 sm:$0xff]   ;;  %v19228_v33 = vld [vmem:[#allocation10 + $0x7e0] ss:$16 sps:$4 sm:$0xff]  }
 0x4c6   : > { %13951 = vmatprep.mubr.bf16.mxu0 %v7985_v37  ;;  %14565 = vmatpush1.bf16.msra.mxu1 %v19141_v61  ;;  %v19233_v61 = vld [vmem:[#allocation10 + $0x7ec] ss:$16 sps:$4 sm:$0xff]  }
 0x4c7   : > { %14596 = vmatprep.mubr.bf16.mxu1 %v7985_v37  ;;  %13921 = vmatprep.subr.bf16.mxu0 %v19146_v6  ;;  %v19231_v6 = vld [vmem:[#allocation10 + $0x7e8] ss:$16 sps:$4 sm:$0xff]   ;;  %v19239_v37 = vld [vmem:[#allocation10 + $0x80c] ss:$16 sps:$4 sm:$0xff]  }
 0x4c8   : > { %14566 = vmatprep.subr.bf16.mxu1 %v19149_v34  ;;  %v19236_v34 = vld [vmem:[#allocation10 + $0x804] ss:$16 sps:$4 sm:$0xff]  }
 0x4c9   : > { %13922 = vmatpush1.bf16.msra.mxu0 %v19144_v49  ;;  %v19234_v49 = vld [vmem:[#allocation10 + $0x800] ss:$16 sps:$4 sm:$0xff]  }
 0x4ca   : > { %14567 = vmatpush1.bf16.msra.mxu1 %v19147_v36  ;;  %13923 = vmatprep.subr.bf16.mxu0 %v19152_v35  ;;  %v19237_v36 = vld [vmem:[#allocation10 + $0x808] ss:$16 sps:$4 sm:$0xff]  }
 0x4cb   : > { %14568 = vmatprep.subr.bf16.mxu1 %v19155_v3  ;;  %v7984_v35 = vld [vmem:[#allocation4 + $0x30] sm:$0xff] }
 0x4cc   : > { %v19242_v3 = vld [vmem:[#allocation10 + $0x824] ss:$16 sps:$4 sm:$0xff]  }
 0x4cd   : > { %13924 = vmatpush1.bf16.msra.mxu0 %v19150_v16  ;;  %v19245_v16 = vld [vmem:[#allocation10 + $0x82c] ss:$16 sps:$4 sm:$0xff]  }
 0x4ce   : > { %14569 = vmatpush1.bf16.msra.mxu1 %v19153_v47  ;;  %13925 = vmatprep.subr.bf16.mxu0 %v19158_v55  ;;  %v7987_v47 = vld [vmem:[#allocation4 + $0x48] sm:$0xff] }
 0x4cf   : > { %14570 = vmatprep.subr.bf16.mxu1 %v19161_v39  ;;  %v19240_v55 = vld [vmem:[#allocation10 + $0x820] ss:$16 sps:$4 sm:$0xff]   ;;  %v19243_v39 = vld [vmem:[#allocation10 + $0x828] ss:$16 sps:$4 sm:$0xff]  }
 0x4d1   : > { %13926 = vmatpush1.bf16.msra.mxu0 %v19156_v40  ;;  %v19248_v40 = vld [vmem:[#allocation10 + $0x844] ss:$16 sps:$4 sm:$0xff]  }
 0x4d2   : > { %14571 = vmatpush1.bf16.msra.mxu1 %v19159_v41  ;;  %13927 = vmatprep.subr.bf16.mxu0 %v19164_v58  ;;  %v19251_v41 = vld [vmem:[#allocation10 + $0x84c] ss:$16 sps:$4 sm:$0xff]   ;;  %v19246_v58 = vld [vmem:[#allocation10 + $0x840] ss:$16 sps:$4 sm:$0xff]  }
 0x4d3   : > { %14572 = vmatprep.subr.bf16.mxu1 %v19167_v23  ;;  %v19249_v23 = vld [vmem:[#allocation10 + $0x848] ss:$16 sps:$4 sm:$0xff]  }
 0x4d5   : > { %13928 = vmatpush1.bf16.msra.mxu0 %v19162_v42  ;;  %v19254_v42 = vld [vmem:[#allocation10 + $0x864] ss:$16 sps:$4 sm:$0xff]  }
 0x4d6   : > { %14573 = vmatpush1.bf16.msra.mxu1 %v19165_v24  ;;  %13929 = vmatprep.subr.bf16.mxu0 %v19170_v28  ;;  %v19257_v24 = vld [vmem:[#allocation10 + $0x86c] ss:$16 sps:$4 sm:$0xff]   ;;  %v19252_v28 = vld [vmem:[#allocation10 + $0x860] ss:$16 sps:$4 sm:$0xff]  }
 0x4d7   : > { %14574 = vmatprep.subr.bf16.mxu1 %v19173_v44  ;;  %v19255_v44 = vld [vmem:[#allocation10 + $0x868] ss:$16 sps:$4 sm:$0xff]  }
 0x4d9   : > { %13930 = vmatpush1.bf16.msra.mxu0 %v19168_v13  ;;  %v19260_v13 = vld [vmem:[#allocation10 + $0x884] ss:$16 sps:$4 sm:$0xff]  }
 0x4da   : > { %14575 = vmatpush1.bf16.msra.mxu1 %v19171_v12  ;;  %13931 = vmatprep.subr.bf16.mxu0 %v19176_v17  ;;  %v19263_v12 = vld [vmem:[#allocation10 + $0x88c] ss:$16 sps:$4 sm:$0xff]   ;;  %v19258_v17 = vld [vmem:[#allocation10 + $0x880] ss:$16 sps:$4 sm:$0xff]  }
 0x4db   : > { %14576 = vmatprep.subr.bf16.mxu1 %v19179_v60  ;;  %v19261_v60 = vld [vmem:[#allocation10 + $0x888] ss:$16 sps:$4 sm:$0xff]  }
 0x4dd   : > { %13932 = vmatpush1.bf16.msra.mxu0 %v19174_v18  ;;  %v19266_v18 = vld [vmem:[#allocation10 + $0x8a4] ss:$16 sps:$4 sm:$0xff]  }
 0x4de   : > { %14577 = vmatpush1.bf16.msra.mxu1 %v19177_v2  ;;  %13933 = vmatprep.subr.bf16.mxu0 %v19182_v25  ;;  %v19269_v2 = vld [vmem:[#allocation10 + $0x8ac] ss:$16 sps:$4 sm:$0xff]   ;;  %v19264_v25 = vld [vmem:[#allocation10 + $0x8a0] ss:$16 sps:$4 sm:$0xff]  }
 0x4df   : > { %14578 = vmatprep.subr.bf16.mxu1 %v19185_v48  ;;  %v19267_v48 = vld [vmem:[#allocation10 + $0x8a8] ss:$16 sps:$4 sm:$0xff]  }
 0x4e1   : > { %13934 = vmatpush1.bf16.msra.mxu0 %v19180_v50  ;;  %v19272_v50 = vld [vmem:[#allocation10 + $0x8c4] ss:$16 sps:$4 sm:$0xff]  }
 0x4e2   : > { %14579 = vmatpush1.bf16.msra.mxu1 %v19183_v45  ;;  %13935 = vmatprep.subr.bf16.mxu0 %v19188_v46  ;;  %v19275_v45 = vld [vmem:[#allocation10 + $0x8cc] ss:$16 sps:$4 sm:$0xff]   ;;  %v19270_v46 = vld [vmem:[#allocation10 + $0x8c0] ss:$16 sps:$4 sm:$0xff]  }
 0x4e3   : > { %14580 = vmatprep.subr.bf16.mxu1 %v19191_v53  ;;  %v19273_v53 = vld [vmem:[#allocation10 + $0x8c8] ss:$16 sps:$4 sm:$0xff]  }
 0x4e5   : > { %13936 = vmatpush1.bf16.msra.mxu0 %v19186_v11  ;;  %v19278_v11 = vld [vmem:[#allocation10 + $0x8e4] ss:$16 sps:$4 sm:$0xff]  }
 0x4e6   : > { %14581 = vmatpush1.bf16.msra.mxu1 %v19189_v9  ;;  %13937 = vmatprep.subr.bf16.mxu0 %v19194_v54  ;;  %v19281_v9 = vld [vmem:[#allocation10 + $0x8ec] ss:$16 sps:$4 sm:$0xff]   ;;  %v19276_v54 = vld [vmem:[#allocation10 + $0x8e0] ss:$16 sps:$4 sm:$0xff]  }
 0x4e7   : > { %14582 = vmatprep.subr.bf16.mxu1 %v19197_v8  ;;  %v19279_v8 = vld [vmem:[#allocation10 + $0x8e8] ss:$16 sps:$4 sm:$0xff]  }
 0x4e9   : > { %13938 = vmatpush1.bf16.msra.mxu0 %v19192_v29  ;;  %v19284_v29 = vld [vmem:[#allocation10 + $0x904] ss:$16 sps:$4 sm:$0xff]  }
 0x4ea   : > { %14583 = vmatpush1.bf16.msra.mxu1 %v19195_v22  ;;  %13939 = vmatprep.subr.bf16.mxu0 %v19200_v38  ;;  %v19287_v22 = vld [vmem:[#allocation10 + $0x90c] ss:$16 sps:$4 sm:$0xff]   ;;  %v19282_v38 = vld [vmem:[#allocation10 + $0x900] ss:$16 sps:$4 sm:$0xff]  }
 0x4eb   : > { %14584 = vmatprep.subr.bf16.mxu1 %v19203_v32  ;;  %v19285_v32 = vld [vmem:[#allocation10 + $0x908] ss:$16 sps:$4 sm:$0xff]  }
 0x4ed   : > { %13940 = vmatpush1.bf16.msra.mxu0 %v19198_v43  ;;  %v19290_v43 = vld [vmem:[#allocation10 + $0x924] ss:$16 sps:$4 sm:$0xff]  }
 0x4ee   : > { %14585 = vmatpush1.bf16.msra.mxu1 %v19201_v10  ;;  %13941 = vmatprep.subr.bf16.mxu0 %v19206_v51  ;;  %v19293_v10 = vld [vmem:[#allocation10 + $0x92c] ss:$16 sps:$4 sm:$0xff]   ;;  %v19288_v51 = vld [vmem:[#allocation10 + $0x920] ss:$16 sps:$4 sm:$0xff]  }
 0x4ef   : > { %14586 = vmatprep.subr.bf16.mxu1 %v19209_v30  ;;  %v19291_v30 = vld [vmem:[#allocation10 + $0x928] ss:$16 sps:$4 sm:$0xff]  }
 0x4f1   : > { %13942 = vmatpush1.bf16.msra.mxu0 %v19204_v4  ;;  %v19296_v4 = vld [vmem:[#allocation10 + $0x944] ss:$16 sps:$4 sm:$0xff]  }
 0x4f2   : > { %14587 = vmatpush1.bf16.msra.mxu1 %v19207_v59  ;;  %13943 = vmatprep.subr.bf16.mxu0 %v19212_v14  ;;  %v19299_v59 = vld [vmem:[#allocation10 + $0x94c] ss:$16 sps:$4 sm:$0xff]   ;;  %v19294_v14 = vld [vmem:[#allocation10 + $0x940] ss:$16 sps:$4 sm:$0xff]  }
 0x4f3   : > { %14588 = vmatprep.subr.bf16.mxu1 %v19215_v19  ;;  %v19297_v19 = vld [vmem:[#allocation10 + $0x948] ss:$16 sps:$4 sm:$0xff]  }
 0x4f5   : > { %13944 = vmatpush1.bf16.msra.mxu0 %v19210_v5  ;;  %v19302_v5 = vld [vmem:[#allocation10 + $0x964] ss:$16 sps:$4 sm:$0xff]  }
 0x4f6   : > { %14589 = vmatpush1.bf16.msra.mxu1 %v19213_v57  ;;  %13945 = vmatprep.subr.bf16.mxu0 %v19218_v52  ;;  %v19305_v57 = vld [vmem:[#allocation10 + $0x96c] ss:$16 sps:$4 sm:$0xff]   ;;  %v19300_v52 = vld [vmem:[#allocation10 + $0x960] ss:$16 sps:$4 sm:$0xff]  }
 0x4f7   : > { %14590 = vmatprep.subr.bf16.mxu1 %v19221_v7  ;;  %v19303_v7 = vld [vmem:[#allocation10 + $0x968] ss:$16 sps:$4 sm:$0xff]  }
 0x4f9   : > { %13946 = vmatpush1.bf16.msra.mxu0 %v19216_v20  ;;  %v19308_v20 = vld [vmem:[#allocation10 + $0x984] ss:$16 sps:$4 sm:$0xff]  }
 0x4fa   : > { %14591 = vmatpush1.bf16.msra.mxu1 %v19219_v15  ;;  %13947 = vmatprep.subr.bf16.mxu0 %v19224_v27  ;;  %v19311_v15 = vld [vmem:[#allocation10 + $0x98c] ss:$16 sps:$4 sm:$0xff]   ;;  %v19306_v27 = vld [vmem:[#allocation10 + $0x980] ss:$16 sps:$4 sm:$0xff]  }
 0x4fb   : > { %14592 = vmatprep.subr.bf16.mxu1 %v19227_v26  ;;  %v19309_v26 = vld [vmem:[#allocation10 + $0x988] ss:$16 sps:$4 sm:$0xff]  }
 0x4fd   : > { %13948 = vmatpush1.bf16.msra.mxu0 %v19222_v31  ;;  %v19314_v31 = vld [vmem:[#allocation10 + $0x9a4] ss:$16 sps:$4 sm:$0xff]  }
 0x4fe   : > { %14593 = vmatpush1.bf16.msra.mxu1 %v19225_v21  ;;  %13949 = vmatprep.subr.bf16.mxu0 %v19230_v56  ;;  %v19317_v21 = vld [vmem:[#allocation10 + $0x9ac] ss:$16 sps:$4 sm:$0xff]   ;;  %v19312_v56 = vld [vmem:[#allocation10 + $0x9a0] ss:$16 sps:$4 sm:$0xff]  }
 0x4ff   : > { %14594 = vmatprep.subr.bf16.mxu1 %v19233_v61  ;;  %v19315_v61 = vld [vmem:[#allocation10 + $0x9a8] ss:$16 sps:$4 sm:$0xff]  }
 0x501   : > { %13950 = vmatpush1.bf16.msra.mxu0 %v19228_v33  ;;  %v19320_v33 = vld [vmem:[#allocation10 + $0x9c4] ss:$16 sps:$4 sm:$0xff]  }
 0x502   : > { %14595 = vmatpush1.bf16.msra.mxu1 %v19231_v6  ;;  %13962 = vmatprep.subr.bf16.mxu0 %v19236_v34  ;;  %v19323_v6 = vld [vmem:[#allocation10 + $0x9cc] ss:$16 sps:$4 sm:$0xff]   ;;  %v19318_v34 = vld [vmem:[#allocation10 + $0x9c0] ss:$16 sps:$4 sm:$0xff]  }
 0x503   : > { %14607 = vmatprep.subr.bf16.mxu1 %v19239_v37  ;;  %v19321_v37 = vld [vmem:[#allocation10 + $0x9c8] ss:$16 sps:$4 sm:$0xff]  }
 0x504   : > { %13952 = vmatmul.mubr.bf16.vlgmr.msra.gmra.mrb[72].mxu0 %v7984_v35 }
 0x505   : > { %14597 = vmatmul.mubr.bf16.vlgmr.msra.gmra.mrb[72].mxu1 %v7984_v35  ;;  %13963 = vmatpush1.bf16.msra.mxu0 %v19234_v49  ;;  %v19326_v49 = vld [vmem:[#allocation10 + $0x9e4] ss:$16 sps:$4 sm:$0xff]   ;;  %v19324_v35 = vld [vmem:[#allocation10 + $0x9e0] ss:$16 sps:$4 sm:$0xff]  }
 0x506   : > { %13994 = vmatprep.mubr.bf16.mxu0 %v7987_v47  ;;  %14608 = vmatpush1.bf16.msra.mxu1 %v19237_v36  ;;  %v19329_v36 = vld [vmem:[#allocation10 + $0x9ec] ss:$16 sps:$4 sm:$0xff]  }
 0x507   : > { %14639 = vmatprep.mubr.bf16.mxu1 %v7987_v47  ;;  %13964 = vmatprep.subr.bf16.mxu0 %v19242_v3  ;;  %v19327_v3 = vld [vmem:[#allocation10 + $0x9e8] ss:$16 sps:$4 sm:$0xff]   ;;  %v19335_v47 = vld [vmem:[#allocation10 + $0xa0c] ss:$16 sps:$4 sm:$0xff]  }
 0x508   : > { %14609 = vmatprep.subr.bf16.mxu1 %v19245_v16  ;;  %v19332_v16 = vld [vmem:[#allocation10 + $0xa04] ss:$16 sps:$4 sm:$0xff]  }
 0x509   : > { %13965 = vmatpush1.bf16.msra.mxu0 %v19240_v55  ;;  %v19330_v55 = vld [vmem:[#allocation10 + $0xa00] ss:$16 sps:$4 sm:$0xff]  }
 0x50a   : > { %14610 = vmatpush1.bf16.msra.mxu1 %v19243_v39  ;;  %13966 = vmatprep.subr.bf16.mxu0 %v19248_v40  ;;  %v19333_v39 = vld [vmem:[#allocation10 + $0xa08] ss:$16 sps:$4 sm:$0xff]  }
 0x50b   : > { %14611 = vmatprep.subr.bf16.mxu1 %v19251_v41  ;;  %v7986_v40 = vld [vmem:[#allocation4 + $0x40] sm:$0xff] }
 0x50c   : > { %v19338_v41 = vld [vmem:[#allocation10 + $0xa24] ss:$16 sps:$4 sm:$0xff]  }
 0x50d   : > { %13967 = vmatpush1.bf16.msra.mxu0 %v19246_v58  ;;  %v19341_v58 = vld [vmem:[#allocation10 + $0xa2c] ss:$16 sps:$4 sm:$0xff]  }
 0x50e   : > { %14612 = vmatpush1.bf16.msra.mxu1 %v19249_v23  ;;  %13968 = vmatprep.subr.bf16.mxu0 %v19254_v42  ;;  %v7989_v23 = vld [vmem:[#allocation4 + $0x58] sm:$0xff] }
 0x50f   : > { %14613 = vmatprep.subr.bf16.mxu1 %v19257_v24  ;;  %v19336_v42 = vld [vmem:[#allocation10 + $0xa20] ss:$16 sps:$4 sm:$0xff]   ;;  %v19339_v24 = vld [vmem:[#allocation10 + $0xa28] ss:$16 sps:$4 sm:$0xff]  }
 0x511   : > { %13969 = vmatpush1.bf16.msra.mxu0 %v19252_v28  ;;  %v19344_v28 = vld [vmem:[#allocation10 + $0xa44] ss:$16 sps:$4 sm:$0xff]  }
 0x512   : > { %14614 = vmatpush1.bf16.msra.mxu1 %v19255_v44  ;;  %13970 = vmatprep.subr.bf16.mxu0 %v19260_v13  ;;  %v19347_v44 = vld [vmem:[#allocation10 + $0xa4c] ss:$16 sps:$4 sm:$0xff]   ;;  %v19342_v13 = vld [vmem:[#allocation10 + $0xa40] ss:$16 sps:$4 sm:$0xff]  }
 0x513   : > { %14615 = vmatprep.subr.bf16.mxu1 %v19263_v12  ;;  %v19345_v12 = vld [vmem:[#allocation10 + $0xa48] ss:$16 sps:$4 sm:$0xff]  }
 0x515   : > { %13971 = vmatpush1.bf16.msra.mxu0 %v19258_v17  ;;  %v19350_v17 = vld [vmem:[#allocation10 + $0xa64] ss:$16 sps:$4 sm:$0xff]  }
 0x516   : > { %14616 = vmatpush1.bf16.msra.mxu1 %v19261_v60  ;;  %13972 = vmatprep.subr.bf16.mxu0 %v19266_v18  ;;  %v19353_v60 = vld [vmem:[#allocation10 + $0xa6c] ss:$16 sps:$4 sm:$0xff]   ;;  %v19348_v18 = vld [vmem:[#allocation10 + $0xa60] ss:$16 sps:$4 sm:$0xff]  }
 0x517   : > { %14617 = vmatprep.subr.bf16.mxu1 %v19269_v2  ;;  %v19351_v2 = vld [vmem:[#allocation10 + $0xa68] ss:$16 sps:$4 sm:$0xff]  }
 0x519   : > { %13973 = vmatpush1.bf16.msra.mxu0 %v19264_v25  ;;  %v19356_v25 = vld [vmem:[#allocation10 + $0xa84] ss:$16 sps:$4 sm:$0xff]  }
 0x51a   : > { %14618 = vmatpush1.bf16.msra.mxu1 %v19267_v48  ;;  %13974 = vmatprep.subr.bf16.mxu0 %v19272_v50  ;;  %v19359_v48 = vld [vmem:[#allocation10 + $0xa8c] ss:$16 sps:$4 sm:$0xff]   ;;  %v19354_v50 = vld [vmem:[#allocation10 + $0xa80] ss:$16 sps:$4 sm:$0xff]  }
 0x51b   : > { %14619 = vmatprep.subr.bf16.mxu1 %v19275_v45  ;;  %v19357_v45 = vld [vmem:[#allocation10 + $0xa88] ss:$16 sps:$4 sm:$0xff]  }
 0x51d   : > { %13975 = vmatpush1.bf16.msra.mxu0 %v19270_v46  ;;  %v19362_v46 = vld [vmem:[#allocation10 + $0xaa4] ss:$16 sps:$4 sm:$0xff]  }
 0x51e   : > { %14620 = vmatpush1.bf16.msra.mxu1 %v19273_v53  ;;  %13976 = vmatprep.subr.bf16.mxu0 %v19278_v11  ;;  %v19365_v53 = vld [vmem:[#allocation10 + $0xaac] ss:$16 sps:$4 sm:$0xff]   ;;  %v19360_v11 = vld [vmem:[#allocation10 + $0xaa0] ss:$16 sps:$4 sm:$0xff]  }
 0x51f   : > { %14621 = vmatprep.subr.bf16.mxu1 %v19281_v9  ;;  %v19363_v9 = vld [vmem:[#allocation10 + $0xaa8] ss:$16 sps:$4 sm:$0xff]  }
 0x521   : > { %13977 = vmatpush1.bf16.msra.mxu0 %v19276_v54  ;;  %v19368_v54 = vld [vmem:[#allocation10 + $0xac4] ss:$16 sps:$4 sm:$0xff]  }
 0x522   : > { %14622 = vmatpush1.bf16.msra.mxu1 %v19279_v8  ;;  %13978 = vmatprep.subr.bf16.mxu0 %v19284_v29  ;;  %v19371_v8 = vld [vmem:[#allocation10 + $0xacc] ss:$16 sps:$4 sm:$0xff]   ;;  %v19366_v29 = vld [vmem:[#allocation10 + $0xac0] ss:$16 sps:$4 sm:$0xff]  }
 0x523   : > { %14623 = vmatprep.subr.bf16.mxu1 %v19287_v22  ;;  %v19369_v22 = vld [vmem:[#allocation10 + $0xac8] ss:$16 sps:$4 sm:$0xff]  }
 0x525   : > { %13979 = vmatpush1.bf16.msra.mxu0 %v19282_v38  ;;  %v19374_v38 = vld [vmem:[#allocation10 + $0xae4] ss:$16 sps:$4 sm:$0xff]  }
 0x526   : > { %14624 = vmatpush1.bf16.msra.mxu1 %v19285_v32  ;;  %13980 = vmatprep.subr.bf16.mxu0 %v19290_v43  ;;  %v19377_v32 = vld [vmem:[#allocation10 + $0xaec] ss:$16 sps:$4 sm:$0xff]   ;;  %v19372_v43 = vld [vmem:[#allocation10 + $0xae0] ss:$16 sps:$4 sm:$0xff]  }
 0x527   : > { %14625 = vmatprep.subr.bf16.mxu1 %v19293_v10  ;;  %v19375_v10 = vld [vmem:[#allocation10 + $0xae8] ss:$16 sps:$4 sm:$0xff]  }
 0x529   : > { %13981 = vmatpush1.bf16.msra.mxu0 %v19288_v51  ;;  %v19380_v51 = vld [vmem:[#allocation10 + $0xb04] ss:$16 sps:$4 sm:$0xff]  }
 0x52a   : > { %14626 = vmatpush1.bf16.msra.mxu1 %v19291_v30  ;;  %13982 = vmatprep.subr.bf16.mxu0 %v19296_v4  ;;  %v19383_v30 = vld [vmem:[#allocation10 + $0xb0c] ss:$16 sps:$4 sm:$0xff]   ;;  %v19378_v4 = vld [vmem:[#allocation10 + $0xb00] ss:$16 sps:$4 sm:$0xff]  }
 0x52b   : > { %14627 = vmatprep.subr.bf16.mxu1 %v19299_v59  ;;  %v19381_v59 = vld [vmem:[#allocation10 + $0xb08] ss:$16 sps:$4 sm:$0xff]  }
 0x52d   : > { %13983 = vmatpush1.bf16.msra.mxu0 %v19294_v14  ;;  %v19386_v14 = vld [vmem:[#allocation10 + $0xb24] ss:$16 sps:$4 sm:$0xff]  }
 0x52e   : > { %14628 = vmatpush1.bf16.msra.mxu1 %v19297_v19  ;;  %13984 = vmatprep.subr.bf16.mxu0 %v19302_v5  ;;  %v19389_v19 = vld [vmem:[#allocation10 + $0xb2c] ss:$16 sps:$4 sm:$0xff]   ;;  %v19384_v5 = vld [vmem:[#allocation10 + $0xb20] ss:$16 sps:$4 sm:$0xff]  }
 0x52f   : > { %14629 = vmatprep.subr.bf16.mxu1 %v19305_v57  ;;  %v19387_v57 = vld [vmem:[#allocation10 + $0xb28] ss:$16 sps:$4 sm:$0xff]  }
 0x531   : > { %13985 = vmatpush1.bf16.msra.mxu0 %v19300_v52  ;;  %v19392_v52 = vld [vmem:[#allocation10 + $0xb44] ss:$16 sps:$4 sm:$0xff]  }
 0x532   : > { %14630 = vmatpush1.bf16.msra.mxu1 %v19303_v7  ;;  %13986 = vmatprep.subr.bf16.mxu0 %v19308_v20  ;;  %v19395_v7 = vld [vmem:[#allocation10 + $0xb4c] ss:$16 sps:$4 sm:$0xff]   ;;  %v19390_v20 = vld [vmem:[#allocation10 + $0xb40] ss:$16 sps:$4 sm:$0xff]  }
 0x533   : > { %14631 = vmatprep.subr.bf16.mxu1 %v19311_v15  ;;  %v19393_v15 = vld [vmem:[#allocation10 + $0xb48] ss:$16 sps:$4 sm:$0xff]  }
 0x535   : > { %13987 = vmatpush1.bf16.msra.mxu0 %v19306_v27  ;;  %v19398_v27 = vld [vmem:[#allocation10 + $0xb64] ss:$16 sps:$4 sm:$0xff]  }
 0x536   : > { %14632 = vmatpush1.bf16.msra.mxu1 %v19309_v26  ;;  %13988 = vmatprep.subr.bf16.mxu0 %v19314_v31  ;;  %v19401_v26 = vld [vmem:[#allocation10 + $0xb6c] ss:$16 sps:$4 sm:$0xff]   ;;  %v19396_v31 = vld [vmem:[#allocation10 + $0xb60] ss:$16 sps:$4 sm:$0xff]  }
 0x537   : > { %14633 = vmatprep.subr.bf16.mxu1 %v19317_v21  ;;  %v19399_v21 = vld [vmem:[#allocation10 + $0xb68] ss:$16 sps:$4 sm:$0xff]  }
 0x539   : > { %13989 = vmatpush1.bf16.msra.mxu0 %v19312_v56  ;;  %v19404_v56 = vld [vmem:[#allocation10 + $0xb84] ss:$16 sps:$4 sm:$0xff]  }
 0x53a   : > { %14634 = vmatpush1.bf16.msra.mxu1 %v19315_v61  ;;  %13990 = vmatprep.subr.bf16.mxu0 %v19320_v33  ;;  %v19407_v61 = vld [vmem:[#allocation10 + $0xb8c] ss:$16 sps:$4 sm:$0xff]   ;;  %v19402_v33 = vld [vmem:[#allocation10 + $0xb80] ss:$16 sps:$4 sm:$0xff]  }
 0x53b   : > { %14635 = vmatprep.subr.bf16.mxu1 %v19323_v6  ;;  %v19405_v6 = vld [vmem:[#allocation10 + $0xb88] ss:$16 sps:$4 sm:$0xff]  }
 0x53d   : > { %13991 = vmatpush1.bf16.msra.mxu0 %v19318_v34  ;;  %v19410_v34 = vld [vmem:[#allocation10 + $0xba4] ss:$16 sps:$4 sm:$0xff]  }
 0x53e   : > { %14636 = vmatpush1.bf16.msra.mxu1 %v19321_v37  ;;  %13992 = vmatprep.subr.bf16.mxu0 %v19326_v49  ;;  %v19413_v37 = vld [vmem:[#allocation10 + $0xbac] ss:$16 sps:$4 sm:$0xff]   ;;  %v19408_v49 = vld [vmem:[#allocation10 + $0xba0] ss:$16 sps:$4 sm:$0xff]  }
 0x53f   : > { %14637 = vmatprep.subr.bf16.mxu1 %v19329_v36  ;;  %v19411_v36 = vld [vmem:[#allocation10 + $0xba8] ss:$16 sps:$4 sm:$0xff]  }
 0x541   : > { %13993 = vmatpush1.bf16.msra.mxu0 %v19324_v35  ;;  %v19416_v35 = vld [vmem:[#allocation10 + $0xbc4] ss:$16 sps:$4 sm:$0xff]  }
 0x542   : > { %14638 = vmatpush1.bf16.msra.mxu1 %v19327_v3  ;;  %14005 = vmatprep.subr.bf16.mxu0 %v19332_v16  ;;  %v19419_v3 = vld [vmem:[#allocation10 + $0xbcc] ss:$16 sps:$4 sm:$0xff]   ;;  %v19414_v16 = vld [vmem:[#allocation10 + $0xbc0] ss:$16 sps:$4 sm:$0xff]  }
 0x543   : > { %14650 = vmatprep.subr.bf16.mxu1 %v19335_v47  ;;  %v19417_v47 = vld [vmem:[#allocation10 + $0xbc8] ss:$16 sps:$4 sm:$0xff]  }
 0x544   : > { %13995 = vmatmul.mubr.bf16.vlgmr.msra.gmra.mrb[72].mxu0 %v7986_v40 }
 0x545   : > { %14640 = vmatmul.mubr.bf16.vlgmr.msra.gmra.mrb[72].mxu1 %v7986_v40  ;;  %14006 = vmatpush1.bf16.msra.mxu0 %v19330_v55  ;;  %v19422_v55 = vld [vmem:[#allocation10 + $0xbe4] ss:$16 sps:$4 sm:$0xff]   ;;  %v19420_v40 = vld [vmem:[#allocation10 + $0xbe0] ss:$16 sps:$4 sm:$0xff]  }
 0x546   : > { %14037 = vmatprep.mubr.bf16.mxu0 %v7989_v23  ;;  %14651 = vmatpush1.bf16.msra.mxu1 %v19333_v39  ;;  %v19425_v39 = vld [vmem:[#allocation10 + $0xbec] ss:$16 sps:$4 sm:$0xff]  }
 0x547   : > { %14682 = vmatprep.mubr.bf16.mxu1 %v7989_v23  ;;  %14007 = vmatprep.subr.bf16.mxu0 %v19338_v41  ;;  %v19423_v41 = vld [vmem:[#allocation10 + $0xbe8] ss:$16 sps:$4 sm:$0xff]   ;;  %v19431_v23 = vld [vmem:[#allocation10 + $0xc0c] ss:$16 sps:$4 sm:$0xff]  }
 0x548   : > { %14652 = vmatprep.subr.bf16.mxu1 %v19341_v58  ;;  %v19428_v58 = vld [vmem:[#allocation10 + $0xc04] ss:$16 sps:$4 sm:$0xff]  }
 0x549   : > { %14008 = vmatpush1.bf16.msra.mxu0 %v19336_v42  ;;  %v19426_v42 = vld [vmem:[#allocation10 + $0xc00] ss:$16 sps:$4 sm:$0xff]  }
 0x54a   : > { %14653 = vmatpush1.bf16.msra.mxu1 %v19339_v24  ;;  %14009 = vmatprep.subr.bf16.mxu0 %v19344_v28  ;;  %v19429_v24 = vld [vmem:[#allocation10 + $0xc08] ss:$16 sps:$4 sm:$0xff]  }
 0x54b   : > { %14654 = vmatprep.subr.bf16.mxu1 %v19347_v44  ;;  %v7988_v28 = vld [vmem:[#allocation4 + $0x50] sm:$0xff] }
 0x54c   : > { %v19434_v44 = vld [vmem:[#allocation10 + $0xc24] ss:$16 sps:$4 sm:$0xff]  }
 0x54d   : > { %14010 = vmatpush1.bf16.msra.mxu0 %v19342_v13  ;;  %v19437_v13 = vld [vmem:[#allocation10 + $0xc2c] ss:$16 sps:$4 sm:$0xff]  }
 0x54e   : > { %14655 = vmatpush1.bf16.msra.mxu1 %v19345_v12  ;;  %14011 = vmatprep.subr.bf16.mxu0 %v19350_v17  ;;  %v7991_v12 = vld [vmem:[#allocation4 + $0x68] sm:$0xff] }
 0x54f   : > { %14656 = vmatprep.subr.bf16.mxu1 %v19353_v60  ;;  %v19432_v17 = vld [vmem:[#allocation10 + $0xc20] ss:$16 sps:$4 sm:$0xff]   ;;  %v19435_v60 = vld [vmem:[#allocation10 + $0xc28] ss:$16 sps:$4 sm:$0xff]  }
 0x551   : > { %14012 = vmatpush1.bf16.msra.mxu0 %v19348_v18  ;;  %v19440_v18 = vld [vmem:[#allocation10 + $0xc44] ss:$16 sps:$4 sm:$0xff]  }
 0x552   : > { %14657 = vmatpush1.bf16.msra.mxu1 %v19351_v2  ;;  %14013 = vmatprep.subr.bf16.mxu0 %v19356_v25  ;;  %v19443_v2 = vld [vmem:[#allocation10 + $0xc4c] ss:$16 sps:$4 sm:$0xff]   ;;  %v19438_v25 = vld [vmem:[#allocation10 + $0xc40] ss:$16 sps:$4 sm:$0xff]  }
 0x553   : > { %14658 = vmatprep.subr.bf16.mxu1 %v19359_v48  ;;  %v19441_v48 = vld [vmem:[#allocation10 + $0xc48] ss:$16 sps:$4 sm:$0xff]  }
 0x555   : > { %14014 = vmatpush1.bf16.msra.mxu0 %v19354_v50  ;;  %v19446_v50 = vld [vmem:[#allocation10 + $0xc64] ss:$16 sps:$4 sm:$0xff]  }
 0x556   : > { %14659 = vmatpush1.bf16.msra.mxu1 %v19357_v45  ;;  %14015 = vmatprep.subr.bf16.mxu0 %v19362_v46  ;;  %v19449_v45 = vld [vmem:[#allocation10 + $0xc6c] ss:$16 sps:$4 sm:$0xff]   ;;  %v19444_v46 = vld [vmem:[#allocation10 + $0xc60] ss:$16 sps:$4 sm:$0xff]  }
 0x557   : > { %14660 = vmatprep.subr.bf16.mxu1 %v19365_v53  ;;  %v19447_v53 = vld [vmem:[#allocation10 + $0xc68] ss:$16 sps:$4 sm:$0xff]  }
 0x559   : > { %14016 = vmatpush1.bf16.msra.mxu0 %v19360_v11  ;;  %v19452_v11 = vld [vmem:[#allocation10 + $0xc84] ss:$16 sps:$4 sm:$0xff]  }
 0x55a   : > { %14661 = vmatpush1.bf16.msra.mxu1 %v19363_v9  ;;  %14017 = vmatprep.subr.bf16.mxu0 %v19368_v54  ;;  %v19455_v9 = vld [vmem:[#allocation10 + $0xc8c] ss:$16 sps:$4 sm:$0xff]   ;;  %v19450_v54 = vld [vmem:[#allocation10 + $0xc80] ss:$16 sps:$4 sm:$0xff]  }
 0x55b   : > { %14662 = vmatprep.subr.bf16.mxu1 %v19371_v8  ;;  %v19453_v8 = vld [vmem:[#allocation10 + $0xc88] ss:$16 sps:$4 sm:$0xff]  }
 0x55d   : > { %14018 = vmatpush1.bf16.msra.mxu0 %v19366_v29  ;;  %v19458_v29 = vld [vmem:[#allocation10 + $0xca4] ss:$16 sps:$4 sm:$0xff]  }
 0x55e   : > { %14663 = vmatpush1.bf16.msra.mxu1 %v19369_v22  ;;  %14019 = vmatprep.subr.bf16.mxu0 %v19374_v38  ;;  %v19461_v22 = vld [vmem:[#allocation10 + $0xcac] ss:$16 sps:$4 sm:$0xff]   ;;  %v19456_v38 = vld [vmem:[#allocation10 + $0xca0] ss:$16 sps:$4 sm:$0xff]  }
 0x55f   : > { %14664 = vmatprep.subr.bf16.mxu1 %v19377_v32  ;;  %v19459_v32 = vld [vmem:[#allocation10 + $0xca8] ss:$16 sps:$4 sm:$0xff]  }
 0x561   : > { %14020 = vmatpush1.bf16.msra.mxu0 %v19372_v43  ;;  %v19464_v43 = vld [vmem:[#allocation10 + $0xcc4] ss:$16 sps:$4 sm:$0xff]  }
 0x562   : > { %14665 = vmatpush1.bf16.msra.mxu1 %v19375_v10  ;;  %14021 = vmatprep.subr.bf16.mxu0 %v19380_v51  ;;  %v19467_v10 = vld [vmem:[#allocation10 + $0xccc] ss:$16 sps:$4 sm:$0xff]   ;;  %v19462_v51 = vld [vmem:[#allocation10 + $0xcc0] ss:$16 sps:$4 sm:$0xff]  }
 0x563   : > { %14666 = vmatprep.subr.bf16.mxu1 %v19383_v30  ;;  %v19465_v30 = vld [vmem:[#allocation10 + $0xcc8] ss:$16 sps:$4 sm:$0xff]  }
 0x565   : > { %14022 = vmatpush1.bf16.msra.mxu0 %v19378_v4  ;;  %v19470_v4 = vld [vmem:[#allocation10 + $0xce4] ss:$16 sps:$4 sm:$0xff]  }
 0x566   : > { %14667 = vmatpush1.bf16.msra.mxu1 %v19381_v59  ;;  %14023 = vmatprep.subr.bf16.mxu0 %v19386_v14  ;;  %v19473_v59 = vld [vmem:[#allocation10 + $0xcec] ss:$16 sps:$4 sm:$0xff]   ;;  %v19468_v14 = vld [vmem:[#allocation10 + $0xce0] ss:$16 sps:$4 sm:$0xff]  }
 0x567   : > { %14668 = vmatprep.subr.bf16.mxu1 %v19389_v19  ;;  %v19471_v19 = vld [vmem:[#allocation10 + $0xce8] ss:$16 sps:$4 sm:$0xff]  }
 0x569   : > { %14024 = vmatpush1.bf16.msra.mxu0 %v19384_v5  ;;  %v19476_v5 = vld [vmem:[#allocation10 + $0xd04] ss:$16 sps:$4 sm:$0xff]  }
 0x56a   : > { %14669 = vmatpush1.bf16.msra.mxu1 %v19387_v57  ;;  %14025 = vmatprep.subr.bf16.mxu0 %v19392_v52  ;;  %v19479_v57 = vld [vmem:[#allocation10 + $0xd0c] ss:$16 sps:$4 sm:$0xff]   ;;  %v19474_v52 = vld [vmem:[#allocation10 + $0xd00] ss:$16 sps:$4 sm:$0xff]  }
 0x56b   : > { %14670 = vmatprep.subr.bf16.mxu1 %v19395_v7  ;;  %v19477_v7 = vld [vmem:[#allocation10 + $0xd08] ss:$16 sps:$4 sm:$0xff]  }
 0x56d   : > { %14026 = vmatpush1.bf16.msra.mxu0 %v19390_v20  ;;  %v19482_v20 = vld [vmem:[#allocation10 + $0xd24] ss:$16 sps:$4 sm:$0xff]  }
 0x56e   : > { %14671 = vmatpush1.bf16.msra.mxu1 %v19393_v15  ;;  %14027 = vmatprep.subr.bf16.mxu0 %v19398_v27  ;;  %v19485_v15 = vld [vmem:[#allocation10 + $0xd2c] ss:$16 sps:$4 sm:$0xff]   ;;  %v19480_v27 = vld [vmem:[#allocation10 + $0xd20] ss:$16 sps:$4 sm:$0xff]  }
 0x56f   : > { %14672 = vmatprep.subr.bf16.mxu1 %v19401_v26  ;;  %v19483_v26 = vld [vmem:[#allocation10 + $0xd28] ss:$16 sps:$4 sm:$0xff]  }
 0x571   : > { %14028 = vmatpush1.bf16.msra.mxu0 %v19396_v31  ;;  %v19488_v31 = vld [vmem:[#allocation10 + $0xd44] ss:$16 sps:$4 sm:$0xff]  }
 0x572   : > { %14673 = vmatpush1.bf16.msra.mxu1 %v19399_v21  ;;  %14029 = vmatprep.subr.bf16.mxu0 %v19404_v56  ;;  %v19491_v21 = vld [vmem:[#allocation10 + $0xd4c] ss:$16 sps:$4 sm:$0xff]   ;;  %v19486_v56 = vld [vmem:[#allocation10 + $0xd40] ss:$16 sps:$4 sm:$0xff]  }
 0x573   : > { %14674 = vmatprep.subr.bf16.mxu1 %v19407_v61  ;;  %v19489_v61 = vld [vmem:[#allocation10 + $0xd48] ss:$16 sps:$4 sm:$0xff]  }
 0x575   : > { %14030 = vmatpush1.bf16.msra.mxu0 %v19402_v33  ;;  %v19494_v33 = vld [vmem:[#allocation10 + $0xd64] ss:$16 sps:$4 sm:$0xff]  }
 0x576   : > { %14675 = vmatpush1.bf16.msra.mxu1 %v19405_v6  ;;  %14031 = vmatprep.subr.bf16.mxu0 %v19410_v34  ;;  %v19497_v6 = vld [vmem:[#allocation10 + $0xd6c] ss:$16 sps:$4 sm:$0xff]   ;;  %v19492_v34 = vld [vmem:[#allocation10 + $0xd60] ss:$16 sps:$4 sm:$0xff]  }
 0x577   : > { %14676 = vmatprep.subr.bf16.mxu1 %v19413_v37  ;;  %v19495_v37 = vld [vmem:[#allocation10 + $0xd68] ss:$16 sps:$4 sm:$0xff]  }
 0x579   : > { %14032 = vmatpush1.bf16.msra.mxu0 %v19408_v49  ;;  %v19500_v49 = vld [vmem:[#allocation10 + $0xd84] ss:$16 sps:$4 sm:$0xff]  }
 0x57a   : > { %14677 = vmatpush1.bf16.msra.mxu1 %v19411_v36  ;;  %14033 = vmatprep.subr.bf16.mxu0 %v19416_v35  ;;  %v19503_v36 = vld [vmem:[#allocation10 + $0xd8c] ss:$16 sps:$4 sm:$0xff]   ;;  %v19498_v35 = vld [vmem:[#allocation10 + $0xd80] ss:$16 sps:$4 sm:$0xff]  }
 0x57b   : > { %14678 = vmatprep.subr.bf16.mxu1 %v19419_v3  ;;  %v19501_v3 = vld [vmem:[#allocation10 + $0xd88] ss:$16 sps:$4 sm:$0xff]  }
 0x57d   : > { %14034 = vmatpush1.bf16.msra.mxu0 %v19414_v16  ;;  %v19506_v16 = vld [vmem:[#allocation10 + $0xda4] ss:$16 sps:$4 sm:$0xff]  }
 0x57e   : > { %14679 = vmatpush1.bf16.msra.mxu1 %v19417_v47  ;;  %14035 = vmatprep.subr.bf16.mxu0 %v19422_v55  ;;  %v19509_v47 = vld [vmem:[#allocation10 + $0xdac] ss:$16 sps:$4 sm:$0xff]   ;;  %v19504_v55 = vld [vmem:[#allocation10 + $0xda0] ss:$16 sps:$4 sm:$0xff]  }
 0x57f   : > { %14680 = vmatprep.subr.bf16.mxu1 %v19425_v39  ;;  %v19507_v39 = vld [vmem:[#allocation10 + $0xda8] ss:$16 sps:$4 sm:$0xff]  }
 0x581   : > { %14036 = vmatpush1.bf16.msra.mxu0 %v19420_v40  ;;  %v19512_v40 = vld [vmem:[#allocation10 + $0xdc4] ss:$16 sps:$4 sm:$0xff]  }
 0x582   : > { %14681 = vmatpush1.bf16.msra.mxu1 %v19423_v41  ;;  %14048 = vmatprep.subr.bf16.mxu0 %v19428_v58  ;;  %v19515_v41 = vld [vmem:[#allocation10 + $0xdcc] ss:$16 sps:$4 sm:$0xff]   ;;  %v19510_v58 = vld [vmem:[#allocation10 + $0xdc0] ss:$16 sps:$4 sm:$0xff]  }
 0x583   : > { %14693 = vmatprep.subr.bf16.mxu1 %v19431_v23  ;;  %v19513_v23 = vld [vmem:[#allocation10 + $0xdc8] ss:$16 sps:$4 sm:$0xff]  }
 0x584   : > { %14038 = vmatmul.mubr.bf16.vlgmr.msra.gmra.mrb[72].mxu0 %v7988_v28 }
 0x585   : > { %14683 = vmatmul.mubr.bf16.vlgmr.msra.gmra.mrb[72].mxu1 %v7988_v28  ;;  %14049 = vmatpush1.bf16.msra.mxu0 %v19426_v42  ;;  %v19518_v42 = vld [vmem:[#allocation10 + $0xde4] ss:$16 sps:$4 sm:$0xff]   ;;  %v19516_v28 = vld [vmem:[#allocation10 + $0xde0] ss:$16 sps:$4 sm:$0xff]  }
 0x586   : > { %14080 = vmatprep.mubr.bf16.mxu0 %v7991_v12  ;;  %14694 = vmatpush1.bf16.msra.mxu1 %v19429_v24  ;;  %v19521_v24 = vld [vmem:[#allocation10 + $0xdec] ss:$16 sps:$4 sm:$0xff]  }
 0x587   : > { %14725 = vmatprep.mubr.bf16.mxu1 %v7991_v12  ;;  %14050 = vmatprep.subr.bf16.mxu0 %v19434_v44  ;;  %v19519_v44 = vld [vmem:[#allocation10 + $0xde8] ss:$16 sps:$4 sm:$0xff]   ;;  %v19527_v12 = vld [vmem:[#allocation10 + $0xe0c] ss:$16 sps:$4 sm:$0xff]  }
 0x588   : > { %14695 = vmatprep.subr.bf16.mxu1 %v19437_v13  ;;  %v19524_v13 = vld [vmem:[#allocation10 + $0xe04] ss:$16 sps:$4 sm:$0xff]  }
 0x589   : > { %14051 = vmatpush1.bf16.msra.mxu0 %v19432_v17  ;;  %v19522_v17 = vld [vmem:[#allocation10 + $0xe00] ss:$16 sps:$4 sm:$0xff]  }
 0x58a   : > { %14696 = vmatpush1.bf16.msra.mxu1 %v19435_v60  ;;  %14052 = vmatprep.subr.bf16.mxu0 %v19440_v18  ;;  %v19525_v60 = vld [vmem:[#allocation10 + $0xe08] ss:$16 sps:$4 sm:$0xff]  }
 0x58b   : > { %14697 = vmatprep.subr.bf16.mxu1 %v19443_v2  ;;  %v7990_v18 = vld [vmem:[#allocation4 + $0x60] sm:$0xff] }
 0x58c   : > { %v19530_v2 = vld [vmem:[#allocation10 + $0xe24] ss:$16 sps:$4 sm:$0xff]  }
 0x58d   : > { %14053 = vmatpush1.bf16.msra.mxu0 %v19438_v25  ;;  %v19533_v25 = vld [vmem:[#allocation10 + $0xe2c] ss:$16 sps:$4 sm:$0xff]  }
 0x58e   : > { %14698 = vmatpush1.bf16.msra.mxu1 %v19441_v48  ;;  %14054 = vmatprep.subr.bf16.mxu0 %v19446_v50  ;;  %v7993_v48 = vld [vmem:[#allocation4 + $0x78] sm:$0xff] }
 0x58f   : > { %14699 = vmatprep.subr.bf16.mxu1 %v19449_v45  ;;  %v19528_v50 = vld [vmem:[#allocation10 + $0xe20] ss:$16 sps:$4 sm:$0xff]   ;;  %v19531_v45 = vld [vmem:[#allocation10 + $0xe28] ss:$16 sps:$4 sm:$0xff]  }
 0x591   : > { %14055 = vmatpush1.bf16.msra.mxu0 %v19444_v46  ;;  %v19536_v46 = vld [vmem:[#allocation10 + $0xe44] ss:$16 sps:$4 sm:$0xff]  }
 0x592   : > { %14700 = vmatpush1.bf16.msra.mxu1 %v19447_v53  ;;  %14056 = vmatprep.subr.bf16.mxu0 %v19452_v11  ;;  %v19539_v53 = vld [vmem:[#allocation10 + $0xe4c] ss:$16 sps:$4 sm:$0xff]   ;;  %v19534_v11 = vld [vmem:[#allocation10 + $0xe40] ss:$16 sps:$4 sm:$0xff]  }
 0x593   : > { %14701 = vmatprep.subr.bf16.mxu1 %v19455_v9  ;;  %v19537_v9 = vld [vmem:[#allocation10 + $0xe48] ss:$16 sps:$4 sm:$0xff]  }
 0x595   : > { %14057 = vmatpush1.bf16.msra.mxu0 %v19450_v54  ;;  %v19542_v54 = vld [vmem:[#allocation10 + $0xe64] ss:$16 sps:$4 sm:$0xff]  }
 0x596   : > { %14702 = vmatpush1.bf16.msra.mxu1 %v19453_v8  ;;  %14058 = vmatprep.subr.bf16.mxu0 %v19458_v29  ;;  %v19545_v8 = vld [vmem:[#allocation10 + $0xe6c] ss:$16 sps:$4 sm:$0xff]   ;;  %v19540_v29 = vld [vmem:[#allocation10 + $0xe60] ss:$16 sps:$4 sm:$0xff]  }
 0x597   : > { %14703 = vmatprep.subr.bf16.mxu1 %v19461_v22  ;;  %v19543_v22 = vld [vmem:[#allocation10 + $0xe68] ss:$16 sps:$4 sm:$0xff]  }
 0x599   : > { %14059 = vmatpush1.bf16.msra.mxu0 %v19456_v38  ;;  %v19548_v38 = vld [vmem:[#allocation10 + $0xe84] ss:$16 sps:$4 sm:$0xff]  }
 0x59a   : > { %14704 = vmatpush1.bf16.msra.mxu1 %v19459_v32  ;;  %14060 = vmatprep.subr.bf16.mxu0 %v19464_v43  ;;  %v19551_v32 = vld [vmem:[#allocation10 + $0xe8c] ss:$16 sps:$4 sm:$0xff]   ;;  %v19546_v43 = vld [vmem:[#allocation10 + $0xe80] ss:$16 sps:$4 sm:$0xff]  }
 0x59b   : > { %14705 = vmatprep.subr.bf16.mxu1 %v19467_v10  ;;  %v19549_v10 = vld [vmem:[#allocation10 + $0xe88] ss:$16 sps:$4 sm:$0xff]  }
 0x59d   : > { %14061 = vmatpush1.bf16.msra.mxu0 %v19462_v51  ;;  %v19554_v51 = vld [vmem:[#allocation10 + $0xea4] ss:$16 sps:$4 sm:$0xff]  }
 0x59e   : > { %14706 = vmatpush1.bf16.msra.mxu1 %v19465_v30  ;;  %14062 = vmatprep.subr.bf16.mxu0 %v19470_v4  ;;  %v19557_v30 = vld [vmem:[#allocation10 + $0xeac] ss:$16 sps:$4 sm:$0xff]   ;;  %v19552_v4 = vld [vmem:[#allocation10 + $0xea0] ss:$16 sps:$4 sm:$0xff]  }
 0x59f   : > { %14707 = vmatprep.subr.bf16.mxu1 %v19473_v59  ;;  %v19555_v59 = vld [vmem:[#allocation10 + $0xea8] ss:$16 sps:$4 sm:$0xff]  }
 0x5a1   : > { %14063 = vmatpush1.bf16.msra.mxu0 %v19468_v14  ;;  %v19560_v14 = vld [vmem:[#allocation10 + $0xec4] ss:$16 sps:$4 sm:$0xff]  }
 0x5a2   : > { %14708 = vmatpush1.bf16.msra.mxu1 %v19471_v19  ;;  %14064 = vmatprep.subr.bf16.mxu0 %v19476_v5  ;;  %v19563_v19 = vld [vmem:[#allocation10 + $0xecc] ss:$16 sps:$4 sm:$0xff]   ;;  %v19558_v5 = vld [vmem:[#allocation10 + $0xec0] ss:$16 sps:$4 sm:$0xff]  }
 0x5a3   : > { %14709 = vmatprep.subr.bf16.mxu1 %v19479_v57  ;;  %v19561_v57 = vld [vmem:[#allocation10 + $0xec8] ss:$16 sps:$4 sm:$0xff]  }
 0x5a5   : > { %14065 = vmatpush1.bf16.msra.mxu0 %v19474_v52  ;;  %v19566_v52 = vld [vmem:[#allocation10 + $0xee4] ss:$16 sps:$4 sm:$0xff]  }
 0x5a6   : > { %14710 = vmatpush1.bf16.msra.mxu1 %v19477_v7  ;;  %14066 = vmatprep.subr.bf16.mxu0 %v19482_v20  ;;  %v19569_v7 = vld [vmem:[#allocation10 + $0xeec] ss:$16 sps:$4 sm:$0xff]   ;;  %v19564_v20 = vld [vmem:[#allocation10 + $0xee0] ss:$16 sps:$4 sm:$0xff]  }
 0x5a7   : > { %14711 = vmatprep.subr.bf16.mxu1 %v19485_v15  ;;  %v19567_v15 = vld [vmem:[#allocation10 + $0xee8] ss:$16 sps:$4 sm:$0xff]  }
 0x5a9   : > { %14067 = vmatpush1.bf16.msra.mxu0 %v19480_v27  ;;  %v19572_v27 = vld [vmem:[#allocation10 + $0xf04] ss:$16 sps:$4 sm:$0xff]  }
 0x5aa   : > { %14712 = vmatpush1.bf16.msra.mxu1 %v19483_v26  ;;  %14068 = vmatprep.subr.bf16.mxu0 %v19488_v31  ;;  %v19575_v26 = vld [vmem:[#allocation10 + $0xf0c] ss:$16 sps:$4 sm:$0xff]   ;;  %v19570_v31 = vld [vmem:[#allocation10 + $0xf00] ss:$16 sps:$4 sm:$0xff]  }
 0x5ab   : > { %14713 = vmatprep.subr.bf16.mxu1 %v19491_v21  ;;  %v19573_v21 = vld [vmem:[#allocation10 + $0xf08] ss:$16 sps:$4 sm:$0xff]  }
 0x5ad   : > { %14069 = vmatpush1.bf16.msra.mxu0 %v19486_v56  ;;  %v19578_v56 = vld [vmem:[#allocation10 + $0xf24] ss:$16 sps:$4 sm:$0xff]  }
 0x5ae   : > { %14714 = vmatpush1.bf16.msra.mxu1 %v19489_v61  ;;  %14070 = vmatprep.subr.bf16.mxu0 %v19494_v33  ;;  %v19581_v61 = vld [vmem:[#allocation10 + $0xf2c] ss:$16 sps:$4 sm:$0xff]   ;;  %v19576_v33 = vld [vmem:[#allocation10 + $0xf20] ss:$16 sps:$4 sm:$0xff]  }
 0x5af   : > { %14715 = vmatprep.subr.bf16.mxu1 %v19497_v6  ;;  %v19579_v6 = vld [vmem:[#allocation10 + $0xf28] ss:$16 sps:$4 sm:$0xff]  }
 0x5b1   : > { %14071 = vmatpush1.bf16.msra.mxu0 %v19492_v34  ;;  %v19584_v34 = vld [vmem:[#allocation10 + $0xf44] ss:$16 sps:$4 sm:$0xff]  }
 0x5b2   : > { %14716 = vmatpush1.bf16.msra.mxu1 %v19495_v37  ;;  %14072 = vmatprep.subr.bf16.mxu0 %v19500_v49  ;;  %v19587_v37 = vld [vmem:[#allocation10 + $0xf4c] ss:$16 sps:$4 sm:$0xff]   ;;  %v19582_v49 = vld [vmem:[#allocation10 + $0xf40] ss:$16 sps:$4 sm:$0xff]  }
 0x5b3   : > { %14717 = vmatprep.subr.bf16.mxu1 %v19503_v36  ;;  %v19585_v36 = vld [vmem:[#allocation10 + $0xf48] ss:$16 sps:$4 sm:$0xff]  }
 0x5b5   : > { %14073 = vmatpush1.bf16.msra.mxu0 %v19498_v35  ;;  %v19590_v35 = vld [vmem:[#allocation10 + $0xf64] ss:$16 sps:$4 sm:$0xff]  }
 0x5b6   : > { %14718 = vmatpush1.bf16.msra.mxu1 %v19501_v3  ;;  %14074 = vmatprep.subr.bf16.mxu0 %v19506_v16  ;;  %v19593_v3 = vld [vmem:[#allocation10 + $0xf6c] ss:$16 sps:$4 sm:$0xff]   ;;  %v19588_v16 = vld [vmem:[#allocation10 + $0xf60] ss:$16 sps:$4 sm:$0xff]  }
 0x5b7   : > { %14719 = vmatprep.subr.bf16.mxu1 %v19509_v47  ;;  %v19591_v47 = vld [vmem:[#allocation10 + $0xf68] ss:$16 sps:$4 sm:$0xff]  }
 0x5b9   : > { %14075 = vmatpush1.bf16.msra.mxu0 %v19504_v55  ;;  %v19596_v55 = vld [vmem:[#allocation10 + $0xf84] ss:$16 sps:$4 sm:$0xff]  }
 0x5ba   : > { %14720 = vmatpush1.bf16.msra.mxu1 %v19507_v39  ;;  %14076 = vmatprep.subr.bf16.mxu0 %v19512_v40  ;;  %v19599_v39 = vld [vmem:[#allocation10 + $0xf8c] ss:$16 sps:$4 sm:$0xff]   ;;  %v19594_v40 = vld [vmem:[#allocation10 + $0xf80] ss:$16 sps:$4 sm:$0xff]  }
 0x5bb   : > { %14721 = vmatprep.subr.bf16.mxu1 %v19515_v41  ;;  %v19597_v41 = vld [vmem:[#allocation10 + $0xf88] ss:$16 sps:$4 sm:$0xff]  }
 0x5bd   : > { %14077 = vmatpush1.bf16.msra.mxu0 %v19510_v58  ;;  %v19602_v58 = vld [vmem:[#allocation10 + $0xfa4] ss:$16 sps:$4 sm:$0xff]  }
 0x5be   : > { %14722 = vmatpush1.bf16.msra.mxu1 %v19513_v23  ;;  %14078 = vmatprep.subr.bf16.mxu0 %v19518_v42  ;;  %v19605_v23 = vld [vmem:[#allocation10 + $0xfac] ss:$16 sps:$4 sm:$0xff]   ;;  %v19600_v42 = vld [vmem:[#allocation10 + $0xfa0] ss:$16 sps:$4 sm:$0xff]  }
 0x5bf   : > { %14723 = vmatprep.subr.bf16.mxu1 %v19521_v24  ;;  %v19603_v24 = vld [vmem:[#allocation10 + $0xfa8] ss:$16 sps:$4 sm:$0xff]  }
 0x5c1   : > { %14079 = vmatpush1.bf16.msra.mxu0 %v19516_v28  ;;  %v19608_v28 = vld [vmem:[#allocation10 + $0xfc4] ss:$16 sps:$4 sm:$0xff]  }
 0x5c2   : > { %14724 = vmatpush1.bf16.msra.mxu1 %v19519_v44  ;;  %14091 = vmatprep.subr.bf16.mxu0 %v19524_v13  ;;  %v19611_v44 = vld [vmem:[#allocation10 + $0xfcc] ss:$16 sps:$4 sm:$0xff]   ;;  %v19606_v13 = vld [vmem:[#allocation10 + $0xfc0] ss:$16 sps:$4 sm:$0xff]  }
 0x5c3   : > { %14736 = vmatprep.subr.bf16.mxu1 %v19527_v12  ;;  %v19609_v12 = vld [vmem:[#allocation10 + $0xfc8] ss:$16 sps:$4 sm:$0xff]  }
 0x5c4   : > { %14081 = vmatmul.mubr.bf16.vlgmr.msra.gmra.mrb[72].mxu0 %v7990_v18 }
 0x5c5   : > { %14726 = vmatmul.mubr.bf16.vlgmr.msra.gmra.mrb[72].mxu1 %v7990_v18  ;;  %14092 = vmatpush1.bf16.msra.mxu0 %v19522_v17  ;;  %v19614_v17 = vld [vmem:[#allocation10 + $0xfe4] ss:$16 sps:$4 sm:$0xff]   ;;  %v19612_v18 = vld [vmem:[#allocation10 + $0xfe0] ss:$16 sps:$4 sm:$0xff]  }
 0x5c6   : > { %14123 = vmatprep.mubr.bf16.mxu0 %v7993_v48  ;;  %14737 = vmatpush1.bf16.msra.mxu1 %v19525_v60  ;;  %v19617_v60 = vld [vmem:[#allocation10 + $0xfec] ss:$16 sps:$4 sm:$0xff]  }
 0x5c7   : > { %14768 = vmatprep.mubr.bf16.mxu1 %v7993_v48  ;;  %14093 = vmatprep.subr.bf16.mxu0 %v19530_v2  ;;  %v19615_v2 = vld [vmem:[#allocation10 + $0xfe8] ss:$16 sps:$4 sm:$0xff]   ;;  %v19623_v48 = vld [vmem:[#allocation10 + $0x100c] ss:$16 sps:$4 sm:$0xff]  }
 0x5c8   : > { %14738 = vmatprep.subr.bf16.mxu1 %v19533_v25  ;;  %v19620_v25 = vld [vmem:[#allocation10 + $0x1004] ss:$16 sps:$4 sm:$0xff]  }
 0x5c9   : > { %14094 = vmatpush1.bf16.msra.mxu0 %v19528_v50  ;;  %v19618_v50 = vld [vmem:[#allocation10 + $0x1000] ss:$16 sps:$4 sm:$0xff]  }
 0x5ca   : > { %14739 = vmatpush1.bf16.msra.mxu1 %v19531_v45  ;;  %14095 = vmatprep.subr.bf16.mxu0 %v19536_v46  ;;  %v19621_v45 = vld [vmem:[#allocation10 + $0x1008] ss:$16 sps:$4 sm:$0xff]  }
 0x5cb   : > { %14740 = vmatprep.subr.bf16.mxu1 %v19539_v53  ;;  %v7992_v46 = vld [vmem:[#allocation4 + $0x70] sm:$0xff] }
 0x5cc   : > { %v19626_v53 = vld [vmem:[#allocation10 + $0x1024] ss:$16 sps:$4 sm:$0xff]  }
 0x5cd   : > { %14096 = vmatpush1.bf16.msra.mxu0 %v19534_v11  ;;  %v19629_v11 = vld [vmem:[#allocation10 + $0x102c] ss:$16 sps:$4 sm:$0xff]  }
 0x5ce   : > { %14741 = vmatpush1.bf16.msra.mxu1 %v19537_v9  ;;  %14097 = vmatprep.subr.bf16.mxu0 %v19542_v54  ;;  %v7995_v9 = vld [vmem:[#allocation4 + $0x88] sm:$0xff] }
 0x5cf   : > { %14742 = vmatprep.subr.bf16.mxu1 %v19545_v8  ;;  %v19624_v54 = vld [vmem:[#allocation10 + $0x1020] ss:$16 sps:$4 sm:$0xff]   ;;  %v19627_v8 = vld [vmem:[#allocation10 + $0x1028] ss:$16 sps:$4 sm:$0xff]  }
 0x5d1   : > { %14098 = vmatpush1.bf16.msra.mxu0 %v19540_v29  ;;  %v19632_v29 = vld [vmem:[#allocation10 + $0x1044] ss:$16 sps:$4 sm:$0xff]  }
 0x5d2   : > { %14743 = vmatpush1.bf16.msra.mxu1 %v19543_v22  ;;  %14099 = vmatprep.subr.bf16.mxu0 %v19548_v38  ;;  %v19635_v22 = vld [vmem:[#allocation10 + $0x104c] ss:$16 sps:$4 sm:$0xff]   ;;  %v19630_v38 = vld [vmem:[#allocation10 + $0x1040] ss:$16 sps:$4 sm:$0xff]  }
 0x5d3   : > { %14744 = vmatprep.subr.bf16.mxu1 %v19551_v32  ;;  %v19633_v32 = vld [vmem:[#allocation10 + $0x1048] ss:$16 sps:$4 sm:$0xff]  }
 0x5d5   : > { %14100 = vmatpush1.bf16.msra.mxu0 %v19546_v43  ;;  %v19638_v43 = vld [vmem:[#allocation10 + $0x1064] ss:$16 sps:$4 sm:$0xff]  }
 0x5d6   : > { %14745 = vmatpush1.bf16.msra.mxu1 %v19549_v10  ;;  %14101 = vmatprep.subr.bf16.mxu0 %v19554_v51  ;;  %v19641_v10 = vld [vmem:[#allocation10 + $0x106c] ss:$16 sps:$4 sm:$0xff]   ;;  %v19636_v51 = vld [vmem:[#allocation10 + $0x1060] ss:$16 sps:$4 sm:$0xff]  }
 0x5d7   : > { %14746 = vmatprep.subr.bf16.mxu1 %v19557_v30  ;;  %v19639_v30 = vld [vmem:[#allocation10 + $0x1068] ss:$16 sps:$4 sm:$0xff]  }
 0x5d9   : > { %14102 = vmatpush1.bf16.msra.mxu0 %v19552_v4  ;;  %v19644_v4 = vld [vmem:[#allocation10 + $0x1084] ss:$16 sps:$4 sm:$0xff]  }
 0x5da   : > { %14747 = vmatpush1.bf16.msra.mxu1 %v19555_v59  ;;  %14103 = vmatprep.subr.bf16.mxu0 %v19560_v14  ;;  %v19647_v59 = vld [vmem:[#allocation10 + $0x108c] ss:$16 sps:$4 sm:$0xff]   ;;  %v19642_v14 = vld [vmem:[#allocation10 + $0x1080] ss:$16 sps:$4 sm:$0xff]  }
 0x5db   : > { %14748 = vmatprep.subr.bf16.mxu1 %v19563_v19  ;;  %v19645_v19 = vld [vmem:[#allocation10 + $0x1088] ss:$16 sps:$4 sm:$0xff]  }
 0x5dd   : > { %14104 = vmatpush1.bf16.msra.mxu0 %v19558_v5  ;;  %v19650_v5 = vld [vmem:[#allocation10 + $0x10a4] ss:$16 sps:$4 sm:$0xff]  }
 0x5de   : > { %14749 = vmatpush1.bf16.msra.mxu1 %v19561_v57  ;;  %14105 = vmatprep.subr.bf16.mxu0 %v19566_v52  ;;  %v19653_v57 = vld [vmem:[#allocation10 + $0x10ac] ss:$16 sps:$4 sm:$0xff]   ;;  %v19648_v52 = vld [vmem:[#allocation10 + $0x10a0] ss:$16 sps:$4 sm:$0xff]  }
 0x5df   : > { %14750 = vmatprep.subr.bf16.mxu1 %v19569_v7  ;;  %v19651_v7 = vld [vmem:[#allocation10 + $0x10a8] ss:$16 sps:$4 sm:$0xff]  }
 0x5e1   : > { %14106 = vmatpush1.bf16.msra.mxu0 %v19564_v20  ;;  %v19656_v20 = vld [vmem:[#allocation10 + $0x10c4] ss:$16 sps:$4 sm:$0xff]  }
 0x5e2   : > { %14751 = vmatpush1.bf16.msra.mxu1 %v19567_v15  ;;  %14107 = vmatprep.subr.bf16.mxu0 %v19572_v27  ;;  %v19659_v15 = vld [vmem:[#allocation10 + $0x10cc] ss:$16 sps:$4 sm:$0xff]   ;;  %v19654_v27 = vld [vmem:[#allocation10 + $0x10c0] ss:$16 sps:$4 sm:$0xff]  }
 0x5e3   : > { %14752 = vmatprep.subr.bf16.mxu1 %v19575_v26  ;;  %v19657_v26 = vld [vmem:[#allocation10 + $0x10c8] ss:$16 sps:$4 sm:$0xff]  }
 0x5e5   : > { %14108 = vmatpush1.bf16.msra.mxu0 %v19570_v31  ;;  %v19662_v31 = vld [vmem:[#allocation10 + $0x10e4] ss:$16 sps:$4 sm:$0xff]  }
 0x5e6   : > { %14753 = vmatpush1.bf16.msra.mxu1 %v19573_v21  ;;  %14109 = vmatprep.subr.bf16.mxu0 %v19578_v56  ;;  %v19665_v21 = vld [vmem:[#allocation10 + $0x10ec] ss:$16 sps:$4 sm:$0xff]   ;;  %v19660_v56 = vld [vmem:[#allocation10 + $0x10e0] ss:$16 sps:$4 sm:$0xff]  }
 0x5e7   : > { %14754 = vmatprep.subr.bf16.mxu1 %v19581_v61  ;;  %v19663_v61 = vld [vmem:[#allocation10 + $0x10e8] ss:$16 sps:$4 sm:$0xff]  }
 0x5e9   : > { %14110 = vmatpush1.bf16.msra.mxu0 %v19576_v33  ;;  %v19668_v33 = vld [vmem:[#allocation10 + $0x1104] ss:$16 sps:$4 sm:$0xff]  }
 0x5ea   : > { %14755 = vmatpush1.bf16.msra.mxu1 %v19579_v6  ;;  %14111 = vmatprep.subr.bf16.mxu0 %v19584_v34  ;;  %v19671_v6 = vld [vmem:[#allocation10 + $0x110c] ss:$16 sps:$4 sm:$0xff]   ;;  %v19666_v34 = vld [vmem:[#allocation10 + $0x1100] ss:$16 sps:$4 sm:$0xff]  }
 0x5eb   : > { %14756 = vmatprep.subr.bf16.mxu1 %v19587_v37  ;;  %v19669_v37 = vld [vmem:[#allocation10 + $0x1108] ss:$16 sps:$4 sm:$0xff]  }
 0x5ed   : > { %14112 = vmatpush1.bf16.msra.mxu0 %v19582_v49  ;;  %v19674_v49 = vld [vmem:[#allocation10 + $0x1124] ss:$16 sps:$4 sm:$0xff]  }
 0x5ee   : > { %14757 = vmatpush1.bf16.msra.mxu1 %v19585_v36  ;;  %14113 = vmatprep.subr.bf16.mxu0 %v19590_v35  ;;  %v19677_v36 = vld [vmem:[#allocation10 + $0x112c] ss:$16 sps:$4 sm:$0xff]   ;;  %v19672_v35 = vld [vmem:[#allocation10 + $0x1120] ss:$16 sps:$4 sm:$0xff]  }
 0x5ef   : > { %14758 = vmatprep.subr.bf16.mxu1 %v19593_v3  ;;  %v19675_v3 = vld [vmem:[#allocation10 + $0x1128] ss:$16 sps:$4 sm:$0xff]  }
 0x5f1   : > { %14114 = vmatpush1.bf16.msra.mxu0 %v19588_v16  ;;  %v19680_v16 = vld [vmem:[#allocation10 + $0x1144] ss:$16 sps:$4 sm:$0xff]  }
 0x5f2   : > { %14759 = vmatpush1.bf16.msra.mxu1 %v19591_v47  ;;  %14115 = vmatprep.subr.bf16.mxu0 %v19596_v55  ;;  %v19683_v47 = vld [vmem:[#allocation10 + $0x114c] ss:$16 sps:$4 sm:$0xff]   ;;  %v19678_v55 = vld [vmem:[#allocation10 + $0x1140] ss:$16 sps:$4 sm:$0xff]  }
 0x5f3   : > { %14760 = vmatprep.subr.bf16.mxu1 %v19599_v39  ;;  %v19681_v39 = vld [vmem:[#allocation10 + $0x1148] ss:$16 sps:$4 sm:$0xff]  }
 0x5f5   : > { %14116 = vmatpush1.bf16.msra.mxu0 %v19594_v40  ;;  %v19686_v40 = vld [vmem:[#allocation10 + $0x1164] ss:$16 sps:$4 sm:$0xff]  }
 0x5f6   : > { %14761 = vmatpush1.bf16.msra.mxu1 %v19597_v41  ;;  %14117 = vmatprep.subr.bf16.mxu0 %v19602_v58  ;;  %v19689_v41 = vld [vmem:[#allocation10 + $0x116c] ss:$16 sps:$4 sm:$0xff]   ;;  %v19684_v58 = vld [vmem:[#allocation10 + $0x1160] ss:$16 sps:$4 sm:$0xff]  }
 0x5f7   : > { %14762 = vmatprep.subr.bf16.mxu1 %v19605_v23  ;;  %v19687_v23 = vld [vmem:[#allocation10 + $0x1168] ss:$16 sps:$4 sm:$0xff]  }
 0x5f9   : > { %14118 = vmatpush1.bf16.msra.mxu0 %v19600_v42  ;;  %v19692_v42 = vld [vmem:[#allocation10 + $0x1184] ss:$16 sps:$4 sm:$0xff]  }
 0x5fa   : > { %14763 = vmatpush1.bf16.msra.mxu1 %v19603_v24  ;;  %14119 = vmatprep.subr.bf16.mxu0 %v19608_v28  ;;  %v19695_v24 = vld [vmem:[#allocation10 + $0x118c] ss:$16 sps:$4 sm:$0xff]   ;;  %v19690_v28 = vld [vmem:[#allocation10 + $0x1180] ss:$16 sps:$4 sm:$0xff]  }
 0x5fb   : > { %14764 = vmatprep.subr.bf16.mxu1 %v19611_v44  ;;  %v19693_v44 = vld [vmem:[#allocation10 + $0x1188] ss:$16 sps:$4 sm:$0xff]  }
 0x5fd   : > { %14120 = vmatpush1.bf16.msra.mxu0 %v19606_v13  ;;  %v19698_v13 = vld [vmem:[#allocation10 + $0x11a4] ss:$16 sps:$4 sm:$0xff]  }
 0x5fe   : > { %14765 = vmatpush1.bf16.msra.mxu1 %v19609_v12  ;;  %14121 = vmatprep.subr.bf16.mxu0 %v19614_v17  ;;  %v19701_v12 = vld [vmem:[#allocation10 + $0x11ac] ss:$16 sps:$4 sm:$0xff]   ;;  %v19696_v17 = vld [vmem:[#allocation10 + $0x11a0] ss:$16 sps:$4 sm:$0xff]  }
 0x5ff   : > { %14766 = vmatprep.subr.bf16.mxu1 %v19617_v60  ;;  %v19699_v60 = vld [vmem:[#allocation10 + $0x11a8] ss:$16 sps:$4 sm:$0xff]  }
 0x601   : > { %14122 = vmatpush1.bf16.msra.mxu0 %v19612_v18  ;;  %v19704_v18 = vld [vmem:[#allocation10 + $0x11c4] ss:$16 sps:$4 sm:$0xff]  }
 0x602   : > { %14767 = vmatpush1.bf16.msra.mxu1 %v19615_v2  ;;  %14134 = vmatprep.subr.bf16.mxu0 %v19620_v25  ;;  %v19707_v2 = vld [vmem:[#allocation10 + $0x11cc] ss:$16 sps:$4 sm:$0xff]   ;;  %v19702_v25 = vld [vmem:[#allocation10 + $0x11c0] ss:$16 sps:$4 sm:$0xff]  }
 0x603   : > { %14779 = vmatprep.subr.bf16.mxu1 %v19623_v48  ;;  %v19705_v48 = vld [vmem:[#allocation10 + $0x11c8] ss:$16 sps:$4 sm:$0xff]  }
 0x604   : > { %14124 = vmatmul.mubr.bf16.vlgmr.msra.gmra.mrb[72].mxu0 %v7992_v46 }
 0x605   : > { %14769 = vmatmul.mubr.bf16.vlgmr.msra.gmra.mrb[72].mxu1 %v7992_v46  ;;  %14135 = vmatpush1.bf16.msra.mxu0 %v19618_v50  ;;  %v19710_v50 = vld [vmem:[#allocation10 + $0x11e4] ss:$16 sps:$4 sm:$0xff]   ;;  %v19708_v46 = vld [vmem:[#allocation10 + $0x11e0] ss:$16 sps:$4 sm:$0xff]  }
 0x606   : > { %14166 = vmatprep.mubr.bf16.mxu0 %v7995_v9  ;;  %14780 = vmatpush1.bf16.msra.mxu1 %v19621_v45  ;;  %v19713_v45 = vld [vmem:[#allocation10 + $0x11ec] ss:$16 sps:$4 sm:$0xff]  }
 0x607   : > { %14811 = vmatprep.mubr.bf16.mxu1 %v7995_v9  ;;  %14136 = vmatprep.subr.bf16.mxu0 %v19626_v53  ;;  %v19711_v53 = vld [vmem:[#allocation10 + $0x11e8] ss:$16 sps:$4 sm:$0xff]   ;;  %v19719_v9 = vld [vmem:[#allocation10 + $0x120c] ss:$16 sps:$4 sm:$0xff]  }
 0x608   : > { %14781 = vmatprep.subr.bf16.mxu1 %v19629_v11  ;;  %v19716_v11 = vld [vmem:[#allocation10 + $0x1204] ss:$16 sps:$4 sm:$0xff]  }
 0x609   : > { %14137 = vmatpush1.bf16.msra.mxu0 %v19624_v54  ;;  %v19714_v54 = vld [vmem:[#allocation10 + $0x1200] ss:$16 sps:$4 sm:$0xff]  }
 0x60a   : > { %14782 = vmatpush1.bf16.msra.mxu1 %v19627_v8  ;;  %14138 = vmatprep.subr.bf16.mxu0 %v19632_v29  ;;  %v19717_v8 = vld [vmem:[#allocation10 + $0x1208] ss:$16 sps:$4 sm:$0xff]  }
 0x60b   : > { %14783 = vmatprep.subr.bf16.mxu1 %v19635_v22  ;;  %v7994_v29 = vld [vmem:[#allocation4 + $0x80] sm:$0xff] }
 0x60c   : > { %v19722_v22 = vld [vmem:[#allocation10 + $0x1224] ss:$16 sps:$4 sm:$0xff]  }
 0x60d   : > { %14139 = vmatpush1.bf16.msra.mxu0 %v19630_v38  ;;  %v19725_v38 = vld [vmem:[#allocation10 + $0x122c] ss:$16 sps:$4 sm:$0xff]  }
 0x60e   : > { %14784 = vmatpush1.bf16.msra.mxu1 %v19633_v32  ;;  %14140 = vmatprep.subr.bf16.mxu0 %v19638_v43  ;;  %v7997_v32 = vld [vmem:[#allocation4 + $0x98] sm:$0xff] }
 0x60f   : > { %14785 = vmatprep.subr.bf16.mxu1 %v19641_v10  ;;  %v19720_v43 = vld [vmem:[#allocation10 + $0x1220] ss:$16 sps:$4 sm:$0xff]   ;;  %v19723_v10 = vld [vmem:[#allocation10 + $0x1228] ss:$16 sps:$4 sm:$0xff]  }
 0x611   : > { %14141 = vmatpush1.bf16.msra.mxu0 %v19636_v51  ;;  %v19728_v51 = vld [vmem:[#allocation10 + $0x1244] ss:$16 sps:$4 sm:$0xff]  }
 0x612   : > { %14786 = vmatpush1.bf16.msra.mxu1 %v19639_v30  ;;  %14142 = vmatprep.subr.bf16.mxu0 %v19644_v4  ;;  %v19731_v30 = vld [vmem:[#allocation10 + $0x124c] ss:$16 sps:$4 sm:$0xff]   ;;  %v19726_v4 = vld [vmem:[#allocation10 + $0x1240] ss:$16 sps:$4 sm:$0xff]  }
 0x613   : > { %14787 = vmatprep.subr.bf16.mxu1 %v19647_v59  ;;  %v19729_v59 = vld [vmem:[#allocation10 + $0x1248] ss:$16 sps:$4 sm:$0xff]  }
 0x615   : > { %14143 = vmatpush1.bf16.msra.mxu0 %v19642_v14  ;;  %v19734_v14 = vld [vmem:[#allocation10 + $0x1264] ss:$16 sps:$4 sm:$0xff]  }
 0x616   : > { %14788 = vmatpush1.bf16.msra.mxu1 %v19645_v19  ;;  %14144 = vmatprep.subr.bf16.mxu0 %v19650_v5  ;;  %v19737_v19 = vld [vmem:[#allocation10 + $0x126c] ss:$16 sps:$4 sm:$0xff]   ;;  %v19732_v5 = vld [vmem:[#allocation10 + $0x1260] ss:$16 sps:$4 sm:$0xff]  }
 0x617   : > { %14789 = vmatprep.subr.bf16.mxu1 %v19653_v57  ;;  %v19735_v57 = vld [vmem:[#allocation10 + $0x1268] ss:$16 sps:$4 sm:$0xff]  }
 0x619   : > { %14145 = vmatpush1.bf16.msra.mxu0 %v19648_v52  ;;  %v19740_v52 = vld [vmem:[#allocation10 + $0x1284] ss:$16 sps:$4 sm:$0xff]  }
 0x61a   : > { %14790 = vmatpush1.bf16.msra.mxu1 %v19651_v7  ;;  %14146 = vmatprep.subr.bf16.mxu0 %v19656_v20  ;;  %v19743_v7 = vld [vmem:[#allocation10 + $0x128c] ss:$16 sps:$4 sm:$0xff]   ;;  %v19738_v20 = vld [vmem:[#allocation10 + $0x1280] ss:$16 sps:$4 sm:$0xff]  }
 0x61b   : > { %14791 = vmatprep.subr.bf16.mxu1 %v19659_v15  ;;  %v19741_v15 = vld [vmem:[#allocation10 + $0x1288] ss:$16 sps:$4 sm:$0xff]  }
 0x61d   : > { %14147 = vmatpush1.bf16.msra.mxu0 %v19654_v27  ;;  %v19746_v27 = vld [vmem:[#allocation10 + $0x12a4] ss:$16 sps:$4 sm:$0xff]  }
 0x61e   : > { %14792 = vmatpush1.bf16.msra.mxu1 %v19657_v26  ;;  %14148 = vmatprep.subr.bf16.mxu0 %v19662_v31  ;;  %v19749_v26 = vld [vmem:[#allocation10 + $0x12ac] ss:$16 sps:$4 sm:$0xff]   ;;  %v19744_v31 = vld [vmem:[#allocation10 + $0x12a0] ss:$16 sps:$4 sm:$0xff]  }
 0x61f   : > { %14793 = vmatprep.subr.bf16.mxu1 %v19665_v21  ;;  %v19747_v21 = vld [vmem:[#allocation10 + $0x12a8] ss:$16 sps:$4 sm:$0xff]  }
 0x621   : > { %14149 = vmatpush1.bf16.msra.mxu0 %v19660_v56  ;;  %v19752_v56 = vld [vmem:[#allocation10 + $0x12c4] ss:$16 sps:$4 sm:$0xff]  }
 0x622   : > { %14794 = vmatpush1.bf16.msra.mxu1 %v19663_v61  ;;  %14150 = vmatprep.subr.bf16.mxu0 %v19668_v33  ;;  %v19755_v61 = vld [vmem:[#allocation10 + $0x12cc] ss:$16 sps:$4 sm:$0xff]   ;;  %v19750_v33 = vld [vmem:[#allocation10 + $0x12c0] ss:$16 sps:$4 sm:$0xff]  }
 0x623   : > { %14795 = vmatprep.subr.bf16.mxu1 %v19671_v6  ;;  %v19753_v6 = vld [vmem:[#allocation10 + $0x12c8] ss:$16 sps:$4 sm:$0xff]  }
 0x625   : > { %14151 = vmatpush1.bf16.msra.mxu0 %v19666_v34  ;;  %v19758_v34 = vld [vmem:[#allocation10 + $0x12e4] ss:$16 sps:$4 sm:$0xff]  }
 0x626   : > { %14796 = vmatpush1.bf16.msra.mxu1 %v19669_v37  ;;  %14152 = vmatprep.subr.bf16.mxu0 %v19674_v49  ;;  %v19761_v37 = vld [vmem:[#allocation10 + $0x12ec] ss:$16 sps:$4 sm:$0xff]   ;;  %v19756_v49 = vld [vmem:[#allocation10 + $0x12e0] ss:$16 sps:$4 sm:$0xff]  }
 0x627   : > { %14797 = vmatprep.subr.bf16.mxu1 %v19677_v36  ;;  %v19759_v36 = vld [vmem:[#allocation10 + $0x12e8] ss:$16 sps:$4 sm:$0xff]  }
 0x629   : > { %14153 = vmatpush1.bf16.msra.mxu0 %v19672_v35  ;;  %v19764_v35 = vld [vmem:[#allocation10 + $0x1304] ss:$16 sps:$4 sm:$0xff]  }
 0x62a   : > { %14798 = vmatpush1.bf16.msra.mxu1 %v19675_v3  ;;  %14154 = vmatprep.subr.bf16.mxu0 %v19680_v16  ;;  %v19767_v3 = vld [vmem:[#allocation10 + $0x130c] ss:$16 sps:$4 sm:$0xff]   ;;  %v19762_v16 = vld [vmem:[#allocation10 + $0x1300] ss:$16 sps:$4 sm:$0xff]  }
 0x62b   : > { %14799 = vmatprep.subr.bf16.mxu1 %v19683_v47  ;;  %v19765_v47 = vld [vmem:[#allocation10 + $0x1308] ss:$16 sps:$4 sm:$0xff]  }
 0x62d   : > { %14155 = vmatpush1.bf16.msra.mxu0 %v19678_v55  ;;  %v19770_v55 = vld [vmem:[#allocation10 + $0x1324] ss:$16 sps:$4 sm:$0xff]  }
 0x62e   : > { %14800 = vmatpush1.bf16.msra.mxu1 %v19681_v39  ;;  %14156 = vmatprep.subr.bf16.mxu0 %v19686_v40  ;;  %v19773_v39 = vld [vmem:[#allocation10 + $0x132c] ss:$16 sps:$4 sm:$0xff]   ;;  %v19768_v40 = vld [vmem:[#allocation10 + $0x1320] ss:$16 sps:$4 sm:$0xff]  }
 0x62f   : > { %14801 = vmatprep.subr.bf16.mxu1 %v19689_v41  ;;  %v19771_v41 = vld [vmem:[#allocation10 + $0x1328] ss:$16 sps:$4 sm:$0xff]  }
 0x631   : > { %14157 = vmatpush1.bf16.msra.mxu0 %v19684_v58  ;;  %v19776_v58 = vld [vmem:[#allocation10 + $0x1344] ss:$16 sps:$4 sm:$0xff]  }
 0x632   : > { %14802 = vmatpush1.bf16.msra.mxu1 %v19687_v23  ;;  %14158 = vmatprep.subr.bf16.mxu0 %v19692_v42  ;;  %v19779_v23 = vld [vmem:[#allocation10 + $0x134c] ss:$16 sps:$4 sm:$0xff]   ;;  %v19774_v42 = vld [vmem:[#allocation10 + $0x1340] ss:$16 sps:$4 sm:$0xff]  }
 0x633   : > { %14803 = vmatprep.subr.bf16.mxu1 %v19695_v24  ;;  %v19777_v24 = vld [vmem:[#allocation10 + $0x1348] ss:$16 sps:$4 sm:$0xff]  }
 0x635   : > { %14159 = vmatpush1.bf16.msra.mxu0 %v19690_v28  ;;  %v19782_v28 = vld [vmem:[#allocation10 + $0x1364] ss:$16 sps:$4 sm:$0xff]  }
 0x636   : > { %14804 = vmatpush1.bf16.msra.mxu1 %v19693_v44  ;;  %14160 = vmatprep.subr.bf16.mxu0 %v19698_v13  ;;  %v19785_v44 = vld [vmem:[#allocation10 + $0x136c] ss:$16 sps:$4 sm:$0xff]   ;;  %v19780_v13 = vld [vmem:[#allocation10 + $0x1360] ss:$16 sps:$4 sm:$0xff]  }
 0x637   : > { %14805 = vmatprep.subr.bf16.mxu1 %v19701_v12  ;;  %v19783_v12 = vld [vmem:[#allocation10 + $0x1368] ss:$16 sps:$4 sm:$0xff]  }
 0x639   : > { %14161 = vmatpush1.bf16.msra.mxu0 %v19696_v17  ;;  %v19788_v17 = vld [vmem:[#allocation10 + $0x1384] ss:$16 sps:$4 sm:$0xff]  }
 0x63a   : > { %14806 = vmatpush1.bf16.msra.mxu1 %v19699_v60  ;;  %14162 = vmatprep.subr.bf16.mxu0 %v19704_v18  ;;  %v19791_v60 = vld [vmem:[#allocation10 + $0x138c] ss:$16 sps:$4 sm:$0xff]   ;;  %v19786_v18 = vld [vmem:[#allocation10 + $0x1380] ss:$16 sps:$4 sm:$0xff]  }
 0x63b   : > { %14807 = vmatprep.subr.bf16.mxu1 %v19707_v2  ;;  %v19789_v2 = vld [vmem:[#allocation10 + $0x1388] ss:$16 sps:$4 sm:$0xff]  }
 0x63d   : > { %14163 = vmatpush1.bf16.msra.mxu0 %v19702_v25  ;;  %v19794_v25 = vld [vmem:[#allocation10 + $0x13a4] ss:$16 sps:$4 sm:$0xff]  }
 0x63e   : > { %14808 = vmatpush1.bf16.msra.mxu1 %v19705_v48  ;;  %14164 = vmatprep.subr.bf16.mxu0 %v19710_v50  ;;  %v19797_v48 = vld [vmem:[#allocation10 + $0x13ac] ss:$16 sps:$4 sm:$0xff]   ;;  %v19792_v50 = vld [vmem:[#allocation10 + $0x13a0] ss:$16 sps:$4 sm:$0xff]  }
 0x63f   : > { %14809 = vmatprep.subr.bf16.mxu1 %v19713_v45  ;;  %v19795_v45 = vld [vmem:[#allocation10 + $0x13a8] ss:$16 sps:$4 sm:$0xff]  }
 0x641   : > { %14165 = vmatpush1.bf16.msra.mxu0 %v19708_v46  ;;  %v19800_v46 = vld [vmem:[#allocation10 + $0x13c4] ss:$16 sps:$4 sm:$0xff]  }
 0x642   : > { %14810 = vmatpush1.bf16.msra.mxu1 %v19711_v53  ;;  %14177 = vmatprep.subr.bf16.mxu0 %v19716_v11  ;;  %v19803_v53 = vld [vmem:[#allocation10 + $0x13cc] ss:$16 sps:$4 sm:$0xff]   ;;  %v19798_v11 = vld [vmem:[#allocation10 + $0x13c0] ss:$16 sps:$4 sm:$0xff]  }
 0x643   : > { %14822 = vmatprep.subr.bf16.mxu1 %v19719_v9  ;;  %v19801_v9 = vld [vmem:[#allocation10 + $0x13c8] ss:$16 sps:$4 sm:$0xff]  }
 0x644   : > { %14167 = vmatmul.mubr.bf16.vlgmr.msra.gmra.mrb[72].mxu0 %v7994_v29 }
 0x645   : > { %14812 = vmatmul.mubr.bf16.vlgmr.msra.gmra.mrb[72].mxu1 %v7994_v29  ;;  %14178 = vmatpush1.bf16.msra.mxu0 %v19714_v54  ;;  %v19806_v54 = vld [vmem:[#allocation10 + $0x13e4] ss:$16 sps:$4 sm:$0xff]   ;;  %v19804_v29 = vld [vmem:[#allocation10 + $0x13e0] ss:$16 sps:$4 sm:$0xff]  }
 0x646   : > { %14209 = vmatprep.mubr.bf16.mxu0 %v7997_v32  ;;  %14823 = vmatpush1.bf16.msra.mxu1 %v19717_v8  ;;  %v19809_v8 = vld [vmem:[#allocation10 + $0x13ec] ss:$16 sps:$4 sm:$0xff]  }
 0x647   : > { %14854 = vmatprep.mubr.bf16.mxu1 %v7997_v32  ;;  %14179 = vmatprep.subr.bf16.mxu0 %v19722_v22  ;;  %v19807_v22 = vld [vmem:[#allocation10 + $0x13e8] ss:$16 sps:$4 sm:$0xff]   ;;  %v19815_v32 = vld [vmem:[#allocation10 + $0x140c] ss:$16 sps:$4 sm:$0xff]  }
 0x648   : > { %14824 = vmatprep.subr.bf16.mxu1 %v19725_v38  ;;  %v19812_v38 = vld [vmem:[#allocation10 + $0x1404] ss:$16 sps:$4 sm:$0xff]  }
 0x649   : > { %14180 = vmatpush1.bf16.msra.mxu0 %v19720_v43  ;;  %v19810_v43 = vld [vmem:[#allocation10 + $0x1400] ss:$16 sps:$4 sm:$0xff]  }
 0x64a   : > { %14825 = vmatpush1.bf16.msra.mxu1 %v19723_v10  ;;  %14181 = vmatprep.subr.bf16.mxu0 %v19728_v51  ;;  %v19813_v10 = vld [vmem:[#allocation10 + $0x1408] ss:$16 sps:$4 sm:$0xff]  }
 0x64b   : > { %14826 = vmatprep.subr.bf16.mxu1 %v19731_v30  ;;  %v7996_v51 = vld [vmem:[#allocation4 + $0x90] sm:$0xff] }
 0x64c   : > { %v19818_v30 = vld [vmem:[#allocation10 + $0x1424] ss:$16 sps:$4 sm:$0xff]  }
 0x64d   : > { %14182 = vmatpush1.bf16.msra.mxu0 %v19726_v4  ;;  %v19821_v4 = vld [vmem:[#allocation10 + $0x142c] ss:$16 sps:$4 sm:$0xff]  }
 0x64e   : > { %14827 = vmatpush1.bf16.msra.mxu1 %v19729_v59  ;;  %14183 = vmatprep.subr.bf16.mxu0 %v19734_v14  ;;  %v7999_v59 = vld [vmem:[#allocation4 + $0xa8] sm:$0xff] }
 0x64f   : > { %14828 = vmatprep.subr.bf16.mxu1 %v19737_v19  ;;  %v19816_v14 = vld [vmem:[#allocation10 + $0x1420] ss:$16 sps:$4 sm:$0xff]   ;;  %v19819_v19 = vld [vmem:[#allocation10 + $0x1428] ss:$16 sps:$4 sm:$0xff]  }
 0x651   : > { %14184 = vmatpush1.bf16.msra.mxu0 %v19732_v5  ;;  %v19824_v5 = vld [vmem:[#allocation10 + $0x1444] ss:$16 sps:$4 sm:$0xff]  }
 0x652   : > { %14829 = vmatpush1.bf16.msra.mxu1 %v19735_v57  ;;  %14185 = vmatprep.subr.bf16.mxu0 %v19740_v52  ;;  %v19827_v57 = vld [vmem:[#allocation10 + $0x144c] ss:$16 sps:$4 sm:$0xff]   ;;  %v19822_v52 = vld [vmem:[#allocation10 + $0x1440] ss:$16 sps:$4 sm:$0xff]  }
 0x653   : > { %14830 = vmatprep.subr.bf16.mxu1 %v19743_v7  ;;  %v19825_v7 = vld [vmem:[#allocation10 + $0x1448] ss:$16 sps:$4 sm:$0xff]  }
 0x655   : > { %14186 = vmatpush1.bf16.msra.mxu0 %v19738_v20  ;;  %v19830_v20 = vld [vmem:[#allocation10 + $0x1464] ss:$16 sps:$4 sm:$0xff]  }
 0x656   : > { %14831 = vmatpush1.bf16.msra.mxu1 %v19741_v15  ;;  %14187 = vmatprep.subr.bf16.mxu0 %v19746_v27  ;;  %v19833_v15 = vld [vmem:[#allocation10 + $0x146c] ss:$16 sps:$4 sm:$0xff]   ;;  %v19828_v27 = vld [vmem:[#allocation10 + $0x1460] ss:$16 sps:$4 sm:$0xff]  }
 0x657   : > { %14832 = vmatprep.subr.bf16.mxu1 %v19749_v26  ;;  %v19831_v26 = vld [vmem:[#allocation10 + $0x1468] ss:$16 sps:$4 sm:$0xff]  }
 0x659   : > { %14188 = vmatpush1.bf16.msra.mxu0 %v19744_v31  ;;  %v19836_v31 = vld [vmem:[#allocation10 + $0x1484] ss:$16 sps:$4 sm:$0xff]  }
 0x65a   : > { %14833 = vmatpush1.bf16.msra.mxu1 %v19747_v21  ;;  %14189 = vmatprep.subr.bf16.mxu0 %v19752_v56  ;;  %v19839_v21 = vld [vmem:[#allocation10 + $0x148c] ss:$16 sps:$4 sm:$0xff]   ;;  %v19834_v56 = vld [vmem:[#allocation10 + $0x1480] ss:$16 sps:$4 sm:$0xff]  }
 0x65b   : > { %14834 = vmatprep.subr.bf16.mxu1 %v19755_v61  ;;  %v19837_v61 = vld [vmem:[#allocation10 + $0x1488] ss:$16 sps:$4 sm:$0xff]  }
 0x65d   : > { %14190 = vmatpush1.bf16.msra.mxu0 %v19750_v33  ;;  %v19842_v33 = vld [vmem:[#allocation10 + $0x14a4] ss:$16 sps:$4 sm:$0xff]  }
 0x65e   : > { %14835 = vmatpush1.bf16.msra.mxu1 %v19753_v6  ;;  %14191 = vmatprep.subr.bf16.mxu0 %v19758_v34  ;;  %v19845_v6 = vld [vmem:[#allocation10 + $0x14ac] ss:$16 sps:$4 sm:$0xff]   ;;  %v19840_v34 = vld [vmem:[#allocation10 + $0x14a0] ss:$16 sps:$4 sm:$0xff]  }
 0x65f   : > { %14836 = vmatprep.subr.bf16.mxu1 %v19761_v37  ;;  %v19843_v37 = vld [vmem:[#allocation10 + $0x14a8] ss:$16 sps:$4 sm:$0xff]  }
 0x661   : > { %14192 = vmatpush1.bf16.msra.mxu0 %v19756_v49  ;;  %v19848_v49 = vld [vmem:[#allocation10 + $0x14c4] ss:$16 sps:$4 sm:$0xff]  }
 0x662   : > { %14837 = vmatpush1.bf16.msra.mxu1 %v19759_v36  ;;  %14193 = vmatprep.subr.bf16.mxu0 %v19764_v35  ;;  %v19851_v36 = vld [vmem:[#allocation10 + $0x14cc] ss:$16 sps:$4 sm:$0xff]   ;;  %v19846_v35 = vld [vmem:[#allocation10 + $0x14c0] ss:$16 sps:$4 sm:$0xff]  }
 0x663   : > { %14838 = vmatprep.subr.bf16.mxu1 %v19767_v3  ;;  %v19849_v3 = vld [vmem:[#allocation10 + $0x14c8] ss:$16 sps:$4 sm:$0xff]  }
 0x665   : > { %14194 = vmatpush1.bf16.msra.mxu0 %v19762_v16  ;;  %v19854_v16 = vld [vmem:[#allocation10 + $0x14e4] ss:$16 sps:$4 sm:$0xff]  }
 0x666   : > { %14839 = vmatpush1.bf16.msra.mxu1 %v19765_v47  ;;  %14195 = vmatprep.subr.bf16.mxu0 %v19770_v55  ;;  %v19857_v47 = vld [vmem:[#allocation10 + $0x14ec] ss:$16 sps:$4 sm:$0xff]   ;;  %v19852_v55 = vld [vmem:[#allocation10 + $0x14e0] ss:$16 sps:$4 sm:$0xff]  }
 0x667   : > { %14840 = vmatprep.subr.bf16.mxu1 %v19773_v39  ;;  %v19855_v39 = vld [vmem:[#allocation10 + $0x14e8] ss:$16 sps:$4 sm:$0xff]  }
 0x669   : > { %14196 = vmatpush1.bf16.msra.mxu0 %v19768_v40  ;;  %v19860_v40 = vld [vmem:[#allocation10 + $0x1504] ss:$16 sps:$4 sm:$0xff]  }
 0x66a   : > { %14841 = vmatpush1.bf16.msra.mxu1 %v19771_v41  ;;  %14197 = vmatprep.subr.bf16.mxu0 %v19776_v58  ;;  %v19863_v41 = vld [vmem:[#allocation10 + $0x150c] ss:$16 sps:$4 sm:$0xff]   ;;  %v19858_v58 = vld [vmem:[#allocation10 + $0x1500] ss:$16 sps:$4 sm:$0xff]  }
 0x66b   : > { %14842 = vmatprep.subr.bf16.mxu1 %v19779_v23  ;;  %v19861_v23 = vld [vmem:[#allocation10 + $0x1508] ss:$16 sps:$4 sm:$0xff]  }
 0x66d   : > { %14198 = vmatpush1.bf16.msra.mxu0 %v19774_v42  ;;  %v19866_v42 = vld [vmem:[#allocation10 + $0x1524] ss:$16 sps:$4 sm:$0xff]  }
 0x66e   : > { %14843 = vmatpush1.bf16.msra.mxu1 %v19777_v24  ;;  %14199 = vmatprep.subr.bf16.mxu0 %v19782_v28  ;;  %v19869_v24 = vld [vmem:[#allocation10 + $0x152c] ss:$16 sps:$4 sm:$0xff]   ;;  %v19864_v28 = vld [vmem:[#allocation10 + $0x1520] ss:$16 sps:$4 sm:$0xff]  }
 0x66f   : > { %14844 = vmatprep.subr.bf16.mxu1 %v19785_v44  ;;  %v19867_v44 = vld [vmem:[#allocation10 + $0x1528] ss:$16 sps:$4 sm:$0xff]  }
 0x671   : > { %14200 = vmatpush1.bf16.msra.mxu0 %v19780_v13  ;;  %v19872_v13 = vld [vmem:[#allocation10 + $0x1544] ss:$16 sps:$4 sm:$0xff]  }
 0x672   : > { %14845 = vmatpush1.bf16.msra.mxu1 %v19783_v12  ;;  %14201 = vmatprep.subr.bf16.mxu0 %v19788_v17  ;;  %v19875_v12 = vld [vmem:[#allocation10 + $0x154c] ss:$16 sps:$4 sm:$0xff]   ;;  %v19870_v17 = vld [vmem:[#allocation10 + $0x1540] ss:$16 sps:$4 sm:$0xff]  }
 0x673   : > { %14846 = vmatprep.subr.bf16.mxu1 %v19791_v60  ;;  %v19873_v60 = vld [vmem:[#allocation10 + $0x1548] ss:$16 sps:$4 sm:$0xff]  }
 0x675   : > { %14202 = vmatpush1.bf16.msra.mxu0 %v19786_v18  ;;  %v19878_v18 = vld [vmem:[#allocation10 + $0x1564] ss:$16 sps:$4 sm:$0xff]  }
 0x676   : > { %14847 = vmatpush1.bf16.msra.mxu1 %v19789_v2  ;;  %14203 = vmatprep.subr.bf16.mxu0 %v19794_v25  ;;  %v19881_v2 = vld [vmem:[#allocation10 + $0x156c] ss:$16 sps:$4 sm:$0xff]   ;;  %v19876_v25 = vld [vmem:[#allocation10 + $0x1560] ss:$16 sps:$4 sm:$0xff]  }
 0x677   : > { %14848 = vmatprep.subr.bf16.mxu1 %v19797_v48  ;;  %v19879_v48 = vld [vmem:[#allocation10 + $0x1568] ss:$16 sps:$4 sm:$0xff]  }
 0x679   : > { %14204 = vmatpush1.bf16.msra.mxu0 %v19792_v50  ;;  %v19884_v50 = vld [vmem:[#allocation10 + $0x1584] ss:$16 sps:$4 sm:$0xff]  }
 0x67a   : > { %14849 = vmatpush1.bf16.msra.mxu1 %v19795_v45  ;;  %14205 = vmatprep.subr.bf16.mxu0 %v19800_v46  ;;  %v19887_v45 = vld [vmem:[#allocation10 + $0x158c] ss:$16 sps:$4 sm:$0xff]   ;;  %v19882_v46 = vld [vmem:[#allocation10 + $0x1580] ss:$16 sps:$4 sm:$0xff]  }
 0x67b   : > { %14850 = vmatprep.subr.bf16.mxu1 %v19803_v53  ;;  %v19885_v53 = vld [vmem:[#allocation10 + $0x1588] ss:$16 sps:$4 sm:$0xff]  }
 0x67d   : > { %14206 = vmatpush1.bf16.msra.mxu0 %v19798_v11  ;;  %v19890_v11 = vld [vmem:[#allocation10 + $0x15a4] ss:$16 sps:$4 sm:$0xff]  }
 0x67e   : > { %14851 = vmatpush1.bf16.msra.mxu1 %v19801_v9  ;;  %14207 = vmatprep.subr.bf16.mxu0 %v19806_v54  ;;  %v19893_v9 = vld [vmem:[#allocation10 + $0x15ac] ss:$16 sps:$4 sm:$0xff]   ;;  %v19888_v54 = vld [vmem:[#allocation10 + $0x15a0] ss:$16 sps:$4 sm:$0xff]  }
 0x67f   : > { %14852 = vmatprep.subr.bf16.mxu1 %v19809_v8  ;;  %v19891_v8 = vld [vmem:[#allocation10 + $0x15a8] ss:$16 sps:$4 sm:$0xff]  }
 0x681   : > { %14208 = vmatpush1.bf16.msra.mxu0 %v19804_v29  ;;  %v19896_v29 = vld [vmem:[#allocation10 + $0x15c4] ss:$16 sps:$4 sm:$0xff]  }
 0x682   : > { %14853 = vmatpush1.bf16.msra.mxu1 %v19807_v22  ;;  %14220 = vmatprep.subr.bf16.mxu0 %v19812_v38  ;;  %v19899_v22 = vld [vmem:[#allocation10 + $0x15cc] ss:$16 sps:$4 sm:$0xff]   ;;  %v19894_v38 = vld [vmem:[#allocation10 + $0x15c0] ss:$16 sps:$4 sm:$0xff]  }
 0x683   : > { %14865 = vmatprep.subr.bf16.mxu1 %v19815_v32  ;;  %v19897_v32 = vld [vmem:[#allocation10 + $0x15c8] ss:$16 sps:$4 sm:$0xff]  }
 0x684   : > { %14210 = vmatmul.mubr.bf16.vlgmr.msra.gmra.mrb[72].mxu0 %v7996_v51 }
 0x685   : > { %14855 = vmatmul.mubr.bf16.vlgmr.msra.gmra.mrb[72].mxu1 %v7996_v51  ;;  %14221 = vmatpush1.bf16.msra.mxu0 %v19810_v43  ;;  %v19902_v43 = vld [vmem:[#allocation10 + $0x15e4] ss:$16 sps:$4 sm:$0xff]   ;;  %v19900_v51 = vld [vmem:[#allocation10 + $0x15e0] ss:$16 sps:$4 sm:$0xff]  }
 0x686   : > { %14252 = vmatprep.mubr.bf16.mxu0 %v7999_v59  ;;  %14866 = vmatpush1.bf16.msra.mxu1 %v19813_v10  ;;  %v19905_v10 = vld [vmem:[#allocation10 + $0x15ec] ss:$16 sps:$4 sm:$0xff]  }
 0x687   : > { %14897 = vmatprep.mubr.bf16.mxu1 %v7999_v59  ;;  %14222 = vmatprep.subr.bf16.mxu0 %v19818_v30  ;;  %v19903_v30 = vld [vmem:[#allocation10 + $0x15e8] ss:$16 sps:$4 sm:$0xff]   ;;  %v19911_v59 = vld [vmem:[#allocation10 + $0x160c] ss:$16 sps:$4 sm:$0xff]  }
 0x688   : > { %14867 = vmatprep.subr.bf16.mxu1 %v19821_v4  ;;  %v19908_v4 = vld [vmem:[#allocation10 + $0x1604] ss:$16 sps:$4 sm:$0xff]  }
 0x689   : > { %14223 = vmatpush1.bf16.msra.mxu0 %v19816_v14  ;;  %v19906_v14 = vld [vmem:[#allocation10 + $0x1600] ss:$16 sps:$4 sm:$0xff]  }
 0x68a   : > { %14868 = vmatpush1.bf16.msra.mxu1 %v19819_v19  ;;  %14224 = vmatprep.subr.bf16.mxu0 %v19824_v5  ;;  %v19909_v19 = vld [vmem:[#allocation10 + $0x1608] ss:$16 sps:$4 sm:$0xff]  }
 0x68b   : > { %14869 = vmatprep.subr.bf16.mxu1 %v19827_v57  ;;  %v7998_v5 = vld [vmem:[#allocation4 + $0xa0] sm:$0xff] }
 0x68c   : > { %v19914_v57 = vld [vmem:[#allocation10 + $0x1624] ss:$16 sps:$4 sm:$0xff]  }
 0x68d   : > { %14225 = vmatpush1.bf16.msra.mxu0 %v19822_v52  ;;  %v19917_v52 = vld [vmem:[#allocation10 + $0x162c] ss:$16 sps:$4 sm:$0xff]  }
 0x68e   : > { %14870 = vmatpush1.bf16.msra.mxu1 %v19825_v7  ;;  %14226 = vmatprep.subr.bf16.mxu0 %v19830_v20  ;;  %v8001_v7 = vld [vmem:[#allocation4 + $0xb8] sm:$0xff] }
 0x68f   : > { %14871 = vmatprep.subr.bf16.mxu1 %v19833_v15  ;;  %v19912_v20 = vld [vmem:[#allocation10 + $0x1620] ss:$16 sps:$4 sm:$0xff]   ;;  %v19915_v15 = vld [vmem:[#allocation10 + $0x1628] ss:$16 sps:$4 sm:$0xff]  }
 0x691   : > { %14227 = vmatpush1.bf16.msra.mxu0 %v19828_v27  ;;  %v19920_v27 = vld [vmem:[#allocation10 + $0x1644] ss:$16 sps:$4 sm:$0xff]  }
 0x692   : > { %14872 = vmatpush1.bf16.msra.mxu1 %v19831_v26  ;;  %14228 = vmatprep.subr.bf16.mxu0 %v19836_v31  ;;  %v19923_v26 = vld [vmem:[#allocation10 + $0x164c] ss:$16 sps:$4 sm:$0xff]   ;;  %v19918_v31 = vld [vmem:[#allocation10 + $0x1640] ss:$16 sps:$4 sm:$0xff]  }
 0x693   : > { %14873 = vmatprep.subr.bf16.mxu1 %v19839_v21  ;;  %v19921_v21 = vld [vmem:[#allocation10 + $0x1648] ss:$16 sps:$4 sm:$0xff]  }
 0x695   : > { %14229 = vmatpush1.bf16.msra.mxu0 %v19834_v56  ;;  %v19926_v56 = vld [vmem:[#allocation10 + $0x1664] ss:$16 sps:$4 sm:$0xff]  }
 0x696   : > { %14874 = vmatpush1.bf16.msra.mxu1 %v19837_v61  ;;  %14230 = vmatprep.subr.bf16.mxu0 %v19842_v33  ;;  %v19929_v61 = vld [vmem:[#allocation10 + $0x166c] ss:$16 sps:$4 sm:$0xff]   ;;  %v19924_v33 = vld [vmem:[#allocation10 + $0x1660] ss:$16 sps:$4 sm:$0xff]  }
 0x697   : > { %14875 = vmatprep.subr.bf16.mxu1 %v19845_v6  ;;  %v19927_v6 = vld [vmem:[#allocation10 + $0x1668] ss:$16 sps:$4 sm:$0xff]  }
 0x699   : > { %14231 = vmatpush1.bf16.msra.mxu0 %v19840_v34  ;;  %v19932_v34 = vld [vmem:[#allocation10 + $0x1684] ss:$16 sps:$4 sm:$0xff]  }
 0x69a   : > { %14876 = vmatpush1.bf16.msra.mxu1 %v19843_v37  ;;  %14232 = vmatprep.subr.bf16.mxu0 %v19848_v49  ;;  %v19935_v37 = vld [vmem:[#allocation10 + $0x168c] ss:$16 sps:$4 sm:$0xff]   ;;  %v19930_v49 = vld [vmem:[#allocation10 + $0x1680] ss:$16 sps:$4 sm:$0xff]  }
 0x69b   : > { %14877 = vmatprep.subr.bf16.mxu1 %v19851_v36  ;;  %v19933_v36 = vld [vmem:[#allocation10 + $0x1688] ss:$16 sps:$4 sm:$0xff]  }
 0x69d   : > { %14233 = vmatpush1.bf16.msra.mxu0 %v19846_v35  ;;  %v19938_v35 = vld [vmem:[#allocation10 + $0x16a4] ss:$16 sps:$4 sm:$0xff]  }
 0x69e   : > { %14878 = vmatpush1.bf16.msra.mxu1 %v19849_v3  ;;  %14234 = vmatprep.subr.bf16.mxu0 %v19854_v16  ;;  %v19941_v3 = vld [vmem:[#allocation10 + $0x16ac] ss:$16 sps:$4 sm:$0xff]   ;;  %v19936_v16 = vld [vmem:[#allocation10 + $0x16a0] ss:$16 sps:$4 sm:$0xff]  }
 0x69f   : > { %14879 = vmatprep.subr.bf16.mxu1 %v19857_v47  ;;  %v19939_v47 = vld [vmem:[#allocation10 + $0x16a8] ss:$16 sps:$4 sm:$0xff]  }
 0x6a1   : > { %14235 = vmatpush1.bf16.msra.mxu0 %v19852_v55  ;;  %v19944_v55 = vld [vmem:[#allocation10 + $0x16c4] ss:$16 sps:$4 sm:$0xff]  }
 0x6a2   : > { %14880 = vmatpush1.bf16.msra.mxu1 %v19855_v39  ;;  %14236 = vmatprep.subr.bf16.mxu0 %v19860_v40  ;;  %v19947_v39 = vld [vmem:[#allocation10 + $0x16cc] ss:$16 sps:$4 sm:$0xff]   ;;  %v19942_v40 = vld [vmem:[#allocation10 + $0x16c0] ss:$16 sps:$4 sm:$0xff]  }
 0x6a3   : > { %14881 = vmatprep.subr.bf16.mxu1 %v19863_v41  ;;  %v19945_v41 = vld [vmem:[#allocation10 + $0x16c8] ss:$16 sps:$4 sm:$0xff]  }
 0x6a5   : > { %14237 = vmatpush1.bf16.msra.mxu0 %v19858_v58  ;;  %v19950_v58 = vld [vmem:[#allocation10 + $0x16e4] ss:$16 sps:$4 sm:$0xff]  }
 0x6a6   : > { %14882 = vmatpush1.bf16.msra.mxu1 %v19861_v23  ;;  %14238 = vmatprep.subr.bf16.mxu0 %v19866_v42  ;;  %v19953_v23 = vld [vmem:[#allocation10 + $0x16ec] ss:$16 sps:$4 sm:$0xff]   ;;  %v19948_v42 = vld [vmem:[#allocation10 + $0x16e0] ss:$16 sps:$4 sm:$0xff]  }
 0x6a7   : > { %14883 = vmatprep.subr.bf16.mxu1 %v19869_v24  ;;  %v19951_v24 = vld [vmem:[#allocation10 + $0x16e8] ss:$16 sps:$4 sm:$0xff]  }
 0x6a9   : > { %14239 = vmatpush1.bf16.msra.mxu0 %v19864_v28  ;;  %v19956_v28 = vld [vmem:[#allocation10 + $0x1704] ss:$16 sps:$4 sm:$0xff]  }
 0x6aa   : > { %14884 = vmatpush1.bf16.msra.mxu1 %v19867_v44  ;;  %14240 = vmatprep.subr.bf16.mxu0 %v19872_v13  ;;  %v19959_v44 = vld [vmem:[#allocation10 + $0x170c] ss:$16 sps:$4 sm:$0xff]   ;;  %v19954_v13 = vld [vmem:[#allocation10 + $0x1700] ss:$16 sps:$4 sm:$0xff]  }
 0x6ab   : > { %14885 = vmatprep.subr.bf16.mxu1 %v19875_v12  ;;  %v19957_v12 = vld [vmem:[#allocation10 + $0x1708] ss:$16 sps:$4 sm:$0xff]  }
 0x6ad   : > { %14241 = vmatpush1.bf16.msra.mxu0 %v19870_v17  ;;  %v19962_v17 = vld [vmem:[#allocation10 + $0x1724] ss:$16 sps:$4 sm:$0xff]  }
 0x6ae   : > { %14886 = vmatpush1.bf16.msra.mxu1 %v19873_v60  ;;  %14242 = vmatprep.subr.bf16.mxu0 %v19878_v18  ;;  %v19965_v60 = vld [vmem:[#allocation10 + $0x172c] ss:$16 sps:$4 sm:$0xff]   ;;  %v19960_v18 = vld [vmem:[#allocation10 + $0x1720] ss:$16 sps:$4 sm:$0xff]  }
 0x6af   : > { %14887 = vmatprep.subr.bf16.mxu1 %v19881_v2  ;;  %v19963_v2 = vld [vmem:[#allocation10 + $0x1728] ss:$16 sps:$4 sm:$0xff]  }
 0x6b1   : > { %14243 = vmatpush1.bf16.msra.mxu0 %v19876_v25  ;;  %v19968_v25 = vld [vmem:[#allocation10 + $0x1744] ss:$16 sps:$4 sm:$0xff]  }
 0x6b2   : > { %14888 = vmatpush1.bf16.msra.mxu1 %v19879_v48  ;;  %14244 = vmatprep.subr.bf16.mxu0 %v19884_v50  ;;  %v19971_v48 = vld [vmem:[#allocation10 + $0x174c] ss:$16 sps:$4 sm:$0xff]   ;;  %v19966_v50 = vld [vmem:[#allocation10 + $0x1740] ss:$16 sps:$4 sm:$0xff]  }
 0x6b3   : > { %14889 = vmatprep.subr.bf16.mxu1 %v19887_v45  ;;  %v19969_v45 = vld [vmem:[#allocation10 + $0x1748] ss:$16 sps:$4 sm:$0xff]  }
 0x6b5   : > { %14245 = vmatpush1.bf16.msra.mxu0 %v19882_v46  ;;  %v19974_v46 = vld [vmem:[#allocation10 + $0x1764] ss:$16 sps:$4 sm:$0xff]  }
 0x6b6   : > { %14890 = vmatpush1.bf16.msra.mxu1 %v19885_v53  ;;  %14246 = vmatprep.subr.bf16.mxu0 %v19890_v11  ;;  %v19977_v53 = vld [vmem:[#allocation10 + $0x176c] ss:$16 sps:$4 sm:$0xff]   ;;  %v19972_v11 = vld [vmem:[#allocation10 + $0x1760] ss:$16 sps:$4 sm:$0xff]  }
 0x6b7   : > { %14891 = vmatprep.subr.bf16.mxu1 %v19893_v9  ;;  %v19975_v9 = vld [vmem:[#allocation10 + $0x1768] ss:$16 sps:$4 sm:$0xff]  }
 0x6b9   : > { %14247 = vmatpush1.bf16.msra.mxu0 %v19888_v54  ;;  %v19980_v54 = vld [vmem:[#allocation10 + $0x1784] ss:$16 sps:$4 sm:$0xff]  }
 0x6ba   : > { %14892 = vmatpush1.bf16.msra.mxu1 %v19891_v8  ;;  %14248 = vmatprep.subr.bf16.mxu0 %v19896_v29  ;;  %v19983_v8 = vld [vmem:[#allocation10 + $0x178c] ss:$16 sps:$4 sm:$0xff]   ;;  %v19978_v29 = vld [vmem:[#allocation10 + $0x1780] ss:$16 sps:$4 sm:$0xff]  }
 0x6bb   : > { %14893 = vmatprep.subr.bf16.mxu1 %v19899_v22  ;;  %v19981_v22 = vld [vmem:[#allocation10 + $0x1788] ss:$16 sps:$4 sm:$0xff]  }
 0x6bd   : > { %14249 = vmatpush1.bf16.msra.mxu0 %v19894_v38  ;;  %v19986_v38 = vld [vmem:[#allocation10 + $0x17a4] ss:$16 sps:$4 sm:$0xff]  }
 0x6be   : > { %14894 = vmatpush1.bf16.msra.mxu1 %v19897_v32  ;;  %14250 = vmatprep.subr.bf16.mxu0 %v19902_v43  ;;  %v19989_v32 = vld [vmem:[#allocation10 + $0x17ac] ss:$16 sps:$4 sm:$0xff]   ;;  %v19984_v43 = vld [vmem:[#allocation10 + $0x17a0] ss:$16 sps:$4 sm:$0xff]  }
 0x6bf   : > { %14895 = vmatprep.subr.bf16.mxu1 %v19905_v10  ;;  %v19987_v10 = vld [vmem:[#allocation10 + $0x17a8] ss:$16 sps:$4 sm:$0xff]  }
 0x6c1   : > { %14251 = vmatpush1.bf16.msra.mxu0 %v19900_v51  ;;  %v19992_v51 = vld [vmem:[#allocation10 + $0x17c4] ss:$16 sps:$4 sm:$0xff]  }
 0x6c2   : > { %14896 = vmatpush1.bf16.msra.mxu1 %v19903_v30  ;;  %14263 = vmatprep.subr.bf16.mxu0 %v19908_v4  ;;  %v19995_v30 = vld [vmem:[#allocation10 + $0x17cc] ss:$16 sps:$4 sm:$0xff]   ;;  %v19990_v4 = vld [vmem:[#allocation10 + $0x17c0] ss:$16 sps:$4 sm:$0xff]  }
 0x6c3   : > { %14908 = vmatprep.subr.bf16.mxu1 %v19911_v59  ;;  %v19993_v59 = vld [vmem:[#allocation10 + $0x17c8] ss:$16 sps:$4 sm:$0xff]  }
 0x6c4   : > { %14253 = vmatmul.mubr.bf16.vlgmr.msra.gmra.mrb[72].mxu0 %v7998_v5 }
 0x6c5   : > { %14898 = vmatmul.mubr.bf16.vlgmr.msra.gmra.mrb[72].mxu1 %v7998_v5  ;;  %14264 = vmatpush1.bf16.msra.mxu0 %v19906_v14  ;;  %v19998_v14 = vld [vmem:[#allocation10 + $0x17e4] ss:$16 sps:$4 sm:$0xff]   ;;  %v19996_v5 = vld [vmem:[#allocation10 + $0x17e0] ss:$16 sps:$4 sm:$0xff]  }
 0x6c6   : > { %14295 = vmatprep.mubr.bf16.mxu0 %v8001_v7  ;;  %14909 = vmatpush1.bf16.msra.mxu1 %v19909_v19  ;;  %v20001_v19 = vld [vmem:[#allocation10 + $0x17ec] ss:$16 sps:$4 sm:$0xff]  }
 0x6c7   : > { %14940 = vmatprep.mubr.bf16.mxu1 %v8001_v7  ;;  %14265 = vmatprep.subr.bf16.mxu0 %v19914_v57  ;;  %v19999_v57 = vld [vmem:[#allocation10 + $0x17e8] ss:$16 sps:$4 sm:$0xff]   ;;  %v20007_v7 = vld [vmem:[#allocation10 + $0x180c] ss:$16 sps:$4 sm:$0xff]  }
 0x6c8   : > { %14910 = vmatprep.subr.bf16.mxu1 %v19917_v52  ;;  %v20004_v52 = vld [vmem:[#allocation10 + $0x1804] ss:$16 sps:$4 sm:$0xff]  }
 0x6c9   : > { %14266 = vmatpush1.bf16.msra.mxu0 %v19912_v20  ;;  %v20002_v20 = vld [vmem:[#allocation10 + $0x1800] ss:$16 sps:$4 sm:$0xff]  }
 0x6ca   : > { %14911 = vmatpush1.bf16.msra.mxu1 %v19915_v15  ;;  %14267 = vmatprep.subr.bf16.mxu0 %v19920_v27  ;;  %v20005_v15 = vld [vmem:[#allocation10 + $0x1808] ss:$16 sps:$4 sm:$0xff]  }
 0x6cb   : > { %14912 = vmatprep.subr.bf16.mxu1 %v19923_v26  ;;  %v8000_v27 = vld [vmem:[#allocation4 + $0xb0] sm:$0xff] }
 0x6cc   : > { %v20010_v26 = vld [vmem:[#allocation10 + $0x1824] ss:$16 sps:$4 sm:$0xff]  }
 0x6cd   : > { %14268 = vmatpush1.bf16.msra.mxu0 %v19918_v31  ;;  %v20013_v31 = vld [vmem:[#allocation10 + $0x182c] ss:$16 sps:$4 sm:$0xff]  }
 0x6ce   : > { %14913 = vmatpush1.bf16.msra.mxu1 %v19921_v21  ;;  %14269 = vmatprep.subr.bf16.mxu0 %v19926_v56  ;;  %v8003_v21 = vld [vmem:[#allocation4 + $0xc8] sm:$0xff] }
 0x6cf   : > { %14914 = vmatprep.subr.bf16.mxu1 %v19929_v61  ;;  %v20008_v56 = vld [vmem:[#allocation10 + $0x1820] ss:$16 sps:$4 sm:$0xff]   ;;  %v20011_v61 = vld [vmem:[#allocation10 + $0x1828] ss:$16 sps:$4 sm:$0xff]  }
 0x6d1   : > { %14270 = vmatpush1.bf16.msra.mxu0 %v19924_v33  ;;  %v20016_v33 = vld [vmem:[#allocation10 + $0x1844] ss:$16 sps:$4 sm:$0xff]  }
 0x6d2   : > { %14915 = vmatpush1.bf16.msra.mxu1 %v19927_v6  ;;  %14271 = vmatprep.subr.bf16.mxu0 %v19932_v34  ;;  %v20019_v6 = vld [vmem:[#allocation10 + $0x184c] ss:$16 sps:$4 sm:$0xff]   ;;  %v20014_v34 = vld [vmem:[#allocation10 + $0x1840] ss:$16 sps:$4 sm:$0xff]  }
 0x6d3   : > { %14916 = vmatprep.subr.bf16.mxu1 %v19935_v37  ;;  %v20017_v37 = vld [vmem:[#allocation10 + $0x1848] ss:$16 sps:$4 sm:$0xff]  }
 0x6d5   : > { %14272 = vmatpush1.bf16.msra.mxu0 %v19930_v49  ;;  %v20022_v49 = vld [vmem:[#allocation10 + $0x1864] ss:$16 sps:$4 sm:$0xff]  }
 0x6d6   : > { %14917 = vmatpush1.bf16.msra.mxu1 %v19933_v36  ;;  %14273 = vmatprep.subr.bf16.mxu0 %v19938_v35  ;;  %v20025_v36 = vld [vmem:[#allocation10 + $0x186c] ss:$16 sps:$4 sm:$0xff]   ;;  %v20020_v35 = vld [vmem:[#allocation10 + $0x1860] ss:$16 sps:$4 sm:$0xff]  }
 0x6d7   : > { %14918 = vmatprep.subr.bf16.mxu1 %v19941_v3  ;;  %v20023_v3 = vld [vmem:[#allocation10 + $0x1868] ss:$16 sps:$4 sm:$0xff]  }
 0x6d9   : > { %14274 = vmatpush1.bf16.msra.mxu0 %v19936_v16  ;;  %v20028_v16 = vld [vmem:[#allocation10 + $0x1884] ss:$16 sps:$4 sm:$0xff]  }
 0x6da   : > { %14919 = vmatpush1.bf16.msra.mxu1 %v19939_v47  ;;  %14275 = vmatprep.subr.bf16.mxu0 %v19944_v55  ;;  %v20031_v47 = vld [vmem:[#allocation10 + $0x188c] ss:$16 sps:$4 sm:$0xff]   ;;  %v20026_v55 = vld [vmem:[#allocation10 + $0x1880] ss:$16 sps:$4 sm:$0xff]  }
 0x6db   : > { %14920 = vmatprep.subr.bf16.mxu1 %v19947_v39  ;;  %v20029_v39 = vld [vmem:[#allocation10 + $0x1888] ss:$16 sps:$4 sm:$0xff]  }
 0x6dd   : > { %14276 = vmatpush1.bf16.msra.mxu0 %v19942_v40  ;;  %v20034_v40 = vld [vmem:[#allocation10 + $0x18a4] ss:$16 sps:$4 sm:$0xff]  }
 0x6de   : > { %14921 = vmatpush1.bf16.msra.mxu1 %v19945_v41  ;;  %14277 = vmatprep.subr.bf16.mxu0 %v19950_v58  ;;  %v20037_v41 = vld [vmem:[#allocation10 + $0x18ac] ss:$16 sps:$4 sm:$0xff]   ;;  %v20032_v58 = vld [vmem:[#allocation10 + $0x18a0] ss:$16 sps:$4 sm:$0xff]  }
 0x6df   : > { %14922 = vmatprep.subr.bf16.mxu1 %v19953_v23  ;;  %v20035_v23 = vld [vmem:[#allocation10 + $0x18a8] ss:$16 sps:$4 sm:$0xff]  }
 0x6e1   : > { %14278 = vmatpush1.bf16.msra.mxu0 %v19948_v42  ;;  %v20040_v42 = vld [vmem:[#allocation10 + $0x18c4] ss:$16 sps:$4 sm:$0xff]  }
 0x6e2   : > { %14923 = vmatpush1.bf16.msra.mxu1 %v19951_v24  ;;  %14279 = vmatprep.subr.bf16.mxu0 %v19956_v28  ;;  %v20043_v24 = vld [vmem:[#allocation10 + $0x18cc] ss:$16 sps:$4 sm:$0xff]   ;;  %v20038_v28 = vld [vmem:[#allocation10 + $0x18c0] ss:$16 sps:$4 sm:$0xff]  }
 0x6e3   : > { %14924 = vmatprep.subr.bf16.mxu1 %v19959_v44  ;;  %v20041_v44 = vld [vmem:[#allocation10 + $0x18c8] ss:$16 sps:$4 sm:$0xff]  }
 0x6e5   : > { %14280 = vmatpush1.bf16.msra.mxu0 %v19954_v13  ;;  %v20046_v13 = vld [vmem:[#allocation10 + $0x18e4] ss:$16 sps:$4 sm:$0xff]  }
 0x6e6   : > { %14925 = vmatpush1.bf16.msra.mxu1 %v19957_v12  ;;  %14281 = vmatprep.subr.bf16.mxu0 %v19962_v17  ;;  %v20049_v12 = vld [vmem:[#allocation10 + $0x18ec] ss:$16 sps:$4 sm:$0xff]   ;;  %v20044_v17 = vld [vmem:[#allocation10 + $0x18e0] ss:$16 sps:$4 sm:$0xff]  }
 0x6e7   : > { %14926 = vmatprep.subr.bf16.mxu1 %v19965_v60  ;;  %v20047_v60 = vld [vmem:[#allocation10 + $0x18e8] ss:$16 sps:$4 sm:$0xff]  }
 0x6e9   : > { %14282 = vmatpush1.bf16.msra.mxu0 %v19960_v18  ;;  %v20052_v18 = vld [vmem:[#allocation10 + $0x1904] ss:$16 sps:$4 sm:$0xff]  }
 0x6ea   : > { %14927 = vmatpush1.bf16.msra.mxu1 %v19963_v2  ;;  %14283 = vmatprep.subr.bf16.mxu0 %v19968_v25  ;;  %v20055_v2 = vld [vmem:[#allocation10 + $0x190c] ss:$16 sps:$4 sm:$0xff]   ;;  %v20050_v25 = vld [vmem:[#allocation10 + $0x1900] ss:$16 sps:$4 sm:$0xff]  }
 0x6eb   : > { %14928 = vmatprep.subr.bf16.mxu1 %v19971_v48  ;;  %v20053_v48 = vld [vmem:[#allocation10 + $0x1908] ss:$16 sps:$4 sm:$0xff]  }
 0x6ed   : > { %14284 = vmatpush1.bf16.msra.mxu0 %v19966_v50  ;;  %v20058_v50 = vld [vmem:[#allocation10 + $0x1924] ss:$16 sps:$4 sm:$0xff]  }
 0x6ee   : > { %14929 = vmatpush1.bf16.msra.mxu1 %v19969_v45  ;;  %14285 = vmatprep.subr.bf16.mxu0 %v19974_v46  ;;  %v20061_v45 = vld [vmem:[#allocation10 + $0x192c] ss:$16 sps:$4 sm:$0xff]   ;;  %v20056_v46 = vld [vmem:[#allocation10 + $0x1920] ss:$16 sps:$4 sm:$0xff]  }
 0x6ef   : > { %14930 = vmatprep.subr.bf16.mxu1 %v19977_v53  ;;  %v20059_v53 = vld [vmem:[#allocation10 + $0x1928] ss:$16 sps:$4 sm:$0xff]  }
 0x6f1   : > { %14286 = vmatpush1.bf16.msra.mxu0 %v19972_v11  ;;  %v20064_v11 = vld [vmem:[#allocation10 + $0x1944] ss:$16 sps:$4 sm:$0xff]  }
 0x6f2   : > { %14931 = vmatpush1.bf16.msra.mxu1 %v19975_v9  ;;  %14287 = vmatprep.subr.bf16.mxu0 %v19980_v54  ;;  %v20067_v9 = vld [vmem:[#allocation10 + $0x194c] ss:$16 sps:$4 sm:$0xff]   ;;  %v20062_v54 = vld [vmem:[#allocation10 + $0x1940] ss:$16 sps:$4 sm:$0xff]  }
 0x6f3   : > { %14932 = vmatprep.subr.bf16.mxu1 %v19983_v8  ;;  %v20065_v8 = vld [vmem:[#allocation10 + $0x1948] ss:$16 sps:$4 sm:$0xff]  }
 0x6f5   : > { %14288 = vmatpush1.bf16.msra.mxu0 %v19978_v29  ;;  %v20070_v29 = vld [vmem:[#allocation10 + $0x1964] ss:$16 sps:$4 sm:$0xff]  }
 0x6f6   : > { %14933 = vmatpush1.bf16.msra.mxu1 %v19981_v22  ;;  %14289 = vmatprep.subr.bf16.mxu0 %v19986_v38  ;;  %v20073_v22 = vld [vmem:[#allocation10 + $0x196c] ss:$16 sps:$4 sm:$0xff]   ;;  %v20068_v38 = vld [vmem:[#allocation10 + $0x1960] ss:$16 sps:$4 sm:$0xff]  }
 0x6f7   : > { %14934 = vmatprep.subr.bf16.mxu1 %v19989_v32  ;;  %v20071_v32 = vld [vmem:[#allocation10 + $0x1968] ss:$16 sps:$4 sm:$0xff]  }
 0x6f9   : > { %14290 = vmatpush1.bf16.msra.mxu0 %v19984_v43  ;;  %v20076_v43 = vld [vmem:[#allocation10 + $0x1984] ss:$16 sps:$4 sm:$0xff]  }
 0x6fa   : > { %14935 = vmatpush1.bf16.msra.mxu1 %v19987_v10  ;;  %14291 = vmatprep.subr.bf16.mxu0 %v19992_v51  ;;  %v20079_v10 = vld [vmem:[#allocation10 + $0x198c] ss:$16 sps:$4 sm:$0xff]   ;;  %v20074_v51 = vld [vmem:[#allocation10 + $0x1980] ss:$16 sps:$4 sm:$0xff]  }
 0x6fb   : > { %14936 = vmatprep.subr.bf16.mxu1 %v19995_v30  ;;  %v20077_v30 = vld [vmem:[#allocation10 + $0x1988] ss:$16 sps:$4 sm:$0xff]  }
 0x6fd   : > { %14292 = vmatpush1.bf16.msra.mxu0 %v19990_v4  ;;  %v20082_v4 = vld [vmem:[#allocation10 + $0x19a4] ss:$16 sps:$4 sm:$0xff]  }
 0x6fe   : > { %14937 = vmatpush1.bf16.msra.mxu1 %v19993_v59  ;;  %14293 = vmatprep.subr.bf16.mxu0 %v19998_v14  ;;  %v20085_v59 = vld [vmem:[#allocation10 + $0x19ac] ss:$16 sps:$4 sm:$0xff]   ;;  %v20080_v14 = vld [vmem:[#allocation10 + $0x19a0] ss:$16 sps:$4 sm:$0xff]  }
 0x6ff   : > { %14938 = vmatprep.subr.bf16.mxu1 %v20001_v19  ;;  %v20083_v19 = vld [vmem:[#allocation10 + $0x19a8] ss:$16 sps:$4 sm:$0xff]  }
 0x701   : > { %14294 = vmatpush1.bf16.msra.mxu0 %v19996_v5  ;;  %v20088_v5 = vld [vmem:[#allocation10 + $0x19c4] ss:$16 sps:$4 sm:$0xff]  }
 0x702   : > { %14939 = vmatpush1.bf16.msra.mxu1 %v19999_v57  ;;  %14306 = vmatprep.subr.bf16.mxu0 %v20004_v52  ;;  %v20091_v57 = vld [vmem:[#allocation10 + $0x19cc] ss:$16 sps:$4 sm:$0xff]   ;;  %v20086_v52 = vld [vmem:[#allocation10 + $0x19c0] ss:$16 sps:$4 sm:$0xff]  }
 0x703   : > { %14951 = vmatprep.subr.bf16.mxu1 %v20007_v7  ;;  %v20089_v7 = vld [vmem:[#allocation10 + $0x19c8] ss:$16 sps:$4 sm:$0xff]  }
 0x704   : > { %14296 = vmatmul.mubr.bf16.vlgmr.msra.gmra.mrb[72].mxu0 %v8000_v27 }
 0x705   : > { %14941 = vmatmul.mubr.bf16.vlgmr.msra.gmra.mrb[72].mxu1 %v8000_v27  ;;  %14307 = vmatpush1.bf16.msra.mxu0 %v20002_v20  ;;  %v20094_v20 = vld [vmem:[#allocation10 + $0x19e4] ss:$16 sps:$4 sm:$0xff]   ;;  %v20092_v27 = vld [vmem:[#allocation10 + $0x19e0] ss:$16 sps:$4 sm:$0xff]  }
 0x706   : > { %14338 = vmatprep.mubr.bf16.mxu0 %v8003_v21  ;;  %14952 = vmatpush1.bf16.msra.mxu1 %v20005_v15  ;;  %v20097_v15 = vld [vmem:[#allocation10 + $0x19ec] ss:$16 sps:$4 sm:$0xff]  }
 0x707   : > { %14983 = vmatprep.mubr.bf16.mxu1 %v8003_v21  ;;  %14308 = vmatprep.subr.bf16.mxu0 %v20010_v26  ;;  %v20095_v26 = vld [vmem:[#allocation10 + $0x19e8] ss:$16 sps:$4 sm:$0xff]   ;;  %v20103_v21 = vld [vmem:[#allocation10 + $0x1a0c] ss:$16 sps:$4 sm:$0xff]  }
 0x708   : > { %14953 = vmatprep.subr.bf16.mxu1 %v20013_v31  ;;  %v20100_v31 = vld [vmem:[#allocation10 + $0x1a04] ss:$16 sps:$4 sm:$0xff]  }
 0x709   : > { %14309 = vmatpush1.bf16.msra.mxu0 %v20008_v56  ;;  %v20098_v56 = vld [vmem:[#allocation10 + $0x1a00] ss:$16 sps:$4 sm:$0xff]  }
 0x70a   : > { %14954 = vmatpush1.bf16.msra.mxu1 %v20011_v61  ;;  %14310 = vmatprep.subr.bf16.mxu0 %v20016_v33  ;;  %v20101_v61 = vld [vmem:[#allocation10 + $0x1a08] ss:$16 sps:$4 sm:$0xff]  }
 0x70b   : > { %14955 = vmatprep.subr.bf16.mxu1 %v20019_v6  ;;  %v8002_v33 = vld [vmem:[#allocation4 + $0xc0] sm:$0xff] }
 0x70c   : > { %v20106_v6 = vld [vmem:[#allocation10 + $0x1a24] ss:$16 sps:$4 sm:$0xff]  }
 0x70d   : > { %14311 = vmatpush1.bf16.msra.mxu0 %v20014_v34  ;;  %v20109_v34 = vld [vmem:[#allocation10 + $0x1a2c] ss:$16 sps:$4 sm:$0xff]  }
 0x70e   : > { %14956 = vmatpush1.bf16.msra.mxu1 %v20017_v37  ;;  %14312 = vmatprep.subr.bf16.mxu0 %v20022_v49  ;;  %v8005_v37 = vld [vmem:[#allocation4 + $0xd8] sm:$0xff] }
 0x70f   : > { %14957 = vmatprep.subr.bf16.mxu1 %v20025_v36  ;;  %v20104_v49 = vld [vmem:[#allocation10 + $0x1a20] ss:$16 sps:$4 sm:$0xff]   ;;  %v20107_v36 = vld [vmem:[#allocation10 + $0x1a28] ss:$16 sps:$4 sm:$0xff]  }
 0x711   : > { %14313 = vmatpush1.bf16.msra.mxu0 %v20020_v35  ;;  %v20112_v35 = vld [vmem:[#allocation10 + $0x1a44] ss:$16 sps:$4 sm:$0xff]  }
 0x712   : > { %14958 = vmatpush1.bf16.msra.mxu1 %v20023_v3  ;;  %14314 = vmatprep.subr.bf16.mxu0 %v20028_v16  ;;  %v20115_v3 = vld [vmem:[#allocation10 + $0x1a4c] ss:$16 sps:$4 sm:$0xff]   ;;  %v20110_v16 = vld [vmem:[#allocation10 + $0x1a40] ss:$16 sps:$4 sm:$0xff]  }
 0x713   : > { %14959 = vmatprep.subr.bf16.mxu1 %v20031_v47  ;;  %v20113_v47 = vld [vmem:[#allocation10 + $0x1a48] ss:$16 sps:$4 sm:$0xff]  }
 0x715   : > { %14315 = vmatpush1.bf16.msra.mxu0 %v20026_v55  ;;  %v20118_v55 = vld [vmem:[#allocation10 + $0x1a64] ss:$16 sps:$4 sm:$0xff]  }
 0x716   : > { %14960 = vmatpush1.bf16.msra.mxu1 %v20029_v39  ;;  %14316 = vmatprep.subr.bf16.mxu0 %v20034_v40  ;;  %v20121_v39 = vld [vmem:[#allocation10 + $0x1a6c] ss:$16 sps:$4 sm:$0xff]   ;;  %v20116_v40 = vld [vmem:[#allocation10 + $0x1a60] ss:$16 sps:$4 sm:$0xff]  }
 0x717   : > { %14961 = vmatprep.subr.bf16.mxu1 %v20037_v41  ;;  %v20119_v41 = vld [vmem:[#allocation10 + $0x1a68] ss:$16 sps:$4 sm:$0xff]  }
 0x719   : > { %14317 = vmatpush1.bf16.msra.mxu0 %v20032_v58  ;;  %v20124_v58 = vld [vmem:[#allocation10 + $0x1a84] ss:$16 sps:$4 sm:$0xff]  }
 0x71a   : > { %14962 = vmatpush1.bf16.msra.mxu1 %v20035_v23  ;;  %14318 = vmatprep.subr.bf16.mxu0 %v20040_v42  ;;  %v20127_v23 = vld [vmem:[#allocation10 + $0x1a8c] ss:$16 sps:$4 sm:$0xff]   ;;  %v20122_v42 = vld [vmem:[#allocation10 + $0x1a80] ss:$16 sps:$4 sm:$0xff]  }
 0x71b   : > { %14963 = vmatprep.subr.bf16.mxu1 %v20043_v24  ;;  %v20125_v24 = vld [vmem:[#allocation10 + $0x1a88] ss:$16 sps:$4 sm:$0xff]  }
 0x71d   : > { %14319 = vmatpush1.bf16.msra.mxu0 %v20038_v28  ;;  %v20130_v28 = vld [vmem:[#allocation10 + $0x1aa4] ss:$16 sps:$4 sm:$0xff]  }
 0x71e   : > { %14964 = vmatpush1.bf16.msra.mxu1 %v20041_v44  ;;  %14320 = vmatprep.subr.bf16.mxu0 %v20046_v13  ;;  %v20133_v44 = vld [vmem:[#allocation10 + $0x1aac] ss:$16 sps:$4 sm:$0xff]   ;;  %v20128_v13 = vld [vmem:[#allocation10 + $0x1aa0] ss:$16 sps:$4 sm:$0xff]  }
 0x71f   : > { %14965 = vmatprep.subr.bf16.mxu1 %v20049_v12  ;;  %v20131_v12 = vld [vmem:[#allocation10 + $0x1aa8] ss:$16 sps:$4 sm:$0xff]  }
 0x721   : > { %14321 = vmatpush1.bf16.msra.mxu0 %v20044_v17  ;;  %v20136_v17 = vld [vmem:[#allocation10 + $0x1ac4] ss:$16 sps:$4 sm:$0xff]  }
 0x722   : > { %14966 = vmatpush1.bf16.msra.mxu1 %v20047_v60  ;;  %14322 = vmatprep.subr.bf16.mxu0 %v20052_v18  ;;  %v20139_v60 = vld [vmem:[#allocation10 + $0x1acc] ss:$16 sps:$4 sm:$0xff]   ;;  %v20134_v18 = vld [vmem:[#allocation10 + $0x1ac0] ss:$16 sps:$4 sm:$0xff]  }
 0x723   : > { %14967 = vmatprep.subr.bf16.mxu1 %v20055_v2  ;;  %v20137_v2 = vld [vmem:[#allocation10 + $0x1ac8] ss:$16 sps:$4 sm:$0xff]  }
 0x725   : > { %14323 = vmatpush1.bf16.msra.mxu0 %v20050_v25  ;;  %v20142_v25 = vld [vmem:[#allocation10 + $0x1ae4] ss:$16 sps:$4 sm:$0xff]  }
 0x726   : > { %14968 = vmatpush1.bf16.msra.mxu1 %v20053_v48  ;;  %14324 = vmatprep.subr.bf16.mxu0 %v20058_v50  ;;  %v20145_v48 = vld [vmem:[#allocation10 + $0x1aec] ss:$16 sps:$4 sm:$0xff]   ;;  %v20140_v50 = vld [vmem:[#allocation10 + $0x1ae0] ss:$16 sps:$4 sm:$0xff]  }
 0x727   : > { %14969 = vmatprep.subr.bf16.mxu1 %v20061_v45  ;;  %v20143_v45 = vld [vmem:[#allocation10 + $0x1ae8] ss:$16 sps:$4 sm:$0xff]  }
 0x729   : > { %14325 = vmatpush1.bf16.msra.mxu0 %v20056_v46  ;;  %v20148_v46 = vld [vmem:[#allocation10 + $0x1b04] ss:$16 sps:$4 sm:$0xff]  }
 0x72a   : > { %14970 = vmatpush1.bf16.msra.mxu1 %v20059_v53  ;;  %14326 = vmatprep.subr.bf16.mxu0 %v20064_v11  ;;  %v20151_v53 = vld [vmem:[#allocation10 + $0x1b0c] ss:$16 sps:$4 sm:$0xff]   ;;  %v20146_v11 = vld [vmem:[#allocation10 + $0x1b00] ss:$16 sps:$4 sm:$0xff]  }
 0x72b   : > { %14971 = vmatprep.subr.bf16.mxu1 %v20067_v9  ;;  %v20149_v9 = vld [vmem:[#allocation10 + $0x1b08] ss:$16 sps:$4 sm:$0xff]  }
 0x72d   : > { %14327 = vmatpush1.bf16.msra.mxu0 %v20062_v54  ;;  %v20154_v54 = vld [vmem:[#allocation10 + $0x1b24] ss:$16 sps:$4 sm:$0xff]  }
 0x72e   : > { %14972 = vmatpush1.bf16.msra.mxu1 %v20065_v8  ;;  %14328 = vmatprep.subr.bf16.mxu0 %v20070_v29  ;;  %v20157_v8 = vld [vmem:[#allocation10 + $0x1b2c] ss:$16 sps:$4 sm:$0xff]   ;;  %v20152_v29 = vld [vmem:[#allocation10 + $0x1b20] ss:$16 sps:$4 sm:$0xff]  }
 0x72f   : > { %14973 = vmatprep.subr.bf16.mxu1 %v20073_v22  ;;  %v20155_v22 = vld [vmem:[#allocation10 + $0x1b28] ss:$16 sps:$4 sm:$0xff]  }
 0x731   : > { %14329 = vmatpush1.bf16.msra.mxu0 %v20068_v38  ;;  %v20160_v38 = vld [vmem:[#allocation10 + $0x1b44] ss:$16 sps:$4 sm:$0xff]  }
 0x732   : > { %14974 = vmatpush1.bf16.msra.mxu1 %v20071_v32  ;;  %14330 = vmatprep.subr.bf16.mxu0 %v20076_v43  ;;  %v20163_v32 = vld [vmem:[#allocation10 + $0x1b4c] ss:$16 sps:$4 sm:$0xff]   ;;  %v20158_v43 = vld [vmem:[#allocation10 + $0x1b40] ss:$16 sps:$4 sm:$0xff]  }
 0x733   : > { %14975 = vmatprep.subr.bf16.mxu1 %v20079_v10  ;;  %v20161_v10 = vld [vmem:[#allocation10 + $0x1b48] ss:$16 sps:$4 sm:$0xff]  }
 0x735   : > { %14331 = vmatpush1.bf16.msra.mxu0 %v20074_v51  ;;  %v20166_v51 = vld [vmem:[#allocation10 + $0x1b64] ss:$16 sps:$4 sm:$0xff]  }
 0x736   : > { %14976 = vmatpush1.bf16.msra.mxu1 %v20077_v30  ;;  %14332 = vmatprep.subr.bf16.mxu0 %v20082_v4  ;;  %v20169_v30 = vld [vmem:[#allocation10 + $0x1b6c] ss:$16 sps:$4 sm:$0xff]   ;;  %v20164_v4 = vld [vmem:[#allocation10 + $0x1b60] ss:$16 sps:$4 sm:$0xff]  }
 0x737   : > { %14977 = vmatprep.subr.bf16.mxu1 %v20085_v59  ;;  %v20167_v59 = vld [vmem:[#allocation10 + $0x1b68] ss:$16 sps:$4 sm:$0xff]  }
 0x739   : > { %14333 = vmatpush1.bf16.msra.mxu0 %v20080_v14  ;;  %v20172_v14 = vld [vmem:[#allocation10 + $0x1b84] ss:$16 sps:$4 sm:$0xff]  }
 0x73a   : > { %14978 = vmatpush1.bf16.msra.mxu1 %v20083_v19  ;;  %14334 = vmatprep.subr.bf16.mxu0 %v20088_v5  ;;  %v20175_v19 = vld [vmem:[#allocation10 + $0x1b8c] ss:$16 sps:$4 sm:$0xff]   ;;  %v20170_v5 = vld [vmem:[#allocation10 + $0x1b80] ss:$16 sps:$4 sm:$0xff]  }
 0x73b   : > { %14979 = vmatprep.subr.bf16.mxu1 %v20091_v57  ;;  %v20173_v57 = vld [vmem:[#allocation10 + $0x1b88] ss:$16 sps:$4 sm:$0xff]  }
 0x73d   : > { %14335 = vmatpush1.bf16.msra.mxu0 %v20086_v52  ;;  %v20178_v52 = vld [vmem:[#allocation10 + $0x1ba4] ss:$16 sps:$4 sm:$0xff]  }
 0x73e   : > { %14980 = vmatpush1.bf16.msra.mxu1 %v20089_v7  ;;  %14336 = vmatprep.subr.bf16.mxu0 %v20094_v20  ;;  %v20181_v7 = vld [vmem:[#allocation10 + $0x1bac] ss:$16 sps:$4 sm:$0xff]   ;;  %v20176_v20 = vld [vmem:[#allocation10 + $0x1ba0] ss:$16 sps:$4 sm:$0xff]  }
 0x73f   : > { %14981 = vmatprep.subr.bf16.mxu1 %v20097_v15  ;;  %v20179_v15 = vld [vmem:[#allocation10 + $0x1ba8] ss:$16 sps:$4 sm:$0xff]  }
 0x741   : > { %14337 = vmatpush1.bf16.msra.mxu0 %v20092_v27  ;;  %v20184_v27 = vld [vmem:[#allocation10 + $0x1bc4] ss:$16 sps:$4 sm:$0xff]  }
 0x742   : > { %14982 = vmatpush1.bf16.msra.mxu1 %v20095_v26  ;;  %14349 = vmatprep.subr.bf16.mxu0 %v20100_v31  ;;  %v20187_v26 = vld [vmem:[#allocation10 + $0x1bcc] ss:$16 sps:$4 sm:$0xff]   ;;  %v20182_v31 = vld [vmem:[#allocation10 + $0x1bc0] ss:$16 sps:$4 sm:$0xff]  }
 0x743   : > { %14994 = vmatprep.subr.bf16.mxu1 %v20103_v21  ;;  %v20185_v21 = vld [vmem:[#allocation10 + $0x1bc8] ss:$16 sps:$4 sm:$0xff]  }
 0x744   : > { %14339 = vmatmul.mubr.bf16.vlgmr.msra.gmra.mrb[72].mxu0 %v8002_v33 }
 0x745   : > { %14984 = vmatmul.mubr.bf16.vlgmr.msra.gmra.mrb[72].mxu1 %v8002_v33  ;;  %14350 = vmatpush1.bf16.msra.mxu0 %v20098_v56  ;;  %v20190_v56 = vld [vmem:[#allocation10 + $0x1be4] ss:$16 sps:$4 sm:$0xff]   ;;  %v20188_v33 = vld [vmem:[#allocation10 + $0x1be0] ss:$16 sps:$4 sm:$0xff]  }
 0x746   : > { %14381 = vmatprep.mubr.bf16.mxu0 %v8005_v37  ;;  %14995 = vmatpush1.bf16.msra.mxu1 %v20101_v61  ;;  %v20193_v61 = vld [vmem:[#allocation10 + $0x1bec] ss:$16 sps:$4 sm:$0xff]  }
 0x747   : > { %15026 = vmatprep.mubr.bf16.mxu1 %v8005_v37  ;;  %14351 = vmatprep.subr.bf16.mxu0 %v20106_v6  ;;  %v20191_v6 = vld [vmem:[#allocation10 + $0x1be8] ss:$16 sps:$4 sm:$0xff]   ;;  %v20199_v37 = vld [vmem:[#allocation10 + $0x1c0c] ss:$16 sps:$4 sm:$0xff]  }
 0x748   : > { %14996 = vmatprep.subr.bf16.mxu1 %v20109_v34  ;;  %v20196_v34 = vld [vmem:[#allocation10 + $0x1c04] ss:$16 sps:$4 sm:$0xff]  }
 0x749   : > { %14352 = vmatpush1.bf16.msra.mxu0 %v20104_v49  ;;  %v20194_v49 = vld [vmem:[#allocation10 + $0x1c00] ss:$16 sps:$4 sm:$0xff]  }
 0x74a   : > { %14997 = vmatpush1.bf16.msra.mxu1 %v20107_v36  ;;  %14353 = vmatprep.subr.bf16.mxu0 %v20112_v35  ;;  %v20197_v36 = vld [vmem:[#allocation10 + $0x1c08] ss:$16 sps:$4 sm:$0xff]  }
 0x74b   : > { %14998 = vmatprep.subr.bf16.mxu1 %v20115_v3  ;;  %v8004_v35 = vld [vmem:[#allocation4 + $0xd0] sm:$0xff] }
 0x74c   : > { %v20202_v3 = vld [vmem:[#allocation10 + $0x1c24] ss:$16 sps:$4 sm:$0xff]  }
 0x74d   : > { %14354 = vmatpush1.bf16.msra.mxu0 %v20110_v16  ;;  %v20205_v16 = vld [vmem:[#allocation10 + $0x1c2c] ss:$16 sps:$4 sm:$0xff]  }
 0x74e   : > { %14999 = vmatpush1.bf16.msra.mxu1 %v20113_v47  ;;  %14355 = vmatprep.subr.bf16.mxu0 %v20118_v55  ;;  %v8007_v47 = vld [vmem:[#allocation4 + $0xe8] sm:$0xff] }
 0x74f   : > { %15000 = vmatprep.subr.bf16.mxu1 %v20121_v39  ;;  %v20200_v55 = vld [vmem:[#allocation10 + $0x1c20] ss:$16 sps:$4 sm:$0xff]   ;;  %v20203_v39 = vld [vmem:[#allocation10 + $0x1c28] ss:$16 sps:$4 sm:$0xff]  }
 0x751   : > { %14356 = vmatpush1.bf16.msra.mxu0 %v20116_v40  ;;  %v20208_v40 = vld [vmem:[#allocation10 + $0x1c44] ss:$16 sps:$4 sm:$0xff]  }
 0x752   : > { %15001 = vmatpush1.bf16.msra.mxu1 %v20119_v41  ;;  %14357 = vmatprep.subr.bf16.mxu0 %v20124_v58  ;;  %v20211_v41 = vld [vmem:[#allocation10 + $0x1c4c] ss:$16 sps:$4 sm:$0xff]   ;;  %v20206_v58 = vld [vmem:[#allocation10 + $0x1c40] ss:$16 sps:$4 sm:$0xff]  }
 0x753   : > { %15002 = vmatprep.subr.bf16.mxu1 %v20127_v23  ;;  %v20209_v23 = vld [vmem:[#allocation10 + $0x1c48] ss:$16 sps:$4 sm:$0xff]  }
 0x755   : > { %14358 = vmatpush1.bf16.msra.mxu0 %v20122_v42  ;;  %v20214_v42 = vld [vmem:[#allocation10 + $0x1c64] ss:$16 sps:$4 sm:$0xff]  }
 0x756   : > { %15003 = vmatpush1.bf16.msra.mxu1 %v20125_v24  ;;  %14359 = vmatprep.subr.bf16.mxu0 %v20130_v28  ;;  %v20217_v24 = vld [vmem:[#allocation10 + $0x1c6c] ss:$16 sps:$4 sm:$0xff]   ;;  %v20212_v28 = vld [vmem:[#allocation10 + $0x1c60] ss:$16 sps:$4 sm:$0xff]  }
 0x757   : > { %15004 = vmatprep.subr.bf16.mxu1 %v20133_v44  ;;  %v20215_v44 = vld [vmem:[#allocation10 + $0x1c68] ss:$16 sps:$4 sm:$0xff]  }
 0x759   : > { %14360 = vmatpush1.bf16.msra.mxu0 %v20128_v13  ;;  %v20220_v13 = vld [vmem:[#allocation10 + $0x1c84] ss:$16 sps:$4 sm:$0xff]  }
 0x75a   : > { %15005 = vmatpush1.bf16.msra.mxu1 %v20131_v12  ;;  %14361 = vmatprep.subr.bf16.mxu0 %v20136_v17  ;;  %v20223_v12 = vld [vmem:[#allocation10 + $0x1c8c] ss:$16 sps:$4 sm:$0xff]   ;;  %v20218_v17 = vld [vmem:[#allocation10 + $0x1c80] ss:$16 sps:$4 sm:$0xff]  }
 0x75b   : > { %15006 = vmatprep.subr.bf16.mxu1 %v20139_v60  ;;  %v20221_v60 = vld [vmem:[#allocation10 + $0x1c88] ss:$16 sps:$4 sm:$0xff]  }
 0x75d   : > { %14362 = vmatpush1.bf16.msra.mxu0 %v20134_v18  ;;  %v20226_v18 = vld [vmem:[#allocation10 + $0x1ca4] ss:$16 sps:$4 sm:$0xff]  }
 0x75e   : > { %15007 = vmatpush1.bf16.msra.mxu1 %v20137_v2  ;;  %14363 = vmatprep.subr.bf16.mxu0 %v20142_v25  ;;  %v20229_v2 = vld [vmem:[#allocation10 + $0x1cac] ss:$16 sps:$4 sm:$0xff]   ;;  %v20224_v25 = vld [vmem:[#allocation10 + $0x1ca0] ss:$16 sps:$4 sm:$0xff]  }
 0x75f   : > { %15008 = vmatprep.subr.bf16.mxu1 %v20145_v48  ;;  %v20227_v48 = vld [vmem:[#allocation10 + $0x1ca8] ss:$16 sps:$4 sm:$0xff]  }
 0x761   : > { %14364 = vmatpush1.bf16.msra.mxu0 %v20140_v50  ;;  %v20232_v50 = vld [vmem:[#allocation10 + $0x1cc4] ss:$16 sps:$4 sm:$0xff]  }
 0x762   : > { %15009 = vmatpush1.bf16.msra.mxu1 %v20143_v45  ;;  %14365 = vmatprep.subr.bf16.mxu0 %v20148_v46  ;;  %v20235_v45 = vld [vmem:[#allocation10 + $0x1ccc] ss:$16 sps:$4 sm:$0xff]   ;;  %v20230_v46 = vld [vmem:[#allocation10 + $0x1cc0] ss:$16 sps:$4 sm:$0xff]  }
 0x763   : > { %15010 = vmatprep.subr.bf16.mxu1 %v20151_v53  ;;  %v20233_v53 = vld [vmem:[#allocation10 + $0x1cc8] ss:$16 sps:$4 sm:$0xff]  }
 0x765   : > { %14366 = vmatpush1.bf16.msra.mxu0 %v20146_v11  ;;  %v20238_v11 = vld [vmem:[#allocation10 + $0x1ce4] ss:$16 sps:$4 sm:$0xff]  }
 0x766   : > { %15011 = vmatpush1.bf16.msra.mxu1 %v20149_v9  ;;  %14367 = vmatprep.subr.bf16.mxu0 %v20154_v54  ;;  %v20241_v9 = vld [vmem:[#allocation10 + $0x1cec] ss:$16 sps:$4 sm:$0xff]   ;;  %v20236_v54 = vld [vmem:[#allocation10 + $0x1ce0] ss:$16 sps:$4 sm:$0xff]  }
 0x767   : > { %15012 = vmatprep.subr.bf16.mxu1 %v20157_v8  ;;  %v20239_v8 = vld [vmem:[#allocation10 + $0x1ce8] ss:$16 sps:$4 sm:$0xff]  }
 0x769   : > { %14368 = vmatpush1.bf16.msra.mxu0 %v20152_v29  ;;  %v20244_v29 = vld [vmem:[#allocation10 + $0x1d04] ss:$16 sps:$4 sm:$0xff]  }
 0x76a   : > { %15013 = vmatpush1.bf16.msra.mxu1 %v20155_v22  ;;  %14369 = vmatprep.subr.bf16.mxu0 %v20160_v38  ;;  %v20247_v22 = vld [vmem:[#allocation10 + $0x1d0c] ss:$16 sps:$4 sm:$0xff]   ;;  %v20242_v38 = vld [vmem:[#allocation10 + $0x1d00] ss:$16 sps:$4 sm:$0xff]  }
 0x76b   : > { %15014 = vmatprep.subr.bf16.mxu1 %v20163_v32  ;;  %v20245_v32 = vld [vmem:[#allocation10 + $0x1d08] ss:$16 sps:$4 sm:$0xff]  }
 0x76d   : > { %14370 = vmatpush1.bf16.msra.mxu0 %v20158_v43  ;;  %v20250_v43 = vld [vmem:[#allocation10 + $0x1d24] ss:$16 sps:$4 sm:$0xff]  }
 0x76e   : > { %15015 = vmatpush1.bf16.msra.mxu1 %v20161_v10  ;;  %14371 = vmatprep.subr.bf16.mxu0 %v20166_v51  ;;  %v20253_v10 = vld [vmem:[#allocation10 + $0x1d2c] ss:$16 sps:$4 sm:$0xff]   ;;  %v20248_v51 = vld [vmem:[#allocation10 + $0x1d20] ss:$16 sps:$4 sm:$0xff]  }
 0x76f   : > { %15016 = vmatprep.subr.bf16.mxu1 %v20169_v30  ;;  %v20251_v30 = vld [vmem:[#allocation10 + $0x1d28] ss:$16 sps:$4 sm:$0xff]  }
 0x771   : > { %14372 = vmatpush1.bf16.msra.mxu0 %v20164_v4  ;;  %v20256_v4 = vld [vmem:[#allocation10 + $0x1d44] ss:$16 sps:$4 sm:$0xff]  }
 0x772   : > { %15017 = vmatpush1.bf16.msra.mxu1 %v20167_v59  ;;  %14373 = vmatprep.subr.bf16.mxu0 %v20172_v14  ;;  %v20259_v59 = vld [vmem:[#allocation10 + $0x1d4c] ss:$16 sps:$4 sm:$0xff]   ;;  %v20254_v14 = vld [vmem:[#allocation10 + $0x1d40] ss:$16 sps:$4 sm:$0xff]  }
 0x773   : > { %15018 = vmatprep.subr.bf16.mxu1 %v20175_v19  ;;  %v20257_v19 = vld [vmem:[#allocation10 + $0x1d48] ss:$16 sps:$4 sm:$0xff]  }
 0x775   : > { %14374 = vmatpush1.bf16.msra.mxu0 %v20170_v5  ;;  %v20262_v5 = vld [vmem:[#allocation10 + $0x1d64] ss:$16 sps:$4 sm:$0xff]  }
 0x776   : > { %15019 = vmatpush1.bf16.msra.mxu1 %v20173_v57  ;;  %14375 = vmatprep.subr.bf16.mxu0 %v20178_v52  ;;  %v20265_v57 = vld [vmem:[#allocation10 + $0x1d6c] ss:$16 sps:$4 sm:$0xff]   ;;  %v20260_v52 = vld [vmem:[#allocation10 + $0x1d60] ss:$16 sps:$4 sm:$0xff]  }
 0x777   : > { %15020 = vmatprep.subr.bf16.mxu1 %v20181_v7  ;;  %v20263_v7 = vld [vmem:[#allocation10 + $0x1d68] ss:$16 sps:$4 sm:$0xff]  }
 0x779   : > { %14376 = vmatpush1.bf16.msra.mxu0 %v20176_v20  ;;  %v20268_v20 = vld [vmem:[#allocation10 + $0x1d84] ss:$16 sps:$4 sm:$0xff]  }
 0x77a   : > { %15021 = vmatpush1.bf16.msra.mxu1 %v20179_v15  ;;  %14377 = vmatprep.subr.bf16.mxu0 %v20184_v27  ;;  %v20271_v15 = vld [vmem:[#allocation10 + $0x1d8c] ss:$16 sps:$4 sm:$0xff]   ;;  %v20266_v27 = vld [vmem:[#allocation10 + $0x1d80] ss:$16 sps:$4 sm:$0xff]  }
 0x77b   : > { %15022 = vmatprep.subr.bf16.mxu1 %v20187_v26  ;;  %v20269_v26 = vld [vmem:[#allocation10 + $0x1d88] ss:$16 sps:$4 sm:$0xff]  }
 0x77d   : > { %14378 = vmatpush1.bf16.msra.mxu0 %v20182_v31  ;;  %v20274_v31 = vld [vmem:[#allocation10 + $0x1da4] ss:$16 sps:$4 sm:$0xff]  }
 0x77e   : > { %15023 = vmatpush1.bf16.msra.mxu1 %v20185_v21  ;;  %14379 = vmatprep.subr.bf16.mxu0 %v20190_v56  ;;  %v20277_v21 = vld [vmem:[#allocation10 + $0x1dac] ss:$16 sps:$4 sm:$0xff]   ;;  %v20272_v56 = vld [vmem:[#allocation10 + $0x1da0] ss:$16 sps:$4 sm:$0xff]  }
 0x77f   : > { %15024 = vmatprep.subr.bf16.mxu1 %v20193_v61  ;;  %v20275_v61 = vld [vmem:[#allocation10 + $0x1da8] ss:$16 sps:$4 sm:$0xff]  }
 0x781   : > { %14380 = vmatpush1.bf16.msra.mxu0 %v20188_v33  ;;  %v20280_v33 = vld [vmem:[#allocation10 + $0x1dc4] ss:$16 sps:$4 sm:$0xff]  }
 0x782   : > { %15025 = vmatpush1.bf16.msra.mxu1 %v20191_v6  ;;  %14392 = vmatprep.subr.bf16.mxu0 %v20196_v34  ;;  %v20283_v6 = vld [vmem:[#allocation10 + $0x1dcc] ss:$16 sps:$4 sm:$0xff]   ;;  %v20278_v34 = vld [vmem:[#allocation10 + $0x1dc0] ss:$16 sps:$4 sm:$0xff]  }
 0x783   : > { %15037 = vmatprep.subr.bf16.mxu1 %v20199_v37  ;;  %v20281_v37 = vld [vmem:[#allocation10 + $0x1dc8] ss:$16 sps:$4 sm:$0xff]  }
 0x784   : > { %14382 = vmatmul.mubr.bf16.vlgmr.msra.gmra.mrb[72].mxu0 %v8004_v35 }
 0x785   : > { %15027 = vmatmul.mubr.bf16.vlgmr.msra.gmra.mrb[72].mxu1 %v8004_v35  ;;  %14393 = vmatpush1.bf16.msra.mxu0 %v20194_v49  ;;  %v20286_v49 = vld [vmem:[#allocation10 + $0x1de4] ss:$16 sps:$4 sm:$0xff]   ;;  %v20284_v35 = vld [vmem:[#allocation10 + $0x1de0] ss:$16 sps:$4 sm:$0xff]  }
 0x786   : > { %14424 = vmatprep.mubr.bf16.mxu0 %v8007_v47  ;;  %15038 = vmatpush1.bf16.msra.mxu1 %v20197_v36  ;;  %v20289_v36 = vld [vmem:[#allocation10 + $0x1dec] ss:$16 sps:$4 sm:$0xff]  }
 0x787   : > { %15069 = vmatprep.mubr.bf16.mxu1 %v8007_v47  ;;  %14394 = vmatprep.subr.bf16.mxu0 %v20202_v3  ;;  %v20287_v3 = vld [vmem:[#allocation10 + $0x1de8] ss:$16 sps:$4 sm:$0xff]  }
 0x788   : > { %15039 = vmatprep.subr.bf16.mxu1 %v20205_v16  ;;  %v20290_v16 = vld [vmem:[#allocation13 + $0x40] sm:$0xff]  }
 0x789   : > { %14395 = vmatpush1.bf16.msra.mxu0 %v20200_v55  ;;  %v20291_v47 = vld [vmem:[#allocation13] sm:$0xff]   ;;  %v20292_v55 = vld [vmem:[#allocation13 + $0x48] sm:$0xff]  }
 0x78a   : > { %15040 = vmatpush1.bf16.msra.mxu1 %v20203_v39  ;;  %14396 = vmatprep.subr.bf16.mxu0 %v20208_v40  ;;  %v8006_v39 = vld [vmem:[#allocation4 + $0xe0] sm:$0xff]  ;;  %v20293_v40 = vld [vmem:[#allocation13 + $0x8] sm:$0xff]  }
 0x78b   : > { %15041 = vmatprep.subr.bf16.mxu1 %v20211_v41  ;;  %v20294_v41 = vld [vmem:[#allocation13 + $0x50] sm:$0xff]  }
 0x78d   : > { %14397 = vmatpush1.bf16.msra.mxu0 %v20206_v58  ;;  %v20295_v58 = vld [vmem:[#allocation13 + $0x10] sm:$0xff]  }
 0x78e   : > { %15042 = vmatpush1.bf16.msra.mxu1 %v20209_v23  ;;  %14398 = vmatprep.subr.bf16.mxu0 %v20214_v42  ;;  %v20296_v23 = vld [vmem:[#allocation13 + $0x58] sm:$0xff]  }
 0x78f   : > { %15043 = vmatprep.subr.bf16.mxu1 %v20217_v24  ;;  %v20297_v42 = vld [vmem:[#allocation13 + $0x18] sm:$0xff]   ;;  %v20298_v24 = vld [vmem:[#allocation13 + $0x60] sm:$0xff]  }
 0x791   : > { %14399 = vmatpush1.bf16.msra.mxu0 %v20212_v28  ;;  %v20299_v28 = vld [vmem:[#allocation13 + $0x20] sm:$0xff]  }
 0x792   : > { %15044 = vmatpush1.bf16.msra.mxu1 %v20215_v44  ;;  %14400 = vmatprep.subr.bf16.mxu0 %v20220_v13  ;;  %v20300_v44 = vld [vmem:[#allocation13 + $0x68] sm:$0xff]  }
 0x793   : > { %15045 = vmatprep.subr.bf16.mxu1 %v20223_v12  ;;  %v20301_v13 = vld [vmem:[#allocation13 + $0x28] sm:$0xff]   ;;  %v20302_v12 = vld [vmem:[#allocation13 + $0x70] sm:$0xff]  }
 0x795   : > { %14401 = vmatpush1.bf16.msra.mxu0 %v20218_v17  ;;  %v20303_v17 = vld [vmem:[#allocation13 + $0x30] sm:$0xff]  }
 0x796   : > { %15046 = vmatpush1.bf16.msra.mxu1 %v20221_v60  ;;  %14402 = vmatprep.subr.bf16.mxu0 %v20226_v18  ;;  %v20304_v60 = vld [vmem:[#allocation13 + $0x78] sm:$0xff]  }
 0x797   : > { %15047 = vmatprep.subr.bf16.mxu1 %v20229_v2  ;;  %v20305_v18 = vld [vmem:[#allocation13 + $0x38] sm:$0xff]  }
 0x798   : > { %v8968_v2 = vld [vmem:[#allocation11] sm:$0xf] }
 0x799   : > { %14403 = vmatpush1.bf16.msra.mxu0 %v20224_v25  ;;  %v8973_v25 = vrot.slane %v8968_v2, %v20993_v62 }
 0x79a   : > { %15048 = vmatpush1.bf16.msra.mxu1 %v20227_v48  ;;  %14404 = vmatprep.subr.bf16.mxu0 %v20232_v50  ;;  %v8981_v48 = vrot.slane %v8968_v2, %v20996_v63  ;;  %v8977_v50 = vrot.slane %v8968_v2, %v20999_v0 }
 0x79b   : > { %15049 = vmatprep.subr.bf16.mxu1 %v20235_v45  ;;  %v8985_v45 = vrot.slane %v8968_v2, %v21002_v1 }
 0x79d   : > { %14405 = vmatpush1.bf16.msra.mxu0 %v20230_v46 }
 0x79e   : > { %15050 = vmatpush1.bf16.msra.mxu1 %v20233_v53  ;;  %14406 = vmatprep.subr.bf16.mxu0 %v20238_v11 }
 0x79f   : > { %15051 = vmatprep.subr.bf16.mxu1 %v20241_v9 }
 0x7a1   : > { %14407 = vmatpush1.bf16.msra.mxu0 %v20236_v54 }
 0x7a2   : > { %15052 = vmatpush1.bf16.msra.mxu1 %v20239_v8  ;;  %14408 = vmatprep.subr.bf16.mxu0 %v20244_v29 }
 0x7a3   : > { %15053 = vmatprep.subr.bf16.mxu1 %v20247_v22 }
 0x7a5   : > { %14409 = vmatpush1.bf16.msra.mxu0 %v20242_v38 }
 0x7a6   : > { %15054 = vmatpush1.bf16.msra.mxu1 %v20245_v32  ;;  %14410 = vmatprep.subr.bf16.mxu0 %v20250_v43 }
 0x7a7   : > { %15055 = vmatprep.subr.bf16.mxu1 %v20253_v10 }
 0x7a9   : > { %14411 = vmatpush1.bf16.msra.mxu0 %v20248_v51 }
 0x7aa   : > { %15056 = vmatpush1.bf16.msra.mxu1 %v20251_v30  ;;  %14412 = vmatprep.subr.bf16.mxu0 %v20256_v4 }
 0x7ab   : > { %15057 = vmatprep.subr.bf16.mxu1 %v20259_v59 }
 0x7ad   : > { %14413 = vmatpush1.bf16.msra.mxu0 %v20254_v14 }
 0x7ae   : > { %15058 = vmatpush1.bf16.msra.mxu1 %v20257_v19  ;;  %14414 = vmatprep.subr.bf16.mxu0 %v20262_v5 }
 0x7af   : > { %15059 = vmatprep.subr.bf16.mxu1 %v20265_v57 }
 0x7b1   : > { %14415 = vmatpush1.bf16.msra.mxu0 %v20260_v52 }
 0x7b2   : > { %15060 = vmatpush1.bf16.msra.mxu1 %v20263_v7  ;;  %14416 = vmatprep.subr.bf16.mxu0 %v20268_v20 }
 0x7b3   : > { %15061 = vmatprep.subr.bf16.mxu1 %v20271_v15 }
 0x7b5   : > { %14417 = vmatpush1.bf16.msra.mxu0 %v20266_v27 }
 0x7b6   : > { %15062 = vmatpush1.bf16.msra.mxu1 %v20269_v26  ;;  %14418 = vmatprep.subr.bf16.mxu0 %v20274_v31 }
 0x7b7   : > { %15063 = vmatprep.subr.bf16.mxu1 %v20277_v21 }
 0x7b9   : > { %14419 = vmatpush1.bf16.msra.mxu0 %v20272_v56 }
 0x7ba   : > { %15064 = vmatpush1.bf16.msra.mxu1 %v20275_v61  ;;  %14420 = vmatprep.subr.bf16.mxu0 %v20280_v33  ;;  %v17097_v61 = vld [vmem:[#allocation14] ss:$0 sm:$0xff] }
 0x7bb   : > { %15065 = vmatprep.subr.bf16.mxu1 %v20283_v6 }
 0x7bd   : > { %14421 = vmatpush1.bf16.msra.mxu0 %v20278_v34 }
 0x7be   : > { %15066 = vmatpush1.bf16.msra.mxu1 %v20281_v37  ;;  %14422 = vmatprep.subr.bf16.mxu0 %v20286_v49 }
 0x7bf   : > { %15067 = vmatprep.subr.bf16.mxu1 %v20289_v36 }
 0x7c1   : > { %14423 = vmatpush1.bf16.msra.mxu0 %v20284_v35 }
 0x7c2   : > { %15068 = vmatpush1.bf16.msra.mxu1 %v20287_v3  ;;  %17118 = vmatprep.subr.bf16.mxu0 %v20290_v16 }
 0x7c4   : > { %14425 = vmatmul.mubr.bf16.vlgmr.msra.gmra.mrb[72].mxu0 %v8006_v39 }
 0x7c5   : > { %15070 = vmatmul.mubr.bf16.vlgmr.msra.gmra.mrb[72].mxu1 %v8006_v39  ;;  %17119 = vmatpush3.bf16.msra.mxu0 %v20291_v47 }
 0x7c6   : > { %17120 = vmatprep.subr.bf16.mxu0 %v20292_v55 }
 0x7c9   : > { %17121 = vmatpush3.bf16.msra.mxu0 %v20293_v40 }
 0x7ca   : > { %17122 = vmatprep.subr.bf16.mxu0 %v20294_v41 }
 0x7cd   : > { %17123 = vmatpush3.bf16.msra.mxu0 %v20295_v58 }
 0x7ce   : > { %17124 = vmatprep.subr.bf16.mxu0 %v20296_v23 }
 0x7d1   : > { %17125 = vmatpush3.bf16.msra.mxu0 %v20297_v42 }
 0x7d2   : > { %17126 = vmatprep.subr.bf16.mxu0 %v20298_v24 }
 0x7d5   : > { %17127 = vmatpush3.bf16.msra.mxu0 %v20299_v28 }
 0x7d6   : > { %17128 = vmatprep.subr.bf16.mxu0 %v20300_v44 }
 0x7d9   : > { %17129 = vmatpush3.bf16.msra.mxu0 %v20301_v13 }
 0x7da   : > { %17130 = vmatprep.subr.bf16.mxu0 %v20302_v12 }
 0x7dd   : > { %17131 = vmatpush3.bf16.msra.mxu0 %v20303_v17 }
 0x7de   : > { %17132 = vmatprep.subr.bf16.mxu0 %v20304_v60 }
 0x7e1   : > { %17133 = vmatpush3.bf16.msra.mxu0 %v20305_v18 }
 0x897   : > { %v14426_v46 = vpop.f32.mrb[72].mxu0 }
 0x898   : > { %v17140_v53 = vadd.f32 %v14426_v46, %v8973_v25  ;;  %v15071_v11 = vpop.f32.mrb[72].mxu1  ;;  %v14428_v9 = vpop.f32.mrb[73].mxu0 }
 0x899   : > { %v17144_v54 = vadd.f32 %v15071_v11, %v8981_v48  ;;  %v17141_v8 = vadd.f32 %v14428_v9, %v8977_v50  ;;  %v15073_v29 = vpop.f32.mrb[73].mxu1  ;;  %v14430_v22 = vpop.f32.mrb[74].mxu0 }
 0x89a   : > { %v17145_v38 = vadd.f32 %v15073_v29, %v8985_v45  ;;  %v17142_v32 = vadd.f32 %v14430_v22, %v8973_v25  ;;  %v15075_v43 = vpop.f32.mrb[74].mxu1  ;;  %v14432_v10 = vpop.f32.mrb[75].mxu0  ;;  %v15080_v63 = vmax.f32 %v17140_v53, 0.0 }
 0x89b   : > { %v17146_v51 = vadd.f32 %v15075_v43, %v8981_v48  ;;  %v17143_v62 = vadd.f32 %v14432_v10, %v8977_v50  ;;  %v15077_v30 = vpop.f32.mrb[75].mxu1  ;;  %v15082_v59 = vmax.f32 %v17144_v54, 0.0  ;;  %v15081_v1 = vmax.f32 %v17141_v8, 0.0 }
 0x89c   : > { %v15084_v4 = vmax.f32 %v17142_v32, 0.0  ;;  %v17147_v0 = vadd.f32 %v15077_v30, %v8985_v45  ;;  %v15083_v5 = vmax.f32 %v17145_v38, 0.0 }
 0x89d   : > { %v15086_v14 = vmax.f32 %v17146_v51, 0.0  ;;  %v15085_v19 = vmax.f32 %v17143_v62, 0.0 }
 0x89e   : > { %v15088_v57 = vmax.f32 %v15080_v63, %v15084_v4  ;;  %v15087_v52 = vmax.f32 %v17147_v0, 0.0 }
 0x89f   : > { %v15090_v7 = vmax.f32 %v15082_v59, %v15086_v14  ;;  %v15089_v20 = vmax.f32 %v15081_v1, %v15085_v19 }
 0x8a0   : > { %v15091_v15 = vmax.f32 %v15083_v5, %v15087_v52 }
 0x8a1   : > { %v15092_v27 = vmax.f32 %v15088_v57, %v15090_v7 }
 0x8a2   : > { %v15093_v26 = vmax.f32 %v15089_v20, %v15091_v15 }
 0x8a3   : > { %v15094_v21 = vpack.c.bf16 %v15092_v27, %v15092_v27 }
 0x8a4   : > { %v15095_v31 = vpack.c.bf16 %v15093_v26, %v15093_v26 }
 0x8a6   : > { %15263 = vmatprep.mubr.bf16.mxu0 %v15095_v31 }
 0x8a7   : > { %15264 = vmatmul.mubr.bf16.vlgmr.msra.gmra.mrb[76].mxu0 %v15094_v21 }
 0x97a   : > { %v17134_v56 = vpop.f32.mrb[76].mxu0 }
 0x97b   : > { %v17135_v33 = vpop.f32.mrb[77].mxu0 }
 0x97c   : > { %v17136_v6 = vadd.f32 %v17135_v33, %v17134_v56  ;;  %v17137_v34 = vpop.f32.mrb[78].mxu0 }
 0x97d   : > { %v17138_v37 = vpop.f32.mrb[79].mxu0 }
 0x97e   : > { %v15266_v49 = vadd.f32 %v17136_v6, %v17097_v61 }
 0x980   : > { %15271 = vst [vmem:[%s353_s16] sm:$0xff] %v15266_v49 }
 0x981   : > { %20572 = shalt.err (!%p20569_p6)
}
 0x982   : > { %s20573_s13 = scalar_lea.hbm %s21392_s29, 128  ;;  %s20577_s4 = scalar_lea.hbm %s21441_s7, 256 }
 0x983   : > { %p20574_p5 = scmp.ne.s32.totalorder %s21392_s29, %s20573_s13  ;;  %p20578_p10 = scmp.lt.u32.totalorder %s21392_s29, %s21441_s7 }
 0x984   : > { %p20579_p2 = scmp.lt.u32.totalorder %s20577_s4, %s20573_s13  ;;  %p20581_p4 = scmp.lt.u32.totalorder %s20573_s13, %s21392_s29 }
 0x985   : > { %p20575_p9 = pnand %p20574_p5, %p21464_p7 }
 0x986   : > { %p20580_p3 = por %p20579_p2, %p20578_p10 }
 0x987   : > { %p20576_p12 = pneg %p20575_p9 }
 0x988   : > { %p20582_p8 = por %p20581_p4, %p20580_p3 }
 0x98a   : > { %p20583_p11 = pnand %p20582_p8, %p20576_p12 }
 0x98c   : > { %20586 = shalt.err (!%p20583_p11)
}
 0x98d   : > { %17717 = dma.vmem_to_hbm [thread:$0]  (%p21464_p7), %s21394_s19, 128, %s21392_s29, %s15273_s22  }
 0x98e PF: > { %p17754_p13 = scmp.ge.s32.totalorder %s20637_s27, 2  ;;  %s15298_s8 = sand.u32 1, %s20625_s24  }
 0x98f   : > { %p21465_p1 = scmp.ne.s32.totalorder %s21449_s12, 0  ;;  %s15299_s14 = scalar_lea.sflag [#allocation7], %s15298_s8 }
 0x991   : > { %p17739_p0 = pnand %p17754_p13, %p21465_p1 }
 0x993   : > { %20620 = dma.done.wait (!%p17739_p0), %s15299_s14, 128  }
 0x994   : > { %20622 = vsyncadd (!%p17739_p0), %s15299_s14, 4294967168  ;;  %s21466_s16 = sld [smem:[#allocation22_spill]]  ;;  %p21_p6 = scmp.ge.s32.totalorder %s20718_s30, 4  }
 0x995   : > { %s21467_s24 = smov %s20629_s25  ;;  %s21468_s25 = smov %s20633_s26 }
 0x996   : > { %s21470_s27 = smov %s20718_s30  ;;  %23 = sbr.rel (!%p21_p6) target bundleno = 10 (0xa), region = 108 }
 0x99a   : > { %s21469_s26 = smov %s21466_s16 }
 0x99d   :  { %15304 = vsyncpa [#allocation6], 1 }
 0x99e   :  { %15306 = vsyncpa [#allocation6 + $0x1], 1 }
 0x99f   :  { %15307 = vsyncpa [#allocation9], 1 }
 0x9a0   :  { %15308 = vsyncpa [#allocation12], 1 }
 0x9a1   :  { %15309 = vsyncpa [#allocation15], 1 }
 0x9a2   :  { %15310 = vsyncpa [#allocation7], 1 }
 0x9a3   :  { %15312 = vsyncpa [#allocation7 + $0x1], 1 }

</bundles_post_ra>
